<compile_context>
chip_gen: v5e
topology: v5e:2x2
jax: 0.10.0
libtpu: 0.0.40
codegen_flags: <defaults>
</compile_context>

<pallas_src>
import functools

import numpy as np

import jax
import jax.numpy as jnp
from jax.experimental import pallas as pl
from jax.experimental.pallas import tpu as pltpu


# --------------------------------------------------------------------------
# static helpers (host side)
# --------------------------------------------------------------------------
def _shift_masks(B, H, W, K):
    """Per-tap lane shifts and boundary masks for a KxK 'same' convolution on
    the flattened-pixel layout p = b*H*W + y*W + x (pixels live in lanes)."""
    pad = K // 2
    P = B * H * W
    idx = np.arange(P)
    yy = (idx % (H * W)) // W
    xx = idx % W
    masks, shifts = [], []
    for dy in range(K):
        for dx in range(K):
            oy, ox = dy - pad, dx - pad
            ok = ((yy + oy >= 0) & (yy + oy < H) &
                  (xx + ox >= 0) & (xx + ox < W))
            masks.append(ok.astype(np.float32))
            shifts.append(oy * W + ox)
    return jnp.asarray(np.stack(masks, axis=0)), tuple(shifts)


# --------------------------------------------------------------------------
# in-kernel building blocks
# --------------------------------------------------------------------------
def _shift_pixels(v, s):
    """u[..., p] = v[..., (p + s) mod P]  (lane rotation on the XLU).
    Out-of-bounds / wrapped lanes are zeroed by the per-tap mask."""
    P = v.shape[-1]
    if s % P == 0:
        return v
    return pltpu.roll(v, shift=(-s) % P, axis=1)


def _trunk_to_scratch(x_ref, m1_ref, m2_ref, c1w_ref, c1b_ref, c2w_ref, c2b_ref,
                      extra_ref, xh_ref, *, B, H, W, C1, C2, shifts1, shifts2):
    """conv1 + ReLU + conv2, then write the head input (torch NCHW-flatten
    order concatenated with extra_feats) into the VMEM scratch xh_ref."""
    P = B * H * W
    HW = H * W
    x = x_ref[...]                       # (1, P)   f32
    m1 = m1_ref[...]                     # (9, P)
    m2 = m2_ref[...]                     # (25, P)
    c1w = c1w_ref[...]                   # (C1, 9)
    c2w = c2w_ref[...]                   # (C2, 25*C1)

    # conv1: 1 -> C1, 3x3, pad 1, + ReLU.  Broadcast MACs on the VPU.
    acc1 = jnp.zeros((C1, P), jnp.float32) + c1b_ref[...]
    for t, s in enumerate(shifts1):
        xs = _shift_pixels(x, s) * m1[t:t + 1, :]          # (1, P)
        acc1 = acc1 + c1w[:, t:t + 1] * xs                 # (C1,1)*(1,P)
    h1 = jnp.maximum(acc1, 0.0)                            # (C1, P)

    # conv2: C1 -> C2, 5x5, pad 2 (no activation).  One small MXU matmul/tap.
    acc2 = jnp.zeros((C2, P), jnp.float32) + c2b_ref[...]
    for t, s in enumerate(shifts2):
        h1s = _shift_pixels(h1, s) * m2[t:t + 1, :]        # (C1, P)
        wt = c2w[:, t * C1:(t + 1) * C1]                   # (C2, C1)
        acc2 = acc2 + jnp.dot(wt, h1s, preferred_element_type=jnp.float32)

    # Assemble head input in torch's card_layer.view(B,-1) order:
    #   xh[b, c*HW + yx] = conv2_out[c, b*HW + yx];   xh[b, C2*HW:] = extra[b]
    for b in range(B):
        for c in range(C2):
            xh_ref[b:b + 1, c * HW:(c + 1) * HW] = acc2[c:c + 1, b * HW:(b + 1) * HW]
    xh_ref[:, C2 * HW:] = extra_ref[...]


def _softmax_and_mask(logits, mask):
    """Softmax(dim=1) followed by torch's mask_unavailable_actions (note the
    renormalization uses a whole-tensor sum, exactly like the reference)."""
    m = jnp.max(logits, axis=1, keepdims=True)
    e = jnp.exp(logits - m)
    probs = e * pl.reciprocal(jnp.sum(e, axis=1, keepdims=True), approx=True)
    valid = probs * mask
    s = jnp.sum(valid, keepdims=True)                      # global sum, (1,1)
    msum = jnp.sum(mask, keepdims=True)
    # TODO(synk): an all-zero mask yields inf/nan here, same as the torch reference.
    fallback = mask * pl.reciprocal(msum, approx=True)
    return jnp.where(s > 0.0, valid * pl.reciprocal(s, approx=True), fallback)


# --------------------------------------------------------------------------
# fused kernels (trunk + head)
# --------------------------------------------------------------------------
def _fused_head3_kernel(x_ref, m1_ref, m2_ref, c1w_ref, c1b_ref, c2w_ref, c2b_ref,
                        extra_ref, w1_ref, b1_ref, w2_ref, b2_ref, w3_ref, b3_ref,
                        mask_ref, out_ref, xh_ref,
                        *, B, H, W, C1, C2, shifts1, shifts2):
    # card_play_decision_net: Linear -> Sigmoid -> Linear -> ReLU -> Linear -> Softmax
    _trunk_to_scratch(x_ref, m1_ref, m2_ref, c1w_ref, c1b_ref, c2w_ref, c2b_ref,
                      extra_ref, xh_ref, B=B, H=H, W=W, C1=C1, C2=C2,
                      shifts1=shifts1, shifts2=shifts2)
    xb = xh_ref[...].astype(jnp.bfloat16)
    z1 = jnp.dot(xb, w1_ref[...], preferred_element_type=jnp.float32) + b1_ref[...]
    z1 = 1.0 / (1.0 + jnp.exp(-z1))                        # Sigmoid
    z2 = jnp.maximum(
        jnp.dot(z1.astype(jnp.bfloat16), w2_ref[...],
                preferred_element_type=jnp.float32) + b2_ref[...], 0.0)
    logits = jnp.dot(z2.astype(jnp.bfloat16), w3_ref[...],
                     preferred_element_type=jnp.float32) + b3_ref[...]
    out_ref[...] = _softmax_and_mask(logits, mask_ref[...])


def _fused_head2_kernel(x_ref, m1_ref, m2_ref, c1w_ref, c1b_ref, c2w_ref, c2b_ref,
                        extra_ref, w1_ref, b1_ref, w2_ref, b2_ref,
                        mask_ref, out_ref, xh_ref,
                        *, B, H, W, C1, C2, shifts1, shifts2):
    # chi_peng / action decision nets: Linear -> ReLU -> Linear -> Softmax
    _trunk_to_scratch(x_ref, m1_ref, m2_ref, c1w_ref, c1b_ref, c2w_ref, c2b_ref,
                      extra_ref, xh_ref, B=B, H=H, W=W, C1=C1, C2=C2,
                      shifts1=shifts1, shifts2=shifts2)
    xb = xh_ref[...].astype(jnp.bfloat16)
    z1 = jnp.maximum(
        jnp.dot(xb, w1_ref[...], preferred_element_type=jnp.float32) + b1_ref[...],
        0.0)
    logits = jnp.dot(z1.astype(jnp.bfloat16), w2_ref[...],
                     preferred_element_type=jnp.float32) + b2_ref[...]
    out_ref[...] = _softmax_and_mask(logits, mask_ref[...])


def _fused_call(kernel, inputs, out_shape, scratch_shape):
    return pl.pallas_call(
        kernel,
        out_shape=jax.ShapeDtypeStruct(out_shape, jnp.float32),
        grid=(1,),
        in_specs=[pl.BlockSpec(a.shape, lambda i, n=a.ndim: (0,) * n)
                  for a in inputs],
        out_specs=pl.BlockSpec(out_shape, lambda i: (0, 0)),
        scratch_shapes=[pltpu.VMEM(scratch_shape, jnp.float32)],
        compiler_params=pltpu.CompilerParams(
            dimension_semantics=("arbitrary",),
            vmem_limit_bytes=16 * 1024 * 1024),
    )(*inputs)


# --------------------------------------------------------------------------
# parameters
# --------------------------------------------------------------------------
def init_params(key, card_feat_depth, num_extra_feats, num_cards, num_actions):
    hidden_channels = [8, 16, 32]
    hidden_layers_size = [512, 1024]
    C1, C2 = hidden_channels[0], hidden_channels[1]
    linear_length = C2 * num_cards * card_feat_depth
    D = linear_length + num_extra_feats
    N1, N2 = hidden_layers_size

    keys = jax.random.split(key, 18)

    def w(k, shape, scale=0.05):
        return scale * jax.random.normal(k, shape, dtype=jnp.float32)

    conv1_w = w(keys[0], (C1, 1, 3, 3))            # torch OIHW
    conv2_w = w(keys[2], (C2, C1, 5, 5))           # torch OIHW

    params = {
        # conv weights repacked for the kernel:
        #   conv1_wm[co, dy*3+dx]            = conv1_w[co, 0, dy, dx]
        #   conv2_wm[co, (dy*5+dx)*C1 + ci]  = conv2_w[co, ci, dy, dx]
        "conv1_wm": conv1_w.reshape(C1, 9),
        "conv1_b": w(keys[1], (C1,)).reshape(C1, 1),
        "conv2_wm": jnp.transpose(conv2_w, (0, 2, 3, 1)).reshape(C2, 25 * C1),
        "conv2_b": w(keys[3], (C2,)).reshape(C2, 1),
        # decision heads: weights (in, out) in bf16 (half the HBM DMA), biases f32
        "play_w1": w(keys[4], (D, N1)).astype(jnp.bfloat16),
        "play_b1": w(keys[5], (N1,)).reshape(1, N1),
        "play_w2": w(keys[6], (N1, N2)).astype(jnp.bfloat16),
        "play_b2": w(keys[7], (N2,)).reshape(1, N2),
        "play_w3": w(keys[8], (N2, num_cards)).astype(jnp.bfloat16),
        "play_b3": w(keys[9], (num_cards,)).reshape(1, num_cards),
        "chi_w1": w(keys[10], (D, N1)).astype(jnp.bfloat16),
        "chi_b1": w(keys[11], (N1,)).reshape(1, N1),
        "chi_w2": w(keys[12], (N1, num_cards)).astype(jnp.bfloat16),
        "chi_b2": w(keys[13], (num_cards,)).reshape(1, num_cards),
        "act_w1": w(keys[14], (D, N2)).astype(jnp.bfloat16),
        "act_b1": w(keys[15], (N2,)).reshape(1, N2),
        "act_w2": w(keys[16], (N2, num_actions)).astype(jnp.bfloat16),
        "act_b2": w(keys[17], (num_actions,)).reshape(1, num_actions),
        # TODO(synk): the critic sub-network is defined in __init__ but never
        # used in forward(); it is intentionally not instantiated here.
    }
    return params


# --------------------------------------------------------------------------
# forward pass (one fused pallas_call per invocation)
# --------------------------------------------------------------------------
@functools.partial(jax.jit, static_argnums=3)
def actor_critic_forward(params, card_feats, extra_feats, decide_which, mask):
    assert decide_which in ("play", "chi_gang", "action")
    B, H, W = card_feats.shape                     # H = num_cards, W = card_feat_depth
    C1 = params["conv1_wm"].shape[0]
    C2 = params["conv2_wm"].shape[0]
    D = C2 * H * W + extra_feats.shape[1]

    x_in = card_feats.astype(jnp.float32).reshape(1, B * H * W)
    m1, shifts1 = _shift_masks(B, H, W, 3)
    m2, shifts2 = _shift_masks(B, H, W, 5)
    extra = extra_feats.astype(jnp.float32)
    mask = mask.astype(jnp.float32)

    trunk_in = (x_in, m1, m2, params["conv1_wm"], params["conv1_b"],
                params["conv2_wm"], params["conv2_b"], extra)
    static = dict(B=B, H=H, W=W, C1=C1, C2=C2, shifts1=shifts1, shifts2=shifts2)

    if decide_which == "play":
        kern = functools.partial(_fused_head3_kernel, **static)
        head = (params["play_w1"], params["play_b1"], params["play_w2"],
                params["play_b2"], params["play_w3"], params["play_b3"])
        nc = params["play_b3"].shape[1]
    elif decide_which == "action":
        kern = functools.partial(_fused_head2_kernel, **static)
        head = (params["act_w1"], params["act_b1"],
                params["act_w2"], params["act_b2"])
        nc = params["act_b2"].shape[1]
    else:  # 'chi_gang'
        kern = functools.partial(_fused_head2_kernel, **static)
        head = (params["chi_w1"], params["chi_b1"],
                params["chi_w2"], params["chi_b2"])
        nc = params["chi_b2"].shape[1]

    return _fused_call(kern, trunk_in + head + (mask,), (B, nc), (B, D))


# --------------------------------------------------------------------------
# main
# --------------------------------------------------------------------------
if __name__ == "__main__":
    B = 2
    num_cards = 8
    card_feat_depth = 8
    num_extra_feats = 16
    num_actions = 4

    key = jax.random.PRNGKey(0)
    k_params, k_cards, k_extra, k_mask = jax.random.split(key, 4)
    params = init_params(k_params, card_feat_depth, num_extra_feats,
                         num_cards, num_actions)

    card_feats = jax.random.normal(k_cards, (B, num_cards, card_feat_depth),
                                   dtype=jnp.float32)
    extra_feats = jax.random.normal(k_extra, (B, num_extra_feats),
                                    dtype=jnp.float32)
    mask_cards = (jax.random.uniform(k_mask, (B, num_cards)) > 0.3).astype(jnp.float32)
    mask_actions = jnp.ones((B, num_actions), dtype=jnp.float32)

    out_play = actor_critic_forward(params, card_feats, extra_feats, "play", mask_cards)
    out_chi = actor_critic_forward(params, card_feats, extra_feats, "chi_gang", mask_cards)
    out_act = actor_critic_forward(params, card_feats, extra_feats, "action", mask_actions)

    jax.block_until_ready((out_play, out_chi, out_act))
    assert out_play.shape == (B, num_cards)
    assert out_chi.shape == (B, num_cards)
    assert out_act.shape == (B, num_actions)
    print("KERNEL_OK")
</pallas_src>

<mosaic_0001>
module attributes {stable_mosaic.version = 11 : i64} {
  func.func @_fused_head3_kernel(%arg0: i32, %arg1: memref<1x128xf32, #tpu.memory_space<vmem>>, %arg2: memref<9x128xf32, #tpu.memory_space<vmem>>, %arg3: memref<25x128xf32, #tpu.memory_space<vmem>>, %arg4: memref<8x9xf32, #tpu.memory_space<vmem>>, %arg5: memref<8x1xf32, #tpu.memory_space<vmem>>, %arg6: memref<16x200xf32, #tpu.memory_space<vmem>>, %arg7: memref<16x1xf32, #tpu.memory_space<vmem>>, %arg8: memref<2x16xf32, #tpu.memory_space<vmem>>, %arg9: memref<1040x512xbf16, #tpu.memory_space<vmem>>, %arg10: memref<1x512xf32, #tpu.memory_space<vmem>>, %arg11: memref<512x1024xbf16, #tpu.memory_space<vmem>>, %arg12: memref<1x1024xf32, #tpu.memory_space<vmem>>, %arg13: memref<1024x8xbf16, #tpu.memory_space<vmem>>, %arg14: memref<1x8xf32, #tpu.memory_space<vmem>>, %arg15: memref<2x8xf32, #tpu.memory_space<vmem>>, %arg16: memref<2x8xf32, #tpu.memory_space<vmem>>, %arg17: memref<2x1040xf32, #tpu.memory_space<vmem>>) attributes {dimension_semantics = [#tpu.dimension_semantics<arbitrary>], iteration_bounds = array<i64: 1>, scalar_prefetch = 0 : i64, scratch_operands = 1 : i64, tpu.core_type = #tpu.core_type<tc>, window_params = [{pipeline_mode = #tpu.pipeline_mode<synchronous>, transform_indices = @transform_0, window_bounds = array<i64: 1, 128>}, {pipeline_mode = #tpu.pipeline_mode<synchronous>, transform_indices = @transform_1, window_bounds = array<i64: 9, 128>}, {pipeline_mode = #tpu.pipeline_mode<synchronous>, transform_indices = @transform_2, window_bounds = array<i64: 25, 128>}, {pipeline_mode = #tpu.pipeline_mode<synchronous>, transform_indices = @transform_3, window_bounds = array<i64: 8, 9>}, {pipeline_mode = #tpu.pipeline_mode<synchronous>, transform_indices = @transform_4, window_bounds = array<i64: 8, 1>}, {pipeline_mode = #tpu.pipeline_mode<synchronous>, transform_indices = @transform_5, window_bounds = array<i64: 16, 200>}, {pipeline_mode = #tpu.pipeline_mode<synchronous>, transform_indices = @transform_6, window_bounds = array<i64: 16, 1>}, {pipeline_mode = #tpu.pipeline_mode<synchronous>, transform_indices = @transform_7, window_bounds = array<i64: 2, 16>}, {pipeline_mode = #tpu.pipeline_mode<synchronous>, transform_indices = @transform_8, window_bounds = array<i64: 1040, 512>}, {pipeline_mode = #tpu.pipeline_mode<synchronous>, transform_indices = @transform_9, window_bounds = array<i64: 1, 512>}, {pipeline_mode = #tpu.pipeline_mode<synchronous>, transform_indices = @transform_10, window_bounds = array<i64: 512, 1024>}, {pipeline_mode = #tpu.pipeline_mode<synchronous>, transform_indices = @transform_11, window_bounds = array<i64: 1, 1024>}, {pipeline_mode = #tpu.pipeline_mode<synchronous>, transform_indices = @transform_12, window_bounds = array<i64: 1024, 8>}, {pipeline_mode = #tpu.pipeline_mode<synchronous>, transform_indices = @transform_13, window_bounds = array<i64: 1, 8>}, {pipeline_mode = #tpu.pipeline_mode<synchronous>, transform_indices = @transform_14, window_bounds = array<i64: 2, 8>}, {pipeline_mode = #tpu.pipeline_mode<synchronous>, transform_indices = @transform_15, window_bounds = array<i64: 2, 8>}]} {
    %c0 = arith.constant 0 : index
    %c0_0 = arith.constant 0 : index
    %0 = vector.load %arg1[%c0, %c0_0] : memref<1x128xf32, #tpu.memory_space<vmem>>, vector<1x128xf32>
    %c0_1 = arith.constant 0 : index
    %c0_2 = arith.constant 0 : index
    %1 = vector.load %arg2[%c0_1, %c0_2] : memref<9x128xf32, #tpu.memory_space<vmem>>, vector<9x128xf32>
    %c0_3 = arith.constant 0 : index
    %c0_4 = arith.constant 0 : index
    %2 = vector.load %arg3[%c0_3, %c0_4] : memref<25x128xf32, #tpu.memory_space<vmem>>, vector<25x128xf32>
    %c0_5 = arith.constant 0 : index
    %c0_6 = arith.constant 0 : index
    %3 = vector.load %arg4[%c0_5, %c0_6] : memref<8x9xf32, #tpu.memory_space<vmem>>, vector<8x9xf32>
    %c0_7 = arith.constant 0 : index
    %c0_8 = arith.constant 0 : index
    %4 = vector.load %arg6[%c0_7, %c0_8] : memref<16x200xf32, #tpu.memory_space<vmem>>, vector<16x200xf32>
    %cst = arith.constant 0.000000e+00 : f32
    %5 = vector.broadcast %cst : f32 to vector<8x128xf32>
    %c0_9 = arith.constant 0 : index
    %c0_10 = arith.constant 0 : index
    %6 = vector.load %arg5[%c0_9, %c0_10] : memref<8x1xf32, #tpu.memory_space<vmem>>, vector<8x1xf32>
    %7 = vector.broadcast %6 : vector<8x1xf32> to vector<8x128xf32>
    %8 = arith.addf %5, %7 : vector<8x128xf32>
    %c9_i32 = arith.constant 9 : i32
    %9 = tpu.dynamic_rotate %0 by %c9_i32 dim 1 : vector<1x128xf32>, i32 -> vector<1x128xf32>
    %10 = vector.extract_strided_slice %1 {offsets = [0, 0], sizes = [1, 128], strides = [1, 1]} : vector<9x128xf32> to vector<1x128xf32>
    %11 = arith.mulf %9, %10 : vector<1x128xf32>
    %12 = vector.extract_strided_slice %3 {offsets = [0, 0], sizes = [8, 1], strides = [1, 1]} : vector<8x9xf32> to vector<8x1xf32>
    %13 = vector.broadcast %12 : vector<8x1xf32> to vector<8x128xf32>
    %14 = vector.broadcast %11 : vector<1x128xf32> to vector<8x128xf32>
    %15 = arith.mulf %13, %14 : vector<8x128xf32>
    %16 = arith.addf %8, %15 : vector<8x128xf32>
    %c8_i32 = arith.constant 8 : i32
    %17 = tpu.dynamic_rotate %0 by %c8_i32 dim 1 : vector<1x128xf32>, i32 -> vector<1x128xf32>
    %18 = vector.extract_strided_slice %1 {offsets = [1, 0], sizes = [1, 128], strides = [1, 1]} : vector<9x128xf32> to vector<1x128xf32>
    %19 = arith.mulf %17, %18 : vector<1x128xf32>
    %20 = vector.extract_strided_slice %3 {offsets = [0, 1], sizes = [8, 1], strides = [1, 1]} : vector<8x9xf32> to vector<8x1xf32>
    %21 = vector.broadcast %20 : vector<8x1xf32> to vector<8x128xf32>
    %22 = vector.broadcast %19 : vector<1x128xf32> to vector<8x128xf32>
    %23 = arith.mulf %21, %22 : vector<8x128xf32>
    %24 = arith.addf %16, %23 : vector<8x128xf32>
    %c7_i32 = arith.constant 7 : i32
    %25 = tpu.dynamic_rotate %0 by %c7_i32 dim 1 : vector<1x128xf32>, i32 -> vector<1x128xf32>
    %26 = vector.extract_strided_slice %1 {offsets = [2, 0], sizes = [1, 128], strides = [1, 1]} : vector<9x128xf32> to vector<1x128xf32>
    %27 = arith.mulf %25, %26 : vector<1x128xf32>
    %28 = vector.extract_strided_slice %3 {offsets = [0, 2], sizes = [8, 1], strides = [1, 1]} : vector<8x9xf32> to vector<8x1xf32>
    %29 = vector.broadcast %28 : vector<8x1xf32> to vector<8x128xf32>
    %30 = vector.broadcast %27 : vector<1x128xf32> to vector<8x128xf32>
    %31 = arith.mulf %29, %30 : vector<8x128xf32>
    %32 = arith.addf %24, %31 : vector<8x128xf32>
    %c1_i32 = arith.constant 1 : i32
    %33 = tpu.dynamic_rotate %0 by %c1_i32 dim 1 : vector<1x128xf32>, i32 -> vector<1x128xf32>
    %34 = vector.extract_strided_slice %1 {offsets = [3, 0], sizes = [1, 128], strides = [1, 1]} : vector<9x128xf32> to vector<1x128xf32>
    %35 = arith.mulf %33, %34 : vector<1x128xf32>
    %36 = vector.extract_strided_slice %3 {offsets = [0, 3], sizes = [8, 1], strides = [1, 1]} : vector<8x9xf32> to vector<8x1xf32>
    %37 = vector.broadcast %36 : vector<8x1xf32> to vector<8x128xf32>
    %38 = vector.broadcast %35 : vector<1x128xf32> to vector<8x128xf32>
    %39 = arith.mulf %37, %38 : vector<8x128xf32>
    %40 = arith.addf %32, %39 : vector<8x128xf32>
    %41 = vector.extract_strided_slice %1 {offsets = [4, 0], sizes = [1, 128], strides = [1, 1]} : vector<9x128xf32> to vector<1x128xf32>
    %42 = arith.mulf %0, %41 : vector<1x128xf32>
    %43 = vector.extract_strided_slice %3 {offsets = [0, 4], sizes = [8, 1], strides = [1, 1]} : vector<8x9xf32> to vector<8x1xf32>
    %44 = vector.broadcast %43 : vector<8x1xf32> to vector<8x128xf32>
    %45 = vector.broadcast %42 : vector<1x128xf32> to vector<8x128xf32>
    %46 = arith.mulf %44, %45 : vector<8x128xf32>
    %47 = arith.addf %40, %46 : vector<8x128xf32>
    %c127_i32 = arith.constant 127 : i32
    %48 = tpu.dynamic_rotate %0 by %c127_i32 dim 1 : vector<1x128xf32>, i32 -> vector<1x128xf32>
    %49 = vector.extract_strided_slice %1 {offsets = [5, 0], sizes = [1, 128], strides = [1, 1]} : vector<9x128xf32> to vector<1x128xf32>
    %50 = arith.mulf %48, %49 : vector<1x128xf32>
    %51 = vector.extract_strided_slice %3 {offsets = [0, 5], sizes = [8, 1], strides = [1, 1]} : vector<8x9xf32> to vector<8x1xf32>
    %52 = vector.broadcast %51 : vector<8x1xf32> to vector<8x128xf32>
    %53 = vector.broadcast %50 : vector<1x128xf32> to vector<8x128xf32>
    %54 = arith.mulf %52, %53 : vector<8x128xf32>
    %55 = arith.addf %47, %54 : vector<8x128xf32>
    %c121_i32 = arith.constant 121 : i32
    %56 = tpu.dynamic_rotate %0 by %c121_i32 dim 1 : vector<1x128xf32>, i32 -> vector<1x128xf32>
    %57 = vector.extract_strided_slice %1 {offsets = [6, 0], sizes = [1, 128], strides = [1, 1]} : vector<9x128xf32> to vector<1x128xf32>
    %58 = arith.mulf %56, %57 : vector<1x128xf32>
    %59 = vector.extract_strided_slice %3 {offsets = [0, 6], sizes = [8, 1], strides = [1, 1]} : vector<8x9xf32> to vector<8x1xf32>
    %60 = vector.broadcast %59 : vector<8x1xf32> to vector<8x128xf32>
    %61 = vector.broadcast %58 : vector<1x128xf32> to vector<8x128xf32>
    %62 = arith.mulf %60, %61 : vector<8x128xf32>
    %63 = arith.addf %55, %62 : vector<8x128xf32>
    %c120_i32 = arith.constant 120 : i32
    %64 = tpu.dynamic_rotate %0 by %c120_i32 dim 1 : vector<1x128xf32>, i32 -> vector<1x128xf32>
    %65 = vector.extract_strided_slice %1 {offsets = [7, 0], sizes = [1, 128], strides = [1, 1]} : vector<9x128xf32> to vector<1x128xf32>
    %66 = arith.mulf %64, %65 : vector<1x128xf32>
    %67 = vector.extract_strided_slice %3 {offsets = [0, 7], sizes = [8, 1], strides = [1, 1]} : vector<8x9xf32> to vector<8x1xf32>
    %68 = vector.broadcast %67 : vector<8x1xf32> to vector<8x128xf32>
    %69 = vector.broadcast %66 : vector<1x128xf32> to vector<8x128xf32>
    %70 = arith.mulf %68, %69 : vector<8x128xf32>
    %71 = arith.addf %63, %70 : vector<8x128xf32>
    %c119_i32 = arith.constant 119 : i32
    %72 = tpu.dynamic_rotate %0 by %c119_i32 dim 1 : vector<1x128xf32>, i32 -> vector<1x128xf32>
    %73 = vector.extract_strided_slice %1 {offsets = [8, 0], sizes = [1, 128], strides = [1, 1]} : vector<9x128xf32> to vector<1x128xf32>
    %74 = arith.mulf %72, %73 : vector<1x128xf32>
    %75 = vector.extract_strided_slice %3 {offsets = [0, 8], sizes = [8, 1], strides = [1, 1]} : vector<8x9xf32> to vector<8x1xf32>
    %76 = vector.broadcast %75 : vector<8x1xf32> to vector<8x128xf32>
    %77 = vector.broadcast %74 : vector<1x128xf32> to vector<8x128xf32>
    %78 = arith.mulf %76, %77 : vector<8x128xf32>
    %79 = arith.addf %71, %78 : vector<8x128xf32>
    %cst_11 = arith.constant 0.000000e+00 : f32
    %80 = vector.broadcast %cst_11 : f32 to vector<8x128xf32>
    %81 = arith.maximumf %79, %80 : vector<8x128xf32>
    %cst_12 = arith.constant 0.000000e+00 : f32
    %82 = vector.broadcast %cst_12 : f32 to vector<16x128xf32>
    %c0_13 = arith.constant 0 : index
    %c0_14 = arith.constant 0 : index
    %83 = vector.load %arg7[%c0_13, %c0_14] : memref<16x1xf32, #tpu.memory_space<vmem>>, vector<16x1xf32>
    %84 = vector.broadcast %83 : vector<16x1xf32> to vector<16x128xf32>
    %85 = arith.addf %82, %84 : vector<16x128xf32>
    %c18_i32 = arith.constant 18 : i32
    %86 = tpu.dynamic_rotate %81 by %c18_i32 dim 1 : vector<8x128xf32>, i32 -> vector<8x128xf32>
    %87 = vector.extract_strided_slice %2 {offsets = [0, 0], sizes = [1, 128], strides = [1, 1]} : vector<25x128xf32> to vector<1x128xf32>
    %88 = vector.broadcast %87 : vector<1x128xf32> to vector<8x128xf32>
    %89 = arith.mulf %86, %88 : vector<8x128xf32>
    %90 = vector.extract_strided_slice %4 {offsets = [0, 0], sizes = [16, 8], strides = [1, 1]} : vector<16x200xf32> to vector<16x8xf32>
    %cst_15 = arith.constant dense<0.000000e+00> : vector<16x128xf32>
    %91 = tpu.matmul %90, %89, %cst_15 {dimension_numbers = #tpu.dot_dimension_numbers<[1], [0], [0], [1], [0, 0, 1, 1], [], []>} : vector<16x8xf32>, vector<8x128xf32>, vector<16x128xf32> -> vector<16x128xf32>
    %92 = arith.addf %85, %91 : vector<16x128xf32>
    %c17_i32 = arith.constant 17 : i32
    %93 = tpu.dynamic_rotate %81 by %c17_i32 dim 1 : vector<8x128xf32>, i32 -> vector<8x128xf32>
    %94 = vector.extract_strided_slice %2 {offsets = [1, 0], sizes = [1, 128], strides = [1, 1]} : vector<25x128xf32> to vector<1x128xf32>
    %95 = vector.broadcast %94 : vector<1x128xf32> to vector<8x128xf32>
    %96 = arith.mulf %93, %95 : vector<8x128xf32>
    %97 = vector.extract_strided_slice %4 {offsets = [0, 8], sizes = [16, 8], strides = [1, 1]} : vector<16x200xf32> to vector<16x8xf32>
    %cst_16 = arith.constant dense<0.000000e+00> : vector<16x128xf32>
    %98 = tpu.matmul %97, %96, %cst_16 {dimension_numbers = #tpu.dot_dimension_numbers<[1], [0], [0], [1], [0, 0, 1, 1], [], []>} : vector<16x8xf32>, vector<8x128xf32>, vector<16x128xf32> -> vector<16x128xf32>
    %99 = arith.addf %92, %98 : vector<16x128xf32>
    %c16_i32 = arith.constant 16 : i32
    %100 = tpu.dynamic_rotate %81 by %c16_i32 dim 1 : vector<8x128xf32>, i32 -> vector<8x128xf32>
    %101 = vector.extract_strided_slice %2 {offsets = [2, 0], sizes = [1, 128], strides = [1, 1]} : vector<25x128xf32> to vector<1x128xf32>
    %102 = vector.broadcast %101 : vector<1x128xf32> to vector<8x128xf32>
    %103 = arith.mulf %100, %102 : vector<8x128xf32>
    %104 = vector.extract_strided_slice %4 {offsets = [0, 16], sizes = [16, 8], strides = [1, 1]} : vector<16x200xf32> to vector<16x8xf32>
    %cst_17 = arith.constant dense<0.000000e+00> : vector<16x128xf32>
    %105 = tpu.matmul %104, %103, %cst_17 {dimension_numbers = #tpu.dot_dimension_numbers<[1], [0], [0], [1], [0, 0, 1, 1], [], []>} : vector<16x8xf32>, vector<8x128xf32>, vector<16x128xf32> -> vector<16x128xf32>
    %106 = arith.addf %99, %105 : vector<16x128xf32>
    %c15_i32 = arith.constant 15 : i32
    %107 = tpu.dynamic_rotate %81 by %c15_i32 dim 1 : vector<8x128xf32>, i32 -> vector<8x128xf32>
    %108 = vector.extract_strided_slice %2 {offsets = [3, 0], sizes = [1, 128], strides = [1, 1]} : vector<25x128xf32> to vector<1x128xf32>
    %109 = vector.broadcast %108 : vector<1x128xf32> to vector<8x128xf32>
    %110 = arith.mulf %107, %109 : vector<8x128xf32>
    %111 = vector.extract_strided_slice %4 {offsets = [0, 24], sizes = [16, 8], strides = [1, 1]} : vector<16x200xf32> to vector<16x8xf32>
    %cst_18 = arith.constant dense<0.000000e+00> : vector<16x128xf32>
    %112 = tpu.matmul %111, %110, %cst_18 {dimension_numbers = #tpu.dot_dimension_numbers<[1], [0], [0], [1], [0, 0, 1, 1], [], []>} : vector<16x8xf32>, vector<8x128xf32>, vector<16x128xf32> -> vector<16x128xf32>
    %113 = arith.addf %106, %112 : vector<16x128xf32>
    %c14_i32 = arith.constant 14 : i32
    %114 = tpu.dynamic_rotate %81 by %c14_i32 dim 1 : vector<8x128xf32>, i32 -> vector<8x128xf32>
    %115 = vector.extract_strided_slice %2 {offsets = [4, 0], sizes = [1, 128], strides = [1, 1]} : vector<25x128xf32> to vector<1x128xf32>
    %116 = vector.broadcast %115 : vector<1x128xf32> to vector<8x128xf32>
    %117 = arith.mulf %114, %116 : vector<8x128xf32>
    %118 = vector.extract_strided_slice %4 {offsets = [0, 32], sizes = [16, 8], strides = [1, 1]} : vector<16x200xf32> to vector<16x8xf32>
    %cst_19 = arith.constant dense<0.000000e+00> : vector<16x128xf32>
    %119 = tpu.matmul %118, %117, %cst_19 {dimension_numbers = #tpu.dot_dimension_numbers<[1], [0], [0], [1], [0, 0, 1, 1], [], []>} : vector<16x8xf32>, vector<8x128xf32>, vector<16x128xf32> -> vector<16x128xf32>
    %120 = arith.addf %113, %119 : vector<16x128xf32>
    %c10_i32 = arith.constant 10 : i32
    %121 = tpu.dynamic_rotate %81 by %c10_i32 dim 1 : vector<8x128xf32>, i32 -> vector<8x128xf32>
    %122 = vector.extract_strided_slice %2 {offsets = [5, 0], sizes = [1, 128], strides = [1, 1]} : vector<25x128xf32> to vector<1x128xf32>
    %123 = vector.broadcast %122 : vector<1x128xf32> to vector<8x128xf32>
    %124 = arith.mulf %121, %123 : vector<8x128xf32>
    %125 = vector.extract_strided_slice %4 {offsets = [0, 40], sizes = [16, 8], strides = [1, 1]} : vector<16x200xf32> to vector<16x8xf32>
    %cst_20 = arith.constant dense<0.000000e+00> : vector<16x128xf32>
    %126 = tpu.matmul %125, %124, %cst_20 {dimension_numbers = #tpu.dot_dimension_numbers<[1], [0], [0], [1], [0, 0, 1, 1], [], []>} : vector<16x8xf32>, vector<8x128xf32>, vector<16x128xf32> -> vector<16x128xf32>
    %127 = arith.addf %120, %126 : vector<16x128xf32>
    %c9_i32_21 = arith.constant 9 : i32
    %128 = tpu.dynamic_rotate %81 by %c9_i32_21 dim 1 : vector<8x128xf32>, i32 -> vector<8x128xf32>
    %129 = vector.extract_strided_slice %2 {offsets = [6, 0], sizes = [1, 128], strides = [1, 1]} : vector<25x128xf32> to vector<1x128xf32>
    %130 = vector.broadcast %129 : vector<1x128xf32> to vector<8x128xf32>
    %131 = arith.mulf %128, %130 : vector<8x128xf32>
    %132 = vector.extract_strided_slice %4 {offsets = [0, 48], sizes = [16, 8], strides = [1, 1]} : vector<16x200xf32> to vector<16x8xf32>
    %cst_22 = arith.constant dense<0.000000e+00> : vector<16x128xf32>
    %133 = tpu.matmul %132, %131, %cst_22 {dimension_numbers = #tpu.dot_dimension_numbers<[1], [0], [0], [1], [0, 0, 1, 1], [], []>} : vector<16x8xf32>, vector<8x128xf32>, vector<16x128xf32> -> vector<16x128xf32>
    %134 = arith.addf %127, %133 : vector<16x128xf32>
    %c8_i32_23 = arith.constant 8 : i32
    %135 = tpu.dynamic_rotate %81 by %c8_i32_23 dim 1 : vector<8x128xf32>, i32 -> vector<8x128xf32>
    %136 = vector.extract_strided_slice %2 {offsets = [7, 0], sizes = [1, 128], strides = [1, 1]} : vector<25x128xf32> to vector<1x128xf32>
    %137 = vector.broadcast %136 : vector<1x128xf32> to vector<8x128xf32>
    %138 = arith.mulf %135, %137 : vector<8x128xf32>
    %139 = vector.extract_strided_slice %4 {offsets = [0, 56], sizes = [16, 8], strides = [1, 1]} : vector<16x200xf32> to vector<16x8xf32>
    %cst_24 = arith.constant dense<0.000000e+00> : vector<16x128xf32>
    %140 = tpu.matmul %139, %138, %cst_24 {dimension_numbers = #tpu.dot_dimension_numbers<[1], [0], [0], [1], [0, 0, 1, 1], [], []>} : vector<16x8xf32>, vector<8x128xf32>, vector<16x128xf32> -> vector<16x128xf32>
    %141 = arith.addf %134, %140 : vector<16x128xf32>
    %c7_i32_25 = arith.constant 7 : i32
    %142 = tpu.dynamic_rotate %81 by %c7_i32_25 dim 1 : vector<8x128xf32>, i32 -> vector<8x128xf32>
    %143 = vector.extract_strided_slice %2 {offsets = [8, 0], sizes = [1, 128], strides = [1, 1]} : vector<25x128xf32> to vector<1x128xf32>
    %144 = vector.broadcast %143 : vector<1x128xf32> to vector<8x128xf32>
    %145 = arith.mulf %142, %144 : vector<8x128xf32>
    %146 = vector.extract_strided_slice %4 {offsets = [0, 64], sizes = [16, 8], strides = [1, 1]} : vector<16x200xf32> to vector<16x8xf32>
    %cst_26 = arith.constant dense<0.000000e+00> : vector<16x128xf32>
    %147 = tpu.matmul %146, %145, %cst_26 {dimension_numbers = #tpu.dot_dimension_numbers<[1], [0], [0], [1], [0, 0, 1, 1], [], []>} : vector<16x8xf32>, vector<8x128xf32>, vector<16x128xf32> -> vector<16x128xf32>
    %148 = arith.addf %141, %147 : vector<16x128xf32>
    %c6_i32 = arith.constant 6 : i32
    %149 = tpu.dynamic_rotate %81 by %c6_i32 dim 1 : vector<8x128xf32>, i32 -> vector<8x128xf32>
    %150 = vector.extract_strided_slice %2 {offsets = [9, 0], sizes = [1, 128], strides = [1, 1]} : vector<25x128xf32> to vector<1x128xf32>
    %151 = vector.broadcast %150 : vector<1x128xf32> to vector<8x128xf32>
    %152 = arith.mulf %149, %151 : vector<8x128xf32>
    %153 = vector.extract_strided_slice %4 {offsets = [0, 72], sizes = [16, 8], strides = [1, 1]} : vector<16x200xf32> to vector<16x8xf32>
    %cst_27 = arith.constant dense<0.000000e+00> : vector<16x128xf32>
    %154 = tpu.matmul %153, %152, %cst_27 {dimension_numbers = #tpu.dot_dimension_numbers<[1], [0], [0], [1], [0, 0, 1, 1], [], []>} : vector<16x8xf32>, vector<8x128xf32>, vector<16x128xf32> -> vector<16x128xf32>
    %155 = arith.addf %148, %154 : vector<16x128xf32>
    %c2_i32 = arith.constant 2 : i32
    %156 = tpu.dynamic_rotate %81 by %c2_i32 dim 1 : vector<8x128xf32>, i32 -> vector<8x128xf32>
    %157 = vector.extract_strided_slice %2 {offsets = [10, 0], sizes = [1, 128], strides = [1, 1]} : vector<25x128xf32> to vector<1x128xf32>
    %158 = vector.broadcast %157 : vector<1x128xf32> to vector<8x128xf32>
    %159 = arith.mulf %156, %158 : vector<8x128xf32>
    %160 = vector.extract_strided_slice %4 {offsets = [0, 80], sizes = [16, 8], strides = [1, 1]} : vector<16x200xf32> to vector<16x8xf32>
    %cst_28 = arith.constant dense<0.000000e+00> : vector<16x128xf32>
    %161 = tpu.matmul %160, %159, %cst_28 {dimension_numbers = #tpu.dot_dimension_numbers<[1], [0], [0], [1], [0, 0, 1, 1], [], []>} : vector<16x8xf32>, vector<8x128xf32>, vector<16x128xf32> -> vector<16x128xf32>
    %162 = arith.addf %155, %161 : vector<16x128xf32>
    %c1_i32_29 = arith.constant 1 : i32
    %163 = tpu.dynamic_rotate %81 by %c1_i32_29 dim 1 : vector<8x128xf32>, i32 -> vector<8x128xf32>
    %164 = vector.extract_strided_slice %2 {offsets = [11, 0], sizes = [1, 128], strides = [1, 1]} : vector<25x128xf32> to vector<1x128xf32>
    %165 = vector.broadcast %164 : vector<1x128xf32> to vector<8x128xf32>
    %166 = arith.mulf %163, %165 : vector<8x128xf32>
    %167 = vector.extract_strided_slice %4 {offsets = [0, 88], sizes = [16, 8], strides = [1, 1]} : vector<16x200xf32> to vector<16x8xf32>
    %cst_30 = arith.constant dense<0.000000e+00> : vector<16x128xf32>
    %168 = tpu.matmul %167, %166, %cst_30 {dimension_numbers = #tpu.dot_dimension_numbers<[1], [0], [0], [1], [0, 0, 1, 1], [], []>} : vector<16x8xf32>, vector<8x128xf32>, vector<16x128xf32> -> vector<16x128xf32>
    %169 = arith.addf %162, %168 : vector<16x128xf32>
    %170 = vector.extract_strided_slice %2 {offsets = [12, 0], sizes = [1, 128], strides = [1, 1]} : vector<25x128xf32> to vector<1x128xf32>
    %171 = vector.broadcast %170 : vector<1x128xf32> to vector<8x128xf32>
    %172 = arith.mulf %81, %171 : vector<8x128xf32>
    %173 = vector.extract_strided_slice %4 {offsets = [0, 96], sizes = [16, 8], strides = [1, 1]} : vector<16x200xf32> to vector<16x8xf32>
    %cst_31 = arith.constant dense<0.000000e+00> : vector<16x128xf32>
    %174 = tpu.matmul %173, %172, %cst_31 {dimension_numbers = #tpu.dot_dimension_numbers<[1], [0], [0], [1], [0, 0, 1, 1], [], []>} : vector<16x8xf32>, vector<8x128xf32>, vector<16x128xf32> -> vector<16x128xf32>
    %175 = arith.addf %169, %174 : vector<16x128xf32>
    %c127_i32_32 = arith.constant 127 : i32
    %176 = tpu.dynamic_rotate %81 by %c127_i32_32 dim 1 : vector<8x128xf32>, i32 -> vector<8x128xf32>
    %177 = vector.extract_strided_slice %2 {offsets = [13, 0], sizes = [1, 128], strides = [1, 1]} : vector<25x128xf32> to vector<1x128xf32>
    %178 = vector.broadcast %177 : vector<1x128xf32> to vector<8x128xf32>
    %179 = arith.mulf %176, %178 : vector<8x128xf32>
    %180 = vector.extract_strided_slice %4 {offsets = [0, 104], sizes = [16, 8], strides = [1, 1]} : vector<16x200xf32> to vector<16x8xf32>
    %cst_33 = arith.constant dense<0.000000e+00> : vector<16x128xf32>
    %181 = tpu.matmul %180, %179, %cst_33 {dimension_numbers = #tpu.dot_dimension_numbers<[1], [0], [0], [1], [0, 0, 1, 1], [], []>} : vector<16x8xf32>, vector<8x128xf32>, vector<16x128xf32> -> vector<16x128xf32>
    %182 = arith.addf %175, %181 : vector<16x128xf32>
    %c126_i32 = arith.constant 126 : i32
    %183 = tpu.dynamic_rotate %81 by %c126_i32 dim 1 : vector<8x128xf32>, i32 -> vector<8x128xf32>
    %184 = vector.extract_strided_slice %2 {offsets = [14, 0], sizes = [1, 128], strides = [1, 1]} : vector<25x128xf32> to vector<1x128xf32>
    %185 = vector.broadcast %184 : vector<1x128xf32> to vector<8x128xf32>
    %186 = arith.mulf %183, %185 : vector<8x128xf32>
    %187 = vector.extract_strided_slice %4 {offsets = [0, 112], sizes = [16, 8], strides = [1, 1]} : vector<16x200xf32> to vector<16x8xf32>
    %cst_34 = arith.constant dense<0.000000e+00> : vector<16x128xf32>
    %188 = tpu.matmul %187, %186, %cst_34 {dimension_numbers = #tpu.dot_dimension_numbers<[1], [0], [0], [1], [0, 0, 1, 1], [], []>} : vector<16x8xf32>, vector<8x128xf32>, vector<16x128xf32> -> vector<16x128xf32>
    %189 = arith.addf %182, %188 : vector<16x128xf32>
    %c122_i32 = arith.constant 122 : i32
    %190 = tpu.dynamic_rotate %81 by %c122_i32 dim 1 : vector<8x128xf32>, i32 -> vector<8x128xf32>
    %191 = vector.extract_strided_slice %2 {offsets = [15, 0], sizes = [1, 128], strides = [1, 1]} : vector<25x128xf32> to vector<1x128xf32>
    %192 = vector.broadcast %191 : vector<1x128xf32> to vector<8x128xf32>
    %193 = arith.mulf %190, %192 : vector<8x128xf32>
    %194 = vector.extract_strided_slice %4 {offsets = [0, 120], sizes = [16, 8], strides = [1, 1]} : vector<16x200xf32> to vector<16x8xf32>
    %cst_35 = arith.constant dense<0.000000e+00> : vector<16x128xf32>
    %195 = tpu.matmul %194, %193, %cst_35 {dimension_numbers = #tpu.dot_dimension_numbers<[1], [0], [0], [1], [0, 0, 1, 1], [], []>} : vector<16x8xf32>, vector<8x128xf32>, vector<16x128xf32> -> vector<16x128xf32>
    %196 = arith.addf %189, %195 : vector<16x128xf32>
    %c121_i32_36 = arith.constant 121 : i32
    %197 = tpu.dynamic_rotate %81 by %c121_i32_36 dim 1 : vector<8x128xf32>, i32 -> vector<8x128xf32>
    %198 = vector.extract_strided_slice %2 {offsets = [16, 0], sizes = [1, 128], strides = [1, 1]} : vector<25x128xf32> to vector<1x128xf32>
    %199 = vector.broadcast %198 : vector<1x128xf32> to vector<8x128xf32>
    %200 = arith.mulf %197, %199 : vector<8x128xf32>
    %201 = vector.extract_strided_slice %4 {offsets = [0, 128], sizes = [16, 8], strides = [1, 1]} : vector<16x200xf32> to vector<16x8xf32>
    %cst_37 = arith.constant dense<0.000000e+00> : vector<16x128xf32>
    %202 = tpu.matmul %201, %200, %cst_37 {dimension_numbers = #tpu.dot_dimension_numbers<[1], [0], [0], [1], [0, 0, 1, 1], [], []>} : vector<16x8xf32>, vector<8x128xf32>, vector<16x128xf32> -> vector<16x128xf32>
    %203 = arith.addf %196, %202 : vector<16x128xf32>
    %c120_i32_38 = arith.constant 120 : i32
    %204 = tpu.dynamic_rotate %81 by %c120_i32_38 dim 1 : vector<8x128xf32>, i32 -> vector<8x128xf32>
    %205 = vector.extract_strided_slice %2 {offsets = [17, 0], sizes = [1, 128], strides = [1, 1]} : vector<25x128xf32> to vector<1x128xf32>
    %206 = vector.broadcast %205 : vector<1x128xf32> to vector<8x128xf32>
    %207 = arith.mulf %204, %206 : vector<8x128xf32>
    %208 = vector.extract_strided_slice %4 {offsets = [0, 136], sizes = [16, 8], strides = [1, 1]} : vector<16x200xf32> to vector<16x8xf32>
    %cst_39 = arith.constant dense<0.000000e+00> : vector<16x128xf32>
    %209 = tpu.matmul %208, %207, %cst_39 {dimension_numbers = #tpu.dot_dimension_numbers<[1], [0], [0], [1], [0, 0, 1, 1], [], []>} : vector<16x8xf32>, vector<8x128xf32>, vector<16x128xf32> -> vector<16x128xf32>
    %210 = arith.addf %203, %209 : vector<16x128xf32>
    %c119_i32_40 = arith.constant 119 : i32
    %211 = tpu.dynamic_rotate %81 by %c119_i32_40 dim 1 : vector<8x128xf32>, i32 -> vector<8x128xf32>
    %212 = vector.extract_strided_slice %2 {offsets = [18, 0], sizes = [1, 128], strides = [1, 1]} : vector<25x128xf32> to vector<1x128xf32>
    %213 = vector.broadcast %212 : vector<1x128xf32> to vector<8x128xf32>
    %214 = arith.mulf %211, %213 : vector<8x128xf32>
    %215 = vector.extract_strided_slice %4 {offsets = [0, 144], sizes = [16, 8], strides = [1, 1]} : vector<16x200xf32> to vector<16x8xf32>
    %cst_41 = arith.constant dense<0.000000e+00> : vector<16x128xf32>
    %216 = tpu.matmul %215, %214, %cst_41 {dimension_numbers = #tpu.dot_dimension_numbers<[1], [0], [0], [1], [0, 0, 1, 1], [], []>} : vector<16x8xf32>, vector<8x128xf32>, vector<16x128xf32> -> vector<16x128xf32>
    %217 = arith.addf %210, %216 : vector<16x128xf32>
    %c118_i32 = arith.constant 118 : i32
    %218 = tpu.dynamic_rotate %81 by %c118_i32 dim 1 : vector<8x128xf32>, i32 -> vector<8x128xf32>
    %219 = vector.extract_strided_slice %2 {offsets = [19, 0], sizes = [1, 128], strides = [1, 1]} : vector<25x128xf32> to vector<1x128xf32>
    %220 = vector.broadcast %219 : vector<1x128xf32> to vector<8x128xf32>
    %221 = arith.mulf %218, %220 : vector<8x128xf32>
    %222 = vector.extract_strided_slice %4 {offsets = [0, 152], sizes = [16, 8], strides = [1, 1]} : vector<16x200xf32> to vector<16x8xf32>
    %cst_42 = arith.constant dense<0.000000e+00> : vector<16x128xf32>
    %223 = tpu.matmul %222, %221, %cst_42 {dimension_numbers = #tpu.dot_dimension_numbers<[1], [0], [0], [1], [0, 0, 1, 1], [], []>} : vector<16x8xf32>, vector<8x128xf32>, vector<16x128xf32> -> vector<16x128xf32>
    %224 = arith.addf %217, %223 : vector<16x128xf32>
    %c114_i32 = arith.constant 114 : i32
    %225 = tpu.dynamic_rotate %81 by %c114_i32 dim 1 : vector<8x128xf32>, i32 -> vector<8x128xf32>
    %226 = vector.extract_strided_slice %2 {offsets = [20, 0], sizes = [1, 128], strides = [1, 1]} : vector<25x128xf32> to vector<1x128xf32>
    %227 = vector.broadcast %226 : vector<1x128xf32> to vector<8x128xf32>
    %228 = arith.mulf %225, %227 : vector<8x128xf32>
    %229 = vector.extract_strided_slice %4 {offsets = [0, 160], sizes = [16, 8], strides = [1, 1]} : vector<16x200xf32> to vector<16x8xf32>
    %cst_43 = arith.constant dense<0.000000e+00> : vector<16x128xf32>
    %230 = tpu.matmul %229, %228, %cst_43 {dimension_numbers = #tpu.dot_dimension_numbers<[1], [0], [0], [1], [0, 0, 1, 1], [], []>} : vector<16x8xf32>, vector<8x128xf32>, vector<16x128xf32> -> vector<16x128xf32>
    %231 = arith.addf %224, %230 : vector<16x128xf32>
    %c113_i32 = arith.constant 113 : i32
    %232 = tpu.dynamic_rotate %81 by %c113_i32 dim 1 : vector<8x128xf32>, i32 -> vector<8x128xf32>
    %233 = vector.extract_strided_slice %2 {offsets = [21, 0], sizes = [1, 128], strides = [1, 1]} : vector<25x128xf32> to vector<1x128xf32>
    %234 = vector.broadcast %233 : vector<1x128xf32> to vector<8x128xf32>
    %235 = arith.mulf %232, %234 : vector<8x128xf32>
    %236 = vector.extract_strided_slice %4 {offsets = [0, 168], sizes = [16, 8], strides = [1, 1]} : vector<16x200xf32> to vector<16x8xf32>
    %cst_44 = arith.constant dense<0.000000e+00> : vector<16x128xf32>
    %237 = tpu.matmul %236, %235, %cst_44 {dimension_numbers = #tpu.dot_dimension_numbers<[1], [0], [0], [1], [0, 0, 1, 1], [], []>} : vector<16x8xf32>, vector<8x128xf32>, vector<16x128xf32> -> vector<16x128xf32>
    %238 = arith.addf %231, %237 : vector<16x128xf32>
    %c112_i32 = arith.constant 112 : i32
    %239 = tpu.dynamic_rotate %81 by %c112_i32 dim 1 : vector<8x128xf32>, i32 -> vector<8x128xf32>
    %240 = vector.extract_strided_slice %2 {offsets = [22, 0], sizes = [1, 128], strides = [1, 1]} : vector<25x128xf32> to vector<1x128xf32>
    %241 = vector.broadcast %240 : vector<1x128xf32> to vector<8x128xf32>
    %242 = arith.mulf %239, %241 : vector<8x128xf32>
    %243 = vector.extract_strided_slice %4 {offsets = [0, 176], sizes = [16, 8], strides = [1, 1]} : vector<16x200xf32> to vector<16x8xf32>
    %cst_45 = arith.constant dense<0.000000e+00> : vector<16x128xf32>
    %244 = tpu.matmul %243, %242, %cst_45 {dimension_numbers = #tpu.dot_dimension_numbers<[1], [0], [0], [1], [0, 0, 1, 1], [], []>} : vector<16x8xf32>, vector<8x128xf32>, vector<16x128xf32> -> vector<16x128xf32>
    %245 = arith.addf %238, %244 : vector<16x128xf32>
    %c111_i32 = arith.constant 111 : i32
    %246 = tpu.dynamic_rotate %81 by %c111_i32 dim 1 : vector<8x128xf32>, i32 -> vector<8x128xf32>
    %247 = vector.extract_strided_slice %2 {offsets = [23, 0], sizes = [1, 128], strides = [1, 1]} : vector<25x128xf32> to vector<1x128xf32>
    %248 = vector.broadcast %247 : vector<1x128xf32> to vector<8x128xf32>
    %249 = arith.mulf %246, %248 : vector<8x128xf32>
    %250 = vector.extract_strided_slice %4 {offsets = [0, 184], sizes = [16, 8], strides = [1, 1]} : vector<16x200xf32> to vector<16x8xf32>
    %cst_46 = arith.constant dense<0.000000e+00> : vector<16x128xf32>
    %251 = tpu.matmul %250, %249, %cst_46 {dimension_numbers = #tpu.dot_dimension_numbers<[1], [0], [0], [1], [0, 0, 1, 1], [], []>} : vector<16x8xf32>, vector<8x128xf32>, vector<16x128xf32> -> vector<16x128xf32>
    %252 = arith.addf %245, %251 : vector<16x128xf32>
    %c110_i32 = arith.constant 110 : i32
    %253 = tpu.dynamic_rotate %81 by %c110_i32 dim 1 : vector<8x128xf32>, i32 -> vector<8x128xf32>
    %254 = vector.extract_strided_slice %2 {offsets = [24, 0], sizes = [1, 128], strides = [1, 1]} : vector<25x128xf32> to vector<1x128xf32>
    %255 = vector.broadcast %254 : vector<1x128xf32> to vector<8x128xf32>
    %256 = arith.mulf %253, %255 : vector<8x128xf32>
    %257 = vector.extract_strided_slice %4 {offsets = [0, 192], sizes = [16, 8], strides = [1, 1]} : vector<16x200xf32> to vector<16x8xf32>
    %cst_47 = arith.constant dense<0.000000e+00> : vector<16x128xf32>
    %258 = tpu.matmul %257, %256, %cst_47 {dimension_numbers = #tpu.dot_dimension_numbers<[1], [0], [0], [1], [0, 0, 1, 1], [], []>} : vector<16x8xf32>, vector<8x128xf32>, vector<16x128xf32> -> vector<16x128xf32>
    %259 = arith.addf %252, %258 : vector<16x128xf32>
    %260 = vector.extract_strided_slice %259 {offsets = [0, 0], sizes = [1, 64], strides = [1, 1]} : vector<16x128xf32> to vector<1x64xf32>
    %c0_48 = arith.constant 0 : index
    %c0_49 = arith.constant 0 : index
    %261 = vector.load %arg17[%c0_48, %c0_49] : memref<2x1040xf32, #tpu.memory_space<vmem>>, vector<1x64xf32>
    tpu.vector_store %arg17[%c0_48, %c0_49], %260 {strides = array<i32>} : memref<2x1040xf32, #tpu.memory_space<vmem>>, vector<1x64xf32>,
    %262 = vector.extract_strided_slice %259 {offsets = [1, 0], sizes = [1, 64], strides = [1, 1]} : vector<16x128xf32> to vector<1x64xf32>
    %c0_50 = arith.constant 0 : index
    %c64 = arith.constant 64 : index
    %263 = vector.load %arg17[%c0_50, %c64] : memref<2x1040xf32, #tpu.memory_space<vmem>>, vector<1x64xf32>
    tpu.vector_store %arg17[%c0_50, %c64], %262 {strides = array<i32>} : memref<2x1040xf32, #tpu.memory_space<vmem>>, vector<1x64xf32>,
    %264 = vector.extract_strided_slice %259 {offsets = [2, 0], sizes = [1, 64], strides = [1, 1]} : vector<16x128xf32> to vector<1x64xf32>
    %c0_51 = arith.constant 0 : index
    %c128 = arith.constant 128 : index
    %265 = vector.load %arg17[%c0_51, %c128] : memref<2x1040xf32, #tpu.memory_space<vmem>>, vector<1x64xf32>
    tpu.vector_store %arg17[%c0_51, %c128], %264 {strides = array<i32>} : memref<2x1040xf32, #tpu.memory_space<vmem>>, vector<1x64xf32>,
    %266 = vector.extract_strided_slice %259 {offsets = [3, 0], sizes = [1, 64], strides = [1, 1]} : vector<16x128xf32> to vector<1x64xf32>
    %c0_52 = arith.constant 0 : index
    %c192 = arith.constant 192 : index
    %267 = vector.load %arg17[%c0_52, %c192] : memref<2x1040xf32, #tpu.memory_space<vmem>>, vector<1x64xf32>
    tpu.vector_store %arg17[%c0_52, %c192], %266 {strides = array<i32>} : memref<2x1040xf32, #tpu.memory_space<vmem>>, vector<1x64xf32>,
    %268 = vector.extract_strided_slice %259 {offsets = [4, 0], sizes = [1, 64], strides = [1, 1]} : vector<16x128xf32> to vector<1x64xf32>
    %c0_53 = arith.constant 0 : index
    %c256 = arith.constant 256 : index
    %269 = vector.load %arg17[%c0_53, %c256] : memref<2x1040xf32, #tpu.memory_space<vmem>>, vector<1x64xf32>
    tpu.vector_store %arg17[%c0_53, %c256], %268 {strides = array<i32>} : memref<2x1040xf32, #tpu.memory_space<vmem>>, vector<1x64xf32>,
    %270 = vector.extract_strided_slice %259 {offsets = [5, 0], sizes = [1, 64], strides = [1, 1]} : vector<16x128xf32> to vector<1x64xf32>
    %c0_54 = arith.constant 0 : index
    %c320 = arith.constant 320 : index
    %271 = vector.load %arg17[%c0_54, %c320] : memref<2x1040xf32, #tpu.memory_space<vmem>>, vector<1x64xf32>
    tpu.vector_store %arg17[%c0_54, %c320], %270 {strides = array<i32>} : memref<2x1040xf32, #tpu.memory_space<vmem>>, vector<1x64xf32>,
    %272 = vector.extract_strided_slice %259 {offsets = [6, 0], sizes = [1, 64], strides = [1, 1]} : vector<16x128xf32> to vector<1x64xf32>
    %c0_55 = arith.constant 0 : index
    %c384 = arith.constant 384 : index
    %273 = vector.load %arg17[%c0_55, %c384] : memref<2x1040xf32, #tpu.memory_space<vmem>>, vector<1x64xf32>
    tpu.vector_store %arg17[%c0_55, %c384], %272 {strides = array<i32>} : memref<2x1040xf32, #tpu.memory_space<vmem>>, vector<1x64xf32>,
    %274 = vector.extract_strided_slice %259 {offsets = [7, 0], sizes = [1, 64], strides = [1, 1]} : vector<16x128xf32> to vector<1x64xf32>
    %c0_56 = arith.constant 0 : index
    %c448 = arith.constant 448 : index
    %275 = vector.load %arg17[%c0_56, %c448] : memref<2x1040xf32, #tpu.memory_space<vmem>>, vector<1x64xf32>
    tpu.vector_store %arg17[%c0_56, %c448], %274 {strides = array<i32>} : memref<2x1040xf32, #tpu.memory_space<vmem>>, vector<1x64xf32>,
    %276 = vector.extract_strided_slice %259 {offsets = [8, 0], sizes = [1, 64], strides = [1, 1]} : vector<16x128xf32> to vector<1x64xf32>
    %c0_57 = arith.constant 0 : index
    %c512 = arith.constant 512 : index
    %277 = vector.load %arg17[%c0_57, %c512] : memref<2x1040xf32, #tpu.memory_space<vmem>>, vector<1x64xf32>
    tpu.vector_store %arg17[%c0_57, %c512], %276 {strides = array<i32>} : memref<2x1040xf32, #tpu.memory_space<vmem>>, vector<1x64xf32>,
    %278 = vector.extract_strided_slice %259 {offsets = [9, 0], sizes = [1, 64], strides = [1, 1]} : vector<16x128xf32> to vector<1x64xf32>
    %c0_58 = arith.constant 0 : index
    %c576 = arith.constant 576 : index
    %279 = vector.load %arg17[%c0_58, %c576] : memref<2x1040xf32, #tpu.memory_space<vmem>>, vector<1x64xf32>
    tpu.vector_store %arg17[%c0_58, %c576], %278 {strides = array<i32>} : memref<2x1040xf32, #tpu.memory_space<vmem>>, vector<1x64xf32>,
    %280 = vector.extract_strided_slice %259 {offsets = [10, 0], sizes = [1, 64], strides = [1, 1]} : vector<16x128xf32> to vector<1x64xf32>
    %c0_59 = arith.constant 0 : index
    %c640 = arith.constant 640 : index
    %281 = vector.load %arg17[%c0_59, %c640] : memref<2x1040xf32, #tpu.memory_space<vmem>>, vector<1x64xf32>
    tpu.vector_store %arg17[%c0_59, %c640], %280 {strides = array<i32>} : memref<2x1040xf32, #tpu.memory_space<vmem>>, vector<1x64xf32>,
    %282 = vector.extract_strided_slice %259 {offsets = [11, 0], sizes = [1, 64], strides = [1, 1]} : vector<16x128xf32> to vector<1x64xf32>
    %c0_60 = arith.constant 0 : index
    %c704 = arith.constant 704 : index
    %283 = vector.load %arg17[%c0_60, %c704] : memref<2x1040xf32, #tpu.memory_space<vmem>>, vector<1x64xf32>
    tpu.vector_store %arg17[%c0_60, %c704], %282 {strides = array<i32>} : memref<2x1040xf32, #tpu.memory_space<vmem>>, vector<1x64xf32>,
    %284 = vector.extract_strided_slice %259 {offsets = [12, 0], sizes = [1, 64], strides = [1, 1]} : vector<16x128xf32> to vector<1x64xf32>
    %c0_61 = arith.constant 0 : index
    %c768 = arith.constant 768 : index
    %285 = vector.load %arg17[%c0_61, %c768] : memref<2x1040xf32, #tpu.memory_space<vmem>>, vector<1x64xf32>
    tpu.vector_store %arg17[%c0_61, %c768], %284 {strides = array<i32>} : memref<2x1040xf32, #tpu.memory_space<vmem>>, vector<1x64xf32>,
    %286 = vector.extract_strided_slice %259 {offsets = [13, 0], sizes = [1, 64], strides = [1, 1]} : vector<16x128xf32> to vector<1x64xf32>
    %c0_62 = arith.constant 0 : index
    %c832 = arith.constant 832 : index
    %287 = vector.load %arg17[%c0_62, %c832] : memref<2x1040xf32, #tpu.memory_space<vmem>>, vector<1x64xf32>
    tpu.vector_store %arg17[%c0_62, %c832], %286 {strides = array<i32>} : memref<2x1040xf32, #tpu.memory_space<vmem>>, vector<1x64xf32>,
    %288 = vector.extract_strided_slice %259 {offsets = [14, 0], sizes = [1, 64], strides = [1, 1]} : vector<16x128xf32> to vector<1x64xf32>
    %c0_63 = arith.constant 0 : index
    %c896 = arith.constant 896 : index
    %289 = vector.load %arg17[%c0_63, %c896] : memref<2x1040xf32, #tpu.memory_space<vmem>>, vector<1x64xf32>
    tpu.vector_store %arg17[%c0_63, %c896], %288 {strides = array<i32>} : memref<2x1040xf32, #tpu.memory_space<vmem>>, vector<1x64xf32>,
    %290 = vector.extract_strided_slice %259 {offsets = [15, 0], sizes = [1, 64], strides = [1, 1]} : vector<16x128xf32> to vector<1x64xf32>
    %c0_64 = arith.constant 0 : index
    %c960 = arith.constant 960 : index
    %291 = vector.load %arg17[%c0_64, %c960] : memref<2x1040xf32, #tpu.memory_space<vmem>>, vector<1x64xf32>
    tpu.vector_store %arg17[%c0_64, %c960], %290 {strides = array<i32>} : memref<2x1040xf32, #tpu.memory_space<vmem>>, vector<1x64xf32>,
    %292 = vector.extract_strided_slice %259 {offsets = [0, 64], sizes = [1, 64], strides = [1, 1]} : vector<16x128xf32> to vector<1x64xf32>
    %c1 = arith.constant 1 : index
    %c0_65 = arith.constant 0 : index
    %293 = vector.load %arg17[%c1, %c0_65] : memref<2x1040xf32, #tpu.memory_space<vmem>>, vector<1x64xf32>
    tpu.vector_store %arg17[%c1, %c0_65], %292 {strides = array<i32>} : memref<2x1040xf32, #tpu.memory_space<vmem>>, vector<1x64xf32>,
    %294 = vector.extract_strided_slice %259 {offsets = [1, 64], sizes = [1, 64], strides = [1, 1]} : vector<16x128xf32> to vector<1x64xf32>
    %c1_66 = arith.constant 1 : index
    %c64_67 = arith.constant 64 : index
    %295 = vector.load %arg17[%c1_66, %c64_67] : memref<2x1040xf32, #tpu.memory_space<vmem>>, vector<1x64xf32>
    tpu.vector_store %arg17[%c1_66, %c64_67], %294 {strides = array<i32>} : memref<2x1040xf32, #tpu.memory_space<vmem>>, vector<1x64xf32>,
    %296 = vector.extract_strided_slice %259 {offsets = [2, 64], sizes = [1, 64], strides = [1, 1]} : vector<16x128xf32> to vector<1x64xf32>
    %c1_68 = arith.constant 1 : index
    %c128_69 = arith.constant 128 : index
    %297 = vector.load %arg17[%c1_68, %c128_69] : memref<2x1040xf32, #tpu.memory_space<vmem>>, vector<1x64xf32>
    tpu.vector_store %arg17[%c1_68, %c128_69], %296 {strides = array<i32>} : memref<2x1040xf32, #tpu.memory_space<vmem>>, vector<1x64xf32>,
    %298 = vector.extract_strided_slice %259 {offsets = [3, 64], sizes = [1, 64], strides = [1, 1]} : vector<16x128xf32> to vector<1x64xf32>
    %c1_70 = arith.constant 1 : index
    %c192_71 = arith.constant 192 : index
    %299 = vector.load %arg17[%c1_70, %c192_71] : memref<2x1040xf32, #tpu.memory_space<vmem>>, vector<1x64xf32>
    tpu.vector_store %arg17[%c1_70, %c192_71], %298 {strides = array<i32>} : memref<2x1040xf32, #tpu.memory_space<vmem>>, vector<1x64xf32>,
    %300 = vector.extract_strided_slice %259 {offsets = [4, 64], sizes = [1, 64], strides = [1, 1]} : vector<16x128xf32> to vector<1x64xf32>
    %c1_72 = arith.constant 1 : index
    %c256_73 = arith.constant 256 : index
    %301 = vector.load %arg17[%c1_72, %c256_73] : memref<2x1040xf32, #tpu.memory_space<vmem>>, vector<1x64xf32>
    tpu.vector_store %arg17[%c1_72, %c256_73], %300 {strides = array<i32>} : memref<2x1040xf32, #tpu.memory_space<vmem>>, vector<1x64xf32>,
    %302 = vector.extract_strided_slice %259 {offsets = [5, 64], sizes = [1, 64], strides = [1, 1]} : vector<16x128xf32> to vector<1x64xf32>
    %c1_74 = arith.constant 1 : index
    %c320_75 = arith.constant 320 : index
    %303 = vector.load %arg17[%c1_74, %c320_75] : memref<2x1040xf32, #tpu.memory_space<vmem>>, vector<1x64xf32>
    tpu.vector_store %arg17[%c1_74, %c320_75], %302 {strides = array<i32>} : memref<2x1040xf32, #tpu.memory_space<vmem>>, vector<1x64xf32>,
    %304 = vector.extract_strided_slice %259 {offsets = [6, 64], sizes = [1, 64], strides = [1, 1]} : vector<16x128xf32> to vector<1x64xf32>
    %c1_76 = arith.constant 1 : index
    %c384_77 = arith.constant 384 : index
    %305 = vector.load %arg17[%c1_76, %c384_77] : memref<2x1040xf32, #tpu.memory_space<vmem>>, vector<1x64xf32>
    tpu.vector_store %arg17[%c1_76, %c384_77], %304 {strides = array<i32>} : memref<2x1040xf32, #tpu.memory_space<vmem>>, vector<1x64xf32>,
    %306 = vector.extract_strided_slice %259 {offsets = [7, 64], sizes = [1, 64], strides = [1, 1]} : vector<16x128xf32> to vector<1x64xf32>
    %c1_78 = arith.constant 1 : index
    %c448_79 = arith.constant 448 : index
    %307 = vector.load %arg17[%c1_78, %c448_79] : memref<2x1040xf32, #tpu.memory_space<vmem>>, vector<1x64xf32>
    tpu.vector_store %arg17[%c1_78, %c448_79], %306 {strides = array<i32>} : memref<2x1040xf32, #tpu.memory_space<vmem>>, vector<1x64xf32>,
    %308 = vector.extract_strided_slice %259 {offsets = [8, 64], sizes = [1, 64], strides = [1, 1]} : vector<16x128xf32> to vector<1x64xf32>
    %c1_80 = arith.constant 1 : index
    %c512_81 = arith.constant 512 : index
    %309 = vector.load %arg17[%c1_80, %c512_81] : memref<2x1040xf32, #tpu.memory_space<vmem>>, vector<1x64xf32>
    tpu.vector_store %arg17[%c1_80, %c512_81], %308 {strides = array<i32>} : memref<2x1040xf32, #tpu.memory_space<vmem>>, vector<1x64xf32>,
    %310 = vector.extract_strided_slice %259 {offsets = [9, 64], sizes = [1, 64], strides = [1, 1]} : vector<16x128xf32> to vector<1x64xf32>
    %c1_82 = arith.constant 1 : index
    %c576_83 = arith.constant 576 : index
    %311 = vector.load %arg17[%c1_82, %c576_83] : memref<2x1040xf32, #tpu.memory_space<vmem>>, vector<1x64xf32>
    tpu.vector_store %arg17[%c1_82, %c576_83], %310 {strides = array<i32>} : memref<2x1040xf32, #tpu.memory_space<vmem>>, vector<1x64xf32>,
    %312 = vector.extract_strided_slice %259 {offsets = [10, 64], sizes = [1, 64], strides = [1, 1]} : vector<16x128xf32> to vector<1x64xf32>
    %c1_84 = arith.constant 1 : index
    %c640_85 = arith.constant 640 : index
    %313 = vector.load %arg17[%c1_84, %c640_85] : memref<2x1040xf32, #tpu.memory_space<vmem>>, vector<1x64xf32>
    tpu.vector_store %arg17[%c1_84, %c640_85], %312 {strides = array<i32>} : memref<2x1040xf32, #tpu.memory_space<vmem>>, vector<1x64xf32>,
    %314 = vector.extract_strided_slice %259 {offsets = [11, 64], sizes = [1, 64], strides = [1, 1]} : vector<16x128xf32> to vector<1x64xf32>
    %c1_86 = arith.constant 1 : index
    %c704_87 = arith.constant 704 : index
    %315 = vector.load %arg17[%c1_86, %c704_87] : memref<2x1040xf32, #tpu.memory_space<vmem>>, vector<1x64xf32>
    tpu.vector_store %arg17[%c1_86, %c704_87], %314 {strides = array<i32>} : memref<2x1040xf32, #tpu.memory_space<vmem>>, vector<1x64xf32>,
    %316 = vector.extract_strided_slice %259 {offsets = [12, 64], sizes = [1, 64], strides = [1, 1]} : vector<16x128xf32> to vector<1x64xf32>
    %c1_88 = arith.constant 1 : index
    %c768_89 = arith.constant 768 : index
    %317 = vector.load %arg17[%c1_88, %c768_89] : memref<2x1040xf32, #tpu.memory_space<vmem>>, vector<1x64xf32>
    tpu.vector_store %arg17[%c1_88, %c768_89], %316 {strides = array<i32>} : memref<2x1040xf32, #tpu.memory_space<vmem>>, vector<1x64xf32>,
    %318 = vector.extract_strided_slice %259 {offsets = [13, 64], sizes = [1, 64], strides = [1, 1]} : vector<16x128xf32> to vector<1x64xf32>
    %c1_90 = arith.constant 1 : index
    %c832_91 = arith.constant 832 : index
    %319 = vector.load %arg17[%c1_90, %c832_91] : memref<2x1040xf32, #tpu.memory_space<vmem>>, vector<1x64xf32>
    tpu.vector_store %arg17[%c1_90, %c832_91], %318 {strides = array<i32>} : memref<2x1040xf32, #tpu.memory_space<vmem>>, vector<1x64xf32>,
    %320 = vector.extract_strided_slice %259 {offsets = [14, 64], sizes = [1, 64], strides = [1, 1]} : vector<16x128xf32> to vector<1x64xf32>
    %c1_92 = arith.constant 1 : index
    %c896_93 = arith.constant 896 : index
    %321 = vector.load %arg17[%c1_92, %c896_93] : memref<2x1040xf32, #tpu.memory_space<vmem>>, vector<1x64xf32>
    tpu.vector_store %arg17[%c1_92, %c896_93], %320 {strides = array<i32>} : memref<2x1040xf32, #tpu.memory_space<vmem>>, vector<1x64xf32>,
    %322 = vector.extract_strided_slice %259 {offsets = [15, 64], sizes = [1, 64], strides = [1, 1]} : vector<16x128xf32> to vector<1x64xf32>
    %c1_94 = arith.constant 1 : index
    %c960_95 = arith.constant 960 : index
    %323 = vector.load %arg17[%c1_94, %c960_95] : memref<2x1040xf32, #tpu.memory_space<vmem>>, vector<1x64xf32>
    tpu.vector_store %arg17[%c1_94, %c960_95], %322 {strides = array<i32>} : memref<2x1040xf32, #tpu.memory_space<vmem>>, vector<1x64xf32>,
    %c0_96 = arith.constant 0 : index
    %c0_97 = arith.constant 0 : index
    %324 = vector.load %arg8[%c0_96, %c0_97] : memref<2x16xf32, #tpu.memory_space<vmem>>, vector<2x16xf32>
    %c0_98 = arith.constant 0 : index
    %c1024 = arith.constant 1024 : index
    %325 = vector.load %arg17[%c0_98, %c1024] : memref<2x1040xf32, #tpu.memory_space<vmem>>, vector<2x16xf32>
    tpu.vector_store %arg17[%c0_98, %c1024], %324 {strides = array<i32>} : memref<2x1040xf32, #tpu.memory_space<vmem>>, vector<2x16xf32>,
    %c0_99 = arith.constant 0 : index
    %c0_100 = arith.constant 0 : index
    %326 = vector.load %arg17[%c0_99, %c0_100] : memref<2x1040xf32, #tpu.memory_space<vmem>>, vector<2x1040xf32>
    %327 = arith.truncf %326 : vector<2x1040xf32> to vector<2x1040xbf16>
    %c0_101 = arith.constant 0 : index
    %c0_102 = arith.constant 0 : index
    %328 = vector.load %arg9[%c0_101, %c0_102] : memref<1040x512xbf16, #tpu.memory_space<vmem>>, vector<1040x512xbf16>
    %cst_103 = arith.constant dense<0.000000e+00> : vector<2x512xf32>
    %329 = tpu.matmul %327, %328, %cst_103 {dimension_numbers = #tpu.dot_dimension_numbers<[1], [0], [0], [1], [0, 0, 1, 1], [], []>} : vector<2x1040xbf16>, vector<1040x512xbf16>, vector<2x512xf32> -> vector<2x512xf32>
    %c0_104 = arith.constant 0 : index
    %c0_105 = arith.constant 0 : index
    %330 = vector.load %arg10[%c0_104, %c0_105] : memref<1x512xf32, #tpu.memory_space<vmem>>, vector<1x512xf32>
    %331 = vector.broadcast %330 : vector<1x512xf32> to vector<2x512xf32>
    %332 = arith.addf %329, %331 : vector<2x512xf32>
    %cst_106 = arith.constant 0.000000e+00 : f32
    %333 = vector.broadcast %cst_106 : f32 to vector<2x512xf32>
    %334 = arith.subf %333, %332 : vector<2x512xf32>
    %335 = math.exp %334 : vector<2x512xf32>
    %cst_107 = arith.constant 1.000000e+00 : f32
    %336 = vector.broadcast %cst_107 : f32 to vector<2x512xf32>
    %337 = arith.addf %336, %335 : vector<2x512xf32>
    %cst_108 = arith.constant 1.000000e+00 : f32
    %338 = vector.broadcast %cst_108 : f32 to vector<2x512xf32>
    %339 = arith.divf %338, %337 : vector<2x512xf32>
    %340 = arith.truncf %339 : vector<2x512xf32> to vector<2x512xbf16>
    %c0_109 = arith.constant 0 : index
    %c0_110 = arith.constant 0 : index
    %341 = vector.load %arg11[%c0_109, %c0_110] : memref<512x1024xbf16, #tpu.memory_space<vmem>>, vector<512x1024xbf16>
    %cst_111 = arith.constant dense<0.000000e+00> : vector<2x1024xf32>
    %342 = tpu.matmul %340, %341, %cst_111 {dimension_numbers = #tpu.dot_dimension_numbers<[1], [0], [0], [1], [0, 0, 1, 1], [], []>} : vector<2x512xbf16>, vector<512x1024xbf16>, vector<2x1024xf32> -> vector<2x1024xf32>
    %c0_112 = arith.constant 0 : index
    %c0_113 = arith.constant 0 : index
    %343 = vector.load %arg12[%c0_112, %c0_113] : memref<1x1024xf32, #tpu.memory_space<vmem>>, vector<1x1024xf32>
    %344 = vector.broadcast %343 : vector<1x1024xf32> to vector<2x1024xf32>
    %345 = arith.addf %342, %344 : vector<2x1024xf32>
    %cst_114 = arith.constant 0.000000e+00 : f32
    %346 = vector.broadcast %cst_114 : f32 to vector<2x1024xf32>
    %347 = arith.maximumf %345, %346 : vector<2x1024xf32>
    %348 = arith.truncf %347 : vector<2x1024xf32> to vector<2x1024xbf16>
    %c0_115 = arith.constant 0 : index
    %c0_116 = arith.constant 0 : index
    %349 = vector.load %arg13[%c0_115, %c0_116] : memref<1024x8xbf16, #tpu.memory_space<vmem>>, vector<1024x8xbf16>
    %cst_117 = arith.constant dense<0.000000e+00> : vector<2x8xf32>
    %350 = tpu.matmul %348, %349, %cst_117 {dimension_numbers = #tpu.dot_dimension_numbers<[1], [0], [0], [1], [0, 0, 1, 1], [], []>} : vector<2x1024xbf16>, vector<1024x8xbf16>, vector<2x8xf32> -> vector<2x8xf32>
    %c0_118 = arith.constant 0 : index
    %c0_119 = arith.constant 0 : index
    %351 = vector.load %arg14[%c0_118, %c0_119] : memref<1x8xf32, #tpu.memory_space<vmem>>, vector<1x8xf32>
    %352 = vector.broadcast %351 : vector<1x8xf32> to vector<2x8xf32>
    %353 = arith.addf %350, %352 : vector<2x8xf32>
    %c0_120 = arith.constant 0 : index
    %c0_121 = arith.constant 0 : index
    %354 = vector.load %arg15[%c0_120, %c0_121] : memref<2x8xf32, #tpu.memory_space<vmem>>, vector<2x8xf32>
    %cst_122 = arith.constant dense<0xFF800000> : vector<2xf32>
    %355 = vector.multi_reduction <maximumf>, %353, %cst_122 [1] : vector<2x8xf32> to vector<2xf32>
    %356 = vector.shape_cast %355 : vector<2xf32> to vector<2x1xf32>
    %357 = vector.broadcast %356 : vector<2x1xf32> to vector<2x8xf32>
    %358 = arith.subf %353, %357 : vector<2x8xf32>
    %359 = math.exp %358 : vector<2x8xf32>
    %cst_123 = arith.constant dense<0.000000e+00> : vector<2xf32>
    %360 = vector.multi_reduction <add>, %359, %cst_123 [1] : vector<2x8xf32> to vector<2xf32>
    %361 = vector.shape_cast %360 : vector<2xf32> to vector<2x1xf32>
    %362 = tpu.reciprocal %361 {approx = true} : vector<2x1xf32> -> vector<2x1xf32>
    %363 = vector.broadcast %362 : vector<2x1xf32> to vector<2x8xf32>
    %364 = arith.mulf %359, %363 : vector<2x8xf32>
    %365 = arith.mulf %364, %354 : vector<2x8xf32>
    %366 = vector.shape_cast %365 : vector<2x8xf32> to vector<1x2x8xf32>
    %cst_124 = arith.constant dense<0.000000e+00> : vector<1xf32>
    %367 = vector.multi_reduction <add>, %366, %cst_124 [1, 2] : vector<1x2x8xf32> to vector<1xf32>
    %368 = vector.shape_cast %367 : vector<1xf32> to vector<1x1x1xf32>
    %369 = vector.extract %368[0, 0, 0] : f32 from vector<1x1x1xf32>
    %370 = vector.broadcast %369 : f32 to vector<1x1xf32>
    %371 = vector.shape_cast %354 : vector<2x8xf32> to vector<1x2x8xf32>
    %cst_125 = arith.constant dense<0.000000e+00> : vector<1xf32>
    %372 = vector.multi_reduction <add>, %371, %cst_125 [1, 2] : vector<1x2x8xf32> to vector<1xf32>
    %373 = vector.shape_cast %372 : vector<1xf32> to vector<1x1x1xf32>
    %374 = vector.extract %373[0, 0, 0] : f32 from vector<1x1x1xf32>
    %375 = vector.broadcast %374 : f32 to vector<1x1xf32>
    %376 = tpu.reciprocal %375 {approx = true} : vector<1x1xf32> -> vector<1x1xf32>
    %377 = vector.broadcast %376 : vector<1x1xf32> to vector<2x8xf32>
    %378 = arith.mulf %354, %377 : vector<2x8xf32>
    %cst_126 = arith.constant 0.000000e+00 : f32
    %379 = vector.broadcast %cst_126 : f32 to vector<1x1xf32>
    %380 = arith.cmpf ogt, %370, %379 : vector<1x1xf32>
    %381 = tpu.reciprocal %370 {approx = true} : vector<1x1xf32> -> vector<1x1xf32>
    %382 = vector.broadcast %381 : vector<1x1xf32> to vector<2x8xf32>
    %383 = arith.mulf %365, %382 : vector<2x8xf32>
    %384 = vector.shape_cast %380 : vector<1x1xi1> to vector<1x1xi1>
    %385 = vector.broadcast %384 : vector<1x1xi1> to vector<2x8xi1>
    %386 = arith.select %385, %383, %378 : vector<2x8xi1>, vector<2x8xf32>
    %c0_127 = arith.constant 0 : index
    %c0_128 = arith.constant 0 : index
    %387 = vector.load %arg16[%c0_127, %c0_128] : memref<2x8xf32, #tpu.memory_space<vmem>>, vector<2x8xf32>
    tpu.vector_store %arg16[%c0_127, %c0_128], %386 {strides = array<i32>} : memref<2x8xf32, #tpu.memory_space<vmem>>, vector<2x8xf32>,
    return
  }
  func.func @transform_0(%arg0: i32) -> (i32, i32) {
    %c0_i32 = arith.constant 0 : i32
    %c0_i32_0 = arith.constant 0 : i32
    %c0_i32_1 = arith.constant 0 : i32
    return %c0_i32, %c0_i32_0 : i32, i32
  }
  func.func @transform_1(%arg0: i32) -> (i32, i32) {
    %c0_i32 = arith.constant 0 : i32
    %c0_i32_0 = arith.constant 0 : i32
    %c0_i32_1 = arith.constant 0 : i32
    return %c0_i32, %c0_i32_0 : i32, i32
  }
  func.func @transform_2(%arg0: i32) -> (i32, i32) {
    %c0_i32 = arith.constant 0 : i32
    %c0_i32_0 = arith.constant 0 : i32
    %c0_i32_1 = arith.constant 0 : i32
    return %c0_i32, %c0_i32_0 : i32, i32
  }
  func.func @transform_3(%arg0: i32) -> (i32, i32) {
    %c0_i32 = arith.constant 0 : i32
    %c0_i32_0 = arith.constant 0 : i32
    %c0_i32_1 = arith.constant 0 : i32
    return %c0_i32, %c0_i32_0 : i32, i32
  }
  func.func @transform_4(%arg0: i32) -> (i32, i32) {
    %c0_i32 = arith.constant 0 : i32
    %c0_i32_0 = arith.constant 0 : i32
    %c0_i32_1 = arith.constant 0 : i32
    return %c0_i32, %c0_i32_0 : i32, i32
  }
  func.func @transform_5(%arg0: i32) -> (i32, i32) {
    %c0_i32 = arith.constant 0 : i32
    %c0_i32_0 = arith.constant 0 : i32
    %c0_i32_1 = arith.constant 0 : i32
    return %c0_i32, %c0_i32_0 : i32, i32
  }
  func.func @transform_6(%arg0: i32) -> (i32, i32) {
    %c0_i32 = arith.constant 0 : i32
    %c0_i32_0 = arith.constant 0 : i32
    %c0_i32_1 = arith.constant 0 : i32
    return %c0_i32, %c0_i32_0 : i32, i32
  }
  func.func @transform_7(%arg0: i32) -> (i32, i32) {
    %c0_i32 = arith.constant 0 : i32
    %c0_i32_0 = arith.constant 0 : i32
    %c0_i32_1 = arith.constant 0 : i32
    return %c0_i32, %c0_i32_0 : i32, i32
  }
  func.func @transform_8(%arg0: i32) -> (i32, i32) {
    %c0_i32 = arith.constant 0 : i32
    %c0_i32_0 = arith.constant 0 : i32
    %c0_i32_1 = arith.constant 0 : i32
    return %c0_i32, %c0_i32_0 : i32, i32
  }
  func.func @transform_9(%arg0: i32) -> (i32, i32) {
    %c0_i32 = arith.constant 0 : i32
    %c0_i32_0 = arith.constant 0 : i32
    %c0_i32_1 = arith.constant 0 : i32
    return %c0_i32, %c0_i32_0 : i32, i32
  }
  func.func @transform_10(%arg0: i32) -> (i32, i32) {
    %c0_i32 = arith.constant 0 : i32
    %c0_i32_0 = arith.constant 0 : i32
    %c0_i32_1 = arith.constant 0 : i32
    return %c0_i32, %c0_i32_0 : i32, i32
  }
  func.func @transform_11(%arg0: i32) -> (i32, i32) {
    %c0_i32 = arith.constant 0 : i32
    %c0_i32_0 = arith.constant 0 : i32
    %c0_i32_1 = arith.constant 0 : i32
    return %c0_i32, %c0_i32_0 : i32, i32
  }
  func.func @transform_12(%arg0: i32) -> (i32, i32) {
    %c0_i32 = arith.constant 0 : i32
    %c0_i32_0 = arith.constant 0 : i32
    %c0_i32_1 = arith.constant 0 : i32
    return %c0_i32, %c0_i32_0 : i32, i32
  }
  func.func @transform_13(%arg0: i32) -> (i32, i32) {
    %c0_i32 = arith.constant 0 : i32
    %c0_i32_0 = arith.constant 0 : i32
    %c0_i32_1 = arith.constant 0 : i32
    return %c0_i32, %c0_i32_0 : i32, i32
  }
  func.func @transform_14(%arg0: i32) -> (i32, i32) {
    %c0_i32 = arith.constant 0 : i32
    %c0_i32_0 = arith.constant 0 : i32
    %c0_i32_1 = arith.constant 0 : i32
    return %c0_i32, %c0_i32_0 : i32, i32
  }
  func.func @transform_15(%arg0: i32) -> (i32, i32) {
    %c0_i32 = arith.constant 0 : i32
    %c0_i32_0 = arith.constant 0 : i32
    %c0_i32_1 = arith.constant 0 : i32
    return %c0_i32, %c0_i32_0 : i32, i32
  }
}

</mosaic_0001>

<bundles_post_ra>
// kernel: actor_critic_forward.1
= control target key start
LH: loop header
LB: loop body
LE: loop exit
PB: predicated region body
PF: predicated region fallthrough
CT: control target
= control target key end

     0   :  { %20 = vsyncpa [#allocation4], 0  ;;  %s10723_s0 = inlined_call_operand.vmem [shape: f32[1,128], index: 0, kind: input, shape index: {}]   ;;  %s10724_s1 = inlined_call_operand.hbm [shape: f32[9,128], index: 1, kind: input, shape index: {}]   ;;  %s10725_s2 = inlined_call_operand.hbm [shape: f32[25,128], index: 2, kind: input, shape index: {}]   ;;  %s10726_s3 = inlined_call_operand.hbm [shape: f32[8,9], index: 3, kind: input, shape index: {}]   ;;  %s10727_s4 = inlined_call_operand.vmem [shape: f32[8,1], index: 4, kind: input, shape index: {}]   ;;  %s10728_s5 = inlined_call_operand.hbm [shape: f32[16,200], index: 5, kind: input, shape index: {}]   ;;  %s10729_s6 = inlined_call_operand.vmem [shape: f32[16,1], index: 6, kind: input, shape index: {}]   ;;  %s10730_s7 = inlined_call_operand.hbm [shape: f32[2,16], index: 7, kind: input, shape index: {}]   ;;  %s10731_s8 = inlined_call_operand.hbm [shape: bf16[1040,512], index: 8, kind: input, shape index: {}]   ;;  %s10732_s9 = inlined_call_operand.hbm [shape: f32[1,512], index: 9, kind: input, shape index: {}]   ;;  %s10733_s10 = inlined_call_operand.hbm [shape: bf16[512,1024], index: 10, kind: input, shape index: {}]   ;;  %s10734_s11 = inlined_call_operand.hbm [shape: f32[1,1024], index: 11, kind: input, shape index: {}]   ;;  %s10735_s12 = inlined_call_operand.vmem [shape: bf16[1024,8], index: 12, kind: input, shape index: {}]   ;;  %s10736_s13 = inlined_call_operand.hbm [shape: f32[1,8], index: 13, kind: input, shape index: {}]   ;;  %s10737_s14 = inlined_call_operand.hbm [shape: f32[2,8], index: 14, kind: input, shape index: {}]   ;;  %s10738_s15 = inlined_call_operand.hbm [shape: f32[2,8], index: 15, kind: output, shape index: {}]  }
   0x1   :  { %21 = vsyncpa [#allocation7], 0 }
   0x2   :  { %22 = vsyncpa [#allocation10], 0 }
   0x3   :  { %23 = vsyncpa [#allocation13], 0 }
   0x4   :  { %24 = vsyncpa [#allocation16], 0 }
   0x5   :  { %25 = vsyncpa [#allocation19], 0 }
   0x6   :  { %26 = vsyncpa [#allocation5], 0  ;;  %s46_s20 = sshll.u32 %s10725_s2, 4  ;;  %s9678_s21 = smov [#allocation6]   ;;  %s47_s20 = int_to_ptr.hbm [resolvable:$true] %s46_s20 }
   0x7   :  { %s48_s22 = sshll.u32 %s9678_s21, 4  ;;  %s72_s25 = sshll.u32 %s10728_s5, 4  ;;  %s49_s22 = int_to_ptr.vmem [resolvable:$true] %s48_s22  ;;  %s73_s25 = int_to_ptr.hbm [resolvable:$true] %s72_s25 }
   0x8   :  { %s9679_s26 = smov 128   ;;  %s9680_s27 = smov 8  }
   0x9   :  { %54 = dma.hbm_to_vmem [thread:$0]  %s47_s20, 512, %s49_s22, [#allocation7], %s9679_s26, %s9679_s26, %s9680_s27  }
   0xa   :  { %s9681_s28 = smov [#allocation9]   ;;  %s9682_s30 = smov 256  }
   0xb   :  { %s74_s29 = sshll.u32 %s9681_s28, 4  ;;  %s9683_s2 = smov 16   ;;  %s75_s29 = int_to_ptr.vmem [resolvable:$true] %s74_s29 }
   0xc   :  { %80 = dma.hbm_to_vmem [thread:$0]  %s73_s25, 512, %s75_s29, [#allocation10], %s9682_s30, %s9682_s30, %s9683_s2  }
   0xd   :  { %s98_s18 = sshll.u32 %s10731_s8, 4  ;;  %s9684_s5 = smov [#allocation12]   ;;  %s99_s18 = int_to_ptr.hbm [resolvable:$true] %s98_s18 }
   0xe   :  { %s100_s19 = sshll.u32 %s9684_s5, 4  ;;  %s122_s20 = sshll.u32 %s10733_s10, 4  ;;  %s101_s19 = int_to_ptr.vmem [resolvable:$true] %s100_s19  ;;  %s123_s20 = int_to_ptr.hbm [resolvable:$true] %s122_s20 }
   0xf   :  { %106 = dma.hbm_to_vmem [thread:$0]  %s99_s18, 33280, %s101_s19, [#allocation13], %s9682_s30, %s9682_s30, %s9683_s2  }
  0x10   :  { %s9685_s22 = smov [#allocation15]   ;;  %s9686_s28 = smov 512  }
  0x11   :  { %s124_s24 = sshll.u32 %s9685_s22, 4  ;;  %s9687_s25 = smov 32   ;;  %s125_s24 = int_to_ptr.vmem [resolvable:$true] %s124_s24 }
  0x12   :  { %130 = dma.hbm_to_vmem [thread:$0]  %s123_s20, 32768, %s125_s24, [#allocation16], %s9686_s28, %s9686_s28, %s9687_s25  }
  0x13   :  { %s149_s16 = sshll.u32 %s10736_s13, 4  ;;  %s9688_s17 = smov [#allocation18]   ;;  %s150_s16 = int_to_ptr.hbm [resolvable:$true] %s149_s16 }
  0x14   :  { %s151_s5 = sshll.u32 %s9688_s17, 4  ;;  %s33_s30 = sshll.u32 %s10724_s1, 4  ;;  %s152_s5 = int_to_ptr.vmem [resolvable:$true] %s151_s5  ;;  %s34_s30 = int_to_ptr.hbm [resolvable:$true] %s33_s30 }
  0x15   :  { %154 = dma.hbm_to_vmem [thread:$0]  %s150_s16, 16, %s152_s5, [#allocation19]  }
  0x16   :  { %s9689_s18 = smov [#allocation3]   ;;  %s60_s20 = sshll.u32 %s10726_s3, 4  ;;  %s61_s20 = int_to_ptr.hbm [resolvable:$true] %s60_s20 }
  0x17   :  { %s35_s19 = sshll.u32 %s9689_s18, 4  ;;  %s88_s28 = sshll.u32 %s10730_s7, 4  ;;  %s36_s19 = int_to_ptr.vmem [resolvable:$true] %s35_s19  ;;  %s89_s28 = int_to_ptr.hbm [resolvable:$true] %s88_s28 }
  0x18   :  { %41 = dma.hbm_to_vmem [thread:$0]  %s34_s30, 256, %s36_s19, [#allocation4], %s9679_s26, %s9679_s26, %s9680_s27  }
  0x19   :  { %s9690_s29 = smov [#allocation8]   ;;  %s9691_s8 = smov [#allocation11]  }
  0x1a   :  { %s62_s1 = sshll.u32 %s9690_s29, 4  ;;  %s90_s16 = sshll.u32 %s9691_s8, 4  ;;  %s63_s1 = int_to_ptr.vmem [resolvable:$true] %s62_s1  ;;  %s91_s16 = int_to_ptr.vmem [resolvable:$true] %s90_s16 }
  0x1b   :  { %65 = dma.hbm_to_vmem [thread:$0]  %s61_s20, 128, %s63_s1, [#allocation7]  }
  0x1c   :  { %s112_s3 = sshll.u32 %s10732_s9, 4  ;;  %s136_s10 = sshll.u32 %s10734_s11, 4  ;;  %s113_s3 = int_to_ptr.hbm [resolvable:$true] %s112_s3  ;;  %s137_s10 = int_to_ptr.hbm [resolvable:$true] %s136_s10 }
  0x1d   :  { %93 = dma.hbm_to_vmem [thread:$0]  %s89_s28, 32, %s91_s16, [#allocation10]  }
  0x1e   :  { %s9692_s30 = smov [#allocation14]   ;;  %s9693_s18 = smov [#allocation17]  }
  0x1f   :  { %s114_s7 = sshll.u32 %s9692_s30, 4  ;;  %s138_s19 = sshll.u32 %s9693_s18, 4  ;;  %s115_s7 = int_to_ptr.vmem [resolvable:$true] %s114_s7  ;;  %s139_s19 = int_to_ptr.vmem [resolvable:$true] %s138_s19 }
  0x20   :  { %117 = dma.hbm_to_vmem [thread:$0]  %s113_s3, 64, %s115_s7, [#allocation13]  }
  0x21   :  { %s160_s20 = sshll.u32 %s10737_s14, 4  ;;  %s9694_s9 = smov [#allocation20]   ;;  %s161_s20 = int_to_ptr.hbm [resolvable:$true] %s160_s20 }
  0x22   :  { %141 = dma.hbm_to_vmem [thread:$0]  %s137_s10, 128, %s139_s19, [#allocation16]  }
  0x23   :  { %s162_s13 = sshll.u32 %s9694_s9, 4  ;;  %s163_s13 = int_to_ptr.vmem [resolvable:$true] %s162_s13 }
  0x24   :  { %165 = dma.hbm_to_vmem [thread:$0]  %s161_s20, 32, %s163_s13, [#allocation19]  }
  0x25   :  { %9664 = dma.done.wait [#allocation4], 256  }
  0x26   :  { %9665 = vsyncadd [#allocation4], 4294967040 }
  0x27   :  { %9666 = dma.done.wait [#allocation7], 640  }
  0x28   :  { %9667 = vsyncadd [#allocation7], 4294966656 }
  0x29   :  { %9668 = dma.done.wait [#allocation10], 544  }
  0x2a   :  { %9669 = vsyncadd [#allocation10], 4294966752 }
  0x2b   :  { %9670 = dma.done.wait [#allocation13], 33344  }
  0x2c   :  { %9671 = vsyncadd [#allocation13], 4294933952 }
  0x2d   :  { %9672 = dma.done.wait [#allocation16], 32896  }
  0x2e   :  { %9673 = vsyncadd [#allocation16], 4294934400 }
  0x2f   :  { %9674 = dma.done.wait [#allocation19], 48  }
  0x30   :  { %9675 = vsyncadd [#allocation19], 4294967248  ;;  %v9695_v0 = vmov 0   ;;  %v9696_v1 = vmov 5   ;;  %v218_v2 = vld [vmem:[#allocation8] sm:$0xff]  ;;  %v223_v4 = vld [vmem:[%s10727_s4] sm:$0xff] }
  0x31   :  { %9336 = vset.pattern.permute.xlu1 %v9695_v0  ;;  %9337 = vset.pattern.permute.xlu2 %v9695_v0  ;;  %v9862_v3 = vld [vmem:[%s10723_s0] sm:$0x1]  ;;  %s9697_s29 = smov 9   ;;  %s9698_s1 = smov 7   ;;  %v9699_v5 = vmov 2   ;;  %v9700_v6 = vmov 1  }
  0x32   :  { %9342 = vset.pattern.permute.xlu0 %v9696_v1  ;;  %235 = vperm.xlu1 %9336, %v218_v2   ;;  %s9701_s0 = smov 1   ;;  %v9702_v7 = vmov 3   ;;  %v9703_v8 = vmov 4   ;;  %s9704_s4 = smov 127   ;;  %v9706_v9 = vmov 6   ;;  %v9708_v10 = vmov 8  }
  0x33   :  { %230 = vrot.lane.b32.xlu0 %v9862_v3, %s9697_s29  ;;  %226 = vperm.xlu2 %9337, %v223_v4   ;;  %s9705_s8 = smov 121   ;;  %s9707_s16 = smov 120   ;;  %v9710_v11 = vmov 7   ;;  %v9883_v12 = vld [vmem:[#allocation9] sm:$0xff]  ;;  %v9891_v13 = vld [vmem:[#allocation9 + $0x10] sm:$0xff]  ;;  %v212_v14 = vld [vmem:[#allocation3] sm:$0xff] }
  0x34   :  { %s9709_s17 = smov 119   ;;  %s9711_s5 = smov 104   ;;  %278 = vst [vmem:[#allocation1] sm:$0xff] %v212_v14  ;;  %v244_v22 = vrot.slane %v212_v14, 1  ;;  %v256_v26 = vrot.slane %v212_v14, 2  ;;  %v268_v28 = vrot.slane %v212_v14, 3 }
  0x35   :  { %s9712_s3 = smov 96   ;;  %s9713_s21 = smov 112   ;;  %v294_v35 = vrot.slane %v212_v14, 5  ;;  %v306_v46 = vrot.slane %v212_v14, 6  ;;  %v318_v52 = vrot.slane %v212_v14, 7  ;;  %vm357_vm0 = vcmask 64512  }
  0x36   :  { %s9714_s26 = smov 64   ;;  %s9715_s10 = smov 80   ;;  %vm1273_vm1 = vcmask 516096   ;;  %vm1281_vm2 = vcmask 1040896   ;;  %vm1472_vm3 = vcmask 123904   ;;  %vm3081_vm4 = vcmask 130048  }
  0x37   :  { %s9716_s30 = smov 88   ;;  %s9717_s7 = smov 72  }
  0x38   :  { %s9718_s18 = smov 48   ;;  %s9719_s19 = smov 56  }
  0x39   :  { %s9720_s23 = smov 40   ;;  %s9721_s22 = smov 17  }
  0x3a   :  { %254 = vrot.lane.b32.xlu1 %v9862_v3, %s9698_s1  ;;  %s9722_s20 = smov 18   ;;  %s9723_s9 = smov 14  }
  0x3b   :  { %241 = vrot.lane.b32.xlu0 %v9862_v3, %s9680_s27  ;;  %9339 = vset.pattern.permute.xlu1 %v9699_v5  ;;  %v280_v31 = vld [vmem:[#allocation1 + $0x4] ss:$9 sm:$0xff]  ;;  %s9724_s13 = smov 15   ;;  %s9725_s11 = smov 10  }
  0x3c   :  { %9338 = vset.pattern.permute.xlu2 %v9700_v6  ;;  %v282_v38 = vmul.f32 %v280_v31, %v9862_v3  ;;  %s9726_s14 = smov 126   ;;  %s9727_s24 = smov 2  }
  0x3d   :  { %248 = vperm.xlu2 %9338, %v218_v2   ;;  %s9728_s28 = smov 6  }
  0x3e   :  { %v288_v47 = vperm.slane %v282_v38, 0 }
  0x42   :  { %260 = vperm.xlu1 %9339, %v218_v2  }
  0x43   :  { %266 = vrot.lane.b32.xlu0 %v9862_v3, %s9701_s0 }
  0x45   :  { %9340 = vset.pattern.permute.xlu2 %v9702_v7 }
  0x46   :  { %272 = vperm.xlu2 %9340, %v218_v2  }
  0x4a   :  { %9341 = vset.pattern.permute.xlu1 %v9703_v8 }
  0x4b   :  { %292 = vrot.lane.b32.xlu0 %v9862_v3, %s9704_s4  ;;  %284 = vperm.xlu1 %9341, %v218_v2  }
  0x4e   :  { %304 = vrot.lane.b32.xlu2 %v9862_v3, %s9705_s8 }
  0x4f   :  { %9343 = vset.pattern.permute.xlu2 %v9706_v9 }
  0x53   :  { %298 = vperm.xlu0 %9342, %v218_v2   ;;  %316 = vrot.lane.b32.xlu1 %v9862_v3, %s9707_s16 }
  0x54   :  { %9347 = vset.pattern.permute.xlu1 %v9695_v0 }
  0x56   :  { %310 = vperm.xlu2 %9343, %v218_v2  }
  0x5b   :  { %9345 = vset.pattern.permute.xlu0 %v9708_v10  ;;  %328 = vrot.lane.b32.xlu1 %v9862_v3, %s9709_s17 }
  0x5c   :  { %332 = vperm.xlu0 %9345, %v218_v2  }
  0x5e   :  { %9344 = vset.pattern.permute.xlu2 %v9710_v11 }
  0x5f   :  { %322 = vperm.xlu2 %9344, %v218_v2   ;;  %v213_v2 = vld [vmem:[#allocation3 + $0x8] sm:$0x1] }
  0x63   :  { %467 = vrot.lane.b32.xlu1 %v9883_v12, %s9711_s5 }
  0x64   :  { %504 = vrot.lane.b32.xlu0 %v9883_v12, %s9712_s3 }
  0x65   :  { %9346 = vset.pattern.permute.xlu0 %v9695_v0 }
  0x67   :  { %430 = vrot.lane.b32.xlu2 %v9883_v12, %s9713_s21 }
  0x6b   :  { %432 = vrot.lane.b32.xlu1 %v9891_v13, %s9713_s21 }
  0x6c   :  { %506 = vrot.lane.b32.xlu0 %v9891_v13, %s9712_s3 }
  0x6f   :  { %393 = vrot.lane.b32.xlu2 %v9883_v12, %s9707_s16 }
  0x73   :  { %395 = vrot.lane.b32.xlu1 %v9891_v13, %s9707_s16 }
  0x74   :  { %652 = vrot.lane.b32.xlu0 %v9883_v12, %s9714_s26 }
  0x77   :  { %469 = vrot.lane.b32.xlu2 %v9891_v13, %s9711_s5 }
  0x7b   :  { %578 = vrot.lane.b32.xlu1 %v9883_v12, %s9715_s10 }
  0x7c   :  { %654 = vrot.lane.b32.xlu0 %v9891_v13, %s9714_s26 }
  0x7f   :  { %541 = vrot.lane.b32.xlu2 %v9883_v12, %s9716_s30 }
  0x83   :  { %615 = vrot.lane.b32.xlu1 %v9883_v12, %s9717_s7 }
  0x84   :  { %728 = vrot.lane.b32.xlu0 %v9891_v13, %s9718_s18 }
  0x87   :  { %617 = vrot.lane.b32.xlu2 %v9891_v13, %s9717_s7 }
  0x8b   :  { %580 = vrot.lane.b32.xlu1 %v9891_v13, %s9715_s10 }
  0x8c   :  { %691 = vrot.lane.b32.xlu0 %v9891_v13, %s9719_s19 }
  0x8d   :  { %v227_v15 = vpop.permute.xlu2 %226 }
  0x8f   :  { %689 = vrot.lane.b32.xlu2 %v9883_v12, %s9719_s19 }
  0x93   :  { %543 = vrot.lane.b32.xlu1 %v9891_v13, %s9716_s30 }
  0x97   :  { %v249_v16 = vpop.permute.xlu2 %248 }
  0x9b   :  { %726 = vrot.lane.b32.xlu1 %v9883_v12, %s9718_s18 }
  0xa0   :  { %v273_v21 = vpop.permute.xlu2 %272 }
  0xa3   :  { %763 = vrot.lane.b32.xlu1 %v9883_v12, %s9720_s23 }
  0xa4   :  { %v236_v17 = vpop.permute.xlu1 %235 }
  0xa5   :  { %v231_v18 = vpop.permute.xlu0 %230 }
  0xa6   :  { %v232_v23 = vmul.f32 %v231_v18, %v212_v14 }
  0xa8   :  { %v305_v29 = vpop.permute.xlu2 %304  ;;  %v238_v30 = vperm.slane %v232_v23, 0 }
  0xa9   :  { %v308_v54 = vmul.f32 %v306_v46, %v305_v29 }
  0xaa   :  { %v239_v36 = vmul.f32 %v238_v30, %v236_v17 }
  0xab   :  { %v313_v61 = vperm.slane %v308_v54, 0 }
  0xac   :  { %v255_v19 = vpop.permute.xlu1 %254  ;;  %v240_v44 = vadd.f32 %v239_v36, %v227_v15 }
  0xad   :  { %v242_v20 = vpop.permute.xlu0 %241  ;;  %v258_v32 = vmul.f32 %v256_v26, %v255_v19 }
  0xae   :  { %v246_v27 = vmul.f32 %v244_v22, %v242_v20 }
  0xaf   :  { %v263_v40 = vperm.slane %v258_v32, 0 }
  0xb0   :  { %v251_v33 = vperm.slane %v246_v27, 0  ;;  %v311_v48 = vpop.permute.xlu2 %310 }
  0xb1   :  { %v314_v3 = vmul.f32 %v313_v61, %v311_v48 }
  0xb2   :  { %v252_v41 = vmul.f32 %v251_v33, %v249_v16 }
  0xb4   :  { %v261_v24 = vpop.permute.xlu1 %260  ;;  %v253_v49 = vadd.f32 %v252_v41, %v240_v44 }
  0xb5   :  { %v267_v25 = vpop.permute.xlu0 %266  ;;  %v264_v45 = vmul.f32 %v263_v40, %v261_v24 }
  0xb6   :  { %v270_v34 = vmul.f32 %v268_v28, %v267_v25  ;;  %v9977_v25 = vld [vmem:[#allocation9 + $0x8] sm:$0xff]  ;;  %v9989_v28 = vld [vmem:[#allocation9 + $0x18] sm:$0xff] }
  0xb7   :  { %v265_v53 = vadd.f32 %v264_v45, %v253_v49 }
  0xb8   :  { %v275_v42 = vperm.slane %v270_v34, 0  ;;  %v10009_v34 = vld [vmem:[#allocation6] sm:$0xff] }
  0xb9   :  { %v323_v1 = vpop.permute.xlu2 %322  ;;  %v428_v36 = vperm.slane %v10009_v34, 2  ;;  %v355_v48 = vperm.slane %v10009_v34, 0 }
  0xba   :  { %v276_v50 = vmul.f32 %v275_v42, %v273_v21  ;;  %v576_v42 = vperm.slane %v10009_v34, 6 }
  0xbc   :  { %v277_v58 = vadd.f32 %v276_v50, %v265_v53 }
  0xbd   :  { %v293_v37 = vpop.permute.xlu0 %292  ;;  %v285_v39 = vpop.permute.xlu1 %284 }
  0xbe   :  { %v296_v43 = vmul.f32 %v294_v35, %v293_v37  ;;  %v290_v55 = vmul.f32 %v288_v47, %v285_v39  ;;  %v391_v47 = vperm.slane %v10009_v34, 1 }
  0xc0   :  { %v301_v51 = vperm.slane %v296_v43, 0  ;;  %v291_v62 = vadd.f32 %v290_v55, %v277_v58  ;;  %v10050_v55 = vld [vmem:[#allocation6 + $0x8] sm:$0xff] }
  0xc1   :  { %v431_v17 = vpop.permute.xlu2 %430  ;;  %v724_v58 = vperm.slane %v10050_v55, 2 }
  0xc5   :  { %v299_v56 = vpop.permute.xlu0 %298  ;;  %v317_v57 = vpop.permute.xlu1 %316 }
  0xc6   :  { %v302_v59 = vmul.f32 %v301_v51, %v299_v56  ;;  %v320_v60 = vmul.f32 %v318_v52, %v317_v57  ;;  %v539_v51 = vperm.slane %v10009_v34, 5  ;;  %v502_v57 = vperm.slane %v10009_v34, 4 }
  0xc8   :  { %v303_v63 = vadd.f32 %v302_v59, %v291_v62  ;;  %v325_v0 = vperm.slane %v320_v60, 0  ;;  %v340_v59 = vld [vmem:[%s10729_s6 + $0x8] sm:$0xff]  ;;  %v465_v60 = vperm.slane %v10009_v34, 3 }
  0xc9   :  { %v9956_v19 = vpop.permute.xlu2 %393 }
  0xca   :  { %v315_v5 = vadd.f32 %v314_v3, %v303_v63  ;;  %v326_v6 = vmul.f32 %v325_v0, %v323_v1  ;;  %v339_v1 = vld [vmem:[%s10729_s6] sm:$0xff]  ;;  %v687_v3 = vperm.slane %v10050_v55, 1 }
  0xcc   :  { %v327_v10 = vadd.f32 %v326_v6, %v315_v5 }
  0xcd   :  { %v329_v4 = vpop.permute.xlu1 %328 }
  0xce   :  { %v330_v7 = vmul.f32 %v329_v4, %v213_v2  ;;  %v333_v8 = vpop.permute.xlu0 %332  ;;  %v613_v2 = vperm.slane %v10009_v34, 7 }
  0xd0   :  { %v335_v9 = vperm.slane %v330_v7, 0 }
  0xd1   :  { %v9966_v21 = vpop.permute.xlu2 %469 }
  0xd2   :  { %v336_v11 = vmul.f32 %v335_v9, %v333_v8  ;;  %v650_v9 = vperm.slane %v10050_v55, 0 }
  0xd4   :  { %v337_v14 = vadd.f32 %v336_v11, %v327_v10  ;;  %v870_v10 = vperm.slane %v10050_v55, 6  ;;  %v796_v11 = vperm.slane %v10050_v55, 4 }
  0xd5   :  { %v9946_v16 = vpop.permute.xlu1 %467 }
  0xd6   :  { %v9926_v15 = vmax.f32 %v337_v14, 0.0  ;;  %v9968_v22 = vpop.permute.xlu0 %504 }
  0xd8   :  { %389 = vrot.lane.b32.xlu0 %v9926_v15, %s9721_s22  ;;  %426 = vrot.lane.b32.xlu2 %v9926_v15, %s9683_s2 }
  0xd9   :  { %353 = vrot.lane.b32.xlu1 %v9926_v15, %s9722_s20  ;;  %v9975_v24 = vpop.permute.xlu2 %541 }
  0xdd   :  { %v433_v18 = vpop.permute.xlu1 %432 }
  0xde   :  { %v9983_v26 = vpop.permute.xlu0 %506 }
  0xe0   :  { %500 = vrot.lane.b32.xlu0 %v9926_v15, %s9723_s9  ;;  %798 = vrot.lane.b32.xlu2 %v9883_v12, %s9687_s25 }
  0xe1   :  { %463 = vrot.lane.b32.xlu1 %v9926_v15, %s9724_s13  ;;  %v9991_v29 = vpop.permute.xlu2 %617  ;;  %s9736_s13 = smov [#allocation21]  }
  0xe5   :  { %v9959_v20 = vpop.permute.xlu1 %395 }
  0xe6   :  { %v9998_v30 = vpop.permute.xlu0 %652 }
  0xe8   :  { %611 = vrot.lane.b32.xlu0 %v9926_v15, %s9680_s27  ;;  %574 = vrot.lane.b32.xlu2 %v9926_v15, %s9697_s29  ;;  %s9729_s29 = smov 24  }
  0xe9   :  { %765 = vrot.lane.b32.xlu1 %v9891_v13, %s9720_s23  ;;  %v10003_v32 = vpop.permute.xlu2 %689 }
  0xed   :  { %v579_v23 = vpop.permute.xlu1 %578 }
  0xee   :  { %v10007_v33 = vpop.permute.xlu0 %654 }
  0xf0   :  { %648 = vrot.lane.b32.xlu0 %v9926_v15, %s9698_s1  ;;  %537 = vrot.lane.b32.xlu2 %v9926_v15, %s9725_s11  ;;  %s9730_s1 = smov 122   ;;  %s6289_s11 = sshll.u32 %s9736_s13, 4  ;;  %s6290_s11 = int_to_ptr.vmem [resolvable:$true] %s6289_s11 }
  0xf1   :  { %868 = vrot.lane.b32.xlu1 %v9926_v15, %s9726_s14 }
  0xf5   :  { %v9987_v27 = vpop.permute.xlu1 %615 }
  0xf6   :  { %v10021_v39 = vpop.permute.xlu0 %728 }
  0xf8   :  { %759 = vrot.lane.b32.xlu0 %v9926_v15, %s9701_s0  ;;  %722 = vrot.lane.b32.xlu2 %v9926_v15, %s9727_s24  ;;  %s9731_s0 = smov 118  }
  0xf9   :  { %831 = vrot.lane.b32.xlu1 %v9926_v15, %s9704_s4  ;;  %s9735_s4 = smov 113  }
  0xfd   :  { %v581_v31 = vpop.permute.xlu1 %580 }
  0xfe   :  { %v10036_v43 = vpop.permute.xlu0 %691 }
 0x100   :  { %872 = vrot.lane.b32.xlu0 %v9883_v12, %s9683_s2  ;;  %685 = vrot.lane.b32.xlu2 %v9926_v15, %s9728_s28  ;;  %s6291_s28 = sshll.u32 %s10738_s15, 4  ;;  %s6292_s28 = int_to_ptr.hbm [resolvable:$true] %s6291_s28 }
 0x101   :  { %835 = vrot.lane.b32.xlu1 %v9883_v12, %s9729_s29 }
 0x105   :  { %v10011_v35 = vpop.permute.xlu1 %543 }
 0x108   :  { %909 = vrot.lane.b32.xlu0 %v9883_v12, %s9680_s27  ;;  %905 = vrot.lane.b32.xlu2 %v9926_v15, %s9730_s1 }
 0x109   :  { %911 = vrot.lane.b32.xlu1 %v9891_v13, %s9680_s27  ;;  %s9732_s27 = smov 114  }
 0x10d   :  { %v727_v40 = vpop.permute.xlu1 %726 }
 0x110   :  { %874 = vrot.lane.b32.xlu0 %v9891_v13, %s9683_s2  ;;  %800 = vrot.lane.b32.xlu2 %v9891_v13, %s9687_s25  ;;  %s9733_s2 = smov 111   ;;  %s9734_s25 = smov 110  }
 0x111   :  { %1051 = vrot.lane.b32.xlu1 %v9926_v15, %s9731_s0 }
 0x115   :  { %v10040_v44 = vpop.permute.xlu1 %763 }
 0x118   :  { %1014 = vrot.lane.b32.xlu0 %v9926_v15, %s9709_s17  ;;  %942 = vrot.lane.b32.xlu2 %v9926_v15, %s9705_s8 }
 0x119   :  { %1055 = vrot.lane.b32.xlu1 %v9977_v25, %s9711_s5 }
 0x120   :  { %977 = vrot.lane.b32.xlu0 %v9926_v15, %s9707_s16  ;;  %837 = vrot.lane.b32.xlu2 %v9891_v13, %s9729_s29 }
 0x121   :  { %1020 = vrot.lane.b32.xlu1 %v9989_v28, %s9713_s21 }
 0x128   :  { %1088 = vrot.lane.b32.xlu0 %v9926_v15, %s9732_s27  ;;  %1018 = vrot.lane.b32.xlu2 %v9977_v25, %s9713_s21 }
 0x129   :  { %983 = vrot.lane.b32.xlu1 %v9989_v28, %s9707_s16 }
 0x130   :  { %1092 = vrot.lane.b32.xlu0 %v9977_v25, %s9712_s3  ;;  %981 = vrot.lane.b32.xlu2 %v9977_v25, %s9707_s16 }
 0x131   :  { %1166 = vrot.lane.b32.xlu1 %v9977_v25, %s9715_s10 }
 0x132   :  { %v427_v37 = vpop.permute.xlu2 %426 }
 0x133   :  { %v429_v38 = vmul.f32 %v428_v36, %v427_v37 }
 0x135   :  { %453 = vmatpush.msra.mxu2 %v429_v38  ;;  %v10104_v38 = vld [vmem:[#allocation6 + $0x10] sm:$0xff] }
 0x136   :  { %6310 = vmatmul.msk.f32.vlgmr.msra.gmra.mxu2 %vm357_vm0, %v431_v17 }
 0x138   :  { %1199 = vrot.lane.b32.xlu0 %v9926_v15, %s9733_s2  ;;  %1057 = vrot.lane.b32.xlu2 %v9989_v28, %s9711_s5 }
 0x139   :  { %1203 = vrot.lane.b32.xlu1 %v9977_v25, %s9717_s7 }
 0x13a   :  { %v10028_v41 = vpop.permute.xlu2 %798 }
 0x13e   :  { %6311 = vmatmul.msk.f32.gmra.mxu2 %vm357_vm0, %v433_v18 }
 0x140   :  { %1094 = vrot.lane.b32.xlu0 %v9989_v28, %s9712_s3  ;;  %1162 = vrot.lane.b32.xlu2 %v9926_v15, %s9713_s21 }
 0x141   :  { %1240 = vrot.lane.b32.xlu1 %v9977_v25, %s9714_s26 }
 0x142   :  { %v575_v45 = vpop.permute.xlu2 %574 }
 0x143   :  { %v577_v46 = vmul.f32 %v576_v42, %v575_v45 }
 0x145   :  { %601 = vmatpush.msrb.mxu2 %v577_v46 }
 0x146   :  { %6318 = vmatmul.msk.f32.vlgmr.msrb.gmra.mxu2 %vm357_vm0, %v579_v23  ;;  %v833_v23 = vperm.slane %v10050_v55, 5 }
 0x148   :  { %1236 = vrot.lane.b32.xlu0 %v9926_v15, %s9734_s25  ;;  %1125 = vrot.lane.b32.xlu2 %v9926_v15, %s9735_s4 }
 0x149   :  { %1131 = vrot.lane.b32.xlu1 %v9989_v28, %s9716_s30 }
 0x14a   :  { %v390_v49 = vpop.permute.xlu0 %389  ;;  %v538_v50 = vpop.permute.xlu2 %537 }
 0x14b   :  { %v354_v52 = vpop.permute.xlu1 %353  ;;  %v392_v53 = vmul.f32 %v391_v47, %v390_v49  ;;  %v540_v56 = vmul.f32 %v539_v51, %v538_v50  ;;  %v979_v50 = vperm.slane %v10104_v38, 1 }
 0x14c   :  { %v356_v54 = vmul.f32 %v355_v48, %v354_v52 }
 0x14e   :  { %379 = vmatpush.msra.mxu0 %v356_v54  ;;  %9272 = vmatpush.msra.mxu1 %v356_v54  ;;  %v1090_v54 = vperm.slane %v10104_v38, 4 }
 0x14f   :  { %6306 = vmatmul.msk.f32.vlgmr.msra.gmra.mxu0 %vm357_vm0, %v9883_v12  ;;  %6307 = vmatmul.msk.f32.vlgmr.msra.gmra.mxu1 %vm357_vm0, %v9891_v13 }
 0x150   :  { %416 = vmatpush.msrb.mxu1 %v392_v53  ;;  %6319 = vmatmul.msk.f32.gmra.mxu2 %vm357_vm0, %v581_v31 }
 0x151   :  { %1205 = vrot.lane.b32.xlu0 %v9989_v28, %s9717_s7  ;;  %1129 = vrot.lane.b32.xlu2 %v9977_v25, %s9716_s30 }
 0x152   :  { %564 = vmatpush.msra.mxu1 %v540_v56  ;;  %v501_v12 = vpop.permute.xlu0 %500  ;;  %v723_v13 = vpop.permute.xlu2 %722  ;;  %348 = vperm.xlu1 %9347, %v340_v59  }
 0x153   :  { %v503_v61 = vmul.f32 %v502_v57, %v501_v12  ;;  %v725_v62 = vmul.f32 %v724_v58, %v723_v13  ;;  %v464_v63 = vpop.permute.xlu1 %463 }
 0x154   :  { %v466_v0 = vmul.f32 %v465_v60, %v464_v63  ;;  %v1127_v60 = vperm.slane %v10104_v38, 5  ;;  %v1201_v63 = vperm.slane %v10104_v38, 7 }
 0x155   :  { %527 = vmatpush.msrb.mxu0 %v503_v61  ;;  %749 = vmatpush.msra.mxu2 %v725_v62 }
 0x156   :  { %490 = vmatpush.msra.mxu3 %v466_v0 }
 0x157   :  { %6308 = vmatmul.msk.f32.vlgmr.msrb.gmra.mxu1 %vm357_vm0, %v9956_v19  ;;  %6312 = vmatmul.msk.f32.vlgmr.msra.gmra.mxu3 %vm357_vm0, %v9946_v16 }
 0x158   :  { %6314 = vmatmul.msk.f32.vlgmr.msrb.gmra.mxu0 %vm357_vm0, %v9968_v22  ;;  %6326 = vmatmul.msk.f32.vlgmr.msra.gmra.mxu2 %vm357_vm0, %v727_v40  ;;  %v907_v22 = vperm.slane %v10050_v55, 7 }
 0x159   :  { %343 = vperm.xlu0 %9346, %v339_v1   ;;  %1168 = vrot.lane.b32.xlu2 %v9989_v28, %s9715_s10 }
 0x15a   :  { %v612_v4 = vpop.permute.xlu0 %611  ;;  %v686_v5 = vpop.permute.xlu2 %685 }
 0x15b   :  { %v614_v6 = vmul.f32 %v613_v2, %v612_v4  ;;  %v688_v7 = vmul.f32 %v687_v3, %v686_v5  ;;  %v766_v8 = vpop.permute.xlu1 %765 }
 0x15d   :  { %638 = vmatpush.msrb.mxu3 %v614_v6  ;;  %712 = vmatpush.msrb.mxu1 %v688_v7  ;;  %v9348_v7 = vld [vmem:[#allocation6 + $0x18] ss:$0 sm:$0xff] }
 0x15f   :  { %6309 = vmatmul.msk.f32.gmra.mxu1 %vm357_vm0, %v9959_v20  ;;  %6313 = vmatmul.msk.f32.gmra.mxu3 %vm357_vm0, %v9966_v21  ;;  %v797_v20 = vmul.f32 %v796_v11, %v9926_v15  ;;  %v761_v21 = vperm.slane %v10050_v55, 3  ;;  %v1164_v55 = vperm.slane %v10104_v38, 6 }
 0x160   :  { %6315 = vmatmul.msk.f32.gmra.mxu0 %vm357_vm0, %v9983_v26  ;;  %6327 = vmatmul.msk.f32.gmra.mxu2 %vm357_vm0, %v10021_v39 }
 0x161   :  { %1242 = vrot.lane.b32.xlu2 %v9989_v28, %s9714_s26 }
 0x162   :  { %v649_v14 = vpop.permute.xlu0 %648  ;;  %v906_v16 = vpop.permute.xlu2 %905 }
 0x163   :  { %v651_v17 = vmul.f32 %v650_v9, %v649_v14  ;;  %v869_v18 = vpop.permute.xlu1 %868  ;;  %v908_v36 = vmul.f32 %v907_v22, %v906_v16 }
 0x164   :  { %v871_v19 = vmul.f32 %v870_v10, %v869_v18 }
 0x165   :  { %675 = vmatpush.msra.mxu0 %v651_v17 }
 0x166   :  { %895 = vmatpush.msrb.mxu2 %v871_v19 }
 0x167   :  { %821 = vmatpush.msrb.mxu0 %v797_v20  ;;  %6316 = vmatmul.msk.f32.vlgmr.msra.gmra.mxu1 %vm357_vm0, %v9975_v24  ;;  %v944_v24 = vperm.slane %v10104_v38, 0 }
 0x168   :  { %6320 = vmatmul.msk.f32.vlgmr.msrb.gmra.mxu3 %vm357_vm0, %v9987_v27  ;;  %6322 = vmatmul.msk.f32.vlgmr.msra.gmra.mxu0 %vm357_vm0, %v9998_v30 }
 0x16a   :  { %v760_v26 = vpop.permute.xlu0 %759  ;;  %v801_v15 = vpop.permute.xlu2 %800 }
 0x16b   :  { %v762_v31 = vmul.f32 %v761_v21, %v760_v26  ;;  %v832_v34 = vpop.permute.xlu1 %831 }
 0x16c   :  { %v834_v37 = vmul.f32 %v833_v23, %v832_v34 }
 0x16d   :  { %786 = vmatpush.msra.mxu3 %v762_v31 }
 0x16e   :  { %858 = vmatpush.msra.mxu1 %v834_v37 }
 0x16f   :  { %932 = vmatpush.msrb.mxu3 %v908_v36  ;;  %6317 = vmatmul.msk.f32.gmra.mxu1 %vm357_vm0, %v10011_v35 }
 0x170   :  { %6321 = vmatmul.msk.f32.gmra.mxu3 %vm357_vm0, %v9991_v29  ;;  %6323 = vmatmul.msk.f32.gmra.mxu0 %vm357_vm0, %v10007_v33  ;;  %v1053_v33 = vperm.slane %v10104_v38, 3 }
 0x172   :  { %v873_v27 = vpop.permute.xlu0 %872  ;;  %v943_v30 = vpop.permute.xlu2 %942 }
 0x173   :  { %v945_v39 = vmul.f32 %v944_v24, %v943_v30  ;;  %v836_v40 = vpop.permute.xlu1 %835  ;;  %6334 = vmatmul.msk.f32.vlgmr.msrb.gmra.mxu2 %vm357_vm0, %v873_v27 }
 0x175   :  { %967 = vmatpush.msra.mxu0 %v945_v39 }
 0x177   :  { %6324 = vmatmul.msk.f32.vlgmr.msrb.gmra.mxu1 %vm357_vm0, %v10003_v32 }
 0x178   :  { %6328 = vmatmul.msk.f32.vlgmr.msra.gmra.mxu3 %vm357_vm0, %v10040_v44  ;;  %6330 = vmatmul.msk.f32.vlgmr.msrb.gmra.mxu0 %vm357_vm0, %v10028_v41  ;;  %v1016_v41 = vperm.slane %v10104_v38, 2 }
 0x17a   :  { %v910_v29 = vpop.permute.xlu0 %909  ;;  %v838_v35 = vpop.permute.xlu2 %837 }
 0x17b   :  { %v912_v42 = vpop.permute.xlu1 %911 }
 0x17f   :  { %6325 = vmatmul.msk.f32.gmra.mxu1 %vm357_vm0, %v10036_v43 }
 0x180   :  { %6329 = vmatmul.msk.f32.gmra.mxu3 %vm357_vm0, %v766_v8  ;;  %6331 = vmatmul.msk.f32.gmra.mxu0 %vm357_vm0, %v801_v15 }
 0x182   :  { %v875_v45 = vpop.permute.xlu0 %874  ;;  %v1019_v32 = vpop.permute.xlu2 %1018 }
 0x183   :  { %v1052_v46 = vpop.permute.xlu1 %1051  ;;  %6335 = vmatmul.msk.f32.gmra.mxu2 %vm357_vm0, %v875_v45 }
 0x184   :  { %v1054_v44 = vmul.f32 %v1053_v33, %v1052_v46 }
 0x186   :  { %1078 = vmatpush.msra.mxu3 %v1054_v44 }
 0x187   :  { %6332 = vmatmul.msk.f32.vlgmr.msra.gmra.mxu1 %vm357_vm0, %v836_v40 }
 0x188   :  { %6336 = vmatmul.msk.f32.vlgmr.msrb.gmra.mxu3 %vm357_vm0, %v910_v29  ;;  %6338 = vmatmul.msk.f32.vlgmr.msra.gmra.mxu0 %vm357_vm0, %v9977_v25 }
 0x18a   :  { %v1015_v43 = vpop.permute.xlu0 %1014  ;;  %v982_v47 = vpop.permute.xlu2 %981 }
 0x18b   :  { %v1017_v48 = vmul.f32 %v1016_v41, %v1015_v43  ;;  %v1056_v49 = vpop.permute.xlu1 %1055 }
 0x18d   :  { %1041 = vmatpush.msra.mxu2 %v1017_v48 }
 0x18e   :  { %6342 = vmatmul.msk.f32.vlgmr.msra.gmra.mxu2 %vm357_vm0, %v1019_v32 }
 0x18f   :  { %6333 = vmatmul.msk.f32.gmra.mxu1 %vm357_vm0, %v838_v35 }
 0x190   :  { %6337 = vmatmul.msk.f32.gmra.mxu3 %vm357_vm0, %v912_v42  ;;  %6339 = vmatmul.msk.f32.gmra.mxu0 %vm357_vm0, %v9989_v28 }
 0x192   :  { %v978_v51 = vpop.permute.xlu0 %977  ;;  %v1058_v52 = vpop.permute.xlu2 %1057 }
 0x193   :  { %v980_v53 = vmul.f32 %v979_v50, %v978_v51  ;;  %v1021_v25 = vpop.permute.xlu1 %1020 }
 0x195   :  { %1004 = vmatpush.msrb.mxu1 %v980_v53 }
 0x196   :  { %6343 = vmatmul.msk.f32.gmra.mxu2 %vm357_vm0, %v1021_v25 }
 0x197   :  { %6340 = vmatmul.msk.f32.vlgmr.msrb.gmra.mxu1 %vm357_vm0, %v982_v47 }
 0x198   :  { %6344 = vmatmul.msk.f32.vlgmr.msra.gmra.mxu3 %vm357_vm0, %v1056_v49 }
 0x19a   :  { %v1089_v56 = vpop.permute.xlu0 %1088  ;;  %v1163_v57 = vpop.permute.xlu2 %1162 }
 0x19b   :  { %v1091_v58 = vmul.f32 %v1090_v54, %v1089_v56  ;;  %v1165_v59 = vmul.f32 %v1164_v55, %v1163_v57  ;;  %v984_v28 = vpop.permute.xlu1 %983 }
 0x19d   :  { %1115 = vmatpush.msrb.mxu0 %v1091_v58  ;;  %1189 = vmatpush.msrb.mxu2 %v1165_v59 }
 0x19f   :  { %6341 = vmatmul.msk.f32.gmra.mxu1 %vm357_vm0, %v984_v28 }
 0x1a0   :  { %6345 = vmatmul.msk.f32.gmra.mxu3 %vm357_vm0, %v1058_v52 }
 0x1a2   :  { %v1093_v12 = vpop.permute.xlu0 %1092  ;;  %v1126_v13 = vpop.permute.xlu2 %1125 }
 0x1a3   :  { %v1128_v61 = vmul.f32 %v1127_v60, %v1126_v13  ;;  %v1167_v62 = vpop.permute.xlu1 %1166  ;;  %6346 = vmatmul.msk.f32.vlgmr.msrb.gmra.mxu0 %vm357_vm0, %v1093_v12 }
 0x1a4   :  { %6350 = vmatmul.msk.f32.vlgmr.msrb.gmra.mxu2 %vm357_vm0, %v1167_v62 }
 0x1a5   :  { %1152 = vmatpush.msra.mxu1 %v1128_v61 }
 0x1aa   :  { %v1200_v0 = vpop.permute.xlu0 %1199 }
 0x1ab   :  { %v1202_v1 = vmul.f32 %v1201_v63, %v1200_v0  ;;  %v1204_v2 = vpop.permute.xlu1 %1203  ;;  %v1130_v3 = vpop.permute.xlu2 %1129 }
 0x1ac   :  { %6348 = vmatmul.msk.f32.vlgmr.msra.gmra.mxu1 %vm357_vm0, %v1130_v3 }
 0x1ad   :  { %1226 = vmatpush.msrb.mxu3 %v1202_v1 }
 0x1ae   :  { %6352 = vmatmul.msk.f32.vlgmr.msrb.gmra.mxu3 %vm357_vm0, %v1204_v2 }
 0x1b2   :  { %v1095_v4 = vpop.permute.xlu0 %1094 }
 0x1b3   :  { %v1241_v5 = vpop.permute.xlu1 %1240  ;;  %6347 = vmatmul.msk.f32.gmra.mxu0 %vm357_vm0, %v1095_v4  ;;  %v1169_v6 = vpop.permute.xlu2 %1168 }
 0x1b4   :  { %6351 = vmatmul.msk.f32.gmra.mxu2 %vm357_vm0, %v1169_v6 }
 0x1b9   :  { %v455_v20 = vpop.f32.mrf.mxu2 }
 0x1ba   :  { %v1237_v8 = vpop.permute.xlu0 %1236 }
 0x1bb   :  { %v1239_v9 = vmul.f32 %v9348_v7, %v1237_v8  ;;  %v1132_v10 = vpop.permute.xlu1 %1131  ;;  %v1243_v14 = vpop.permute.xlu2 %1242 }
 0x1bc   :  { %6349 = vmatmul.msk.f32.gmra.mxu1 %vm357_vm0, %v1132_v10 }
 0x1bd   :  { %1263 = vmatpush.msra.mxu0 %v1239_v9 }
 0x1be   :  { %6354 = vmatmul.msk.f32.vlgmr.msra.gmra.mxu0 %vm357_vm0, %v1241_v5 }
 0x1c1   :  { %v458_v15 = vpop.f32.mrf.mxu2 }
 0x1c3   :  { %v1206_v11 = vpop.permute.xlu0 %1205 }
 0x1c4   :  { %6353 = vmatmul.msk.f32.gmra.mxu3 %vm357_vm0, %v1206_v11  ;;  %v349_v32 = vpop.permute.xlu1 %348 }
 0x1c6   :  { %6355 = vmatmul.msk.f32.gmra.mxu0 %vm357_vm0, %v1243_v14 }
 0x1c9   :  { %v603_v37 = vpop.f32.mrf.mxu2 }
 0x1cb   :  { %v344_v38 = vpop.permute.xlu0 %343 }
 0x1cc   :  { %v384_v16 = vpop.f32.mrf.mxu1  ;;  %v381_v18 = vpop.f32.mrf.mxu0 }
 0x1cd   :  { %v387_v30 = vadd.f32 %v381_v18, %v344_v38  ;;  %v388_v41 = vadd.f32 %v384_v16, %v349_v32 }
 0x1d3   :  { %v606_v40 = vpop.f32.mrf.mxu2 }
 0x1d4   :  { %v418_v17 = vpop.f32.mrf.mxu1 }
 0x1d5   :  { %v529_v22 = vpop.f32.mrf.mxu0  ;;  %v424_v29 = vadd.f32 %v418_v17, %v387_v30 }
 0x1d7   :  { %v461_v33 = vadd.f32 %v455_v20, %v424_v29 }
 0x1da   :  { %v492_v19 = vpop.f32.mrf.mxu3 }
 0x1db   :  { %v498_v45 = vadd.f32 %v492_v19, %v461_v33  ;;  %v751_v44 = vpop.f32.mrf.mxu2 }
 0x1dc   :  { %v421_v21 = vpop.f32.mrf.mxu1 }
 0x1dd   :  { %v532_v31 = vpop.f32.mrf.mxu0  ;;  %v535_v43 = vadd.f32 %v529_v22, %v498_v45  ;;  %v425_v50 = vadd.f32 %v421_v21, %v388_v41 }
 0x1df   :  { %v462_v53 = vadd.f32 %v458_v15, %v425_v50 }
 0x1e2   :  { %v495_v23 = vpop.f32.mrf.mxu3 }
 0x1e3   :  { %v754_v54 = vpop.f32.mrf.mxu2  ;;  %v499_v55 = vadd.f32 %v495_v23, %v462_v53 }
 0x1e4   :  { %v566_v26 = vpop.f32.mrf.mxu1 }
 0x1e5   :  { %v677_v24 = vpop.f32.mrf.mxu0  ;;  %v572_v47 = vadd.f32 %v566_v26, %v535_v43  ;;  %v536_v59 = vadd.f32 %v532_v31, %v499_v55 }
 0x1e7   :  { %v609_v51 = vadd.f32 %v603_v37, %v572_v47 }
 0x1eb   :  { %v640_v34 = vpop.f32.mrf.mxu3 }
 0x1ec   :  { %v569_v36 = vpop.f32.mrf.mxu1  ;;  %v646_v25 = vadd.f32 %v640_v34, %v609_v51 }
 0x1ed   :  { %v680_v35 = vpop.f32.mrf.mxu0  ;;  %v573_v60 = vadd.f32 %v569_v36, %v536_v59 }
 0x1ee   :  { %v683_v56 = vadd.f32 %v677_v24, %v646_v25 }
 0x1ef   :  { %v610_v62 = vadd.f32 %v606_v40, %v573_v60 }
 0x1f3   :  { %v643_v27 = vpop.f32.mrf.mxu3 }
 0x1f4   :  { %v714_v39 = vpop.f32.mrf.mxu1  ;;  %v647_v1 = vadd.f32 %v643_v27, %v610_v62 }
 0x1f5   :  { %v823_v48 = vpop.f32.mrf.mxu0  ;;  %v720_v28 = vadd.f32 %v714_v39, %v683_v56 }
 0x1f6   :  { %v897_v12 = vpop.f32.mrf.mxu2  ;;  %v684_v5 = vadd.f32 %v680_v35, %v647_v1 }
 0x1f7   :  { %v757_v61 = vadd.f32 %v751_v44, %v720_v28 }
 0x1fb   :  { %v788_v42 = vpop.f32.mrf.mxu3 }
 0x1fc   :  { %v717_v46 = vpop.f32.mrf.mxu1  ;;  %v794_v63 = vadd.f32 %v788_v42, %v757_v61 }
 0x1fd   :  { %v826_v57 = vpop.f32.mrf.mxu0  ;;  %v721_v8 = vadd.f32 %v717_v46, %v684_v5 }
 0x1fe   :  { %v829_v3 = vadd.f32 %v823_v48, %v794_v63 }
 0x1ff   :  { %v758_v11 = vadd.f32 %v754_v54, %v721_v8 }
 0x203   :  { %v791_v49 = vpop.f32.mrf.mxu3 }
 0x204   :  { %v860_v52 = vpop.f32.mrf.mxu1  ;;  %v795_v18 = vadd.f32 %v791_v49, %v758_v11 }
 0x205   :  { %v969_v0 = vpop.f32.mrf.mxu0  ;;  %v866_v6 = vadd.f32 %v860_v52, %v829_v3 }
 0x206   :  { %v900_v4 = vpop.f32.mrf.mxu2  ;;  %v830_v21 = vadd.f32 %v826_v57, %v795_v18 }
 0x207   :  { %v903_v9 = vadd.f32 %v897_v12, %v866_v6 }
 0x20b   :  { %v934_v58 = vpop.f32.mrf.mxu3 }
 0x20c   :  { %v863_v13 = vpop.f32.mrf.mxu1  ;;  %v940_v14 = vadd.f32 %v934_v58, %v903_v9 }
 0x20d   :  { %v972_v10 = vpop.f32.mrf.mxu0  ;;  %v867_v26 = vadd.f32 %v863_v13, %v830_v21 }
 0x20e   :  { %v975_v19 = vadd.f32 %v969_v0, %v940_v14 }
 0x20f   :  { %v904_v36 = vadd.f32 %v900_v4, %v867_v26 }
 0x211   :  { %v1043_v16 = vpop.f32.mrf.mxu2 }
 0x213   :  { %v937_v2 = vpop.f32.mrf.mxu3 }
 0x214   :  { %v1006_v7 = vpop.f32.mrf.mxu1  ;;  %v941_v24 = vadd.f32 %v937_v2, %v904_v36  ;;  %v8754_v36 = vld [vmem:[#allocation12 + $0x1ec] sm:$0xf0] }
 0x215   :  { %v1012_v22 = vadd.f32 %v1006_v7, %v975_v19 }
 0x216   :  { %v976_v29 = vadd.f32 %v972_v10, %v941_v24  ;;  %v8786_v24 = vld [vmem:[#allocation12 + $0x2ec] sm:$0xf0] }
 0x217   :  { %v1049_v31 = vadd.f32 %v1043_v16, %v1012_v22 }
 0x219   :  { %v1046_v15 = vpop.f32.mrf.mxu2 }
 0x21b   :  { %v1080_v17 = vpop.f32.mrf.mxu3 }
 0x21c   :  { %v1009_v20 = vpop.f32.mrf.mxu1  ;;  %v1086_v37 = vadd.f32 %v1080_v17, %v1049_v31 }
 0x21d   :  { %v1013_v42 = vadd.f32 %v1009_v20, %v976_v29  ;;  %v6594_v29 = vld [vmem:[#allocation12 + $0x1c0] sm:$0xf] }
 0x21f   :  { %v1050_v46 = vadd.f32 %v1046_v15, %v1013_v42  ;;  %v6722_v42 = vld [vmem:[#allocation12 + $0x2c0] sm:$0xf] }
 0x220   :  { %v1117_v23 = vpop.f32.mrf.mxu0 }
 0x221   :  { %v1123_v27 = vadd.f32 %v1117_v23, %v1086_v37  ;;  %v6738_v37 = vld [vmem:[#allocation12 + $0x2e0] sm:$0xf] }
 0x223   :  { %v1083_v34 = vpop.f32.mrf.mxu3 }
 0x224   :  { %v1087_v41 = vadd.f32 %v1083_v34, %v1050_v46  ;;  %v6610_v34 = vld [vmem:[#allocation12 + $0x1e0] sm:$0xf]  ;;  %v8814_v46 = vld [vmem:[#allocation12 + $0x3cc] sm:$0xf0] }
 0x227   :  { %v1191_v40 = vpop.f32.mrf.mxu2 }
 0x229   :  { %v1154_v38 = vpop.f32.mrf.mxu1 }
 0x22a   :  { %v1160_v39 = vadd.f32 %v1154_v38, %v1123_v27  ;;  %v6611_v38 = vor.u32 %v8754_v36, %v6610_v34  ;;  %v6866_v27 = vld [vmem:[#allocation12 + $0x3e0] sm:$0xf]  ;;  %v8714_v34 = vld [vmem:[#allocation12 + $0xac] sm:$0xf0] }
 0x22c   :  { %v1197_v33 = vadd.f32 %v1191_v40, %v1160_v39  ;;  %v6739_v39 = vor.u32 %v8786_v24, %v6738_v37  ;;  %3098 = vmatpush.bf16.msra.mxu2 %v6611_v38 }
 0x22e   :  { %3111 = vmatpush.bf16.msra.mxu3 %v6739_v39  ;;  %v8730_v39 = vld [vmem:[#allocation12 + $0x12c] sm:$0xf0] }
 0x230   :  { %v1120_v30 = vpop.f32.mrf.mxu0 }
 0x231   :  { %v1228_v35 = vpop.f32.mrf.mxu3  ;;  %v1124_v48 = vadd.f32 %v1120_v30, %v1087_v41  ;;  %v8818_v30 = vld [vmem:[#allocation12 + $0x3ec] sm:$0xf0] }
 0x232   :  { %v1234_v45 = vadd.f32 %v1228_v35, %v1197_v33  ;;  %v6867_v40 = vor.u32 %v8818_v30, %v6866_v27  ;;  %v8750_v35 = vld [vmem:[#allocation12 + $0x1cc] sm:$0xf0]  ;;  %v6514_v30 = vld [vmem:[#allocation12 + $0x120] sm:$0xf] }
 0x233   :  { %v6595_v33 = vor.u32 %v8750_v35, %v6594_v29  ;;  %v8762_v35 = vld [vmem:[#allocation12 + $0x22c] sm:$0xf0] }
 0x234   :  { %3124 = vmatpush.bf16.msrb.mxu0 %v6867_v40  ;;  %v6642_v40 = vld [vmem:[#allocation12 + $0x220] sm:$0xf] }
 0x235   :  { %3099 = vmatpush.bf16.msra.mxu2 %v6595_v33  ;;  %v8794_v33 = vld [vmem:[#allocation12 + $0x32c] sm:$0xf0] }
 0x237   :  { %v1194_v51 = vpop.f32.mrf.mxu2 }
 0x239   :  { %v1157_v47 = vpop.f32.mrf.mxu1 }
 0x23a   :  { %v1161_v50 = vadd.f32 %v1157_v47, %v1124_v48  ;;  %v8746_v47 = vld [vmem:[#allocation12 + $0x1ac] sm:$0xf0]  ;;  %v6706_v48 = vld [vmem:[#allocation12 + $0x2a0] sm:$0xf] }
 0x23b   :  { %v1265_v32 = vpop.f32.mrf.mxu0 }
 0x23c   :  { %v10156_v44 = vadd.f32 %v1265_v32, %v1234_v45  ;;  %v1198_v53 = vadd.f32 %v1194_v51, %v1161_v50  ;;  %v8782_v45 = vld [vmem:[#allocation12 + $0x2cc] sm:$0xf0]  ;;  %v6850_v32 = vld [vmem:[#allocation12 + $0x3c0] sm:$0xf] }
 0x23d   :  { %v6851_v41 = vor.u32 %v8814_v46, %v6850_v32  ;;  %v8778_v50 = vld [vmem:[#allocation12 + $0x2ac] sm:$0xf0]  ;;  %v6834_v51 = vld [vmem:[#allocation12 + $0x3a0] sm:$0xf] }
 0x23e   :  { %1283 = vst.sshfl [vmem:[#allocation1] sm:$0xff pattern:$0x73625140] %v10156_v44  ;;  %1375 = vrot.lane.b32.xlu2 %v10156_v44, %s9714_s26  ;;  %v1276_v43 = vrot.slane %v10156_v44, 7  ;;  %v6498_v46 = vld [vmem:[#allocation12 + $0x100] sm:$0xf] }
 0x23f   :  { %1274 = vst.msk [vmem:[#allocation2] sm:$0x1] %vm1273_vm1, %v10156_v44  ;;  %3125 = vmatpush.bf16.msrb.mxu0 %v6851_v41  ;;  %v6626_v41 = vld [vmem:[#allocation12 + $0x200] sm:$0xf] }
 0x240   :  { %v1277_v49 = vrot.slane %v1276_v43, 2  ;;  %v6578_v43 = vld [vmem:[#allocation12 + $0x1a0] sm:$0xf] }
 0x242   :  { %1278 = vrot.lane.b32.xlu1 %v1277_v49, %s9714_s26 }
 0x243   :  { %v1268_v54 = vpop.f32.mrf.mxu0 }
 0x245   :  { %v1285_v52 = vld [vmem:[#allocation1 + $0x1] ss:$4 sm:$0xff] }
 0x246   :  { %1288 = vst.sshfl [vmem:[#allocation1] sm:$0xff pattern:$0x73625140] %v10156_v44 }
 0x247   :  { %v1231_v25 = vpop.f32.mrf.mxu3  ;;  %1287 = vst.msk [vmem:[#allocation2 + $0x2] sm:$0x1] %vm1273_vm1, %v1285_v52  ;;  %v8810_v52 = vld [vmem:[#allocation12 + $0x3ac] sm:$0xf0] }
 0x248   :  { %v1235_v55 = vadd.f32 %v1231_v25, %v1198_v53  ;;  %v6707_v53 = vor.u32 %v8778_v50, %v6706_v48  ;;  %v6835_v25 = vor.u32 %v8810_v52, %v6834_v51  ;;  %v8790_v48 = vld [vmem:[#allocation12 + $0x30c] sm:$0xf0] }
 0x24a   :  { %v10167_v56 = vadd.f32 %v1268_v54, %v1235_v55  ;;  %v6562_v54 = vld [vmem:[#allocation12 + $0x180] sm:$0xf]  ;;  %v8742_v55 = vld [vmem:[#allocation12 + $0x18c] sm:$0xf0]  ;;  %3126 = vmatpush.bf16.msrb.mxu0 %v6835_v25 }
 0x24c   :  { %1325 = vst.msk [vmem:[#allocation2 + $0x8] sm:$0x1] %vm1273_vm1, %v10167_v56  ;;  %v1327_v14 = vrot.slane %v10167_v56, 7 }
 0x24d   :  { %v1290_v57 = vld [vmem:[#allocation1 + $0x1] ss:$4 sm:$0xff] }
 0x24e   :  { %1297 = vst.sshfl [vmem:[#allocation1] sm:$0xff pattern:$0x73625140] %v10156_v44  ;;  %v6356_v58 = vrot.slane %v1290_v57, 9  ;;  %v10211_v16 = vrot.slane %v1327_v14, 2 }
 0x24f   :  { %v8774_v57 = vld [vmem:[#allocation12 + $0x28c] sm:$0xf0] }
 0x250   :  { %1293 = vrot.lane.b32.xlu2 %v6356_v58, %s9714_s26  ;;  %v6818_v58 = vld [vmem:[#allocation12 + $0x380] sm:$0xf] }
 0x255   :  { %v1299_v59 = vld [vmem:[#allocation1 + $0x2] ss:$4 sm:$0xff] }
 0x256   :  { %1302 = vst.sshfl [vmem:[#allocation1] sm:$0xff pattern:$0x73625140] %v10156_v44 }
 0x257   :  { %1301 = vst.msk [vmem:[#allocation2 + $0x4] sm:$0x1] %vm1273_vm1, %v1299_v59  ;;  %v8806_v59 = vld [vmem:[#allocation12 + $0x38c] sm:$0xf0] }
 0x25d   :  { %v1304_v28 = vld [vmem:[#allocation1 + $0x2] ss:$4 sm:$0xff] }
 0x25e   :  { %1311 = vst.sshfl [vmem:[#allocation1] sm:$0xff pattern:$0x73625140] %v10156_v44  ;;  %v6357_v60 = vrot.slane %v1304_v28, 9  ;;  %v6563_v28 = vor.u32 %v8742_v55, %v6562_v54  ;;  %v6434_v54 = vld [vmem:[#allocation12 + $0x80] sm:$0xf] }
 0x25f   :  { %v8710_v55 = vld [vmem:[#allocation12 + $0x8c] sm:$0xf0] }
 0x260   :  { %1307 = vrot.lane.b32.xlu0 %v6357_v60, %s9714_s26  ;;  %v6546_v60 = vld [vmem:[#allocation12 + $0x160] sm:$0xf] }
 0x265   :  { %v1313_v12 = vld [vmem:[#allocation1 + $0x3] ss:$4 sm:$0xff] }
 0x266   :  { %1316 = vst.sshfl [vmem:[#allocation1] sm:$0xff pattern:$0x73625140] %v10156_v44 }
 0x267   :  { %1315 = vst.msk [vmem:[#allocation2 + $0x6] sm:$0x1] %vm1273_vm1, %v1313_v12  ;;  %v8738_v12 = vld [vmem:[#allocation12 + $0x16c] sm:$0xf0] }
 0x26d   :  { %v1318_v13 = vld [vmem:[#allocation1 + $0x3] ss:$4 sm:$0xff] }
 0x26e   :  { %1333 = vst.sshfl [vmem:[#allocation1] sm:$0xff pattern:$0x73625140] %v10167_v56  ;;  %v6358_v6 = vrot.slane %v1318_v13, 9 }
 0x275   :  { %v1335_v61 = vld [vmem:[#allocation1 + $0x1] ss:$4 sm:$0xff] }
 0x276   :  { %1338 = vst.sshfl [vmem:[#allocation1] sm:$0xff pattern:$0x73625140] %v10167_v56 }
 0x277   :  { %1337 = vst.msk [vmem:[#allocation2 + $0xa] sm:$0x1] %vm1273_vm1, %v1335_v61  ;;  %v6819_v61 = vor.u32 %v8806_v59, %v6818_v58  ;;  %v8882_v58 = vld [vmem:[#allocation12 + $0x5ec] sm:$0xf0]  ;;  %v7250_v59 = vld [vmem:[#allocation12 + $0x6e0] sm:$0xf] }
 0x279   :  { %3127 = vmatpush.bf16.msrb.mxu0 %v6819_v61 }
 0x27d   :  { %v1340_v62 = vld [vmem:[#allocation1 + $0x1] ss:$4 sm:$0xff] }
 0x27e   :  { %1347 = vst.sshfl [vmem:[#allocation1] sm:$0xff pattern:$0x73625140] %v10167_v56  ;;  %v6359_v23 = vrot.slane %v1340_v62, 9  ;;  %v6674_v62 = vld [vmem:[#allocation12 + $0x260] sm:$0xf] }
 0x285   :  { %v1349_v63 = vld [vmem:[#allocation1 + $0x2] ss:$4 sm:$0xff] }
 0x286   :  { %1352 = vst.sshfl [vmem:[#allocation1] sm:$0xff pattern:$0x73625140] %v10167_v56 }
 0x287   :  { %1351 = vst.msk [vmem:[#allocation2 + $0xc] sm:$0x1] %vm1273_vm1, %v1349_v63  ;;  %v6482_v63 = vld [vmem:[#allocation12 + $0xe0] sm:$0xf] }
 0x28d   :  { %v10185_v0 = vld [vmem:[#allocation1 + $0x2] ss:$4 sm:$0xff] }
 0x28e   :  { %1361 = vst.sshfl [vmem:[#allocation1] sm:$0xff pattern:$0x73625140] %v10167_v56  ;;  %v6360_v31 = vrot.slane %v10185_v0, 9  ;;  %v8722_v0 = vld [vmem:[#allocation12 + $0xec] sm:$0xf0] }
 0x295   :  { %v1363_v1 = vld [vmem:[#allocation1 + $0x3] ss:$4 sm:$0xff] }
 0x296   :  { %1366 = vst.sshfl [vmem:[#allocation1] sm:$0xff pattern:$0x73625140] %v10167_v56 }
 0x297   :  { %1365 = vst.msk [vmem:[#allocation2 + $0xe] sm:$0x1] %vm1273_vm1, %v1363_v1  ;;  %v8770_v1 = vld [vmem:[#allocation12 + $0x26c] sm:$0xf0] }
 0x298   :  { %v1376_v2 = vpop.permute.xlu2 %1375  ;;  %v6675_v14 = vor.u32 %v8770_v1, %v6674_v62  ;;  %v6418_v62 = vld [vmem:[#allocation12 + $0x60] sm:$0xf] }
 0x299   :  { %1378 = vst.msk [vmem:[#allocation2 + $0x1] sm:$0x1] %vm1273_vm1, %v1376_v2  ;;  %v6802_v2 = vld [vmem:[#allocation12 + $0x360] sm:$0xf] }
 0x29a   :  { %1380 = vst.msk [vmem:[#allocation2 + $0x1] sm:$0x1] %vm1281_vm2, %v1277_v49  ;;  %v6579_v49 = vor.u32 %v8746_v47, %v6578_v43  ;;  %v8758_v43 = vld [vmem:[#allocation12 + $0x20c] sm:$0xf0]  ;;  %v6754_v47 = vld [vmem:[#allocation12 + $0x300] sm:$0xf] }
 0x29b   :  { %v6627_v51 = vor.u32 %v8758_v43, %v6626_v41  ;;  %v6755_v52 = vor.u32 %v8790_v48, %v6754_v47  ;;  %v7106_v1 = vld [vmem:[#allocation12 + $0x5c0] sm:$0xf]  ;;  %v8694_v41 = vld [vmem:[#allocation12 + $0xc] sm:$0xf0] }
 0x29c   :  { %3100 = vmatpush.bf16.msra.mxu2 %v6579_v49  ;;  %v7058_v43 = vld [vmem:[#allocation12 + $0x560] sm:$0xf]  ;;  %v8866_v48 = vld [vmem:[#allocation12 + $0x56c] sm:$0xf0] }
 0x29d   :  { %v1368_v3 = vld [vmem:[#allocation1 + $0x3] ss:$4 sm:$0xff] }
 0x29e   :  { %1381 = vst.sshfl [vmem:[#allocation1] sm:$0xff pattern:$0x73625140] %v10156_v44  ;;  %v6361_v20 = vrot.slane %v1368_v3, 9  ;;  %v8802_v3 = vld [vmem:[#allocation12 + $0x36c] sm:$0xf0] }
 0x2a0   :  { %3101 = vmatpush.bf16.msra.mxu2 %v6563_v28 }
 0x2a5   :  { %v1383_v4 = vld [vmem:[#allocation1 + $0x1] ss:$4 sm:$0xff] }
 0x2a6   :  { %1384 = vrot.lane.b32.xlu1 %v1383_v4, %s9714_s26  ;;  %1388 = vst.sshfl [vmem:[#allocation1] sm:$0xff pattern:$0x73625140] %v10156_v44  ;;  %v6483_v4 = vor.u32 %v8722_v0, %v6482_v63  ;;  %v8706_v63 = vld [vmem:[#allocation12 + $0x6c] sm:$0xf0] }
 0x2a7   :  { %v6419_v0 = vor.u32 %v8706_v63, %v6418_v62  ;;  %v7154_v62 = vld [vmem:[#allocation12 + $0x620] sm:$0xf] }
 0x2a8   :  { %3085 = vmatpush.bf16.msrb.mxu1 %v6483_v4 }
 0x2aa   :  { %v1294_v5 = vpop.permute.xlu2 %1293 }
 0x2ab   :  { %1296 = vst.msk [vmem:[#allocation2 + $0x2] sm:$0x1] %vm1281_vm2, %v1294_v5  ;;  %v6466_v5 = vld [vmem:[#allocation12 + $0xc0] sm:$0xf] }
 0x2ad   :  { %v10196_v7 = vld [vmem:[#allocation1 + $0x1] ss:$4 sm:$0xff] }
 0x2ae   :  { %1321 = vrot.lane.b32.xlu1 %v6358_v6, %s9714_s26  ;;  %1395 = vst.sshfl [vmem:[#allocation1] sm:$0xff pattern:$0x73625140] %v10156_v44  ;;  %v6547_v6 = vor.u32 %v8738_v12, %v6546_v60  ;;  %v6362_v50 = vrot.slane %v10196_v7, 9  ;;  %v8914_v60 = vld [vmem:[#allocation12 + $0x6ec] sm:$0xf0] }
 0x2af   :  { %v7378_v7 = vld [vmem:[#allocation12 + $0x7e0] sm:$0xf]  ;;  %v7251_v12 = vor.u32 %v8914_v60, %v7250_v59  ;;  %v8894_v59 = vld [vmem:[#allocation12 + $0x64c] sm:$0xf0] }
 0x2b0   :  { %3102 = vmatpush.bf16.msra.mxu2 %v6547_v6  ;;  %v7362_v6 = vld [vmem:[#allocation12 + $0x7c0] sm:$0xf]  ;;  %v8926_v60 = vld [vmem:[#allocation12 + $0x74c] sm:$0xf0] }
 0x2b4   :  { %v1279_v8 = vpop.permute.xlu1 %1278 }
 0x2b5   :  { %1282 = vst.msk [vmem:[#allocation2] sm:$0x1] %vm1281_vm2, %v1279_v8  ;;  %v1397_v9 = vld [vmem:[#allocation1 + $0x2] ss:$4 sm:$0xff] }
 0x2b6   :  { %1398 = vrot.lane.b32.xlu2 %v1397_v9, %s9714_s26  ;;  %1402 = vst.sshfl [vmem:[#allocation1] sm:$0xff pattern:$0x73625140] %v10156_v44  ;;  %v6530_v8 = vld [vmem:[#allocation12 + $0x140] sm:$0xf] }
 0x2b7   :  { %v8734_v9 = vld [vmem:[#allocation12 + $0x14c] sm:$0xf0] }
 0x2b8   :  { %v6531_v37 = vor.u32 %v8734_v9, %v6530_v8  ;;  %v8942_v8 = vld [vmem:[#allocation12 + $0x7cc] sm:$0xf0] }
 0x2ba   :  { %3103 = vmatpush.bf16.msra.mxu2 %v6531_v37 }
 0x2bd   :  { %v10203_v10 = vld [vmem:[#allocation1 + $0x2] ss:$4 sm:$0xff] }
 0x2be   :  { %1409 = vst.sshfl [vmem:[#allocation1] sm:$0xff pattern:$0x73625140] %v10156_v44  ;;  %1423 = vrot.lane.b32.xlu2 %v10167_v56, %s9714_s26  ;;  %v6363_v36 = vrot.slane %v10203_v10, 9  ;;  %v6515_v10 = vor.u32 %v8730_v39, %v6514_v30  ;;  %v7074_v30 = vld [vmem:[#allocation12 + $0x580] sm:$0xf] }
 0x2c0   :  { %3104 = vmatpush.bf16.msra.mxu2 %v6515_v10  ;;  %v7330_v10 = vld [vmem:[#allocation12 + $0x780] sm:$0xf] }
 0x2c5   :  { %v1411_v11 = vld [vmem:[#allocation1 + $0x3] ss:$4 sm:$0xff] }
 0x2c6   :  { %1412 = vrot.lane.b32.xlu0 %v1411_v11, %s9714_s26  ;;  %1416 = vst.sshfl [vmem:[#allocation1] sm:$0xff pattern:$0x73625140] %v10156_v44  ;;  %v6723_v44 = vor.u32 %v8782_v45, %v6722_v42  ;;  %v8718_v11 = vld [vmem:[#allocation12 + $0xcc] sm:$0xf0]  ;;  %v6643_v45 = vor.u32 %v8762_v35, %v6642_v40 }
 0x2c7   :  { %v6770_v42 = vld [vmem:[#allocation12 + $0x320] sm:$0xf]  ;;  %v8870_v40 = vld [vmem:[#allocation12 + $0x58c] sm:$0xf0] }
 0x2c8   :  { %3112 = vmatpush.bf16.msra.mxu3 %v6723_v44  ;;  %v6771_v32 = vor.u32 %v8794_v33, %v6770_v42  ;;  %v8726_v44 = vld [vmem:[#allocation12 + $0x10c] sm:$0xf0]  ;;  %v7075_v42 = vor.u32 %v8870_v40, %v7074_v30  ;;  %v6946_v30 = vld [vmem:[#allocation12 + $0x480] sm:$0xf] }
 0x2c9   :  { %v6499_v49 = vor.u32 %v8726_v44, %v6498_v46  ;;  %v8902_v35 = vld [vmem:[#allocation12 + $0x68c] sm:$0xf0]  ;;  %v6370_v44 = vld [vmem:[#allocation12] sm:$0xf] }
 0x2ca   :  { %v6371_v47 = vor.u32 %v8694_v41, %v6370_v44  ;;  %v8752_v44 = vld [vmem:[#allocation12 + $0x1e4] sm:$0xf]  ;;  %v6914_v41 = vld [vmem:[#allocation12 + $0x440] sm:$0xf] }
 0x2cb   :  { %3105 = vmatpush.bf16.msra.mxu2 %v6499_v49  ;;  %v7186_v49 = vld [vmem:[#allocation12 + $0x660] sm:$0xf] }
 0x2cc   :  { %3113 = vmatpush.bf16.msra.mxu3 %v6707_v53 }
 0x2cd   :  { %v10213_v17 = vld [vmem:[#allocation1 + $0x3] ss:$4 sm:$0xff] }
 0x2ce   :  { %1429 = vst.sshfl [vmem:[#allocation1] sm:$0xff pattern:$0x73625140] %v10167_v56  ;;  %1329 = vrot.lane.b32.xlu0 %v10211_v16, %s9714_s26 }
 0x2d2   :  { %v1308_v18 = vpop.permute.xlu0 %1307 }
 0x2d3   :  { %1310 = vst.msk [vmem:[#allocation2 + $0x4] sm:$0x1] %vm1281_vm2, %v1308_v18  ;;  %v6803_v18 = vor.u32 %v8802_v3, %v6802_v2  ;;  %v8878_v2 = vld [vmem:[#allocation12 + $0x5cc] sm:$0xf0]  ;;  %v7234_v3 = vld [vmem:[#allocation12 + $0x6c0] sm:$0xf] }
 0x2d4   :  { %v7107_v4 = vor.u32 %v8878_v2, %v7106_v1  ;;  %v7282_v1 = vld [vmem:[#allocation12 + $0x720] sm:$0xf]  ;;  %v8922_v2 = vld [vmem:[#allocation12 + $0x72c] sm:$0xf0] }
 0x2d5   :  { %v1431_v19 = vld [vmem:[#allocation1 + $0x1] ss:$4 sm:$0xff]  ;;  %3128 = vmatpush.bf16.msrb.mxu0 %v6803_v18 }
 0x2d6   :  { %1436 = vst.sshfl [vmem:[#allocation1] sm:$0xff pattern:$0x73625140] %v10167_v56  ;;  %1432 = vrot.lane.b32.xlu0 %v1431_v19, %s9714_s26  ;;  %v6658_v19 = vld [vmem:[#allocation12 + $0x240] sm:$0xf] }
 0x2d7   :  { %v8702_v18 = vld [vmem:[#allocation12 + $0x4c] sm:$0xf0] }
 0x2dd   :  { %v10221_v21 = vld [vmem:[#allocation1 + $0x1] ss:$4 sm:$0xff] }
 0x2de   :  { %1443 = vst.sshfl [vmem:[#allocation1] sm:$0xff pattern:$0x73625140] %v10167_v56  ;;  %1371 = vrot.lane.b32.xlu0 %v6361_v20, %s9714_s26  ;;  %v8766_v20 = vld [vmem:[#allocation12 + $0x24c] sm:$0xf0] }
 0x2df   :  { %v6659_v24 = vor.u32 %v8766_v20, %v6658_v19  ;;  %v7090_v19 = vld [vmem:[#allocation12 + $0x5a0] sm:$0xf] }
 0x2e5   :  { %v1445_v22 = vld [vmem:[#allocation1 + $0x2] ss:$4 sm:$0xff] }
 0x2e6   :  { %1446 = vrot.lane.b32.xlu1 %v1445_v22, %s9714_s26  ;;  %1450 = vst.sshfl [vmem:[#allocation1] sm:$0xff pattern:$0x73625140] %v10167_v56  ;;  %v6786_v22 = vld [vmem:[#allocation12 + $0x340] sm:$0xf] }
 0x2ed   :  { %v10227_v26 = vld [vmem:[#allocation1 + $0x2] ss:$4 sm:$0xff] }
 0x2ee   :  { %1457 = vst.sshfl [vmem:[#allocation1] sm:$0xff pattern:$0x73625140] %v10167_v56  ;;  %1343 = vrot.lane.b32.xlu1 %v6359_v23, %s9714_s26  ;;  %v6467_v23 = vor.u32 %v8718_v11, %v6466_v5  ;;  %v8910_v5 = vld [vmem:[#allocation12 + $0x6cc] sm:$0xf0]  ;;  %v7363_v11 = vor.u32 %v8942_v8, %v7362_v6 }
 0x2ef   :  { %v7235_v9 = vor.u32 %v8910_v5, %v7234_v3  ;;  %v6994_v5 = vld [vmem:[#allocation12 + $0x4e0] sm:$0xf]  ;;  %v8850_v6 = vld [vmem:[#allocation12 + $0x4ec] sm:$0xf0] }
 0x2f0   :  { %3086 = vmatpush.bf16.msrb.mxu1 %v6467_v23  ;;  %v7218_v23 = vld [vmem:[#allocation12 + $0x6a0] sm:$0xf]  ;;  %v6995_v8 = vor.u32 %v8850_v6, %v6994_v5  ;;  %v8712_v5 = vld [vmem:[#allocation12 + $0xa4] sm:$0xf]  ;;  %v6452_v6 = vld [vmem:[#allocation12 + $0xb0] sm:$0xf0] }
 0x2f5   :  { %v1459_v15 = vld [vmem:[#allocation1 + $0x3] ss:$4 sm:$0xff] }
 0x2f6   :  { %1460 = vrot.lane.b32.xlu2 %v1459_v15, %s9714_s26  ;;  %1464 = vst.sshfl [vmem:[#allocation1] sm:$0xff pattern:$0x73625140] %v10167_v56  ;;  %v6690_v56 = vld [vmem:[#allocation12 + $0x280] sm:$0xf] }
 0x2f7   :  { %v6691_v13 = vor.u32 %v8774_v57, %v6690_v56  ;;  %v8798_v15 = vld [vmem:[#allocation12 + $0x34c] sm:$0xf0]  ;;  %v7122_v56 = vld [vmem:[#allocation12 + $0x5e0] sm:$0xf]  ;;  %v6435_v57 = vor.u32 %v8710_v55, %v6434_v54 }
 0x2f8   :  { %v6787_v27 = vor.u32 %v8798_v15, %v6786_v22  ;;  %v7123_v28 = vor.u32 %v8882_v58, %v7122_v56  ;;  %v8874_v22 = vld [vmem:[#allocation12 + $0x5ac] sm:$0xf0]  ;;  %v7042_v55 = vld [vmem:[#allocation12 + $0x540] sm:$0xf] }
 0x2f9   :  { %3114 = vmatpush.bf16.msra.mxu3 %v6691_v13  ;;  %v8946_v13 = vld [vmem:[#allocation12 + $0x7ec] sm:$0xf0]  ;;  %v7091_v15 = vor.u32 %v8874_v22, %v7090_v19  ;;  %v7266_v19 = vld [vmem:[#allocation12 + $0x700] sm:$0xf] }
 0x2fa   :  { %3129 = vmatpush.bf16.msrb.mxu0 %v6787_v27  ;;  %3150 = vmatpush.bf16.msrb.mxu2 %v7123_v28  ;;  %v7379_v61 = vor.u32 %v8946_v13, %v7378_v7  ;;  %v8698_v27 = vld [vmem:[#allocation12 + $0x2c] sm:$0xf0]  ;;  %v7298_v28 = vld [vmem:[#allocation12 + $0x740] sm:$0xf] }
 0x2fb   :  { %v8862_v56 = vld [vmem:[#allocation12 + $0x54c] sm:$0xf0]  ;;  %v7026_v13 = vld [vmem:[#allocation12 + $0x520] sm:$0xf] }
 0x2fc   :  { %v7043_v58 = vor.u32 %v8862_v56, %v7042_v55  ;;  %v6468_v55 = vld [vmem:[#allocation12 + $0xd0] sm:$0xf0] }
 0x2fd   :  { %3115 = vmatpush.bf16.msra.mxu3 %v6675_v14 }
 0x2fe   :  { %1357 = vrot.lane.b32.xlu2 %v6360_v31, %s9714_s26  ;;  %v6450_v31 = vld [vmem:[#allocation12 + $0xa0] sm:$0xf]  ;;  %3130 = vmatpush.bf16.msrb.mxu0 %v6771_v32  ;;  %v1471_v32 = vld [vmem:[#allocation11] sm:$0x3] }
 0x2ff   :  { %v6451_v38 = vor.u32 %v8714_v34, %v6450_v31  ;;  %3151 = vmatpush.bf16.msrb.mxu2 %v7107_v4  ;;  %v8906_v31 = vld [vmem:[#allocation12 + $0x6ac] sm:$0xf0]  ;;  %v7346_v34 = vld [vmem:[#allocation12 + $0x7a0] sm:$0xf]  ;;  %1473 = vst.msk [vmem:[#allocation2 + $0x10] sm:$0x3] %vm1472_vm3, %v1471_v32  ;;  %v7283_v4 = vor.u32 %v8922_v2, %v7282_v1 }
 0x300   :  { %v7219_v37 = vor.u32 %v8906_v31, %v7218_v23  ;;  %v8846_v31 = vld [vmem:[#allocation12 + $0x4cc] sm:$0xf0]  ;;  %v6484_v32 = vld [vmem:[#allocation12 + $0xf0] sm:$0xf0]  ;;  %v6898_v1 = vld [vmem:[#allocation12 + $0x420] sm:$0xf] }
 0x301   :  { %3087 = vmatpush.bf16.msrb.mxu1 %v6451_v38  ;;  %3116 = vmatpush.bf16.msra.mxu3 %v6659_v24  ;;  %v6386_v24 = vld [vmem:[#allocation12 + $0x20] sm:$0xf]  ;;  %v8826_v2 = vld [vmem:[#allocation12 + $0x42c] sm:$0xf0] }
 0x302   :  { %3131 = vmatpush.bf16.msrb.mxu0 %v6755_v52  ;;  %v6387_v39 = vor.u32 %v8698_v27, %v6386_v24  ;;  %v8842_v24 = vld [vmem:[#allocation12 + $0x4ac] sm:$0xf0] }
 0x303   :  { %3152 = vmatpush.bf16.msrb.mxu2 %v7091_v15  ;;  %v6978_v15 = vld [vmem:[#allocation12 + $0x4c0] sm:$0xf] }
 0x305   :  { %3117 = vmatpush.bf16.msra.mxu3 %v6643_v45  ;;  %3088 = vmatpush.bf16.msrb.mxu1 %v6435_v57  ;;  %v8934_v45 = vld [vmem:[#allocation12 + $0x78c] sm:$0xf0]  ;;  %v7170_v57 = vld [vmem:[#allocation12 + $0x640] sm:$0xf] }
 0x306   :  { %3176 = vmatpush.bf16.msra.mxu0 %v7379_v61  ;;  %v7331_v46 = vor.u32 %v8934_v45, %v7330_v10  ;;  %v7171_v7 = vor.u32 %v8894_v59, %v7170_v57  ;;  %v8858_v61 = vld [vmem:[#allocation12 + $0x52c] sm:$0xf0]  ;;  %v6365_v10 = vrot.slane %v10221_v21, 9  ;;  %v8720_v45 = vld [vmem:[#allocation12 + $0xe4] sm:$0xf] }
 0x307   :  { %3153 = vmatpush.bf16.msrb.mxu2 %v7075_v42  ;;  %v7027_v63 = vor.u32 %v8858_v61, %v7026_v13  ;;  %v8834_v42 = vld [vmem:[#allocation12 + $0x46c] sm:$0xf0]  ;;  %v6487_v59 = vor.u32 %v8720_v45, %v6484_v32  ;;  %v8748_v13 = vld [vmem:[#allocation12 + $0x1c4] sm:$0xf]  ;;  %v6596_v61 = vld [vmem:[#allocation12 + $0x1d0] sm:$0xf0] }
 0x309   :  { %3118 = vmatpush.bf16.msra.mxu3 %v6627_v51  ;;  %3089 = vmatpush.bf16.msrb.mxu1 %v6419_v0  ;;  %v7059_v51 = vor.u32 %v8866_v48, %v7058_v43  ;;  %v8890_v0 = vld [vmem:[#allocation12 + $0x62c] sm:$0xf0]  ;;  %v6612_v48 = vld [vmem:[#allocation12 + $0x1f0] sm:$0xf0] }
 0x30a   :  { %3177 = vmatpush.bf16.msra.mxu0 %v7363_v11  ;;  %v7155_v3 = vor.u32 %v8890_v0, %v7154_v62  ;;  %v8854_v11 = vld [vmem:[#allocation12 + $0x50c] sm:$0xf0]  ;;  %v8780_v62 = vld [vmem:[#allocation12 + $0x2c4] sm:$0xf] }
 0x30b   :  { %3154 = vmatpush.bf16.msrb.mxu2 %v7059_v51  ;;  %v8830_v43 = vld [vmem:[#allocation12 + $0x44c] sm:$0xf0] }
 0x30c   :  { %v6915_v51 = vor.u32 %v8830_v43, %v6914_v41  ;;  %v8736_v41 = vld [vmem:[#allocation12 + $0x164] sm:$0xf]  ;;  %v6548_v43 = vld [vmem:[#allocation12 + $0x170] sm:$0xf0] }
 0x30d   :  { %3163 = vmatpush.bf16.msrb.mxu3 %v7251_v12  ;;  %v7299_v12 = vor.u32 %v8926_v60, %v7298_v28  ;;  %v6615_v28 = vor.u32 %v8752_v44, %v6612_v48  ;;  %v6420_v44 = vld [vmem:[#allocation12 + $0x70] sm:$0xf0] }
 0x30e   :  { %v6676_v48 = vld [vmem:[#allocation12 + $0x270] sm:$0xf0] }
 0x30f   :  { %3155 = vmatpush.bf16.msrb.mxu2 %v7043_v58 }
 0x310   :  { %v1399_v29 = vpop.permute.xlu2 %1398 }
 0x311   :  { %1401 = vst.msk [vmem:[#allocation2 + $0x5] sm:$0x1] %vm1273_vm1, %v1399_v29  ;;  %3164 = vmatpush.bf16.msrb.mxu3 %v7235_v9  ;;  %v7202_v29 = vld [vmem:[#allocation12 + $0x680] sm:$0xf] }
 0x312   :  { %1408 = vst.msk [vmem:[#allocation2 + $0x5] sm:$0x1] %vm1281_vm2, %v6363_v36  ;;  %v8938_v36 = vld [vmem:[#allocation12 + $0x7ac] sm:$0xf0]  ;;  %v7203_v33 = vor.u32 %v8902_v35, %v7202_v29  ;;  %v7010_v9 = vld [vmem:[#allocation12 + $0x500] sm:$0xf] }
 0x313   :  { %v7347_v38 = vor.u32 %v8938_v36, %v7346_v34  ;;  %3156 = vmatpush.bf16.msrb.mxu2 %v7027_v63  ;;  %v6364_v36 = vrot.slane %v10213_v17, 9  ;;  %v6930_v17 = vld [vmem:[#allocation12 + $0x460] sm:$0xf]  ;;  %v6724_v63 = vld [vmem:[#allocation12 + $0x2d0] sm:$0xf0] }
 0x315   :  { %3165 = vmatpush.bf16.msrb.mxu3 %v7219_v37  ;;  %3178 = vmatpush.bf16.msra.mxu0 %v7347_v38  ;;  %v6979_v37 = vor.u32 %v8846_v31, %v6978_v15  ;;  %v6962_v38 = vld [vmem:[#allocation12 + $0x4a0] sm:$0xf] }
 0x316   :  { %v6963_v27 = vor.u32 %v8842_v24, %v6962_v38  ;;  %v7394_v31 = vld [vmem:[#allocation12 + $0x800] sm:$0xf]  ;;  %v8708_v38 = vld [vmem:[#allocation12 + $0x84] sm:$0xf] }
 0x318   :  { %v1385_v53 = vpop.permute.xlu1 %1384  ;;  %v1424_v25 = vpop.permute.xlu2 %1423 }
 0x319   :  { %1387 = vst.msk [vmem:[#allocation2 + $0x3] sm:$0x1] %vm1273_vm1, %v1385_v53  ;;  %3166 = vmatpush.bf16.msrb.mxu3 %v7203_v33  ;;  %3179 = vmatpush.bf16.msra.mxu0 %v7331_v46  ;;  %v7314_v53 = vld [vmem:[#allocation12 + $0x760] sm:$0xf]  ;;  %v6931_v33 = vor.u32 %v8834_v42, %v6930_v17  ;;  %v1476_v46 = vld [vmem:[#allocation2 + $0x10] sm:$0x3] }
 0x31a   :  { %1394 = vst.msk [vmem:[#allocation2 + $0x3] sm:$0x1] %vm1281_vm2, %v6362_v50  ;;  %v8898_v50 = vld [vmem:[#allocation12 + $0x66c] sm:$0xf0]  ;;  %v6366_v17 = vrot.slane %v10227_v26, 9 }
 0x31b   :  { %1426 = vst.msk [vmem:[#allocation2 + $0x9] sm:$0x1] %vm1273_vm1, %v1424_v25  ;;  %v7187_v52 = vor.u32 %v8898_v50, %v7186_v49  ;;  %v8930_v25 = vld [vmem:[#allocation12 + $0x76c] sm:$0xf0]  ;;  %v8784_v49 = vld [vmem:[#allocation12 + $0x2e4] sm:$0xf] }
 0x31c   :  { %1428 = vst.msk [vmem:[#allocation2 + $0x9] sm:$0x1] %vm1281_vm2, %v10211_v16  ;;  %v6402_v16 = vld [vmem:[#allocation12 + $0x40] sm:$0xf]  ;;  %v7315_v54 = vor.u32 %v8930_v25, %v7314_v53  ;;  %v6740_v50 = vld [vmem:[#allocation12 + $0x2f0] sm:$0xf0] }
 0x31d   :  { %v6403_v20 = vor.u32 %v8702_v18, %v6402_v16  ;;  %3167 = vmatpush.bf16.msrb.mxu3 %v7187_v52  ;;  %v7011_v16 = vor.u32 %v8854_v11, %v7010_v9  ;;  %v8886_v18 = vld [vmem:[#allocation12 + $0x60c] sm:$0xf0]  ;;  %v6899_v9 = vor.u32 %v8826_v2, %v6898_v1 }
 0x31e   :  { %3180 = vmatpush.bf16.msra.mxu0 %v7315_v54  ;;  %v1466_v53 = vld [vmem:[#allocation1 + $0x3] ss:$4 sm:$0xff] }
 0x31f   :  { %3090 = vmatpush.bf16.msrb.mxu1 %v6403_v20  ;;  %v8918_v20 = vld [vmem:[#allocation12 + $0x70c] sm:$0xf0]  ;;  %3157 = vmatpush.bf16.msrb.mxu2 %v7011_v16  ;;  %v8716_v54 = vld [vmem:[#allocation12 + $0xc4] sm:$0xf]  ;;  %v6367_v0 = vrot.slane %v1466_v53, 9  ;;  %v6727_v16 = vor.u32 %v8780_v62, %v6724_v63 }
 0x320   :  { %v1322_v14 = vpop.permute.xlu1 %1321  ;;  %v7267_v23 = vor.u32 %v8918_v20, %v7266_v19  ;;  %v8776_v19 = vld [vmem:[#allocation12 + $0x2a4] sm:$0xf]  ;;  %v6708_v20 = vld [vmem:[#allocation12 + $0x2b0] sm:$0xf0] }
 0x321   :  { %1324 = vst.msk [vmem:[#allocation2 + $0x6] sm:$0x1] %vm1281_vm2, %v1322_v14  ;;  %3168 = vmatpush.bf16.msrb.mxu3 %v7171_v7  ;;  %v7138_v14 = vld [vmem:[#allocation12 + $0x600] sm:$0xf]  ;;  %v8732_v53 = vld [vmem:[#allocation12 + $0x144] sm:$0xf] }
 0x322   :  { %3181 = vmatpush.bf16.msra.mxu0 %v7299_v12  ;;  %v7139_v22 = vor.u32 %v8886_v18, %v7138_v14  ;;  %v6743_v12 = vor.u32 %v8784_v49, %v6740_v50  ;;  %v6580_v18 = vld [vmem:[#allocation12 + $0x1b0] sm:$0xf0]  ;;  %v6551_v49 = vor.u32 %v8736_v41, %v6548_v43  ;;  %v8700_v50 = vld [vmem:[#allocation12 + $0x44] sm:$0xf] }
 0x323   :  { %3091 = vmatpush.bf16.msrb.mxu1 %v6387_v39  ;;  %v8838_v39 = vld [vmem:[#allocation12 + $0x48c] sm:$0xf0]  ;;  %v6516_v62 = vld [vmem:[#allocation12 + $0x130] sm:$0xf0]  ;;  %v8760_v63 = vld [vmem:[#allocation12 + $0x224] sm:$0xf] }
 0x324   :  { %v6947_v40 = vor.u32 %v8838_v39, %v6946_v30  ;;  %v6436_v30 = vld [vmem:[#allocation12 + $0x90] sm:$0xf0]  ;;  %v8740_v39 = vld [vmem:[#allocation12 + $0x184] sm:$0xf] }
 0x325   :  { %3169 = vmatpush.bf16.msrb.mxu3 %v7155_v3  ;;  %v6471_v3 = vor.u32 %v8716_v54, %v6468_v55  ;;  %v6439_v42 = vor.u32 %v8708_v38, %v6436_v30  ;;  %v8764_v54 = vld [vmem:[#allocation12 + $0x244] sm:$0xf]  ;;  %v6660_v55 = vld [vmem:[#allocation12 + $0x250] sm:$0xf0] }
 0x326   :  { %3182 = vmatpush.bf16.msra.mxu0 %v7283_v4  ;;  %v6599_v4 = vor.u32 %v8748_v13, %v6596_v61  ;;  %v6388_v13 = vld [vmem:[#allocation12 + $0x30] sm:$0xf0]  ;;  %v8728_v61 = vld [vmem:[#allocation12 + $0x124] sm:$0xf] }
 0x327   :  { %3092 = vmatpush.bf16.msrb.mxu1 %v6371_v47  ;;  %v6519_v2 = vor.u32 %v8728_v61, %v6516_v62  ;;  %v6852_v30 = vld [vmem:[#allocation12 + $0x3d0] sm:$0xf0]  ;;  %v8876_v41 = vld [vmem:[#allocation12 + $0x5c4] sm:$0xf] }
 0x328   :  { %v7108_v43 = vld [vmem:[#allocation12 + $0x5d0] sm:$0xf0] }
 0x329   :  { %3170 = vmatpush.bf16.msrb.mxu3 %v7139_v22  ;;  %v6882_v22 = vld [vmem:[#allocation12 + $0x400] sm:$0xf]  ;;  %v6820_v61 = vld [vmem:[#allocation12 + $0x390] sm:$0xf0] }
 0x32a   :  { %3183 = vmatpush.bf16.msra.mxu0 %v7267_v23  ;;  %v8822_v23 = vld [vmem:[#allocation12 + $0x40c] sm:$0xf0] }
 0x32b   :  { %3137 = vmatpush.bf16.msra.mxu1 %v6995_v8  ;;  %v8744_v8 = vld [vmem:[#allocation12 + $0x1a4] sm:$0xf]  ;;  %v6883_v15 = vor.u32 %v8822_v23, %v6882_v22  ;;  %v6868_v22 = vld [vmem:[#allocation12 + $0x3f0] sm:$0xf0] }
 0x32c   :  { %v8848_v23 = vld [vmem:[#allocation12 + $0x4e4] sm:$0xf] }
 0x32f   :  { %3138 = vmatpush.bf16.msra.mxu1 %v6979_v37  ;;  %v6583_v37 = vor.u32 %v8744_v8, %v6580_v18  ;;  %v6500_v8 = vld [vmem:[#allocation12 + $0x110] sm:$0xf0] }
 0x333   :  { %3139 = vmatpush.bf16.msra.mxu1 %v6963_v27  ;;  %v6711_v27 = vor.u32 %v8776_v19, %v6708_v20  ;;  %v8816_v20 = vld [vmem:[#allocation12 + $0x3e4] sm:$0xf] }
 0x337   :  { %3140 = vmatpush.bf16.msra.mxu1 %v6947_v40  ;;  %v6564_v40 = vld [vmem:[#allocation12 + $0x190] sm:$0xf0] }
 0x338   :  { %v1413_v34 = vpop.permute.xlu0 %1412 }
 0x339   :  { %1415 = vst.msk [vmem:[#allocation2 + $0x7] sm:$0x1] %vm1273_vm1, %v1413_v34  ;;  %v8950_v34 = vld [vmem:[#allocation12 + $0x80c] sm:$0xf0] }
 0x33a   :  { %1422 = vst.msk [vmem:[#allocation2 + $0x7] sm:$0x1] %vm1281_vm2, %v6364_v36  ;;  %v6455_v36 = vor.u32 %v8712_v5, %v6452_v6  ;;  %v7395_v24 = vor.u32 %v8950_v34, %v7394_v31  ;;  %v6372_v5 = vld [vmem:[#allocation12 + $0x10] sm:$0xf0]  ;;  %v8724_v6 = vld [vmem:[#allocation12 + $0x104] sm:$0xf] }
 0x33b   :  { %3141 = vmatpush.bf16.msra.mxu1 %v6931_v33  ;;  %v6567_v33 = vor.u32 %v8740_v39, %v6564_v40  ;;  %v8880_v31 = vld [vmem:[#allocation12 + $0x5e4] sm:$0xf]  ;;  %v7124_v34 = vld [vmem:[#allocation12 + $0x5f0] sm:$0xf0] }
 0x33f   :  { %3142 = vmatpush.bf16.msra.mxu1 %v6915_v51 }
 0x340   :  { %v1330_v29 = vpop.permute.xlu0 %1329 }
 0x341   :  { %v1474_v35 = vld [vmem:[#allocation2] sm:$0xff]  ;;  %1332 = vst.msk [vmem:[#allocation2 + $0x8] sm:$0x1] %vm1281_vm2, %v1330_v29  ;;  %v8772_v29 = vld [vmem:[#allocation12 + $0x284] sm:$0xf] }
 0x342   :  { %1480 = vst [vmem:[#allocation1] ss:$4 sm:$0xff] %v1474_v35  ;;  %v6692_v35 = vld [vmem:[#allocation12 + $0x290] sm:$0xf0] }
 0x343   :  { %3143 = vmatpush.bf16.msra.mxu1 %v6899_v9  ;;  %v8756_v9 = vld [vmem:[#allocation12 + $0x204] sm:$0xf] }
 0x347   :  { %3144 = vmatpush.bf16.msra.mxu1 %v6883_v15  ;;  %v6996_v15 = vld [vmem:[#allocation12 + $0x4f0] sm:$0xf0] }
 0x348   :  { %v1433_v47 = vpop.permute.xlu0 %1432 }
 0x349   :  { %1435 = vst.msk [vmem:[#allocation2 + $0xb] sm:$0x1] %vm1273_vm1, %v1433_v47  ;;  %v1483_v52 = vld.sshfl [vmem:[#allocation1] sm:$0xff pattern:$0x73625140] }
 0x34a   :  { %1442 = vst.msk [vmem:[#allocation2 + $0xb] sm:$0x1] %vm1281_vm2, %v6365_v10  ;;  %v10252_v25 = vpack.c.bf16 %v1483_v52, %v1483_v52  ;;  %v1484_v21 = vld.sshfl [vmem:[#allocation1 + $0x8] sm:$0xff pattern:$0x73625140] }
 0x34b   :  { %v10254_v56 = vpack.c.bf16 %v1484_v21, %v1484_v21  ;;  %v1485_v57 = vld.sshfl [vmem:[#allocation1 + $0x10] sm:$0xff pattern:$0x73625140]  ;;  %v1486_v58 = vld.sshfl [vmem:[#allocation1 + $0x18] sm:$0xff pattern:$0x73625140] }
 0x34c   :  { %3093 = vmatmul.bf16.vlgmr.msrb.gmra.mxu1 %v10252_v25  ;;  %v10257_v60 = vpack.c.bf16 %v1485_v57, %v1485_v57  ;;  %1491 = vst [vmem:[#allocation1] ss:$4 sm:$0xff] %v1476_v46  ;;  %v10259_v7 = vpack.c.bf16 %v1486_v58, %v1486_v58  ;;  %v8704_v10 = vld [vmem:[#allocation12 + $0x64] sm:$0xf]  ;;  %v6695_v46 = vor.u32 %v8772_v29, %v6692_v35  ;;  %v6404_v52 = vld [vmem:[#allocation12 + $0x50] sm:$0xf0] }
 0x34d   :  { %3106 = vmatmul.bf16.vlgmr.msra.gmra.mxu2 %v10254_v56  ;;  %3196 = vmatpush.bf16.msrb.mxu1 %v7395_v24  ;;  %v8768_v47 = vld [vmem:[#allocation12 + $0x264] sm:$0xf]  ;;  %v6423_v26 = vor.u32 %v8704_v10, %v6420_v44  ;;  %v6532_v21 = vld [vmem:[#allocation12 + $0x150] sm:$0xf0]  ;;  %v6407_v57 = vor.u32 %v8700_v50, %v6404_v52  ;;  %v7111_v52 = vor.u32 %v8876_v41, %v7108_v43 }
 0x34e   :  { %3119 = vmatmul.bf16.vlgmr.msra.gmra.mxu3 %v10257_v60  ;;  %3132 = vmatmul.bf16.vlgmr.msrb.gmra.mxu0 %v10259_v7  ;;  %v6679_v51 = vor.u32 %v8768_v47, %v6676_v48  ;;  %v6535_v58 = vor.u32 %v8732_v53, %v6532_v21  ;;  %v6980_v44 = vld [vmem:[#allocation12 + $0x4d0] sm:$0xf0]  ;;  %v8908_v47 = vld [vmem:[#allocation12 + $0x6c4] sm:$0xf] }
 0x34f   :  { %3202 = vmatpush.bf16.msra.mxu2 %v6487_v59  ;;  %3215 = vmatpush.bf16.msra.mxu3 %v6615_v28  ;;  %v8696_v59 = vld [vmem:[#allocation12 + $0x24] sm:$0xf]  ;;  %v7236_v48 = vld [vmem:[#allocation12 + $0x6d0] sm:$0xf0] }
 0x350   :  { %v1461_v11 = vpop.permute.xlu2 %1460  ;;  %v1372_v14 = vpop.permute.xlu0 %1371  ;;  %3228 = vmatpush.bf16.msrb.mxu0 %v6743_v12  ;;  %v6663_v12 = vor.u32 %v8764_v54, %v6660_v55  ;;  %v6391_v1 = vor.u32 %v8696_v59, %v6388_v13  ;;  %v8808_v50 = vld [vmem:[#allocation12 + $0x3a4] sm:$0xf]  ;;  %v7239_v53 = vor.u32 %v8908_v47, %v7236_v48  ;;  %v6964_v54 = vld [vmem:[#allocation12 + $0x4b0] sm:$0xf0] }
 0x351   :  { %1463 = vst.msk [vmem:[#allocation2 + $0xf] sm:$0x1] %vm1273_vm1, %v1461_v11  ;;  %v6628_v11 = vld [vmem:[#allocation12 + $0x210] sm:$0xf0]  ;;  %v8840_v21 = vld [vmem:[#allocation12 + $0x4a4] sm:$0xf] }
 0x352   :  { %1470 = vst.msk [vmem:[#allocation2 + $0xf] sm:$0x1] %vm1281_vm2, %v6367_v0  ;;  %v6644_v0 = vld [vmem:[#allocation12 + $0x230] sm:$0xf0]  ;;  %v6631_v19 = vor.u32 %v8756_v9, %v6628_v11  ;;  %v8872_v55 = vld [vmem:[#allocation12 + $0x5a4] sm:$0xf] }
 0x353   :  { %1374 = vst.msk [vmem:[#allocation2 + $0xe] sm:$0x1] %vm1281_vm2, %v1372_v14  ;;  %3203 = vmatpush.bf16.msra.mxu2 %v6471_v3  ;;  %3216 = vmatpush.bf16.msra.mxu3 %v6599_v4  ;;  %v8692_v3 = vld [vmem:[#allocation12 + $0x4] sm:$0xf]  ;;  %v6647_v4 = vor.u32 %v8760_v63, %v6644_v0  ;;  %v7220_v59 = vld [vmem:[#allocation12 + $0x6b0] sm:$0xf0] }
 0x354   :  { %3229 = vmatpush.bf16.msrb.mxu0 %v6727_v16  ;;  %v6375_v14 = vor.u32 %v8692_v3, %v6372_v5  ;;  %v6503_v16 = vor.u32 %v8724_v6, %v6500_v8  ;;  %v8804_v13 = vld [vmem:[#allocation12 + $0x384] sm:$0xf]  ;;  %v7076_v3 = vld [vmem:[#allocation12 + $0x590] sm:$0xf0] }
 0x355   :  { %v8836_v0 = vld [vmem:[#allocation12 + $0x484] sm:$0xf]  ;;  %v7204_v5 = vld [vmem:[#allocation12 + $0x690] sm:$0xf0]  ;;  %v6823_v8 = vor.u32 %v8804_v13, %v6820_v61 }
 0x356   :  { %v1492_v6 = vld.sshfl [vmem:[#allocation1] sm:$0xff pattern:$0x73625140]  ;;  %v8800_v11 = vld [vmem:[#allocation12 + $0x364] sm:$0xf] }
 0x357   :  { %3204 = vmatpush.bf16.msra.mxu2 %v6455_v36  ;;  %3217 = vmatpush.bf16.msra.mxu3 %v6583_v37  ;;  %v8912_v36 = vld [vmem:[#allocation12 + $0x6e4] sm:$0xf]  ;;  %v7252_v37 = vld [vmem:[#allocation12 + $0x6f0] sm:$0xf0] }
 0x358   :  { %v1447_v45 = vpop.permute.xlu1 %1446  ;;  %v1358_v32 = vpop.permute.xlu2 %1357  ;;  %3230 = vmatpush.bf16.msrb.mxu0 %v6711_v27  ;;  %v8812_v27 = vld [vmem:[#allocation12 + $0x3c4] sm:$0xf]  ;;  %v6772_v43 = vld [vmem:[#allocation12 + $0x330] sm:$0xf0] }
 0x359   :  { %1449 = vst.msk [vmem:[#allocation2 + $0xd] sm:$0x1] %vm1273_vm1, %v1447_v45  ;;  %v7127_v45 = vor.u32 %v8880_v31, %v7124_v34  ;;  %v7188_v31 = vld [vmem:[#allocation12 + $0x670] sm:$0xf0]  ;;  %v10284_v34 = vpack.c.bf16 %v1492_v6, %v1492_v6  ;;  %v8792_v41 = vld [vmem:[#allocation12 + $0x324] sm:$0xf] }
 0x35a   :  { %1456 = vst.msk [vmem:[#allocation2 + $0xd] sm:$0x1] %vm1281_vm2, %v6366_v17  ;;  %v6871_v17 = vor.u32 %v8816_v20, %v6868_v22  ;;  %v6932_v20 = vld [vmem:[#allocation12 + $0x470] sm:$0xf0]  ;;  %v8864_v22 = vld [vmem:[#allocation12 + $0x564] sm:$0xf] }
 0x35b   :  { %1360 = vst.msk [vmem:[#allocation2 + $0xc] sm:$0x1] %vm1281_vm2, %v1358_v32  ;;  %3205 = vmatpush.bf16.msra.mxu2 %v6439_v42  ;;  %3218 = vmatpush.bf16.msra.mxu3 %v6567_v33  ;;  %v6999_v42 = vor.u32 %v8848_v23, %v6996_v15  ;;  %v7255_v32 = vor.u32 %v8912_v36, %v7252_v37  ;;  %v7060_v23 = vld [vmem:[#allocation12 + $0x570] sm:$0xf0]  ;;  %v8896_v15 = vld [vmem:[#allocation12 + $0x664] sm:$0xf] }
 0x35c   :  { %3231 = vmatpush.bf16.msrb.mxu0 %v6695_v46  ;;  %v8844_v46 = vld [vmem:[#allocation12 + $0x4c4] sm:$0xf]  ;;  %v7012_v61 = vld [vmem:[#allocation12 + $0x510] sm:$0xf0] }
 0x35d   :  { %v8852_v13 = vld [vmem:[#allocation12 + $0x504] sm:$0xf] }
 0x35f   :  { %3206 = vmatpush.bf16.msra.mxu2 %v6423_v26  ;;  %3219 = vmatpush.bf16.msra.mxu3 %v6551_v49  ;;  %v6855_v26 = vor.u32 %v8812_v27, %v6852_v30  ;;  %v6983_v49 = vor.u32 %v8844_v46, %v6980_v44  ;;  %v7063_v27 = vor.u32 %v8864_v22, %v7060_v23  ;;  %v8819_v22 = vld [vmem:[#allocation12 + $0x3f4] sm:$0xf0] }
 0x360   :  { %v1344_v28 = vpop.permute.xlu1 %1343  ;;  %3232 = vmatpush.bf16.msrb.mxu0 %v6679_v51  ;;  %v6836_v51 = vld [vmem:[#allocation12 + $0x3b0] sm:$0xf0]  ;;  %v7191_v30 = vor.u32 %v8896_v15, %v7188_v31  ;;  %v8940_v31 = vld [vmem:[#allocation12 + $0x7c4] sm:$0xf] }
 0x361   :  { %1346 = vst.msk [vmem:[#allocation2 + $0xa] sm:$0x1] %vm1281_vm2, %v1344_v28  ;;  %v6839_v28 = vor.u32 %v8808_v50, %v6836_v51  ;;  %v8856_v50 = vld [vmem:[#allocation12 + $0x524] sm:$0xf]  ;;  %v7028_v51 = vld [vmem:[#allocation12 + $0x530] sm:$0xf0] }
 0x363   :  { %3207 = vmatpush.bf16.msra.mxu2 %v6407_v57  ;;  %3220 = vmatpush.bf16.msra.mxu3 %v6535_v58  ;;  %v7092_v57 = vld [vmem:[#allocation12 + $0x5b0] sm:$0xf0]  ;;  %v8904_v58 = vld [vmem:[#allocation12 + $0x6a4] sm:$0xf] }
 0x364   :  { %3233 = vmatpush.bf16.msrb.mxu0 %v6663_v12  ;;  %v6967_v12 = vor.u32 %v8840_v21, %v6964_v54  ;;  %v7095_v62 = vor.u32 %v8872_v55, %v7092_v57  ;;  %v7223_v63 = vor.u32 %v8904_v58, %v7220_v59  ;;  %v8788_v21 = vld [vmem:[#allocation12 + $0x304] sm:$0xf]  ;;  %v6775_v54 = vor.u32 %v8792_v41, %v6772_v43  ;;  %v6756_v57 = vld [vmem:[#allocation12 + $0x310] sm:$0xf0]  ;;  %v8715_v41 = vld [vmem:[#allocation12 + $0xb4] sm:$0xf0] }
 0x365   :  { %v8820_v58 = vld [vmem:[#allocation12 + $0x404] sm:$0xf]  ;;  %v6884_v59 = vld [vmem:[#allocation12 + $0x410] sm:$0xf0]  ;;  %v6586_v43 = vld [vmem:[#allocation12 + $0x1a8] sm:$0xf] }
 0x366   :  { %v6887_v6 = vor.u32 %v8820_v58, %v6884_v59  ;;  %v8743_v58 = vld [vmem:[#allocation12 + $0x194] sm:$0xf0] }
 0x367   :  { %3208 = vmatpush.bf16.msra.mxu2 %v6391_v1  ;;  %3221 = vmatpush.bf16.msra.mxu3 %v6519_v2  ;;  %v6948_v1 = vld [vmem:[#allocation12 + $0x490] sm:$0xf0]  ;;  %v8868_v2 = vld [vmem:[#allocation12 + $0x584] sm:$0xf] }
 0x368   :  { %v1475_v18 = vld [vmem:[#allocation2 + $0x8] sm:$0xff]  ;;  %3234 = vmatpush.bf16.msrb.mxu0 %v6647_v4  ;;  %v8900_v4 = vld [vmem:[#allocation12 + $0x684] sm:$0xf]  ;;  %v6951_v9 = vor.u32 %v8836_v0, %v6948_v1  ;;  %v7380_v1 = vld [vmem:[#allocation12 + $0x7f0] sm:$0xf0] }
 0x369   :  { %1482 = vst [vmem:[#allocation1 + $0x20] ss:$4 sm:$0xff] %v1475_v18  ;;  %v7207_v18 = vor.u32 %v8900_v4, %v7204_v5  ;;  %v8944_v0 = vld [vmem:[#allocation12 + $0x7e4] sm:$0xf]  ;;  %v6618_v4 = vld [vmem:[#allocation12 + $0x1e8] sm:$0xf]  ;;  %v6759_v5 = vor.u32 %v8788_v21, %v6756_v57 }
 0x36a   :  { %v7332_v21 = vld [vmem:[#allocation12 + $0x790] sm:$0xf0]  ;;  %v6570_v57 = vld [vmem:[#allocation12 + $0x188] sm:$0xf] }
 0x36b   :  { %3209 = vmatpush.bf16.msra.mxu2 %v6375_v14  ;;  %3222 = vmatpush.bf16.msra.mxu3 %v6503_v16  ;;  %v6804_v14 = vld [vmem:[#allocation12 + $0x370] sm:$0xf0]  ;;  %v7079_v16 = vor.u32 %v8868_v2, %v7076_v3  ;;  %v6490_v2 = vld [vmem:[#allocation12 + $0xe8] sm:$0xf]  ;;  %v8723_v3 = vld [vmem:[#allocation12 + $0xf4] sm:$0xf0] }
 0x36c   :  { %3235 = vmatpush.bf16.msrb.mxu0 %v6631_v19  ;;  %v8832_v19 = vld [vmem:[#allocation12 + $0x464] sm:$0xf]  ;;  %v6807_v36 = vor.u32 %v8800_v11, %v6804_v14  ;;  %v7396_v11 = vld [vmem:[#allocation12 + $0x810] sm:$0xf0]  ;;  %v7015_v14 = vor.u32 %v8852_v13, %v7012_v61  ;;  %v8807_v13 = vld [vmem:[#allocation12 + $0x394] sm:$0xf0] }
 0x36d   :  { %v6935_v37 = vor.u32 %v8832_v19, %v6932_v20  ;;  %v6491_v19 = vor.u32 %v8723_v3, %v6490_v2  ;;  %v6874_v20 = vld [vmem:[#allocation12 + $0x3e8] sm:$0xf]  ;;  %v8707_v2 = vld [vmem:[#allocation12 + $0x74] sm:$0xf0] }
 0x36e   :  { %v6554_v3 = vld [vmem:[#allocation12 + $0x168] sm:$0xf] }
 0x370   :  { %v1487_v38 = vld.sshfl [vmem:[#allocation1 + $0x20] sm:$0xff pattern:$0x73625140]  ;;  %v1488_v24 = vld.sshfl [vmem:[#allocation1 + $0x28] sm:$0xff pattern:$0x73625140] }
 0x371   :  { %v10272_v39 = vpack.c.bf16 %v1487_v38, %v1487_v38  ;;  %v10274_v40 = vpack.c.bf16 %v1488_v24, %v1488_v24  ;;  %v1489_v29 = vld.sshfl [vmem:[#allocation1 + $0x30] sm:$0xff pattern:$0x73625140]  ;;  %v1490_v35 = vld.sshfl [vmem:[#allocation1 + $0x38] sm:$0xff pattern:$0x73625140] }
 0x372   :  { %v10276_v33 = vpack.c.bf16 %v1489_v29, %v1489_v29  ;;  %v10278_v10 = vpack.c.bf16 %v1490_v35, %v1490_v35  ;;  %v8796_v38 = vld [vmem:[#allocation12 + $0x344] sm:$0xf]  ;;  %v6788_v24 = vld [vmem:[#allocation12 + $0x350] sm:$0xf0] }
 0x373   :  { %3145 = vmatmul.bf16.vlgmr.msra.gmra.mxu1 %v10272_v39  ;;  %3158 = vmatmul.bf16.vlgmr.msrb.gmra.mxu2 %v10274_v40  ;;  %v8828_v29 = vld [vmem:[#allocation12 + $0x444] sm:$0xf]  ;;  %v6916_v35 = vld [vmem:[#allocation12 + $0x450] sm:$0xf0]  ;;  %v6791_v46 = vor.u32 %v8796_v38, %v6788_v24  ;;  %v8719_v38 = vld [vmem:[#allocation12 + $0xd4] sm:$0xf0] }
 0x374   :  { %3171 = vmatmul.bf16.vlgmr.msrb.gmra.mxu3 %v10276_v33  ;;  %3184 = vmatmul.bf16.vlgmr.msra.gmra.mxu0 %v10278_v10  ;;  %v6919_v44 = vor.u32 %v8828_v29, %v6916_v35  ;;  %v6602_v24 = vld [vmem:[#allocation12 + $0x1c8] sm:$0xf] }
 0x375   :  { %3241 = vmatpush.bf16.msra.mxu1 %v6871_v17  ;;  %3254 = vmatpush.bf16.msrb.mxu2 %v6999_v42  ;;  %v8860_v17 = vld [vmem:[#allocation12 + $0x544] sm:$0xf]  ;;  %v7044_v42 = vld [vmem:[#allocation12 + $0x550] sm:$0xf0]  ;;  %v6858_v35 = vld [vmem:[#allocation12 + $0x3c8] sm:$0xf] }
 0x376   :  { %3267 = vmatpush.bf16.msrb.mxu3 %v7127_v45  ;;  %3280 = vmatpush.bf16.msra.mxu0 %v7255_v32  ;;  %v8892_v45 = vld [vmem:[#allocation12 + $0x644] sm:$0xf]  ;;  %v7172_v32 = vld [vmem:[#allocation12 + $0x650] sm:$0xf0]  ;;  %v7047_v47 = vor.u32 %v8860_v17, %v7044_v42  ;;  %v8815_v17 = vld [vmem:[#allocation12 + $0x3d4] sm:$0xf0] }
 0x377   :  { %v7175_v48 = vor.u32 %v8892_v45, %v7172_v32  ;;  %v8936_v32 = vld [vmem:[#allocation12 + $0x7a4] sm:$0xf] }
 0x379   :  { %3242 = vmatpush.bf16.msra.mxu1 %v6855_v26  ;;  %3255 = vmatpush.bf16.msrb.mxu2 %v6983_v49  ;;  %v8824_v26 = vld [vmem:[#allocation12 + $0x424] sm:$0xf]  ;;  %v6900_v49 = vld [vmem:[#allocation12 + $0x430] sm:$0xf0] }
 0x37a   :  { %3268 = vmatpush.bf16.msrb.mxu3 %v7111_v52  ;;  %3281 = vmatpush.bf16.msra.mxu0 %v7239_v53  ;;  %v8888_v52 = vld [vmem:[#allocation12 + $0x624] sm:$0xf]  ;;  %v7156_v53 = vld [vmem:[#allocation12 + $0x630] sm:$0xf0]  ;;  %v6903_v55 = vor.u32 %v8824_v26, %v6900_v49  ;;  %v6842_v49 = vld [vmem:[#allocation12 + $0x3a8] sm:$0xf] }
 0x37d   :  { %3243 = vmatpush.bf16.msra.mxu1 %v6839_v28  ;;  %3256 = vmatpush.bf16.msrb.mxu2 %v6967_v12  ;;  %v7031_v28 = vor.u32 %v8856_v50, %v7028_v51  ;;  %v7159_v12 = vor.u32 %v8888_v52, %v7156_v53  ;;  %v8811_v50 = vld [vmem:[#allocation12 + $0x3b4] sm:$0xf0]  ;;  %v8932_v53 = vld [vmem:[#allocation12 + $0x784] sm:$0xf] }
 0x37e   :  { %3269 = vmatpush.bf16.msrb.mxu3 %v7095_v62  ;;  %3282 = vmatpush.bf16.msra.mxu0 %v7223_v63  ;;  %v8884_v62 = vld [vmem:[#allocation12 + $0x604] sm:$0xf]  ;;  %v7140_v63 = vld [vmem:[#allocation12 + $0x610] sm:$0xf0]  ;;  %v6843_v59 = vor.u32 %v8811_v50, %v6842_v49  ;;  %v8695_v49 = vld [vmem:[#allocation12 + $0x14] sm:$0xf0] }
 0x37f   :  { %v6506_v50 = vld [vmem:[#allocation12 + $0x108] sm:$0xf] }
 0x381   :  { %3244 = vmatpush.bf16.msra.mxu1 %v6823_v8  ;;  %3257 = vmatpush.bf16.msrb.mxu2 %v6951_v9  ;;  %v8755_v8 = vld [vmem:[#allocation12 + $0x1f4] sm:$0xf0]  ;;  %v8948_v9 = vld [vmem:[#allocation12 + $0x804] sm:$0xf] }
 0x382   :  { %3270 = vmatpush.bf16.msrb.mxu3 %v7079_v16  ;;  %3283 = vmatpush.bf16.msra.mxu0 %v7207_v18  ;;  %v7143_v16 = vor.u32 %v8884_v62, %v7140_v63  ;;  %v7383_v18 = vor.u32 %v8944_v0, %v7380_v1  ;;  %v6619_v23 = vor.u32 %v8755_v8, %v6618_v4  ;;  %v8928_v63 = vld [vmem:[#allocation12 + $0x764] sm:$0xf]  ;;  %v7316_v0 = vld [vmem:[#allocation12 + $0x770] sm:$0xf0]  ;;  %v6426_v1 = vld [vmem:[#allocation12 + $0x68] sm:$0xf] }
 0x383   :  { %7408 = vmatmul.msk.bf16.vlgmr.msrb.gmra.mxu1 %vm3081_vm4, %v10284_v34  ;;  %3210 = vmatmul.bf16.vlgmr.msra.gmra.mxu2 %v10252_v25  ;;  %v7399_v15 = vor.u32 %v8948_v9, %v7396_v11  ;;  %v6571_v62 = vor.u32 %v8743_v58, %v6570_v57  ;;  %v8739_v4 = vld [vmem:[#allocation12 + $0x174] sm:$0xf0]  ;;  %v6810_v8 = vld [vmem:[#allocation12 + $0x368] sm:$0xf]  ;;  %v6427_v11 = vor.u32 %v8707_v2, %v6426_v1 }
 0x384   :  { %3223 = vmatmul.bf16.vlgmr.msra.gmra.mxu3 %v10254_v56  ;;  %3236 = vmatmul.bf16.vlgmr.msrb.gmra.mxu0 %v10257_v60  ;;  %v8803_v9 = vld [vmem:[#allocation12 + $0x374] sm:$0xf0]  ;;  %v7130_v58 = vld [vmem:[#allocation12 + $0x5e8] sm:$0xf] }
 0x385   :  { %3245 = vmatpush.bf16.msra.mxu1 %v6807_v36  ;;  %3258 = vmatpush.bf16.msrb.mxu2 %v6935_v37  ;;  %v7364_v36 = vld [vmem:[#allocation12 + $0x7d0] sm:$0xf0]  ;;  %v6474_v37 = vld [vmem:[#allocation12 + $0xc8] sm:$0xf]  ;;  %v8947_v1 = vld [vmem:[#allocation12 + $0x7f4] sm:$0xf0] }
 0x386   :  { %3271 = vmatpush.bf16.msrb.mxu3 %v7063_v27  ;;  %3284 = vmatpush.bf16.msra.mxu0 %v7191_v30  ;;  %v8751_v27 = vld [vmem:[#allocation12 + $0x1d4] sm:$0xf0]  ;;  %v6875_v30 = vor.u32 %v8819_v22, %v6874_v20  ;;  %v7367_v29 = vor.u32 %v8940_v31, %v7364_v36  ;;  %v6475_v42 = vor.u32 %v8719_v38, %v6474_v37  ;;  %v6538_v22 = vld [vmem:[#allocation12 + $0x148] sm:$0xf] }
 0x387   :  { %v6603_v45 = vor.u32 %v8751_v27, %v6602_v24  ;;  %v8703_v20 = vld [vmem:[#allocation12 + $0x54] sm:$0xf0]  ;;  %v6794_v36 = vld [vmem:[#allocation12 + $0x348] sm:$0xf]  ;;  %v8920_v27 = vld [vmem:[#allocation12 + $0x724] sm:$0xf] }
 0x388   :  { %v8799_v37 = vld [vmem:[#allocation12 + $0x354] sm:$0xf0] }
 0x389   :  { %3246 = vmatpush.bf16.msra.mxu1 %v6791_v46  ;;  %3259 = vmatpush.bf16.msrb.mxu2 %v6919_v44  ;;  %v7348_v46 = vld [vmem:[#allocation12 + $0x7b0] sm:$0xf0]  ;;  %v6458_v44 = vld [vmem:[#allocation12 + $0xa8] sm:$0xf] }
 0x38a   :  { %3272 = vmatpush.bf16.msrb.mxu3 %v7047_v47  ;;  %3285 = vmatpush.bf16.msra.mxu0 %v7175_v48  ;;  %v8747_v47 = vld [vmem:[#allocation12 + $0x1b4] sm:$0xf0]  ;;  %v6859_v48 = vor.u32 %v8815_v17, %v6858_v35  ;;  %v7351_v26 = vor.u32 %v8936_v32, %v7348_v46  ;;  %v6459_v51 = vor.u32 %v8715_v41, %v6458_v44  ;;  %v6522_v17 = vld [vmem:[#allocation12 + $0x128] sm:$0xf]  ;;  %v8916_v41 = vld [vmem:[#allocation12 + $0x704] sm:$0xf] }
 0x38b   :  { %v6587_v52 = vor.u32 %v8747_v47, %v6586_v43  ;;  %v8699_v35 = vld [vmem:[#allocation12 + $0x34] sm:$0xf0]  ;;  %v6778_v46 = vld [vmem:[#allocation12 + $0x328] sm:$0xf] }
 0x38c   :  { %v8795_v44 = vld [vmem:[#allocation12 + $0x334] sm:$0xf0] }
 0x38d   :  { %3247 = vmatpush.bf16.msra.mxu1 %v6775_v54  ;;  %3260 = vmatpush.bf16.msrb.mxu2 %v6903_v55  ;;  %v6442_v54 = vld [vmem:[#allocation12 + $0x88] sm:$0xf]  ;;  %v8711_v55 = vld [vmem:[#allocation12 + $0x94] sm:$0xf0] }
 0x38e   :  { %3273 = vmatpush.bf16.msrb.mxu3 %v7031_v28  ;;  %3286 = vmatpush.bf16.msra.mxu0 %v7159_v12  ;;  %v7335_v28 = vor.u32 %v8932_v53, %v7332_v21  ;;  %v6826_v12 = vld [vmem:[#allocation12 + $0x388] sm:$0xf]  ;;  %v6443_v61 = vor.u32 %v8711_v55, %v6442_v54  ;;  %v8787_v53 = vld [vmem:[#allocation12 + $0x2f4] sm:$0xf0]  ;;  %v6779_v55 = vor.u32 %v8795_v44, %v6778_v46 }
 0x38f   :  { %v7002_v21 = vld [vmem:[#allocation12 + $0x4e8] sm:$0xf]  ;;  %v8851_v54 = vld [vmem:[#allocation12 + $0x4f4] sm:$0xf0] }
 0x390   :  { %v8839_v46 = vld [vmem:[#allocation12 + $0x494] sm:$0xf0]  ;;  %v7082_v44 = vld [vmem:[#allocation12 + $0x588] sm:$0xf] }
 0x391   :  { %3248 = vmatpush.bf16.msra.mxu1 %v6759_v5  ;;  %3261 = vmatpush.bf16.msrb.mxu2 %v6887_v6  ;;  %v6827_v5 = vor.u32 %v8807_v13, %v6826_v12  ;;  %v7319_v6 = vor.u32 %v8928_v63, %v7316_v0  ;;  %v6762_v13 = vld [vmem:[#allocation12 + $0x308] sm:$0xf]  ;;  %v8791_v63 = vld [vmem:[#allocation12 + $0x314] sm:$0xf0] }
 0x392   :  { %3274 = vmatpush.bf16.msrb.mxu3 %v7015_v14  ;;  %3287 = vmatpush.bf16.msra.mxu0 %v7143_v16  ;;  %v6555_v14 = vor.u32 %v8739_v4, %v6554_v3  ;;  %v8924_v16 = vld [vmem:[#allocation12 + $0x744] sm:$0xf]  ;;  %v7386_v0 = vld [vmem:[#allocation12 + $0x7e8] sm:$0xf]  ;;  %v8783_v4 = vld [vmem:[#allocation12 + $0x2d4] sm:$0xf0] }
 0x393   :  { %v6730_v3 = vld [vmem:[#allocation12 + $0x2c8] sm:$0xf] }
 0x394   :  { %3249 = vmatmul.bf16.vlgmr.msra.gmra.mxu1 %v10259_v7  ;;  %3262 = vmatmul.bf16.vlgmr.msrb.gmra.mxu2 %v10272_v39 }
 0x395   :  { %3293 = vmatpush.bf16.msrb.mxu1 %v7383_v18  ;;  %3313 = vmatpush.bf16.msra.mxu2 %v7399_v15  ;;  %v7300_v18 = vld [vmem:[#allocation12 + $0x750] sm:$0xf0]  ;;  %v6811_v15 = vor.u32 %v8803_v9, %v6810_v8  ;;  %v7114_v8 = vld [vmem:[#allocation12 + $0x5c8] sm:$0xf]  ;;  %v8879_v9 = vld [vmem:[#allocation12 + $0x5d4] sm:$0xf0] }
 0x396   :  { %3319 = vmatpush.bf16.msra.mxu3 %v6491_v19  ;;  %3332 = vmatpush.bf16.msrb.mxu0 %v6619_v23  ;;  %v6410_v19 = vld [vmem:[#allocation12 + $0x48] sm:$0xf]  ;;  %v8735_v23 = vld [vmem:[#allocation12 + $0x154] sm:$0xf0]  ;;  %v7303_v31 = vor.u32 %v8924_v16, %v7300_v18  ;;  %v6731_v16 = vor.u32 %v8783_v4, %v6730_v3 }
 0x397   :  { %3275 = vmatmul.bf16.vlgmr.msrb.gmra.mxu3 %v10274_v40  ;;  %3288 = vmatmul.bf16.vlgmr.msra.gmra.mxu0 %v10276_v33  ;;  %v6411_v38 = vor.u32 %v8703_v20, %v6410_v19  ;;  %v6539_v24 = vor.u32 %v8735_v23, %v6538_v22  ;;  %v7370_v18 = vld [vmem:[#allocation12 + $0x7c8] sm:$0xf]  ;;  %v8943_v19 = vld [vmem:[#allocation12 + $0x7d4] sm:$0xf0]  ;;  %v7115_v22 = vor.u32 %v8879_v9, %v7114_v8 }
 0x398   :  { %v6714_v23 = vld [vmem:[#allocation12 + $0x2a8] sm:$0xf] }
 0x399   :  { %3358 = vmatpush.bf16.msrb.mxu2 %v6875_v30  ;;  %3294 = vmatpush.bf16.msrb.mxu1 %v7367_v29  ;;  %v7284_v30 = vld [vmem:[#allocation12 + $0x730] sm:$0xf0]  ;;  %v6394_v29 = vld [vmem:[#allocation12 + $0x28] sm:$0xf] }
 0x39a   :  { %3320 = vmatpush.bf16.msra.mxu3 %v6475_v42  ;;  %3333 = vmatpush.bf16.msrb.mxu0 %v6603_v45  ;;  %v8731_v42 = vld [vmem:[#allocation12 + $0x134] sm:$0xf0]  ;;  %v6795_v45 = vor.u32 %v8799_v37, %v6794_v36  ;;  %v7287_v32 = vor.u32 %v8920_v27, %v7284_v30  ;;  %v6395_v43 = vor.u32 %v8699_v35, %v6394_v29  ;;  %v7098_v37 = vld [vmem:[#allocation12 + $0x5a8] sm:$0xf] }
 0x39b   :  { %v6523_v47 = vor.u32 %v8731_v42, %v6522_v17  ;;  %v8843_v36 = vld [vmem:[#allocation12 + $0x4b4] sm:$0xf0]  ;;  %v7354_v30 = vld [vmem:[#allocation12 + $0x7a8] sm:$0xf] }
 0x39c   :  { %v8939_v29 = vld [vmem:[#allocation12 + $0x7b4] sm:$0xf0]  ;;  %v6698_v42 = vld [vmem:[#allocation12 + $0x288] sm:$0xf] }
 0x39d   :  { %3359 = vmatpush.bf16.msrb.mxu2 %v6859_v48  ;;  %3295 = vmatpush.bf16.msrb.mxu1 %v7351_v26  ;;  %v7268_v48 = vld [vmem:[#allocation12 + $0x710] sm:$0xf0]  ;;  %v6378_v26 = vld [vmem:[#allocation12 + $0x8] sm:$0xf] }
 0x39e   :  { %3321 = vmatpush.bf16.msra.mxu3 %v6459_v51  ;;  %3334 = vmatpush.bf16.msrb.mxu0 %v6587_v52  ;;  %v8727_v51 = vld [vmem:[#allocation12 + $0x114] sm:$0xf0]  ;;  %v6746_v52 = vld [vmem:[#allocation12 + $0x2e8] sm:$0xf]  ;;  %v7271_v57 = vor.u32 %v8916_v41, %v7268_v48 }
 0x39f   :  { %v6507_v12 = vor.u32 %v8727_v51, %v6506_v50  ;;  %v8871_v41 = vld [vmem:[#allocation12 + $0x594] sm:$0xf0]  ;;  %v7338_v48 = vld [vmem:[#allocation12 + $0x788] sm:$0xf] }
 0x3a0   :  { %v7083_v50 = vor.u32 %v8871_v41, %v7082_v44  ;;  %v6682_v51 = vld [vmem:[#allocation12 + $0x268] sm:$0xf] }
 0x3a1   :  { %3360 = vmatpush.bf16.msrb.mxu2 %v6843_v59  ;;  %3296 = vmatpush.bf16.msrb.mxu1 %v7335_v28  ;;  %v8883_v59 = vld [vmem:[#allocation12 + $0x5f4] sm:$0xf0]  ;;  %v6379_v28 = vor.u32 %v8695_v49, %v6378_v26 }
 0x3a2   :  { %3322 = vmatpush.bf16.msra.mxu3 %v6443_v61  ;;  %3335 = vmatpush.bf16.msrb.mxu0 %v6571_v62  ;;  %v6747_v61 = vor.u32 %v8787_v53, %v6746_v52  ;;  %v7003_v62 = vor.u32 %v8851_v54, %v7002_v21  ;;  %v7131_v2 = vor.u32 %v8883_v59, %v7130_v58  ;;  %v8935_v26 = vld [vmem:[#allocation12 + $0x794] sm:$0xf0]  ;;  %v6938_v53 = vld [vmem:[#allocation12 + $0x468] sm:$0xf] }
 0x3a3   :  { %v8771_v52 = vld [vmem:[#allocation12 + $0x274] sm:$0xf0]  ;;  %v7066_v54 = vld [vmem:[#allocation12 + $0x568] sm:$0xf] }
 0x3a4   :  { %7409 = vmatmul.msk.bf16.vlgmr.msra.gmra.mxu2 %vm3081_vm4, %v10284_v34  ;;  %v8835_v21 = vld [vmem:[#allocation12 + $0x474] sm:$0xf0]  ;;  %v6683_v58 = vor.u32 %v8771_v52, %v6682_v51  ;;  %v7322_v59 = vld [vmem:[#allocation12 + $0x768] sm:$0xf] }
 0x3a5   :  { %3361 = vmatpush.bf16.msrb.mxu2 %v6827_v5  ;;  %3297 = vmatpush.bf16.msrb.mxu1 %v7319_v6  ;;  %v6986_v5 = vld [vmem:[#allocation12 + $0x4c8] sm:$0xf]  ;;  %v8847_v6 = vld [vmem:[#allocation12 + $0x4d4] sm:$0xf0] }
 0x3a6   :  { %3323 = vmatpush.bf16.msra.mxu3 %v6427_v11  ;;  %3336 = vmatpush.bf16.msrb.mxu0 %v6555_v14  ;;  %v6763_v11 = vor.u32 %v8791_v63, %v6762_v13  ;;  %v7387_v14 = vor.u32 %v8947_v1, %v7386_v0  ;;  %v6987_v20 = vor.u32 %v8847_v6, %v6986_v5  ;;  %v6922_v63 = vld [vmem:[#allocation12 + $0x448] sm:$0xf]  ;;  %v8831_v0 = vld [vmem:[#allocation12 + $0x454] sm:$0xf0] }
 0x3a7   :  { %v7050_v1 = vld [vmem:[#allocation12 + $0x548] sm:$0xf]  ;;  %v8927_v6 = vld [vmem:[#allocation12 + $0x754] sm:$0xf0]  ;;  %v6923_v8 = vor.u32 %v8831_v0, %v6922_v63 }
 0x3a8   :  { %v7306_v5 = vld [vmem:[#allocation12 + $0x748] sm:$0xf]  ;;  %v8919_v52 = vld [vmem:[#allocation12 + $0x714] sm:$0xf0] }
 0x3a9   :  { %3362 = vmatpush.bf16.msrb.mxu2 %v6811_v15  ;;  %3298 = vmatpush.bf16.msrb.mxu1 %v7303_v31  ;;  %v8779_v15 = vld [vmem:[#allocation12 + $0x2b4] sm:$0xf0]  ;;  %v6970_v31 = vld [vmem:[#allocation12 + $0x4a8] sm:$0xf] }
 0x3aa   :  { %3324 = vmatpush.bf16.msra.mxu3 %v6411_v38  ;;  %3337 = vmatpush.bf16.msrb.mxu0 %v6539_v24  ;;  %v8875_v38 = vld [vmem:[#allocation12 + $0x5b4] sm:$0xf0]  ;;  %v7371_v24 = vor.u32 %v8943_v19, %v7370_v18  ;;  %v6715_v27 = vor.u32 %v8779_v15, %v6714_v23  ;;  %v6971_v35 = vor.u32 %v8843_v36, %v6970_v31  ;;  %v7034_v19 = vld [vmem:[#allocation12 + $0x528] sm:$0xf]  ;;  %v10301_v36 = vld [vmem:[#allocation14] sm:$0xf] }
 0x3ab   :  { %v7099_v17 = vor.u32 %v8875_v38, %v7098_v37  ;;  %v8827_v18 = vld [vmem:[#allocation12 + $0x434] sm:$0xf0]  ;;  %v7307_v23 = vor.u32 %v8927_v6, %v7306_v5  ;;  %v6634_v37 = vld [vmem:[#allocation12 + $0x208] sm:$0xf]  ;;  %v8813_v5 = vld [vmem:[#allocation12 + $0x3cc] sm:$0xf] }
 0x3ac   :  { %v8923_v31 = vld [vmem:[#allocation12 + $0x734] sm:$0xf0]  ;;  %v7274_v51 = vld [vmem:[#allocation12 + $0x708] sm:$0xf]  ;;  %v6860_v6 = vld [vmem:[#allocation12 + $0x3d8] sm:$0xf0] }
 0x3ad   :  { %3363 = vmatpush.bf16.msrb.mxu2 %v6795_v45  ;;  %3299 = vmatpush.bf16.msrb.mxu1 %v7287_v32  ;;  %v8775_v45 = vld [vmem:[#allocation12 + $0x294] sm:$0xf0]  ;;  %v6954_v32 = vld [vmem:[#allocation12 + $0x488] sm:$0xf]  ;;  %v7275_v63 = vor.u32 %v8919_v52, %v7274_v51  ;;  %v6700_v52 = vld [vmem:[#allocation12 + $0x298] sm:$0xf0] }
 0x3ae   :  { %3325 = vmatpush.bf16.msra.mxu3 %v6395_v43  ;;  %3338 = vmatpush.bf16.msrb.mxu0 %v6523_v47  ;;  %v7355_v43 = vor.u32 %v8939_v29, %v7354_v30  ;;  %v6699_v47 = vor.u32 %v8775_v45, %v6698_v42  ;;  %v6955_v49 = vor.u32 %v8839_v46, %v6954_v32  ;;  %v6890_v30 = vld [vmem:[#allocation12 + $0x408] sm:$0xf]  ;;  %v8823_v29 = vld [vmem:[#allocation12 + $0x414] sm:$0xf0]  ;;  %v8721_v32 = vld [vmem:[#allocation12 + $0xec] sm:$0xf] }
 0x3af   :  { %v7258_v42 = vld [vmem:[#allocation12 + $0x6e8] sm:$0xf]  ;;  %v8915_v45 = vld [vmem:[#allocation12 + $0x6f4] sm:$0xf0]  ;;  %v6492_v46 = vld [vmem:[#allocation12 + $0xf8] sm:$0xf0] }
 0x3b1   :  { %3364 = vmatpush.bf16.msrb.mxu2 %v6779_v55  ;;  %3300 = vmatpush.bf16.msrb.mxu1 %v7271_v57  ;;  %v8867_v55 = vld [vmem:[#allocation12 + $0x574] sm:$0xf0]  ;;  %v7339_v57 = vor.u32 %v8935_v26, %v7338_v48  ;;  %v1773_v26 = vperm.slane %v10301_v36, 0 }
 0x3b2   :  { %3326 = vmatpush.bf16.msra.mxu3 %v6379_v28  ;;  %3339 = vmatpush.bf16.msrb.mxu0 %v6507_v12  ;;  %v8931_v28 = vld [vmem:[#allocation12 + $0x774] sm:$0xf0]  ;;  %v6939_v12 = vor.u32 %v8835_v21, %v6938_v53  ;;  %v7067_v13 = vor.u32 %v8867_v55, %v7066_v54  ;;  %v7259_v21 = vor.u32 %v8915_v45, %v7258_v42  ;;  %v8785_v55 = vld [vmem:[#allocation12 + $0x2ec] sm:$0xf]  ;;  %v7210_v42 = vld [vmem:[#allocation12 + $0x688] sm:$0xf] }
 0x3b3   :  { %v7323_v3 = vor.u32 %v8931_v28, %v7322_v59  ;;  %v8951_v48 = vld [vmem:[#allocation12 + $0x814] sm:$0xf0]  ;;  %v6495_v54 = vor.u32 %v8721_v32, %v6492_v46  ;;  %v6748_v28 = vld [vmem:[#allocation12 + $0x2f8] sm:$0xf0]  ;;  %v8709_v32 = vld [vmem:[#allocation12 + $0x8c] sm:$0xf] }
 0x3b4   :  { %3301 = vmatmul.bf16.vlgmr.msrb.gmra.mxu1 %v10278_v10  ;;  %v8903_v45 = vld [vmem:[#allocation12 + $0x694] sm:$0xf0]  ;;  %v6444_v46 = vld [vmem:[#allocation12 + $0x98] sm:$0xf0] }
 0x3b5   :  { %3345 = vmatpush.bf16.msra.mxu1 %v6747_v61  ;;  %3327 = vmatmul.bf16.vlgmr.msra.gmra.mxu3 %v10252_v25  ;;  %v6666_v61 = vld [vmem:[#allocation12 + $0x248] sm:$0xf] }
 0x3b6   :  { %3371 = vmatpush.bf16.msrb.mxu3 %v7003_v62  ;;  %3384 = vmatpush.bf16.msra.mxu0 %v7131_v2  ;;  %v8767_v62 = vld [vmem:[#allocation12 + $0x254] sm:$0xf0] }
 0x3b7   :  { %3340 = vmatmul.bf16.vlgmr.msrb.gmra.mxu0 %v10254_v56  ;;  %3365 = vmatpush.bf16.msrb.mxu2 %v6763_v11  ;;  %v8863_v2 = vld [vmem:[#allocation12 + $0x554] sm:$0xf0]  ;;  %v6667_v4 = vor.u32 %v8767_v62, %v6666_v61  ;;  %v6650_v11 = vld [vmem:[#allocation12 + $0x228] sm:$0xf]  ;;  %v8717_v61 = vld [vmem:[#allocation12 + $0xcc] sm:$0xf] }
 0x3b8   :  { %v7051_v9 = vor.u32 %v8863_v2, %v7050_v1  ;;  %v6476_v62 = vld [vmem:[#allocation12 + $0xd8] sm:$0xf0]  ;;  %v6751_v2 = vor.u32 %v8785_v55, %v6748_v28 }
 0x3b9   :  { %3346 = vmatpush.bf16.msra.mxu1 %v6731_v16  ;;  %v6906_v16 = vld [vmem:[#allocation12 + $0x428] sm:$0xf] }
 0x3ba   :  { %3372 = vmatpush.bf16.msrb.mxu3 %v6987_v20  ;;  %3385 = vmatpush.bf16.msra.mxu0 %v7115_v22  ;;  %v8859_v20 = vld [vmem:[#allocation12 + $0x534] sm:$0xf0]  ;;  %v7290_v22 = vld [vmem:[#allocation12 + $0x728] sm:$0xf]  ;;  %v6907_v38 = vor.u32 %v8827_v18, %v6906_v16 }
 0x3bb   :  { %3410 = vmatpush.bf16.msra.mxu2 %v7387_v14  ;;  %v8763_v14 = vld [vmem:[#allocation12 + $0x234] sm:$0xf0]  ;;  %v7291_v44 = vor.u32 %v8923_v31, %v7290_v22  ;;  %v8713_v22 = vld [vmem:[#allocation12 + $0xac] sm:$0xf] }
 0x3bc   :  { %3366 = vmatmul.bf16.vlgmr.msrb.gmra.mxu2 %v10259_v7  ;;  %v6651_v15 = vor.u32 %v8763_v14, %v6650_v11  ;;  %v6732_v11 = vld [vmem:[#allocation12 + $0x2d8] sm:$0xf0]  ;;  %v7226_v14 = vld [vmem:[#allocation12 + $0x6a8] sm:$0xf]  ;;  %v8907_v16 = vld [vmem:[#allocation12 + $0x6b4] sm:$0xf0] }
 0x3bd   :  { %3347 = vmatpush.bf16.msra.mxu1 %v6715_v27  ;;  %v8759_v27 = vld [vmem:[#allocation12 + $0x214] sm:$0xf0] }
 0x3be   :  { %3373 = vmatpush.bf16.msrb.mxu3 %v6971_v35  ;;  %3386 = vmatpush.bf16.msra.mxu0 %v7099_v17  ;;  %v7018_v35 = vld [vmem:[#allocation12 + $0x508] sm:$0xf]  ;;  %v8855_v17 = vld [vmem:[#allocation12 + $0x514] sm:$0xf0] }
 0x3bf   :  { %3411 = vmatpush.bf16.msra.mxu2 %v7371_v24  ;;  %v7035_v24 = vor.u32 %v8859_v20, %v7034_v19 }
 0x3c1   :  { %3348 = vmatpush.bf16.msra.mxu1 %v6699_v47  ;;  %v7402_v47 = vld [vmem:[#allocation12 + $0x808] sm:$0xf] }
 0x3c2   :  { %3374 = vmatpush.bf16.msrb.mxu3 %v6955_v49  ;;  %3387 = vmatpush.bf16.msra.mxu0 %v7083_v50  ;;  %v6891_v49 = vor.u32 %v8823_v29, %v6890_v30  ;;  %v7019_v50 = vor.u32 %v8855_v17, %v7018_v35  ;;  %v7403_v59 = vor.u32 %v8951_v48, %v7402_v47  ;;  %v8809_v30 = vld [vmem:[#allocation12 + $0x3ac] sm:$0xf]  ;;  %v6844_v29 = vld [vmem:[#allocation12 + $0x3b8] sm:$0xf0] }
 0x3c3   :  { %3412 = vmatpush.bf16.msra.mxu2 %v7355_v43  ;;  %v6635_v43 = vor.u32 %v8759_v27, %v6634_v37  ;;  %v8777_v27 = vld [vmem:[#allocation12 + $0x2ac] sm:$0xf]  ;;  %v6716_v17 = vld [vmem:[#allocation12 + $0x2b8] sm:$0xf0]  ;;  %v7211_v47 = vor.u32 %v8903_v45, %v7210_v42 }
 0x3c4   :  { %v8773_v48 = vld [vmem:[#allocation12 + $0x28c] sm:$0xf]  ;;  %v6380_v42 = vld [vmem:[#allocation12 + $0x18] sm:$0xf0] }
 0x3c5   :  { %3349 = vmatpush.bf16.msra.mxu1 %v6683_v58  ;;  %v6876_v58 = vld [vmem:[#allocation12 + $0x3f8] sm:$0xf0]  ;;  %v8753_v45 = vld [vmem:[#allocation12 + $0x1ec] sm:$0xf] }
 0x3c6   :  { %3375 = vmatpush.bf16.msrb.mxu3 %v6939_v12  ;;  %3388 = vmatpush.bf16.msra.mxu0 %v7067_v13  ;;  %v7242_v12 = vld [vmem:[#allocation12 + $0x6c8] sm:$0xf]  ;;  %v8911_v13 = vld [vmem:[#allocation12 + $0x6d4] sm:$0xf0] }
 0x3c7   :  { %3413 = vmatpush.bf16.msra.mxu2 %v7339_v57  ;;  %v8817_v57 = vld [vmem:[#allocation12 + $0x3ec] sm:$0xf] }
 0x3c8   :  { %v6879_v0 = vor.u32 %v8817_v57, %v6876_v58  ;;  %v8705_v57 = vld [vmem:[#allocation12 + $0x6c] sm:$0xf]  ;;  %v6428_v58 = vld [vmem:[#allocation12 + $0x78] sm:$0xf0] }
 0x3c9   :  { %3350 = vmatpush.bf16.msra.mxu1 %v6667_v4  ;;  %v3094_v41 = vpop.f32.mrf.mxu1  ;;  %v8781_v4 = vld [vmem:[#allocation12 + $0x2cc] sm:$0xf] }
 0x3ca   :  { %3376 = vmatpush.bf16.msrb.mxu3 %v6923_v8  ;;  %3389 = vmatpush.bf16.msra.mxu0 %v7051_v9  ;;  %v3095_v1 = vadd.f32 %v3094_v41, %v1773_v26  ;;  %v6479_v8 = vor.u32 %v8717_v61, %v6476_v62  ;;  %v6847_v41 = vor.u32 %v8809_v30, %v6844_v29  ;;  %v8805_v26 = vld [vmem:[#allocation12 + $0x38c] sm:$0xf]  ;;  %v6812_v61 = vld [vmem:[#allocation12 + $0x378] sm:$0xf0]  ;;  %v7146_v29 = vld [vmem:[#allocation12 + $0x608] sm:$0xf] }
 0x3cb   :  { %3414 = vmatpush.bf16.msra.mxu2 %v7323_v3  ;;  %v3133_v53 = vpop.f32.mrf.mxu0  ;;  %v7243_v3 = vor.u32 %v8911_v13, %v7242_v12  ;;  %v8769_v12 = vld [vmem:[#allocation12 + $0x26c] sm:$0xf]  ;;  %v6431_v62 = vor.u32 %v8705_v57, %v6428_v58 }
 0x3cc   :  { %v8801_v13 = vld [vmem:[#allocation12 + $0x36c] sm:$0xf] }
 0x3cd   :  { %3351 = vmatpush.bf16.msra.mxu1 %v6651_v15  ;;  %v6863_v15 = vor.u32 %v8813_v5, %v6860_v6  ;;  %v8945_v58 = vld [vmem:[#allocation12 + $0x7ec] sm:$0xf] }
 0x3ce   :  { %3377 = vmatpush.bf16.msrb.mxu3 %v6907_v38  ;;  %3390 = vmatpush.bf16.msra.mxu0 %v7035_v24  ;;  %v6735_v38 = vor.u32 %v8781_v4, %v6732_v11  ;;  %v7227_v24 = vor.u32 %v8907_v16, %v7226_v14  ;;  %v6815_v4 = vor.u32 %v8801_v13, %v6812_v61  ;;  %v6796_v11 = vld [vmem:[#allocation12 + $0x358] sm:$0xf0]  ;;  %v8845_v13 = vld [vmem:[#allocation12 + $0x4cc] sm:$0xf] }
 0x3cf   :  { %3415 = vmatpush.bf16.msra.mxu2 %v7307_v23  ;;  %v6460_v23 = vld [vmem:[#allocation12 + $0xb8] sm:$0xf0] }
 0x3d0   :  { %v3107_v9 = vpop.f32.mrf.mxu2  ;;  %v6463_v35 = vor.u32 %v8713_v22, %v6460_v23  ;;  %v6668_v16 = vld [vmem:[#allocation12 + $0x258] sm:$0xf0] }
 0x3d1   :  { %3352 = vmatpush.bf16.msra.mxu1 %v6635_v43  ;;  %v3108_v18 = vadd.f32 %v3107_v9, %v3095_v1  ;;  %v3120_v19 = vpop.f32.mrf.mxu3  ;;  %v3096_v20 = vpop.f32.mrf.mxu1  ;;  %v6719_v43 = vor.u32 %v8777_v27, %v6716_v17  ;;  %v8895_v1 = vld [vmem:[#allocation12 + $0x654] sm:$0xf0]  ;;  %v8797_v9 = vld [vmem:[#allocation12 + $0x34c] sm:$0xf]  ;;  %v6396_v22 = vld [vmem:[#allocation12 + $0x38] sm:$0xf0] }
 0x3d2   :  { %3378 = vmatpush.bf16.msrb.mxu3 %v6891_v49  ;;  %3391 = vmatpush.bf16.msra.mxu0 %v7019_v50  ;;  %v6828_v49 = vld [vmem:[#allocation12 + $0x398] sm:$0xf0]  ;;  %v6447_v50 = vor.u32 %v8709_v32, %v6444_v46  ;;  %v8697_v20 = vld [vmem:[#allocation12 + $0x2c] sm:$0xf]  ;;  %v6799_v23 = vor.u32 %v8797_v9, %v6796_v11 }
 0x3d3   :  { %3416 = vmatpush.bf16.msra.mxu2 %v7291_v44  ;;  %v3121_v31 = vadd.f32 %v3120_v19, %v3108_v18  ;;  %v3135_v37 = vpop.f32.mrf.mxu0  ;;  %v7162_v18 = vld [vmem:[#allocation12 + $0x628] sm:$0xf]  ;;  %v8891_v19 = vld [vmem:[#allocation12 + $0x634] sm:$0xf0]  ;;  %v6780_v27 = vld [vmem:[#allocation12 + $0x338] sm:$0xf0]  ;;  %v6399_v30 = vor.u32 %v8697_v20, %v6396_v22 }
 0x3d4   :  { %3353 = vmatmul.bf16.vlgmr.msra.gmra.mxu1 %v10257_v60  ;;  %v7163_v37 = vor.u32 %v8891_v19, %v7162_v18  ;;  %v8693_v17 = vld [vmem:[#allocation12 + $0xc] sm:$0xf]  ;;  %v6620_v32 = vld [vmem:[#allocation12 + $0x1f8] sm:$0xf0] }
 0x3d5   :  { %3397 = vmatpush.bf16.msrb.mxu1 %v7259_v21  ;;  %3379 = vmatmul.bf16.vlgmr.msrb.gmra.mxu3 %v10272_v39  ;;  %v10308_v44 = vadd.f32 %v3133_v53, %v3121_v31  ;;  %v7194_v21 = vld [vmem:[#allocation12 + $0x668] sm:$0xf]  ;;  %v6831_v53 = vor.u32 %v8805_v26, %v6828_v49  ;;  %v8757_v26 = vld [vmem:[#allocation12 + $0x20c] sm:$0xf]  ;;  %v6988_v61 = vld [vmem:[#allocation12 + $0x4d8] sm:$0xf0] }
 0x3d6   :  { %3436 = vmatpush.bf16.msrb.mxu0 %v6495_v54  ;;  %3430 = vmatpush.bf16.msra.mxu3 %v7403_v59  ;;  %v8899_v54 = vld [vmem:[#allocation12 + $0x674] sm:$0xf0]  ;;  %v6703_v59 = vor.u32 %v8773_v48, %v6700_v52  ;;  %v8789_v49 = vld [vmem:[#allocation12 + $0x30c] sm:$0xf]  ;;  %v6623_v52 = vor.u32 %v8753_v45, %v6620_v32  ;;  %v6588_v9 = vld [vmem:[#allocation12 + $0x1b8] sm:$0xf0] }
 0x3d7   :  { %3392 = vmatmul.bf16.vlgmr.msra.gmra.mxu0 %v10274_v40  ;;  %3417 = vmatpush.bf16.msra.mxu2 %v7275_v63  ;;  %v7195_v28 = vor.u32 %v8899_v54, %v7194_v21  ;;  %v6684_v63 = vld [vmem:[#allocation12 + $0x278] sm:$0xf0]  ;;  %v8913_v54 = vld [vmem:[#allocation12 + $0x6ec] sm:$0xf] }
 0x3d8   :  { %v3109_v51 = vpop.f32.mrf.mxu2  ;;  %v6687_v5 = vor.u32 %v8769_v12, %v6684_v63  ;;  %v6636_v21 = vld [vmem:[#allocation12 + $0x218] sm:$0xf0]  ;;  %v8841_v11 = vld [vmem:[#allocation12 + $0x4ac] sm:$0xf] }
 0x3d9   :  { %3398 = vmatpush.bf16.msrb.mxu1 %v7243_v3  ;;  %v3122_v55 = vpop.f32.mrf.mxu3  ;;  %v6412_v3 = vld [vmem:[#allocation12 + $0x58] sm:$0xf0]  ;;  %v6383_v51 = vor.u32 %v8693_v17, %v6380_v42  ;;  %v8905_v20 = vld [vmem:[#allocation12 + $0x6ac] sm:$0xf] }
 0x3da   :  { %3475 = vmatpush.bf16.msrb.mxu3 %v6879_v0  ;;  %3437 = vmatpush.bf16.msrb.mxu0 %v6479_v8  ;;  %v7178_v0 = vld [vmem:[#allocation12 + $0x648] sm:$0xf]  ;;  %v8765_v8 = vld [vmem:[#allocation12 + $0x24c] sm:$0xf]  ;;  %v7260_v55 = vld [vmem:[#allocation12 + $0x6f8] sm:$0xf0] }
 0x3db   :  { %3462 = vmatpush.bf16.msrb.mxu2 %v6751_v2  ;;  %v8701_v2 = vld [vmem:[#allocation12 + $0x4c] sm:$0xf]  ;;  %v7179_v6 = vor.u32 %v8895_v1, %v7178_v0  ;;  %v6671_v31 = vor.u32 %v8765_v8, %v6668_v16  ;;  %v6604_v12 = vld [vmem:[#allocation12 + $0x1d8] sm:$0xf0]  ;;  %v7263_v63 = vor.u32 %v8913_v54, %v7260_v55 }
 0x3dc   :  { %3418 = vmatmul.bf16.vlgmr.msra.gmra.mxu2 %v10278_v10  ;;  %v6415_v14 = vor.u32 %v8701_v2, %v6412_v3  ;;  %v8909_v1 = vld [vmem:[#allocation12 + $0x6cc] sm:$0xf]  ;;  %v7244_v2 = vld [vmem:[#allocation12 + $0x6d8] sm:$0xf0] }
 0x3dd   :  { %3399 = vmatpush.bf16.msrb.mxu1 %v7227_v24  ;;  %v8793_v24 = vld [vmem:[#allocation12 + $0x32c] sm:$0xf]  ;;  %v7247_v16 = vor.u32 %v8909_v1, %v7244_v2  ;;  %v7228_v22 = vld [vmem:[#allocation12 + $0x6b8] sm:$0xf0] }
 0x3de   :  { %3476 = vmatpush.bf16.msrb.mxu3 %v6863_v15  ;;  %3438 = vmatpush.bf16.msrb.mxu0 %v6463_v35  ;;  %v8761_v15 = vld [vmem:[#allocation12 + $0x22c] sm:$0xf]  ;;  %v8887_v35 = vld [vmem:[#allocation12 + $0x614] sm:$0xf0]  ;;  %v6783_v46 = vor.u32 %v8793_v24, %v6780_v27  ;;  %v7212_v42 = vld [vmem:[#allocation12 + $0x698] sm:$0xf0] }
 0x3df   :  { %3463 = vmatpush.bf16.msrb.mxu2 %v6735_v38  ;;  %v6652_v38 = vld [vmem:[#allocation12 + $0x238] sm:$0xf0]  ;;  %v7147_v48 = vor.u32 %v8887_v35, %v7146_v29  ;;  %v8745_v8 = vld [vmem:[#allocation12 + $0x1ac] sm:$0xf]  ;;  %v7231_v29 = vor.u32 %v8905_v20, %v7228_v22 }
 0x3e0   :  { %v8741_v24 = vld [vmem:[#allocation12 + $0x18c] sm:$0xf] }
 0x3e1   :  { %3400 = vmatpush.bf16.msrb.mxu1 %v7211_v47  ;;  %v6655_v47 = vor.u32 %v8761_v15, %v6652_v38  ;;  %v7356_v38 = vld [vmem:[#allocation12 + $0x7b8] sm:$0xf0]  ;;  %v8837_v27 = vld [vmem:[#allocation12 + $0x48c] sm:$0xf] }
 0x3e2   :  { %3477 = vmatpush.bf16.msrb.mxu3 %v6847_v41  ;;  %3439 = vmatpush.bf16.msrb.mxu0 %v6447_v50  ;;  %v8849_v41 = vld [vmem:[#allocation12 + $0x4ec] sm:$0xf]  ;;  %v6764_v50 = vld [vmem:[#allocation12 + $0x318] sm:$0xf0] }
 0x3e3   :  { %3464 = vmatpush.bf16.msrb.mxu2 %v6719_v43  ;;  %v7004_v43 = vld [vmem:[#allocation12 + $0x4f8] sm:$0xf0]  ;;  %v8901_v17 = vld [vmem:[#allocation12 + $0x68c] sm:$0xf] }
 0x3e4   :  { %v7007_v57 = vor.u32 %v8849_v41, %v7004_v43  ;;  %v7340_v41 = vld [vmem:[#allocation12 + $0x798] sm:$0xf0]  ;;  %v8737_v43 = vld [vmem:[#allocation12 + $0x16c] sm:$0xf] }
 0x3e5   :  { %3401 = vmatpush.bf16.msrb.mxu1 %v7195_v28  ;;  %7410 = vmatmul.msk.bf16.vlgmr.msra.gmra.mxu3 %vm3081_vm4, %v10284_v34  ;;  %v6767_v28 = vor.u32 %v8789_v49, %v6764_v50  ;;  %v7215_v49 = vor.u32 %v8901_v17, %v7212_v42  ;;  %v8821_v17 = vld [vmem:[#allocation12 + $0x40c] sm:$0xf]  ;;  %v7132_v42 = vld [vmem:[#allocation12 + $0x5f8] sm:$0xf0] }
 0x3e6   :  { %3478 = vmatpush.bf16.msrb.mxu3 %v6831_v53  ;;  %3440 = vmatpush.bf16.msrb.mxu0 %v6431_v62  ;;  %v7388_v53 = vld [vmem:[#allocation12 + $0x7f8] sm:$0xf0]  ;;  %v6639_v62 = vor.u32 %v8757_v26, %v6636_v21 }
 0x3e7   :  { %3465 = vmatpush.bf16.msrb.mxu2 %v6703_v59  ;;  %v8749_v59 = vld [vmem:[#allocation12 + $0x1cc] sm:$0xf]  ;;  %v7391_v0 = vor.u32 %v8945_v58, %v7388_v53  ;;  %v7196_v21 = vld [vmem:[#allocation12 + $0x678] sm:$0xf0] }
 0x3e8   :  { %v6607_v3 = vor.u32 %v8749_v59, %v6604_v12  ;;  %v8929_v58 = vld [vmem:[#allocation12 + $0x76c] sm:$0xf]  ;;  %v7324_v53 = vld [vmem:[#allocation12 + $0x778] sm:$0xf0] }
 0x3e9   :  { %3402 = vmatpush.bf16.msrb.mxu1 %v7179_v6  ;;  %v7372_v6 = vld [vmem:[#allocation12 + $0x7d8] sm:$0xf0]  ;;  %v8733_v59 = vld [vmem:[#allocation12 + $0x14c] sm:$0xf] }
 0x3ea   :  { %3479 = vmatpush.bf16.msrb.mxu3 %v6815_v4  ;;  %3441 = vmatpush.bf16.msrb.mxu0 %v6415_v14  ;;  %v6991_v4 = vor.u32 %v8845_v13, %v6988_v61  ;;  %v6972_v14 = vld [vmem:[#allocation12 + $0x4b8] sm:$0xf0]  ;;  %v8829_v12 = vld [vmem:[#allocation12 + $0x44c] sm:$0xf] }
 0x3eb   :  { %3466 = vmatpush.bf16.msrb.mxu2 %v6687_v5  ;;  %v8941_v5 = vld [vmem:[#allocation12 + $0x7cc] sm:$0xf]  ;;  %v6975_v15 = vor.u32 %v8841_v11, %v6972_v14  ;;  %v6924_v13 = vld [vmem:[#allocation12 + $0x458] sm:$0xf0] }
 0x3ec   :  { %v7375_v18 = vor.u32 %v8941_v5, %v7372_v6  ;;  %v6927_v2 = vor.u32 %v8829_v12, %v6924_v13  ;;  %v8729_v5 = vld [vmem:[#allocation12 + $0x12c] sm:$0xf]  ;;  %v6908_v11 = vld [vmem:[#allocation12 + $0x438] sm:$0xf0] }
 0x3ed   :  { %3403 = vmatpush.bf16.msrb.mxu1 %v7163_v37  ;;  %v8937_v37 = vld [vmem:[#allocation12 + $0x7ac] sm:$0xf] }
 0x3ee   :  { %3480 = vmatpush.bf16.msrb.mxu3 %v6799_v23  ;;  %3442 = vmatpush.bf16.msrb.mxu0 %v6399_v30  ;;  %v6591_v23 = vor.u32 %v8745_v8, %v6588_v9  ;;  %v6956_v30 = vld [vmem:[#allocation12 + $0x498] sm:$0xf0]  ;;  %v7359_v35 = vor.u32 %v8937_v37, %v7356_v38  ;;  %v8825_v9 = vld [vmem:[#allocation12 + $0x42c] sm:$0xf] }
 0x3ef   :  { %3467 = vmatpush.bf16.msrb.mxu2 %v6671_v31  ;;  %v6959_v32 = vor.u32 %v8837_v27, %v6956_v30  ;;  %v6524_v8 = vld [vmem:[#allocation12 + $0x138] sm:$0xf0]  ;;  %v8921_v37 = vld [vmem:[#allocation12 + $0x72c] sm:$0xf] }
 0x3f0   :  { %v10314_v19 = vpop.f32.mrf.mxu1  ;;  %v6527_v38 = vor.u32 %v8729_v5, %v6524_v8  ;;  %v7292_v27 = vld [vmem:[#allocation12 + $0x738] sm:$0xf0]  ;;  %v8725_v30 = vld [vmem:[#allocation12 + $0x10c] sm:$0xf] }
 0x3f1   :  { %3404 = vmatpush.bf16.msrb.mxu1 %v7147_v48  ;;  %v10316_v31 = vpop.f32.mrf.mxu0  ;;  %v8833_v48 = vld [vmem:[#allocation12 + $0x46c] sm:$0xf] }
 0x3f2   :  { %3481 = vmatpush.bf16.msrb.mxu3 %v6783_v46  ;;  %3443 = vmatpush.bf16.msrb.mxu0 %v6383_v51  ;;  %v8933_v46 = vld [vmem:[#allocation12 + $0x78c] sm:$0xf] }
 0x3f3   :  { %3468 = vmatpush.bf16.msrb.mxu2 %v6655_v47  ;;  %v7343_v50 = vor.u32 %v8933_v46, %v7340_v41  ;;  %v7295_v41 = vor.u32 %v8921_v37, %v7292_v27  ;;  %v9052_v37 = vld [vmem:[#allocation15 + $0x31c] sm:$0xf0] }
 0x3f4   :  { %3405 = vmatmul.bf16.vlgmr.msrb.gmra.mxu1 %v10276_v33 }
 0x3f5   :  { %3449 = vmatpush.bf16.msra.mxu1 %v6623_v52  ;;  %3444 = vmatmul.bf16.vlgmr.msrb.gmra.mxu0 %v10252_v25  ;;  %v6572_v25 = vld [vmem:[#allocation12 + $0x198] sm:$0xf0]  ;;  %v8897_v52 = vld [vmem:[#allocation12 + $0x66c] sm:$0xf] }
 0x3f6   :  { %3488 = vmatpush.bf16.msra.mxu0 %v7007_v57  ;;  %3482 = vmatpush.bf16.msrb.mxu3 %v6767_v28  ;;  %v6575_v45 = vor.u32 %v8741_v24, %v6572_v25  ;;  %v3159_v47 = vpop.f32.mrf.mxu2  ;;  %v6540_v28 = vld [vmem:[#allocation12 + $0x158] sm:$0xf0]  ;;  %v7199_v61 = vor.u32 %v8897_v52, %v7196_v21  ;;  %v6911_v24 = vor.u32 %v8825_v9, %v6908_v11  ;;  %v8877_v21 = vld [vmem:[#allocation12 + $0x5cc] sm:$0xf]  ;;  %v7830_v11 = vld [vmem:[#allocation15 + $0x340] sm:$0xf] }
 0x3f7   :  { %3469 = vmatpush.bf16.msrb.mxu2 %v6639_v62  ;;  %v10320_v26 = vpop.f32.mrf.mxu3  ;;  %v7327_v62 = vor.u32 %v8929_v58, %v7324_v53  ;;  %v6543_v1 = vor.u32 %v8733_v59, %v6540_v28  ;;  %v7276_v52 = vld [vmem:[#allocation12 + $0x718] sm:$0xf0]  ;;  %v7894_v58 = vld [vmem:[#allocation15 + $0x3c0] sm:$0xf] }
 0x3f8   :  { %v3148_v51 = vpop.f32.mrf.mxu1  ;;  %v9076_v53 = vld [vmem:[#allocation15 + $0x3dc] sm:$0xf0]  ;;  %v7084_v9 = vld [vmem:[#allocation12 + $0x598] sm:$0xf0] }
 0x3f9   :  { %3450 = vmatpush.bf16.msra.mxu1 %v6607_v3  ;;  %3483 = vmatmul.bf16.vlgmr.msrb.gmra.mxu3 %v10259_v7  ;;  %v6940_v7 = vld [vmem:[#allocation12 + $0x478] sm:$0xf0]  ;;  %v3187_v57 = vpop.f32.mrf.mxu0  ;;  %v8925_v3 = vld [vmem:[#allocation12 + $0x74c] sm:$0xf] }
 0x3fa   :  { %3527 = vmatpush.bf16.msra.mxu3 %v7391_v0  ;;  %3489 = vmatpush.bf16.msra.mxu0 %v6991_v4  ;;  %v6943_v55 = vor.u32 %v8833_v48, %v6940_v7  ;;  %v7180_v0 = vld [vmem:[#allocation12 + $0x658] sm:$0xf0]  ;;  %v8885_v48 = vld [vmem:[#allocation12 + $0x60c] sm:$0xf] }
 0x3fb   :  { %3514 = vmatpush.bf16.msra.mxu2 %v7263_v63  ;;  %v8893_v63 = vld [vmem:[#allocation12 + $0x64c] sm:$0xf]  ;;  %v7308_v4 = vld [vmem:[#allocation12 + $0x758] sm:$0xf0] }
 0x3fc   :  { %3470 = vmatmul.bf16.vlgmr.msrb.gmra.mxu2 %v10257_v60  ;;  %v6556_v60 = vld [vmem:[#allocation12 + $0x178] sm:$0xf0]  ;;  %v7311_v20 = vor.u32 %v8925_v3, %v7308_v4  ;;  %v8917_v51 = vld [vmem:[#allocation12 + $0x70c] sm:$0xf] }
 0x3fd   :  { %3451 = vmatpush.bf16.msra.mxu1 %v6591_v23  ;;  %v6559_v54 = vor.u32 %v8737_v43, %v6556_v60  ;;  %v8889_v23 = vld [vmem:[#allocation12 + $0x62c] sm:$0xf]  ;;  %v7148_v7 = vld [vmem:[#allocation12 + $0x618] sm:$0xf0]  ;;  %v7279_v12 = vor.u32 %v8917_v51, %v7276_v52  ;;  %v7702_v52 = vld [vmem:[#allocation15 + $0x240] sm:$0xf] }
 0x3fe   :  { %3528 = vmatpush.bf16.msra.mxu3 %v7375_v18  ;;  %3490 = vmatpush.bf16.msra.mxu0 %v6975_v15  ;;  %v3161_v6 = vpop.f32.mrf.mxu2  ;;  %v7183_v18 = vor.u32 %v8893_v63, %v7180_v0  ;;  %v7164_v15 = vld [vmem:[#allocation12 + $0x638] sm:$0xf0]  ;;  %v7151_v28 = vor.u32 %v8885_v48, %v7148_v7  ;;  %v7895_v63 = vor.u32 %v9076_v53, %v7894_v58  ;;  %v9012_v58 = vld [vmem:[#allocation15 + $0x1dc] sm:$0xf0] }
 0x3ff   :  { %3515 = vmatpush.bf16.msra.mxu2 %v7247_v16  ;;  %v3174_v14 = vpop.f32.mrf.mxu3  ;;  %v3147_v16 = vadd.f32 %v10314_v19, %v10308_v44  ;;  %v6892_v44 = vld [vmem:[#allocation12 + $0x418] sm:$0xf0]  ;;  %v8881_v19 = vld [vmem:[#allocation12 + $0x5ec] sm:$0xf]  ;;  %v7167_v46 = vor.u32 %v8889_v23, %v7164_v15  ;;  %v7798_v15 = vld [vmem:[#allocation15 + $0x300] sm:$0xf] }
 0x400   :  { %v3198_v22 = vpop.f32.mrf.mxu1  ;;  %v6895_v60 = vor.u32 %v8821_v17, %v6892_v44  ;;  %v7116_v57 = vld [vmem:[#allocation12 + $0x5d8] sm:$0xf0]  ;;  %v8869_v6 = vld [vmem:[#allocation12 + $0x58c] sm:$0xf]  ;;  %v9060_v14 = vld [vmem:[#allocation15 + $0x35c] sm:$0xf0] }
 0x401   :  { %3452 = vmatpush.bf16.msra.mxu1 %v6575_v45  ;;  %v10324_v25 = vpop.f32.mrf.mxu0  ;;  %v8949_v45 = vld [vmem:[#allocation12 + $0x80c] sm:$0xf]  ;;  %v7100_v0 = vld [vmem:[#allocation12 + $0x5b8] sm:$0xf0] }
 0x402   :  { %3529 = vmatpush.bf16.msra.mxu3 %v7359_v35  ;;  %3491 = vmatpush.bf16.msra.mxu0 %v6959_v32  ;;  %v3160_v35 = vadd.f32 %v3159_v47, %v3147_v16  ;;  %v7404_v32 = vld [vmem:[#allocation12 + $0x818] sm:$0xf0] }
 0x403   :  { %3516 = vmatpush.bf16.msra.mxu2 %v7231_v29  ;;  %v6508_v29 = vld [vmem:[#allocation12 + $0x118] sm:$0xf0] }
 0x404   :  { %v6511_v43 = vor.u32 %v8725_v30, %v6508_v29  ;;  %v7068_v23 = vld [vmem:[#allocation12 + $0x578] sm:$0xf0]  ;;  %v8861_v30 = vld [vmem:[#allocation12 + $0x54c] sm:$0xf]  ;;  %v7766_v29 = vld [vmem:[#allocation15 + $0x2c0] sm:$0xf] }
 0x405   :  { %3453 = vmatpush.bf16.msra.mxu1 %v6559_v54  ;;  %v7407_v54 = vor.u32 %v8949_v45, %v7404_v32  ;;  %v8857_v32 = vld [vmem:[#allocation12 + $0x52c] sm:$0xf]  ;;  %v7020_v51 = vld [vmem:[#allocation12 + $0x518] sm:$0xf0] }
 0x406   :  { %3530 = vmatpush.bf16.msra.mxu3 %v7343_v50  ;;  %3492 = vmatpush.bf16.msra.mxu0 %v6943_v55  ;;  %v7135_v50 = vor.u32 %v8881_v19, %v7132_v42  ;;  %v10327_v47 = vpop.f32.mrf.mxu2 }
 0x407   :  { %3517 = vmatpush.bf16.msra.mxu2 %v7215_v49  ;;  %v3173_v49 = vadd.f32 %v10320_v26, %v3160_v35  ;;  %v10329_v55 = vpop.f32.mrf.mxu3  ;;  %v9044_v35 = vld [vmem:[#allocation15 + $0x2dc] sm:$0xf0] }
 0x408   :  { %v3200_v59 = vpop.f32.mrf.mxu1 }
 0x409   :  { %3454 = vmatpush.bf16.msra.mxu1 %v6543_v1  ;;  %v3239_v26 = vpop.f32.mrf.mxu0  ;;  %v3186_v13 = vadd.f32 %v10316_v31, %v3173_v49  ;;  %v7862_v1 = vld [vmem:[#allocation15 + $0x380] sm:$0xf] }
 0x40a   :  { %3531 = vmatpush.bf16.msra.mxu3 %v7327_v62  ;;  %3493 = vmatpush.bf16.msra.mxu0 %v6927_v2  ;;  %v8873_v62 = vld [vmem:[#allocation12 + $0x5ac] sm:$0xf]  ;;  %v9068_v2 = vld [vmem:[#allocation15 + $0x39c] sm:$0xf0] }
 0x40b   :  { %3518 = vmatpush.bf16.msra.mxu2 %v7199_v61  ;;  %v7119_v61 = vor.u32 %v8877_v21, %v7116_v57  ;;  %v3199_v3 = vadd.f32 %v3198_v22, %v3186_v13  ;;  %v7103_v4 = vor.u32 %v8873_v62, %v7100_v0  ;;  %v7863_v31 = vor.u32 %v9068_v2, %v7862_v1  ;;  %v9028_v21 = vld [vmem:[#allocation15 + $0x25c] sm:$0xf0]  ;;  %v9072_v0 = vld [vmem:[#allocation15 + $0x3c4] sm:$0xf] }
 0x40c   :  { %v7638_v57 = vld [vmem:[#allocation15 + $0x1c0] sm:$0xf]  ;;  %v7896_v1 = vld [vmem:[#allocation15 + $0x3e0] sm:$0xf0] }
 0x40d   :  { %3455 = vmatpush.bf16.msra.mxu1 %v6527_v38  ;;  %v3553_v16 = vsub.f32 0.0, %v3199_v3  ;;  %v7606_v26 = vld [vmem:[#allocation15 + $0x180] sm:$0xf] }
 0x40e   :  { %3532 = vmatpush.bf16.msra.mxu3 %v7311_v20  ;;  %3494 = vmatpush.bf16.msra.mxu0 %v6911_v24  ;;  %v3213_v5 = vpop.f32.mrf.mxu2  ;;  %v7831_v20 = vor.u32 %v9060_v14, %v7830_v11  ;;  %v1774_v24 = vperm.slane %v10301_v36, 1  ;;  %v7670_v13 = vld [vmem:[#allocation15 + $0x200] sm:$0xf] }
 0x40f   :  { %3519 = vmatpush.bf16.msra.mxu2 %v7183_v18  ;;  %v3226_v8 = vpop.f32.mrf.mxu3  ;;  %v8865_v18 = vld [vmem:[#allocation12 + $0x56c] sm:$0xf]  ;;  %v3557_v38 = vmul.f32 1.442695, %v3553_v16  ;;  %v7899_v5 = vor.u32 %v9072_v0, %v7896_v1  ;;  %v7704_v0 = vld [vmem:[#allocation15 + $0x260] sm:$0xf0] }
 0x410   :  { %v7071_v27 = vor.u32 %v8865_v18, %v7068_v23  ;;  %v3212_v19 = vadd.f32 %v10327_v47, %v1774_v24  ;;  %v9064_v8 = vld [vmem:[#allocation15 + $0x384] sm:$0xf]  ;;  %v8988_v18 = vld [vmem:[#allocation15 + $0x11c] sm:$0xf0] }
 0x411   :  { %3456 = vmatpush.bf16.msra.mxu1 %v6511_v43  ;;  %9350 = vpow2.f32 %v3557_v38  ;;  %v7734_v43 = vld [vmem:[#allocation15 + $0x280] sm:$0xf]  ;;  %v7832_v23 = vld [vmem:[#allocation15 + $0x360] sm:$0xf0] }
 0x412   :  { %3533 = vmatpush.bf16.msra.mxu3 %v7295_v41  ;;  %3495 = vmatpush.bf16.msra.mxu0 %v6895_v60  ;;  %v7036_v41 = vld [vmem:[#allocation12 + $0x538] sm:$0xf0]  ;;  %v9036_v60 = vld [vmem:[#allocation15 + $0x29c] sm:$0xf0]  ;;  %v3225_v7 = vadd.f32 %v10329_v55, %v3212_v19  ;;  %v7703_v55 = vor.u32 %v9028_v21, %v7702_v52  ;;  %v9032_v21 = vld [vmem:[#allocation15 + $0x284] sm:$0xf] }
 0x413   :  { %3520 = vmatpush.bf16.msra.mxu2 %v7167_v46  ;;  %v7767_v46 = vor.u32 %v9044_v35, %v7766_v29  ;;  %v7039_v49 = vor.u32 %v8857_v32, %v7036_v41  ;;  %v7735_v47 = vor.u32 %v9036_v60, %v7734_v43  ;;  %v7510_v24 = vld [vmem:[#allocation15 + $0xc0] sm:$0xf]  ;;  %v9048_v35 = vld [vmem:[#allocation15 + $0x304] sm:$0xf] }
 0x414   :  { %3457 = vmatmul.bf16.vlgmr.msra.gmra.mxu1 %v10254_v56  ;;  %v3250_v56 = vpop.f32.mrf.mxu1  ;;  %v10336_v22 = vpop.f32.mrf.mxu0  ;;  %v8980_v29 = vld [vmem:[#allocation15 + $0xdc] sm:$0xf0]  ;;  %v7768_v41 = vld [vmem:[#allocation15 + $0x2e0] sm:$0xf0] }
 0x415   :  { %3501 = vmatpush.bf16.msrb.mxu1 %v7135_v50  ;;  %3496 = vmatmul.bf16.vlgmr.msra.gmra.mxu0 %v10272_v39  ;;  %v7087_v39 = vor.u32 %v8869_v6, %v7084_v9  ;;  %v8853_v50 = vld [vmem:[#allocation12 + $0x50c] sm:$0xf]  ;;  %v7864_v9 = vld [vmem:[#allocation15 + $0x3a0] sm:$0xf0]  ;;  %v8972_v32 = vld [vmem:[#allocation15 + $0x9c] sm:$0xf0] }
 0x416   :  { %3547 = vmatpush.bf16.msrb.mxu0 %v7407_v54  ;;  %3534 = vmatpush.bf16.msra.mxu3 %v7279_v12  ;;  %v7639_v12 = vor.u32 %v9012_v58, %v7638_v57  ;;  %v8150_v57 = vld [vmem:[#allocation15 + $0x5c0] sm:$0xf] }
 0x417   :  { %3521 = vmatpush.bf16.msra.mxu2 %v7151_v28  ;;  %v3263_v17 = vpop.f32.mrf.mxu2  ;;  %v9351_v48 = vpop.eup %9350  ;;  %v3238_v28 = vadd.f32 %v10324_v25, %v3225_v7  ;;  %v8118_v1 = vld [vmem:[#allocation15 + $0x580] sm:$0xf] }
 0x418   :  { %v10343_v53 = vadd.f32 1.0, %v9351_v48 }
 0x419   :  { %3502 = vmatpush.bf16.msrb.mxu1 %v7119_v61  ;;  %3535 = vmatmul.bf16.vlgmr.msra.gmra.mxu3 %v10278_v10  ;;  %v7052_v10 = vld [vmem:[#allocation12 + $0x558] sm:$0xf0]  ;;  %v9020_v61 = vld [vmem:[#allocation15 + $0x21c] sm:$0xf0]  ;;  %v3251_v62 = vadd.f32 %v3250_v56, %v3238_v28 }
 0x41a   :  { %3522 = vmatmul.bf16.vlgmr.msra.gmra.mxu2 %v10276_v33  ;;  %v7799_v33 = vor.u32 %v9052_v37, %v7798_v15  ;;  %v3276_v44 = vpop.f32.mrf.mxu3  ;;  %v7055_v45 = vor.u32 %v8861_v30, %v7052_v10  ;;  %9352 = vrcp.f32 %v10343_v53  ;;  %v7671_v3 = vor.u32 %v9020_v61, %v7670_v13  ;;  %v7542_v56 = vld [vmem:[#allocation15 + $0x100] sm:$0xf] }
 0x41b   :  { %5200 = vmatpush.bf16.msrb.mxu2 %v7895_v63  ;;  %v9004_v63 = vld [vmem:[#allocation15 + $0x19c] sm:$0xf0]  ;;  %v3264_v2 = vadd.f32 %v3263_v17, %v3251_v62  ;;  %v7800_v17 = vld [vmem:[#allocation15 + $0x320] sm:$0xf0]  ;;  %v3578_v58 = vand.u32 2147483647, %v10343_v53  ;;  %vm3574_vm6 = vweird.f32 %v10343_v53 }
 0x41c   :  { %v3252_v42 = vpop.f32.mrf.mxu1  ;;  %v3291_v36 = vpop.f32.mrf.mxu0  ;;  %v7607_v25 = vor.u32 %v9004_v63, %v7606_v26  ;;  %v7414_v13 = vld [vmem:[#allocation15] sm:$0xf]  ;;  %v9024_v63 = vld [vmem:[#allocation15 + $0x244] sm:$0xf] }
 0x41d   :  { %3503 = vmatpush.bf16.msrb.mxu1 %v7103_v4  ;;  %v7574_v4 = vld [vmem:[#allocation15 + $0x140] sm:$0xf]  ;;  %v3277_v11 = vadd.f32 %v3276_v44, %v3264_v2  ;;  %v7511_v42 = vor.u32 %v8980_v29, %v7510_v24  ;;  %v9040_v36 = vld [vmem:[#allocation15 + $0x2c4] sm:$0xf]  ;;  %vm3579_vm8 = vcmp.eq.f32.partialorder %v3578_v58, 8.507059e+37 }
 0x41e   :  { %v8956_v61 = vld [vmem:[#allocation15 + $0x1c] sm:$0xf0]  ;;  %v9077_v58 = vld [vmem:[#allocation15 + $0x3e4] sm:$0xf0] }
 0x41f   :  { %5201 = vmatpush.bf16.msrb.mxu2 %v7863_v31  ;;  %v3265_v54 = vpop.f32.mrf.mxu2  ;;  %v8996_v31 = vld [vmem:[#allocation15 + $0x15c] sm:$0xf0]  ;;  %v3290_v37 = vadd.f32 %v10336_v22, %v3277_v11  ;;  %v7803_v22 = vor.u32 %v9048_v35, %v7800_v17  ;;  %v7415_v11 = vor.u32 %v8956_v61, %v7414_v13  ;;  %v8992_v35 = vld [vmem:[#allocation15 + $0x144] sm:$0xf] }
 0x420   :  { %v10348_v14 = vpop.eup %9352  ;;  %v7575_v16 = vor.u32 %v8996_v31, %v7574_v4  ;;  %v7736_v54 = vld [vmem:[#allocation15 + $0x2a0] sm:$0xf0]  ;;  %v9132_v2 = vld [vmem:[#allocation15 + $0x59c] sm:$0xf0] }
 0x421   :  { %3504 = vmatpush.bf16.msrb.mxu1 %v7087_v39  ;;  %v7867_v39 = vor.u32 %v9064_v8, %v7864_v9  ;;  %v3570_v15 = vmul.f32 %v10348_v14, %v10343_v53  ;;  %vm3575_vm5 = vweird.f32 %v10348_v14  ;;  %v7739_v62 = vor.u32 %v9032_v21, %v7736_v54  ;;  %v7640_v4 = vld [vmem:[#allocation15 + $0x1e0] sm:$0xf0]  ;;  %v9116_v29 = vld [vmem:[#allocation15 + $0x51c] sm:$0xf0] }
 0x422   :  { %v3278_v59 = vpop.f32.mrf.mxu3  ;;  %vm10367_vm7 = vmor %vm3574_vm6, %vm3575_vm5  ;;  %v7576_v17 = vld [vmem:[#allocation15 + $0x160] sm:$0xf0]  ;;  %vm6240_vm5 = vcmask 58368  }
 0x423   :  { %5202 = vmatpush.bf16.msrb.mxu2 %v7831_v20  ;;  %v9056_v20 = vld [vmem:[#allocation15 + $0x344] sm:$0xf]  ;;  %v3571_v44 = vsub.f32 1.0, %v3570_v15  ;;  %v9140_v59 = vld [vmem:[#allocation15 + $0x5dc] sm:$0xf0] }
 0x424   :  { %v9000_v15 = vld [vmem:[#allocation15 + $0x184] sm:$0xf] }
 0x425   :  { %3505 = vmatpush.bf16.msrb.mxu1 %v7071_v27  ;;  %7411 = vmatmul.msk.bf16.vlgmr.msrb.gmra.mxu0 %vm3081_vm4, %v10284_v34  ;;  %v7023_v34 = vor.u32 %v8853_v50, %v7020_v51  ;;  %v7835_v27 = vor.u32 %v9056_v20, %v7832_v23  ;;  %v3572_v43 = vmul.f32 %v10348_v14, %v3571_v44  ;;  %v7446_v50 = vld [vmem:[#allocation15 + $0x40] sm:$0xf]  ;;  %v8968_v13 = vld [vmem:[#allocation15 + $0x84] sm:$0xf] }
 0x426   :  { %v7771_v51 = vor.u32 %v9040_v36, %v7768_v41  ;;  %v8086_v20 = vld [vmem:[#allocation15 + $0x540] sm:$0xf]  ;;  %v8984_v36 = vld [vmem:[#allocation15 + $0x104] sm:$0xf] }
 0x427   :  { %5203 = vmatpush.bf16.msrb.mxu2 %v7799_v33  ;;  %v3315_v6 = vpop.f32.mrf.mxu2  ;;  %v3573_v28 = vadd.f32 %v10348_v14, %v3572_v43  ;;  %v7544_v41 = vld [vmem:[#allocation15 + $0x120] sm:$0xf0] }
 0x428   :  { %v7480_v61 = vld [vmem:[#allocation15 + $0xa0] sm:$0xf0] }
 0x429   :  { %3506 = vmatpush.bf16.msrb.mxu1 %v7055_v45  ;;  %v7478_v45 = vld [vmem:[#allocation15 + $0x80] sm:$0xf]  ;;  %v3577_v31 = vsel %vm10367_vm7, %v10348_v14, %v3573_v28 }
 0x42b   :  { %5204 = vmatpush.bf16.msrb.mxu2 %v7767_v46 }
 0x42d   :  { %3507 = vmatpush.bf16.msrb.mxu1 %v7039_v49  ;;  %v7479_v49 = vor.u32 %v8972_v32, %v7478_v45 }
 0x42f   :  { %5205 = vmatpush.bf16.msrb.mxu2 %v7735_v47  ;;  %v3317_v10 = vpop.f32.mrf.mxu2  ;;  %v8964_v47 = vld [vmem:[#allocation15 + $0x5c] sm:$0xf0] }
 0x430   :  { %v7447_v26 = vor.u32 %v8964_v47, %v7446_v50  ;;  %v8054_v10 = vld [vmem:[#allocation15 + $0x500] sm:$0xf]  ;;  %v7547_v50 = vor.u32 %v8984_v36, %v7544_v41  ;;  %v8152_v36 = vld [vmem:[#allocation15 + $0x5e0] sm:$0xf0] }
 0x431   :  { %3508 = vmatpush.bf16.msrb.mxu1 %v7023_v34  ;;  %v3302_v38 = vpop.f32.mrf.mxu1  ;;  %v3580_v34 = vand.u32 2147483648, %v10343_v53  ;;  %v8055_v44 = vor.u32 %v9116_v29, %v8054_v10  ;;  %v7806_v10 = vld [vmem:[#allocation15 + $0x308] sm:$0xf] }
 0x432   :  { %v3303_v30 = vadd.f32 %v3302_v38, %v3290_v37  ;;  %v7608_v37 = vld [vmem:[#allocation15 + $0x1a0] sm:$0xf0]  ;;  %v9124_v38 = vld [vmem:[#allocation15 + $0x55c] sm:$0xf0]  ;;  %v9053_v29 = vld [vmem:[#allocation15 + $0x324] sm:$0xf0] }
 0x433   :  { %5206 = vmatpush.bf16.msrb.mxu2 %v7703_v55  ;;  %v3581_v8 = vor.u32 1.1754944e-38, %v3580_v34  ;;  %v8087_v14 = vor.u32 %v9124_v38, %v8086_v20  ;;  %v7958_v20 = vld [vmem:[#allocation15 + $0x440] sm:$0xf]  ;;  %v7416_v38 = vld [vmem:[#allocation15 + $0x20] sm:$0xf0] }
 0x434   :  { %3509 = vmatmul.bf16.vlgmr.msrb.gmra.mxu1 %v10274_v40  ;;  %v7543_v40 = vor.u32 %v8988_v18, %v7542_v56  ;;  %v10353_v33 = vpop.f32.mrf.mxu0  ;;  %v3316_v19 = vadd.f32 %v3315_v6, %v3303_v30  ;;  %v7672_v18 = vld [vmem:[#allocation15 + $0x220] sm:$0xf0]  ;;  %v7611_v30 = vor.u32 %v9000_v15, %v7608_v37 }
 0x435   :  { %5187 = vmatpush.bf16.msra.mxu1 %v7639_v12  ;;  %v8151_v12 = vor.u32 %v9140_v59, %v8150_v57  ;;  %v3582_v23 = vsel %vm3579_vm8, %v3581_v8, %v3577_v31  ;;  %v7902_v57 = vld [vmem:[#allocation15 + $0x3c8] sm:$0xf]  ;;  %v7448_v31 = vld [vmem:[#allocation15 + $0x60] sm:$0xf0]  ;;  %v10386_v8 = vld [vmem:[#allocation14] sm:$0xf] }
 0x436   :  { %v3554_v46 = vsub.f32 0.0, %v3316_v19  ;;  %v8022_v19 = vld [vmem:[#allocation15 + $0x4c0] sm:$0xf]  ;;  %v8952_v37 = vld [vmem:[#allocation15 + $0x4] sm:$0xf] }
 0x437   :  { %5207 = vmatpush.bf16.msrb.mxu2 %v7671_v3  ;;  %5213 = vmatpush.bf16.msrb.mxu3 %v8151_v12  ;;  %v7990_v3 = vld [vmem:[#allocation15 + $0x480] sm:$0xf] }
 0x438   :  { %v3559_v60 = vmul.f32 1.442695, %v3554_v46  ;;  %v10356_v48 = vpop.f32.mrf.mxu3 }
 0x439   :  { %5188 = vmatpush.bf16.msra.mxu1 %v7607_v25  ;;  %v3304_v7 = vpop.f32.mrf.mxu1  ;;  %v9008_v25 = vld [vmem:[#allocation15 + $0x1c4] sm:$0xf] }
 0x43a   :  { %9354 = vpow2.f32 %v3559_v60  ;;  %v7643_v56 = vor.u32 %v9008_v25, %v7640_v4  ;;  %v9100_v25 = vld [vmem:[#allocation15 + $0x49c] sm:$0xf0] }
 0x43b   :  { %5252 = vmatpush.bf16.msra.mxu2 %v7899_v5  ;;  %v8119_v5 = vor.u32 %v9132_v2, %v8118_v1  ;;  %v7483_v2 = vor.u32 %v8968_v13, %v7480_v61  ;;  %v7550_v61 = vld [vmem:[#allocation15 + $0x108] sm:$0xf] }
 0x43c   :  { %v3343_v52 = vpop.f32.mrf.mxu0 }
 0x43d   :  { %5189 = vmatpush.bf16.msra.mxu1 %v7575_v16  ;;  %v7707_v16 = vor.u32 %v9024_v63, %v7704_v0  ;;  %5214 = vmatpush.bf16.msrb.mxu3 %v8119_v5  ;;  %v7512_v52 = vld [vmem:[#allocation15 + $0xe0] sm:$0xf0]  ;;  %v7870_v63 = vld [vmem:[#allocation15 + $0x388] sm:$0xf] }
 0x43e   :  { %v9069_v0 = vld [vmem:[#allocation15 + $0x3a4] sm:$0xf0] }
 0x43f   :  { %5253 = vmatpush.bf16.msra.mxu2 %v7867_v39  ;;  %v10362_v55 = vpop.f32.mrf.mxu2  ;;  %v9016_v39 = vld [vmem:[#allocation15 + $0x204] sm:$0xf]  ;;  %v7871_v5 = vor.u32 %v9069_v0, %v7870_v63 }
 0x440   :  { %v9355_v6 = vpop.eup %9354  ;;  %v3330_v53 = vpop.f32.mrf.mxu3  ;;  %v7675_v24 = vor.u32 %v9016_v39, %v7672_v18  ;;  %v9120_v63 = vld [vmem:[#allocation15 + $0x544] sm:$0xf] }
 0x441   :  { %5190 = vmatpush.bf16.msra.mxu1 %v7543_v40  ;;  %v3566_v9 = vadd.f32 1.0, %v9355_v6  ;;  %5215 = vmatpush.bf16.msrb.mxu3 %v8087_v14  ;;  %v8960_v6 = vld [vmem:[#allocation15 + $0x44] sm:$0xf]  ;;  %v7991_v53 = vor.u32 %v9100_v25, %v7990_v3  ;;  %v8989_v3 = vld [vmem:[#allocation15 + $0x124] sm:$0xf0] }
 0x442   :  { %v7451_v18 = vor.u32 %v8960_v6, %v7448_v31  ;;  %v8088_v0 = vld [vmem:[#allocation15 + $0x560] sm:$0xf0]  ;;  %v7710_v25 = vld [vmem:[#allocation15 + $0x248] sm:$0xf] }
 0x443   :  { %5254 = vmatpush.bf16.msra.mxu2 %v7835_v27  ;;  %9356 = vrcp.f32 %v3566_v9  ;;  %v10374_v27 = vpack.c.bf16 %v3582_v23, %v3582_v23  ;;  %v3595_v60 = vand.u32 2147483648, %v3566_v9  ;;  %vm3589_vm10 = vweird.f32 %v3566_v9  ;;  %v9092_v23 = vld [vmem:[#allocation15 + $0x45c] sm:$0xf0]  ;;  %v7518_v31 = vld [vmem:[#allocation15 + $0xc8] sm:$0xf] }
 0x444   :  { %v7959_v14 = vor.u32 %v9092_v23, %v7958_v20 }
 0x445   :  { %5191 = vmatpush.bf16.msra.mxu1 %v7511_v42  ;;  %v9108_v42 = vld [vmem:[#allocation15 + $0x4dc] sm:$0xf0]  ;;  %5216 = vmatpush.bf16.msrb.mxu3 %v8055_v44  ;;  %v3596_v59 = vor.u32 1.1754944e-38, %v3595_v60  ;;  %v9045_v60 = vld [vmem:[#allocation15 + $0x2e4] sm:$0xf0] }
 0x446   :  { %v8023_v46 = vor.u32 %v9108_v42, %v8022_v19  ;;  %v7926_v44 = vld [vmem:[#allocation15 + $0x400] sm:$0xf] }
 0x447   :  { %5255 = vmatpush.bf16.msra.mxu2 %v7803_v22  ;;  %v3369_v40 = vpop.f32.mrf.mxu2  ;;  %v7579_v22 = vor.u32 %v8992_v35, %v7576_v17  ;;  %v7419_v17 = vor.u32 %v8952_v37, %v7416_v38  ;;  %v9084_v19 = vld [vmem:[#allocation15 + $0x41c] sm:$0xf0] }
 0x448   :  { %v7646_v40 = vld [vmem:[#allocation15 + $0x1c8] sm:$0xf] }
 0x449   :  { %5192 = vmatpush.bf16.msra.mxu1 %v7479_v49  ;;  %v9357_v45 = vpop.eup %9356  ;;  %v3593_v49 = vand.u32 2147483647, %v3566_v9  ;;  %5217 = vmatpush.bf16.msrb.mxu3 %v8023_v46  ;;  %v9136_v46 = vld [vmem:[#allocation15 + $0x5c4] sm:$0xf] }
 0x44a   :  { %v3585_v32 = vmul.f32 %v9357_v45, %v3566_v9  ;;  %vm3590_vm9 = vweird.f32 %v9357_v45  ;;  %v1775_v9 = vperm.slane %v10386_v8, 2 }
 0x44b   :  { %5256 = vmatpush.bf16.msra.mxu2 %v7771_v51  ;;  %v8976_v51 = vld [vmem:[#allocation15 + $0xc4] sm:$0xf]  ;;  %vm3591_vm11 = vmor %vm3589_vm10, %vm3590_vm9  ;;  %vm3594_vm12 = vcmp.eq.f32.partialorder %v3593_v49, 8.507059e+37 }
 0x44c   :  { %v3586_v43 = vsub.f32 1.0, %v3585_v32  ;;  %v7515_v34 = vor.u32 %v8976_v51, %v7512_v52  ;;  %v7614_v32 = vld [vmem:[#allocation15 + $0x188] sm:$0xf] }
 0x44d   :  { %5193 = vmatpush.bf16.msra.mxu1 %v7447_v26  ;;  %v7903_v26 = vor.u32 %v9077_v58, %v7902_v57  ;;  %5218 = vmatpush.bf16.msrb.mxu3 %v7991_v53  ;;  %v9128_v57 = vld [vmem:[#allocation15 + $0x584] sm:$0xf] }
 0x44e   :  { %v3587_v7 = vmul.f32 %v9357_v45, %v3586_v43  ;;  %v9005_v43 = vld [vmem:[#allocation15 + $0x1a4] sm:$0xf0]  ;;  %v8120_v58 = vld [vmem:[#allocation15 + $0x5a0] sm:$0xf0] }
 0x44f   :  { %5257 = vmatpush.bf16.msra.mxu2 %v7739_v62  ;;  %v7615_v51 = vor.u32 %v9005_v43, %v7614_v32  ;;  %v9112_v53 = vld [vmem:[#allocation15 + $0x504] sm:$0xf] }
 0x450   :  { %v3588_v21 = vadd.f32 %v9357_v45, %v3587_v7  ;;  %v8155_v7 = vor.u32 %v9136_v46, %v8152_v36  ;;  %v9096_v32 = vld [vmem:[#allocation15 + $0x484] sm:$0xf]  ;;  %v7454_v36 = vld [vmem:[#allocation15 + $0x48] sm:$0xf] }
 0x451   :  { %5194 = vmatpush.bf16.msra.mxu1 %v7415_v11  ;;  %v10377_v47 = vpop.f32.mrf.mxu1  ;;  %5219 = vmatpush.bf16.msrb.mxu3 %v7959_v14 }
 0x452   :  { %v3592_v28 = vsel %vm3591_vm11, %v9357_v45, %v3588_v21  ;;  %v7807_v45 = vor.u32 %v9053_v29, %v7806_v10  ;;  %v7582_v21 = vld [vmem:[#allocation15 + $0x148] sm:$0xf]  ;;  %v8024_v10 = vld [vmem:[#allocation15 + $0x4e0] sm:$0xf0] }
 0x453   :  { %5258 = vmatpush.bf16.msra.mxu2 %v7707_v16  ;;  %v3597_v12 = vsel %vm3594_vm12, %v3596_v59, %v3592_v28  ;;  %v7838_v16 = vld [vmem:[#allocation15 + $0x348] sm:$0xf] }
 0x454   :  { %5195 = vmatmul.bf16.vlgmr.msra.gmra.mxu1 %v10374_v27  ;;  %v10379_v54 = vpop.f32.mrf.mxu0  ;;  %v10381_v62 = vpack.c.bf16 %v3597_v12, %v3597_v12  ;;  %v8997_v59 = vld [vmem:[#allocation15 + $0x164] sm:$0xf0] }
 0x455   :  { %5239 = vmatpush.bf16.msrb.mxu1 %v7643_v56  ;;  %v9061_v56 = vld [vmem:[#allocation15 + $0x364] sm:$0xf0] }
 0x456   :  { %5208 = vmatmul.bf16.vlgmr.msrb.gmra.mxu2 %v10381_v62  ;;  %v7839_v15 = vor.u32 %v9061_v56, %v7838_v16  ;;  %v7742_v28 = vld [vmem:[#allocation15 + $0x288] sm:$0xf] }
 0x457   :  { %5259 = vmatpush.bf16.msra.mxu2 %v7675_v24  ;;  %v3329_v24 = vadd.f32 %v10356_v48, %v1775_v9  ;;  %v7774_v48 = vld [vmem:[#allocation15 + $0x2c8] sm:$0xf]  ;;  %v8056_v9 = vld [vmem:[#allocation15 + $0x520] sm:$0xf0] }
 0x458   :  { %v10383_v1 = vpop.f32.mrf.mxu3  ;;  %v7775_v52 = vor.u32 %v9045_v60, %v7774_v48  ;;  %v8981_v16 = vld [vmem:[#allocation15 + $0xe4] sm:$0xf0]  ;;  %v8059_v20 = vor.u32 %v9112_v53, %v8056_v9  ;;  %v8374_v53 = vld [vmem:[#allocation15 + $0x780] sm:$0xf] }
 0x459   :  { %5240 = vmatpush.bf16.msrb.mxu1 %v7611_v30  ;;  %v3356_v4 = vpop.f32.mrf.mxu1  ;;  %v9013_v30 = vld [vmem:[#allocation15 + $0x1e4] sm:$0xf0]  ;;  %v3342_v41 = vadd.f32 %v10353_v33, %v3329_v24  ;;  %v7519_v14 = vor.u32 %v8981_v16, %v7518_v31  ;;  %v9001_v31 = vld [vmem:[#allocation15 + $0x18c] sm:$0xf]  ;;  %v9196_v9 = vld [vmem:[#allocation15 + $0x79c] sm:$0xf0] }
 0x45a   :  { %v7647_v42 = vor.u32 %v9013_v30, %v7646_v40  ;;  %v9037_v33 = vld [vmem:[#allocation15 + $0x2a4] sm:$0xf0]  ;;  %v9104_v30 = vld [vmem:[#allocation15 + $0x4c4] sm:$0xf]  ;;  %v9041_v16 = vld [vmem:[#allocation15 + $0x2cc] sm:$0xf] }
 0x45b   :  { %5304 = vmatpush.bf16.msrb.mxu2 %v7903_v26  ;;  %v3355_v49 = vadd.f32 %v10377_v47, %v3342_v41  ;;  %v7583_v47 = vor.u32 %v8997_v59, %v7582_v21  ;;  %v7743_v13 = vor.u32 %v9037_v33, %v7742_v28  ;;  %v9029_v4 = vld [vmem:[#allocation15 + $0x264] sm:$0xf0] }
 0x45c   :  { %v3395_v11 = vpop.f32.mrf.mxu0  ;;  %v7711_v6 = vor.u32 %v9029_v4, %v7710_v25  ;;  %v7678_v56 = vld [vmem:[#allocation15 + $0x208] sm:$0xf] }
 0x45d   :  { %5241 = vmatpush.bf16.msrb.mxu1 %v7579_v22  ;;  %v7927_v22 = vor.u32 %v9084_v19, %v7926_v44  ;;  %v3368_v12 = vadd.f32 %v10362_v55, %v3355_v49  ;;  %v7551_v55 = vor.u32 %v8989_v3, %v7550_v61  ;;  %v8027_v44 = vor.u32 %v9104_v30, %v8024_v10  ;;  %v9065_v19 = vld [vmem:[#allocation15 + $0x38c] sm:$0xf]  ;;  %v8965_v41 = vld [vmem:[#allocation15 + $0x64] sm:$0xf0]  ;;  %v9204_v3 = vld [vmem:[#allocation15 + $0x7dc] sm:$0xf0] }
 0x45e   :  { %v7455_v33 = vor.u32 %v8965_v41, %v7454_v36  ;;  %v7648_v61 = vld [vmem:[#allocation15 + $0x1e8] sm:$0xf0]  ;;  %v9188_v30 = vld [vmem:[#allocation15 + $0x75c] sm:$0xf0] }
 0x45f   :  { %v10389_v39 = vpop.f32.mrf.mxu2  ;;  %5305 = vmatpush.bf16.msrb.mxu2 %v7871_v5  ;;  %5220 = vmatpush.bf16.msrb.mxu3 %v7927_v22  ;;  %v8091_v5 = vor.u32 %v9120_v63, %v8088_v0  ;;  %v7992_v22 = vld [vmem:[#allocation15 + $0x4a0] sm:$0xf0]  ;;  %v9049_v63 = vld [vmem:[#allocation15 + $0x30c] sm:$0xf]  ;;  %v8278_v41 = vld [vmem:[#allocation15 + $0x6c0] sm:$0xf] }
 0x460   :  { %v3382_v35 = vpop.f32.mrf.mxu3  ;;  %v7995_v43 = vor.u32 %v9096_v32, %v7992_v22  ;;  %v7808_v0 = vld [vmem:[#allocation15 + $0x328] sm:$0xf0] }
 0x461   :  { %5242 = vmatpush.bf16.msrb.mxu1 %v7547_v50  ;;  %v7486_v35 = vld [vmem:[#allocation15 + $0x88] sm:$0xf]  ;;  %v7584_v10 = vld [vmem:[#allocation15 + $0x168] sm:$0xf0] }
 0x462   :  { %v7552_v32 = vld [vmem:[#allocation15 + $0x128] sm:$0xf0] }
 0x463   :  { %5306 = vmatpush.bf16.msrb.mxu2 %v7839_v15  ;;  %5265 = vmatpush.bf16.msra.mxu3 %v8155_v7  ;;  %v7904_v15 = vld [vmem:[#allocation15 + $0x3e8] sm:$0xf0]  ;;  %v7960_v7 = vld [vmem:[#allocation15 + $0x460] sm:$0xf0] }
 0x464   :  { %v9025_v22 = vld [vmem:[#allocation15 + $0x24c] sm:$0xf] }
 0x465   :  { %5243 = vmatpush.bf16.msrb.mxu1 %v7515_v34  ;;  %v8123_v34 = vor.u32 %v9128_v57, %v8120_v58  ;;  %v7422_v57 = vld [vmem:[#allocation15 + $0x8] sm:$0xf] }
 0x466   :  { %5260 = vmatmul.bf16.vlgmr.msra.gmra.mxu2 %v10381_v62 }
 0x467   :  { %v3421_v50 = vpop.f32.mrf.mxu2  ;;  %5307 = vmatpush.bf16.msrb.mxu2 %v7807_v45  ;;  %5266 = vmatpush.bf16.msra.mxu3 %v8123_v34  ;;  %v8957_v34 = vld [vmem:[#allocation15 + $0x24] sm:$0xf0] }
 0x468   :  { %v3432_v26 = vpop.f32.mrf.mxu3  ;;  %v9057_v50 = vld [vmem:[#allocation15 + $0x34c] sm:$0xf] }
 0x469   :  { %5244 = vmatpush.bf16.msrb.mxu1 %v7483_v2  ;;  %v3381_v2 = vadd.f32 %v10383_v1, %v3368_v12  ;;  %v9073_v1 = vld [vmem:[#allocation15 + $0x3cc] sm:$0xf]  ;;  %v9080_v12 = vld [vmem:[#allocation15 + $0x404] sm:$0xf] }
 0x46a   :  { %v7907_v29 = vor.u32 %v9073_v1, %v7904_v15 }
 0x46b   :  { %5308 = vmatpush.bf16.msrb.mxu2 %v7775_v52  ;;  %5267 = vmatpush.bf16.msra.mxu3 %v8091_v5  ;;  %v3394_v11 = vadd.f32 %v10379_v54, %v3381_v2  ;;  %v8406_v2 = vld [vmem:[#allocation15 + $0x7c0] sm:$0xf]  ;;  %v7423_v5 = vor.u32 %v8957_v34, %v7422_v57 }
 0x46c   :  { %v8407_v4 = vor.u32 %v9204_v3, %v8406_v2  ;;  %v8969_v2 = vld [vmem:[#allocation15 + $0x8c] sm:$0xf] }
 0x46d   :  { %5245 = vmatpush.bf16.msrb.mxu1 %v7451_v18  ;;  %v9021_v18 = vld [vmem:[#allocation15 + $0x224] sm:$0xf0]  ;;  %v7488_v3 = vld [vmem:[#allocation15 + $0xa8] sm:$0xf0] }
 0x46e   :  { %v7679_v24 = vor.u32 %v9021_v18, %v7678_v56  ;;  %5226 = vmatpush.bf16.msra.mxu0 %v8407_v4  ;;  %v7776_v56 = vld [vmem:[#allocation15 + $0x2e8] sm:$0xf0]  ;;  %v8375_v18 = vor.u32 %v9196_v9, %v8374_v53  ;;  %v7491_v9 = vor.u32 %v8969_v2, %v7488_v3  ;;  %v9200_v3 = vld [vmem:[#allocation15 + $0x7c4] sm:$0xf] }
 0x46f   :  { %5309 = vmatpush.bf16.msrb.mxu2 %v7743_v13  ;;  %5268 = vmatpush.bf16.msra.mxu3 %v8059_v20  ;;  %v9009_v13 = vld [vmem:[#allocation15 + $0x1cc] sm:$0xf] }
 0x470   :  { %v3434_v40 = vpop.f32.mrf.mxu3 }
 0x471   :  { %5246 = vmatpush.bf16.msrb.mxu1 %v7419_v17  ;;  %v3406_v23 = vpop.f32.mrf.mxu1  ;;  %v8973_v17 = vld [vmem:[#allocation15 + $0xa4] sm:$0xf0] }
 0x472   :  { %v3407_v37 = vadd.f32 %v3406_v23, %v3394_v11  ;;  %v10399_v38 = vpop.f32.mrf.mxu0  ;;  %v7487_v46 = vor.u32 %v8973_v17, %v7486_v35  ;;  %v7616_v11 = vld [vmem:[#allocation15 + $0x1a8] sm:$0xf0]  ;;  %5227 = vmatpush.bf16.msra.mxu0 %v8375_v18  ;;  %v8310_v17 = vld [vmem:[#allocation15 + $0x700] sm:$0xf] }
 0x473   :  { %5310 = vmatpush.bf16.msrb.mxu2 %v7711_v6  ;;  %5269 = vmatpush.bf16.msra.mxu3 %v8027_v44  ;;  %v7811_v6 = vor.u32 %v9049_v63, %v7808_v0  ;;  %v7619_v40 = vor.u32 %v9001_v31, %v7616_v11  ;;  %v9180_v44 = vld [vmem:[#allocation15 + $0x71c] sm:$0xf0]  ;;  %v8961_v11 = vld [vmem:[#allocation15 + $0x4c] sm:$0xf] }
 0x474   :  { %5247 = vmatmul.bf16.vlgmr.msrb.gmra.mxu1 %v10374_v27  ;;  %v3420_v54 = vadd.f32 %v10389_v39, %v3407_v37  ;;  %v9088_v39 = vld [vmem:[#allocation15 + $0x444] sm:$0xf]  ;;  %v8342_v37 = vld [vmem:[#allocation15 + $0x740] sm:$0xf]  ;;  %v8311_v36 = vor.u32 %v9180_v44, %v8310_v17  ;;  %v8953_v17 = vld [vmem:[#allocation15 + $0xc] sm:$0xf] }
 0x475   :  { %5291 = vmatpush.bf16.msra.mxu1 %v7647_v42  ;;  %v7872_v42 = vld [vmem:[#allocation15 + $0x3a8] sm:$0xf0]  ;;  %v7963_v58 = vor.u32 %v9088_v39, %v7960_v7  ;;  %v8343_v35 = vor.u32 %v9188_v30, %v8342_v37 }
 0x476   :  { %v3433_v45 = vadd.f32 %v3432_v26, %v3420_v54  ;;  %v7875_v60 = vor.u32 %v9065_v19, %v7872_v42  ;;  %v7928_v26 = vld [vmem:[#allocation15 + $0x420] sm:$0xf0]  ;;  %v9033_v54 = vld [vmem:[#allocation15 + $0x28c] sm:$0xf] }
 0x477   :  { %5311 = vmatpush.bf16.msrb.mxu2 %v7679_v24  ;;  %5270 = vmatpush.bf16.msra.mxu3 %v7995_v43  ;;  %v7931_v25 = vor.u32 %v9080_v12, %v7928_v26  ;;  %v8993_v24 = vld [vmem:[#allocation15 + $0x14c] sm:$0xf]  ;;  %v9172_v43 = vld [vmem:[#allocation15 + $0x6dc] sm:$0xf0] }
 0x478   :  { %v3555_v48 = vsub.f32 0.0, %v3433_v45  ;;  %v7587_v19 = vor.u32 %v8993_v24, %v7584_v10  ;;  %v8985_v45 = vld [vmem:[#allocation15 + $0x10c] sm:$0xf]  ;;  %5228 = vmatpush.bf16.msra.mxu0 %v8343_v35  ;;  %v9164_v24 = vld [vmem:[#allocation15 + $0x69c] sm:$0xf0] }
 0x479   :  { %5292 = vmatpush.bf16.msra.mxu1 %v7615_v51  ;;  %v3408_v49 = vpop.f32.mrf.mxu1  ;;  %v7840_v51 = vld [vmem:[#allocation15 + $0x368] sm:$0xf0]  ;;  %v7555_v39 = vor.u32 %v8985_v45, %v7552_v32 }
 0x47a   :  { %v3561_v52 = vmul.f32 1.442695, %v3555_v48  ;;  %v3447_v21 = vpop.f32.mrf.mxu0  ;;  %5312 = vmatmul.bf16.vlgmr.msrb.gmra.mxu2 %v10381_v62  ;;  %v8977_v49 = vld [vmem:[#allocation15 + $0xcc] sm:$0xf] }
 0x47b   :  { %5356 = vmatpush.bf16.msra.mxu2 %v7907_v29  ;;  %5271 = vmatpush.bf16.msra.mxu3 %v7963_v58  ;;  %v7744_v29 = vld [vmem:[#allocation15 + $0x2a8] sm:$0xf0]  ;;  %v8279_v21 = vor.u32 %v9172_v43, %v8278_v41  ;;  %v7910_v58 = vld [vmem:[#allocation15 + $0x3d0] sm:$0xf]  ;;  %v9156_v43 = vld [vmem:[#allocation15 + $0x65c] sm:$0xf0] }
 0x47c   :  { %v10405_v28 = vpop.f32.mrf.mxu3  ;;  %9358 = vpow2.f32 %v3561_v52  ;;  %v7747_v42 = vor.u32 %v9033_v54, %v7744_v29  ;;  %v7680_v52 = vld [vmem:[#allocation15 + $0x228] sm:$0xf0]  ;;  %5229 = vmatpush.bf16.msra.mxu0 %v8311_v36  ;;  %v1776_v29 = vperm.slane %v10386_v8, 3  ;;  %v7654_v36 = vld [vmem:[#allocation15 + $0x1d0] sm:$0xf] }
 0x47d   :  { %5293 = vmatpush.bf16.msra.mxu1 %v7583_v47  ;;  %v7843_v47 = vor.u32 %v9057_v50, %v7840_v51  ;;  %v7520_v50 = vld [vmem:[#allocation15 + $0xe8] sm:$0xf0]  ;;  %v9014_v41 = vld [vmem:[#allocation15 + $0x1ec] sm:$0xf0]  ;;  %v8214_v8 = vld [vmem:[#allocation15 + $0x640] sm:$0xf] }
 0x47e   :  { %v9017_v51 = vld [vmem:[#allocation15 + $0x20c] sm:$0xf] }
 0x47f   :  { %v10403_v59 = vpop.f32.mrf.mxu2  ;;  %5357 = vmatpush.bf16.msra.mxu2 %v7875_v60  ;;  %5272 = vmatpush.bf16.msra.mxu3 %v7931_v25  ;;  %v7683_v63 = vor.u32 %v9017_v51, %v7680_v52  ;;  %v8158_v25 = vld [vmem:[#allocation15 + $0x5c8] sm:$0xf]  ;;  %v7424_v44 = vld [vmem:[#allocation15 + $0x28] sm:$0xf0]  ;;  %v7655_v52 = vor.u32 %v9014_v41, %v7654_v36 }
 0x480   :  { %5230 = vmatpush.bf16.msra.mxu0 %v8279_v21  ;;  %v9117_v21 = vld [vmem:[#allocation15 + $0x524] sm:$0xf0] }
 0x481   :  { %5294 = vmatpush.bf16.msra.mxu1 %v7551_v55  ;;  %v7651_v55 = vor.u32 %v9009_v13, %v7648_v61  ;;  %v7966_v36 = vld [vmem:[#allocation15 + $0x448] sm:$0xf] }
 0x482   :  { %v9359_v20 = vpop.eup %9358  ;;  %v9093_v41 = vld [vmem:[#allocation15 + $0x464] sm:$0xf0] }
 0x483   :  { %5358 = vmatpush.bf16.msra.mxu2 %v7843_v47  ;;  %v10407_v23 = vadd.f32 1.0, %v9359_v20  ;;  %v7523_v47 = vor.u32 %v8977_v49, %v7520_v50  ;;  %v8062_v49 = vld [vmem:[#allocation15 + $0x508] sm:$0xf]  ;;  %v3446_v50 = vadd.f32 %v10399_v38, %v1776_v29  ;;  %v8408_v38 = vld [vmem:[#allocation15 + $0x7e0] sm:$0xf0] }
 0x484   :  { %v3486_v15 = vpop.f32.mrf.mxu3  ;;  %v7718_v29 = vld [vmem:[#allocation15 + $0x250] sm:$0xf] }
 0x485   :  { %5295 = vmatpush.bf16.msra.mxu1 %v7519_v14  ;;  %v7779_v14 = vor.u32 %v9041_v16, %v7776_v56  ;;  %9360 = vrcp.f32 %v10407_v23  ;;  %v3610_v34 = vand.u32 2147483648, %v10407_v23  ;;  %v3608_v61 = vand.u32 2147483647, %v10407_v23  ;;  %v7456_v16 = vld [vmem:[#allocation15 + $0x68] sm:$0xf0] }
 0x486   :  { %vm3604_vm14 = vweird.f32 %v10407_v23  ;;  %v9133_v15 = vld [vmem:[#allocation15 + $0x5a4] sm:$0xf0]  ;;  %v7459_v35 = vor.u32 %v8961_v11, %v7456_v16  ;;  %v7590_v11 = vld [vmem:[#allocation15 + $0x150] sm:$0xf] }
 0x487   :  { %v3473_v1 = vpop.f32.mrf.mxu2  ;;  %5359 = vmatpush.bf16.msra.mxu2 %v7811_v6  ;;  %v9070_v6 = vld [vmem:[#allocation15 + $0x3ac] sm:$0xf0]  ;;  %v3611_v31 = vor.u32 1.1754944e-38, %v3610_v34  ;;  %vm3609_vm0 = vcmp.eq.f32.partialorder %v3608_v61, 8.507059e+37 }
 0x488   :  { %v8126_v1 = vld [vmem:[#allocation15 + $0x588] sm:$0xf]  ;;  %v7782_v34 = vld [vmem:[#allocation15 + $0x2d0] sm:$0xf] }
 0x489   :  { %5296 = vmatpush.bf16.msra.mxu1 %v7487_v46  ;;  %v7712_v46 = vld [vmem:[#allocation15 + $0x268] sm:$0xf0]  ;;  %v8127_v45 = vor.u32 %v9133_v15, %v8126_v1  ;;  %v7750_v16 = vld [vmem:[#allocation15 + $0x290] sm:$0xf]  ;;  %v8376_v1 = vld [vmem:[#allocation15 + $0x7a0] sm:$0xf0] }
 0x48a   :  { %v7715_v7 = vor.u32 %v9025_v22, %v7712_v46  ;;  %v8094_v22 = vld [vmem:[#allocation15 + $0x548] sm:$0xf] }
 0x48b   :  { %5360 = vmatpush.bf16.msra.mxu2 %v7779_v14  ;;  %v9361_v48 = vpop.eup %9360  ;;  %v8246_v14 = vld [vmem:[#allocation15 + $0x680] sm:$0xf]  ;;  %v9125_v46 = vld [vmem:[#allocation15 + $0x564] sm:$0xf0] }
 0x48c   :  { %v3600_v60 = vmul.f32 %v9361_v48, %v10407_v23  ;;  %vm3605_vm13 = vweird.f32 %v9361_v48  ;;  %v7846_v23 = vld [vmem:[#allocation15 + $0x350] sm:$0xf]  ;;  %v8247_v54 = vor.u32 %v9164_v24, %v8246_v14  ;;  %v8095_v51 = vor.u32 %v9125_v46, %v8094_v22  ;;  %v7998_v14 = vld [vmem:[#allocation15 + $0x488] sm:$0xf] }
 0x48d   :  { %5297 = vmatpush.bf16.msra.mxu1 %v7455_v33  ;;  %v9078_v33 = vld [vmem:[#allocation15 + $0x3ec] sm:$0xf0]  ;;  %vm3606_vm15 = vmor %vm3604_vm14, %vm3605_vm13  ;;  %v9101_v24 = vld [vmem:[#allocation15 + $0x4a4] sm:$0xf0] }
 0x48e   :  { %v3601_v57 = vsub.f32 1.0, %v3600_v60  ;;  %v7911_v0 = vor.u32 %v9078_v33, %v7910_v58  ;;  %5231 = vmatpush.bf16.msra.mxu0 %v8247_v54  ;;  %v9054_v60 = vld [vmem:[#allocation15 + $0x32c] sm:$0xf0]  ;;  %v7999_v22 = vor.u32 %v9101_v24, %v7998_v14 }
 0x48f   :  { %5361 = vmatpush.bf16.msra.mxu2 %v7747_v42  ;;  %v9006_v58 = vld [vmem:[#allocation15 + $0x1ac] sm:$0xf0] }
 0x490   :  { %v3602_v13 = vmul.f32 %v9361_v48, %v3601_v57  ;;  %v7622_v57 = vld [vmem:[#allocation15 + $0x190] sm:$0xf] }
 0x491   :  { %5298 = vmatpush.bf16.msra.mxu1 %v7423_v5  ;;  %v10413_v12 = vpop.f32.mrf.mxu1  ;;  %v9141_v5 = vld [vmem:[#allocation15 + $0x5e4] sm:$0xf0]  ;;  %v8990_v54 = vld [vmem:[#allocation15 + $0x12c] sm:$0xf0] }
 0x492   :  { %v10415_v26 = vpop.f32.mrf.mxu0  ;;  %v3603_v4 = vadd.f32 %v9361_v48, %v3602_v13  ;;  %v8159_v18 = vor.u32 %v9141_v5, %v8158_v25  ;;  %v9148_v13 = vld [vmem:[#allocation15 + $0x61c] sm:$0xf0]  ;;  %v3459_v61 = vadd.f32 %v10413_v12, %v3446_v50  ;;  %v8411_v25 = vor.u32 %v9200_v3, %v8408_v38  ;;  %v8998_v12 = vld [vmem:[#allocation15 + $0x16c] sm:$0xf0]  ;;  %v8160_v38 = vld [vmem:[#allocation15 + $0x5e8] sm:$0xf0] }
 0x493   :  { %5362 = vmatpush.bf16.msra.mxu2 %v7715_v7  ;;  %v7427_v7 = vor.u32 %v8953_v17, %v7424_v44  ;;  %v9030_v17 = vld [vmem:[#allocation15 + $0x26c] sm:$0xf0]  ;;  %v9184_v44 = vld [vmem:[#allocation15 + $0x744] sm:$0xf] }
 0x494   :  { %5299 = vmatmul.bf16.vlgmr.msra.gmra.mxu1 %v10374_v27  ;;  %v3607_v53 = vsel %vm3606_vm15, %v9361_v48, %v3603_v4  ;;  %v7814_v48 = vld [vmem:[#allocation15 + $0x310] sm:$0xf] }
 0x495   :  { %5343 = vmatpush.bf16.msrb.mxu1 %v7651_v55  ;;  %v7878_v55 = vld [vmem:[#allocation15 + $0x390] sm:$0xf]  ;;  %v3612_v56 = vsel %vm3609_vm0, %v3611_v31, %v3607_v53  ;;  %v7815_v33 = vor.u32 %v9054_v60, %v7814_v48  ;;  %v8030_v31 = vld [vmem:[#allocation15 + $0x4c8] sm:$0xf] }
 0x496   :  { %v7879_v20 = vor.u32 %v9070_v6, %v7878_v55  ;;  %v10420_v37 = vpack.c.bf16 %v3612_v56, %v3612_v56  ;;  %v8063_v55 = vor.u32 %v9117_v21, %v8062_v49  ;;  %v7623_v6 = vor.u32 %v9006_v58, %v7622_v57  ;;  %v9109_v53 = vld [vmem:[#allocation15 + $0x4e4] sm:$0xf0]  ;;  %v8982_v48 = vld [vmem:[#allocation15 + $0xec] sm:$0xf0]  ;;  %v8312_v49 = vld [vmem:[#allocation15 + $0x720] sm:$0xf0] }
 0x497   :  { %5363 = vmatpush.bf16.msra.mxu2 %v7683_v63  ;;  %v3472_v56 = vadd.f32 %v10403_v59, %v3459_v61  ;;  %v7686_v60 = vld [vmem:[#allocation15 + $0x210] sm:$0xf]  ;;  %v7967_v58 = vor.u32 %v9093_v41, %v7966_v36  ;;  %v9050_v36 = vld [vmem:[#allocation15 + $0x314] sm:$0xf] }
 0x498   :  { %5221 = vmatmul.bf16.vlgmr.msrb.gmra.mxu3 %v10420_v37  ;;  %v7494_v61 = vld [vmem:[#allocation15 + $0x90] sm:$0xf]  ;;  %v7816_v41 = vld [vmem:[#allocation15 + $0x330] sm:$0xf0] }
 0x499   :  { %5344 = vmatpush.bf16.msrb.mxu1 %v7619_v40  ;;  %v9062_v40 = vld [vmem:[#allocation15 + $0x36c] sm:$0xf0]  ;;  %v3460_v30 = vpop.f32.mrf.mxu1  ;;  %5317 = vmatpush.bf16.msrb.mxu3 %v8159_v18  ;;  %v3485_v59 = vadd.f32 %v10405_v28, %v3472_v56  ;;  %v9129_v56 = vld [vmem:[#allocation15 + $0x58c] sm:$0xf] }
 0x49a   :  { %v3499_v10 = vpop.f32.mrf.mxu0  ;;  %5364 = vmatmul.bf16.vlgmr.msra.gmra.mxu2 %v10381_v62  ;;  %v7847_v32 = vor.u32 %v9062_v40, %v7846_v23  ;;  %v9038_v18 = vld [vmem:[#allocation15 + $0x2ac] sm:$0xf0]  ;;  %v8031_v23 = vor.u32 %v9109_v53, %v8030_v31  ;;  %v7591_v40 = vor.u32 %v8998_v12, %v7590_v11 }
 0x49b   :  { %5408 = vmatpush.bf16.msrb.mxu2 %v7911_v0  ;;  %v9046_v0 = vld [vmem:[#allocation15 + $0x2ec] sm:$0xf0]  ;;  %v7751_v30 = vor.u32 %v9038_v18, %v7750_v16  ;;  %v3498_v28 = vadd.f32 %v10415_v26, %v3485_v59  ;;  %v9137_v26 = vld [vmem:[#allocation15 + $0x5cc] sm:$0xf] }
 0x49c   :  { %v10427_v42 = vpop.f32.mrf.mxu3  ;;  %v7558_v10 = vld [vmem:[#allocation15 + $0x110] sm:$0xf]  ;;  %v8163_v11 = vor.u32 %v9137_v26, %v8160_v38  ;;  %v8096_v59 = vld [vmem:[#allocation15 + $0x568] sm:$0xf0]  ;;  %v7592_v26 = vld [vmem:[#allocation15 + $0x170] sm:$0xf0] }
 0x49d   :  { %5345 = vmatpush.bf16.msrb.mxu1 %v7587_v19  ;;  %v10425_v19 = vpop.f32.mrf.mxu2  ;;  %5318 = vmatpush.bf16.msrb.mxu3 %v8127_v45  ;;  %v8344_v45 = vld [vmem:[#allocation15 + $0x760] sm:$0xf0]  ;;  %v7559_v46 = vor.u32 %v8990_v54, %v7558_v10  ;;  %v7462_v12 = vld [vmem:[#allocation15 + $0x50] sm:$0xf]  ;;  %v7752_v38 = vld [vmem:[#allocation15 + $0x2b0] sm:$0xf0] }
 0x49e   :  { %v8966_v16 = vld [vmem:[#allocation15 + $0x6c] sm:$0xf0] }
 0x49f   :  { %5409 = vmatpush.bf16.msrb.mxu2 %v7879_v20  ;;  %v9192_v20 = vld [vmem:[#allocation15 + $0x784] sm:$0xf]  ;;  %v7430_v14 = vld [vmem:[#allocation15 + $0x10] sm:$0xf]  ;;  %v7463_v10 = vor.u32 %v8966_v16, %v7462_v12 }
 0x4a0   :  { %v8379_v15 = vor.u32 %v9192_v20, %v8376_v1  ;;  %v8128_v20 = vld [vmem:[#allocation15 + $0x5a8] sm:$0xf0]  ;;  %v9160_v1 = vld [vmem:[#allocation15 + $0x684] sm:$0xf]  ;;  %v8958_v54 = vld [vmem:[#allocation15 + $0x2c] sm:$0xf0] }
 0x4a1   :  { %5346 = vmatpush.bf16.msrb.mxu1 %v7555_v39  ;;  %v8215_v39 = vor.u32 %v9156_v43, %v8214_v8  ;;  %5319 = vmatpush.bf16.msrb.mxu3 %v8095_v51  ;;  %v7719_v8 = vor.u32 %v9030_v17, %v7718_v29  ;;  %v7526_v43 = vld [vmem:[#allocation15 + $0xd0] sm:$0xf]  ;;  %v9074_v51 = vld [vmem:[#allocation15 + $0x3d4] sm:$0xf]  ;;  %v9121_v29 = vld [vmem:[#allocation15 + $0x54c] sm:$0xf] }
 0x4a2   :  { %v10431_v63 = vpop.f32.mrf.mxu0  ;;  %v8216_v17 = vld [vmem:[#allocation15 + $0x660] sm:$0xf0] }
 0x4a3   :  { %5410 = vmatpush.bf16.msrb.mxu2 %v7847_v32  ;;  %5232 = vmatpush.bf16.msra.mxu0 %v8215_v39  ;;  %v8347_v32 = vor.u32 %v9184_v44, %v8344_v45  ;;  %v9022_v39 = vld [vmem:[#allocation15 + $0x22c] sm:$0xf0] }
 0x4a4   :  { %v3538_v5 = vpop.f32.mrf.mxu3 }
 0x4a5   :  { %5347 = vmatpush.bf16.msrb.mxu1 %v7523_v47  ;;  %v8182_v47 = vld [vmem:[#allocation15 + $0x600] sm:$0xf]  ;;  %v3525_v4 = vpop.f32.mrf.mxu2  ;;  %5320 = vmatpush.bf16.msrb.mxu3 %v8063_v55  ;;  %v9066_v5 = vld [vmem:[#allocation15 + $0x394] sm:$0xf] }
 0x4a6   :  { %v8183_v2 = vor.u32 %v9148_v13, %v8182_v47  ;;  %v9085_v47 = vld [vmem:[#allocation15 + $0x424] sm:$0xf0]  ;;  %v7687_v13 = vor.u32 %v9022_v39, %v7686_v60  ;;  %v8280_v4 = vld [vmem:[#allocation15 + $0x6e0] sm:$0xf0]  ;;  %v7880_v55 = vld [vmem:[#allocation15 + $0x3b0] sm:$0xf0] }
 0x4a7   :  { %5411 = vmatpush.bf16.msrb.mxu2 %v7815_v33  ;;  %v7527_v33 = vor.u32 %v8982_v48, %v7526_v43  ;;  %v7883_v18 = vor.u32 %v9066_v5, %v7880_v55  ;;  %v8099_v43 = vor.u32 %v9121_v29, %v8096_v59  ;;  %v9113_v60 = vld [vmem:[#allocation15 + $0x50c] sm:$0xf]  ;;  %v8184_v39 = vld [vmem:[#allocation15 + $0x620] sm:$0xf0] }
 0x4a8   :  { %5233 = vmatpush.bf16.msra.mxu0 %v8183_v2  ;;  %5273 = vmatmul.bf16.vlgmr.msra.gmra.mxu3 %v10420_v37  ;;  %v9097_v5 = vld [vmem:[#allocation15 + $0x48c] sm:$0xf] }
 0x4a9   :  { %5348 = vmatpush.bf16.msrb.mxu1 %v7491_v9  ;;  %v7783_v9 = vor.u32 %v9046_v0, %v7782_v34  ;;  %5321 = vmatpush.bf16.msrb.mxu3 %v8031_v23  ;;  %v7934_v34 = vld [vmem:[#allocation15 + $0x408] sm:$0xf]  ;;  %v8974_v0 = vld [vmem:[#allocation15 + $0xac] sm:$0xf0]  ;;  %v9081_v29 = vld [vmem:[#allocation15 + $0x40c] sm:$0xf] }
 0x4aa   :  { %v7935_v53 = vor.u32 %v9085_v47, %v7934_v34  ;;  %v9105_v34 = vld [vmem:[#allocation15 + $0x4cc] sm:$0xf] }
 0x4ab   :  { %5412 = vmatpush.bf16.msrb.mxu2 %v7783_v9  ;;  %v7495_v9 = vor.u32 %v8974_v0, %v7494_v61  ;;  %v8032_v61 = vld [vmem:[#allocation15 + $0x4e8] sm:$0xf0]  ;;  %v8994_v0 = vld [vmem:[#allocation15 + $0x154] sm:$0xf] }
 0x4ac   :  { %5278 = vmatpush.bf16.msrb.mxu0 %v8411_v25  ;;  %v9168_v25 = vld [vmem:[#allocation15 + $0x6c4] sm:$0xf] }
 0x4ad   :  { %5349 = vmatpush.bf16.msrb.mxu1 %v7459_v35  ;;  %v3551_v35 = vpop.f32.mrf.mxu0  ;;  %5322 = vmatpush.bf16.msrb.mxu3 %v7999_v22  ;;  %v7656_v22 = vld [vmem:[#allocation15 + $0x1f0] sm:$0xf0] }
 0x4ae   :  { %v9152_v35 = vld [vmem:[#allocation15 + $0x644] sm:$0xf] }
 0x4af   :  { %5413 = vmatpush.bf16.msrb.mxu2 %v7751_v30 }
 0x4b0   :  { %5279 = vmatpush.bf16.msrb.mxu0 %v8379_v15  ;;  %v8248_v15 = vld [vmem:[#allocation15 + $0x6a0] sm:$0xf0] }
 0x4b1   :  { %5350 = vmatpush.bf16.msrb.mxu1 %v7427_v7  ;;  %v9176_v7 = vld [vmem:[#allocation15 + $0x704] sm:$0xf]  ;;  %v3510_v50 = vpop.f32.mrf.mxu1  ;;  %5323 = vmatpush.bf16.msrb.mxu3 %v7967_v58  ;;  %v8251_v24 = vor.u32 %v9160_v1, %v8248_v15  ;;  %v7528_v1 = vld [vmem:[#allocation15 + $0xf0] sm:$0xf0] }
 0x4b2   :  { %v8315_v21 = vor.u32 %v9176_v7, %v8312_v49  ;;  %v3511_v57 = vadd.f32 %v3510_v50, %v3498_v28  ;;  %v9144_v28 = vld [vmem:[#allocation15 + $0x604] sm:$0xf]  ;;  %v7819_v7 = vor.u32 %v9050_v36, %v7816_v41  ;;  %v8064_v49 = vld [vmem:[#allocation15 + $0x528] sm:$0xf0]  ;;  %v9002_v50 = vld [vmem:[#allocation15 + $0x194] sm:$0xf] }
 0x4b3   :  { %5414 = vmatpush.bf16.msrb.mxu2 %v7719_v8  ;;  %v7431_v8 = vor.u32 %v8958_v54, %v7430_v14  ;;  %v8067_v58 = vor.u32 %v9113_v60, %v8064_v49  ;;  %v9205_v49 = vld [vmem:[#allocation15 + $0x7e4] sm:$0xf0] }
 0x4b4   :  { %5351 = vmatmul.bf16.vlgmr.msrb.gmra.mxu1 %v10374_v27  ;;  %5280 = vmatpush.bf16.msrb.mxu0 %v8347_v32  ;;  %v3524_v2 = vadd.f32 %v10425_v19, %v3511_v57  ;;  %v9010_v32 = vld [vmem:[#allocation15 + $0x1d4] sm:$0xf] }
 0x4b5   :  { %5395 = vmatpush.bf16.msra.mxu1 %v7655_v52  ;;  %v7912_v52 = vld [vmem:[#allocation15 + $0x3f0] sm:$0xf0]  ;;  %5324 = vmatpush.bf16.msrb.mxu3 %v7935_v53  ;;  %v7659_v48 = vor.u32 %v9010_v32, %v7656_v22  ;;  %v8166_v22 = vld [vmem:[#allocation15 + $0x5d0] sm:$0xf] }
 0x4b6   :  { %v7915_v3 = vor.u32 %v9074_v51, %v7912_v52  ;;  %v3537_v31 = vadd.f32 %v10427_v42, %v3524_v2  ;;  %v7848_v42 = vld [vmem:[#allocation15 + $0x370] sm:$0xf0]  ;;  %v8187_v52 = vor.u32 %v9144_v28, %v8184_v39  ;;  %v8414_v28 = vld [vmem:[#allocation15 + $0x7c8] sm:$0xf] }
 0x4b7   :  { %5415 = vmatpush.bf16.msrb.mxu2 %v7687_v13  ;;  %v7624_v51 = vld [vmem:[#allocation15 + $0x1b0] sm:$0xf0] }
 0x4b8   :  { %5281 = vmatpush.bf16.msrb.mxu0 %v8315_v21  ;;  %v3550_v19 = vadd.f32 %v10431_v63, %v3537_v31  ;;  %v8131_v63 = vor.u32 %v9129_v56, %v8128_v20  ;;  %5325 = vmatmul.bf16.vlgmr.msrb.gmra.mxu3 %v10420_v37  ;;  %v9042_v21 = vld [vmem:[#allocation15 + $0x2d4] sm:$0xf]  ;;  %v9089_v56 = vld [vmem:[#allocation15 + $0x44c] sm:$0xf] }
 0x4b9   :  { %5396 = vmatpush.bf16.msra.mxu1 %v7623_v6  ;;  %v8283_v6 = vor.u32 %v9168_v25, %v8280_v4  ;;  %v3512_v23 = vpop.f32.mrf.mxu1  ;;  %5369 = vmatpush.bf16.msra.mxu3 %v8163_v11  ;;  %v7784_v57 = vld [vmem:[#allocation15 + $0x2f0] sm:$0xf0]  ;;  %v8035_v25 = vor.u32 %v9105_v34, %v8032_v61  ;;  %v7595_v4 = vor.u32 %v8994_v0, %v7592_v26  ;;  %v10454_v0 = vld [vmem:[#allocation17] sm:$0xff] }
 0x4ba   :  { %v3556_v30 = vsub.f32 0.0, %v3550_v19  ;;  %5416 = vmatmul.bf16.vlgmr.msrb.gmra.mxu2 %v10381_v62  ;;  %v7787_v13 = vor.u32 %v9042_v21, %v7784_v57  ;;  %v8986_v31 = vld [vmem:[#allocation15 + $0x114] sm:$0xf]  ;;  %v8134_v57 = vld [vmem:[#allocation15 + $0x590] sm:$0xf]  ;;  %v8415_v26 = vor.u32 %v9205_v49, %v8414_v28 }
 0x4bb   :  { %5460 = vmatpush.bf16.msra.mxu2 %v7915_v3  ;;  %v9034_v3 = vld [vmem:[#allocation15 + $0x294] sm:$0xf]  ;;  %v8286_v49 = vld [vmem:[#allocation15 + $0x6c8] sm:$0xf] }
 0x4bc   :  { %5282 = vmatpush.bf16.msrb.mxu0 %v8283_v6  ;;  %v3563_v44 = vmul.f32 1.442695, %v3556_v30  ;;  %v7755_v55 = vor.u32 %v9034_v3, %v7752_v38  ;;  %v8000_v6 = vld [vmem:[#allocation15 + $0x4a8] sm:$0xf0]  ;;  %v7560_v53 = vld [vmem:[#allocation15 + $0x130] sm:$0xf0] }
 0x4bd   :  { %5397 = vmatpush.bf16.msra.mxu1 %v7591_v40  ;;  %v9058_v40 = vld [vmem:[#allocation15 + $0x354] sm:$0xf]  ;;  %5370 = vmatpush.bf16.msra.mxu3 %v8131_v63  ;;  %v8003_v12 = vor.u32 %v9097_v5, %v8000_v6  ;;  %v7563_v16 = vor.u32 %v8986_v31, %v7560_v53  ;;  %v9079_v30 = vld [vmem:[#allocation15 + $0x3f4] sm:$0xf0]  ;;  %v7936_v63 = vld [vmem:[#allocation15 + $0x428] sm:$0xf0] }
 0x4be   :  { %v7851_v45 = vor.u32 %v9058_v40, %v7848_v42  ;;  %9362 = vpow2.f32 %v3563_v44  ;;  %v7720_v11 = vld [vmem:[#allocation15 + $0x270] sm:$0xf0]  ;;  %v8382_v3 = vld [vmem:[#allocation15 + $0x788] sm:$0xf]  ;;  %v8102_v6 = vld [vmem:[#allocation15 + $0x550] sm:$0xf] }
 0x4bf   :  { %5461 = vmatpush.bf16.msra.mxu2 %v7883_v18  ;;  %v7968_v18 = vld [vmem:[#allocation15 + $0x468] sm:$0xf0]  ;;  %v8978_v20 = vld [vmem:[#allocation15 + $0xd4] sm:$0xf]  ;;  %v9197_v38 = vld [vmem:[#allocation15 + $0x7a4] sm:$0xf0] }
 0x4c0   :  { %5283 = vmatpush.bf16.msrb.mxu0 %v8251_v24  ;;  %v9018_v23 = vld [vmem:[#allocation15 + $0x214] sm:$0xf]  ;;  %v7918_v24 = vld [vmem:[#allocation15 + $0x3d8] sm:$0xf]  ;;  %v7531_v54 = vor.u32 %v8978_v20, %v7528_v1  ;;  %v9126_v53 = vld [vmem:[#allocation15 + $0x56c] sm:$0xf0] }
 0x4c1   :  { %5398 = vmatpush.bf16.msra.mxu1 %v7559_v46  ;;  %v8219_v46 = vor.u32 %v9152_v35, %v8216_v17  ;;  %5371 = vmatpush.bf16.msra.mxu3 %v8099_v43  ;;  %v7688_v40 = vld [vmem:[#allocation15 + $0x230] sm:$0xf0]  ;;  %v7919_v32 = vor.u32 %v9079_v30, %v7918_v24  ;;  %v9071_v43 = vld [vmem:[#allocation15 + $0x3b4] sm:$0xf0]  ;;  %v8103_v20 = vor.u32 %v9126_v53, %v8102_v6  ;;  %v9118_v24 = vld [vmem:[#allocation15 + $0x52c] sm:$0xf0] }
 0x4c2   :  { %v7691_v35 = vor.u32 %v9018_v23, %v7688_v40  ;;  %v8970_v17 = vld [vmem:[#allocation15 + $0x94] sm:$0xf]  ;;  %v9189_v23 = vld [vmem:[#allocation15 + $0x764] sm:$0xf0]  ;;  %v8070_v40 = vld [vmem:[#allocation15 + $0x510] sm:$0xf] }
 0x4c3   :  { %5462 = vmatpush.bf16.msra.mxu2 %v7851_v45  ;;  %v7496_v44 = vld [vmem:[#allocation15 + $0xb0] sm:$0xf0]  ;;  %v7630_v30 = vld [vmem:[#allocation15 + $0x198] sm:$0xf]  ;;  %v3892_v53 = vperm.slane %v10454_v0, 1 }
 0x4c4   :  { %5284 = vmatpush.bf16.msrb.mxu0 %v8219_v46  ;;  %v9363_v47 = vpop.eup %9362  ;;  %v9142_v46 = vld [vmem:[#allocation15 + $0x5ec] sm:$0xf0]  ;;  %v7499_v60 = vor.u32 %v8970_v17, %v7496_v44  ;;  %v8954_v5 = vld [vmem:[#allocation15 + $0x14] sm:$0xf]  ;;  %v8318_v17 = vld [vmem:[#allocation15 + $0x708] sm:$0xf] }
 0x4c5   :  { %5399 = vmatpush.bf16.msra.mxu1 %v7527_v33  ;;  %v7627_v33 = vor.u32 %v9002_v50, %v7624_v51  ;;  %v10443_v2 = vadd.f32 1.0, %v9363_v47  ;;  %5372 = vmatpush.bf16.msra.mxu3 %v8067_v58  ;;  %v8962_v50 = vld [vmem:[#allocation15 + $0x54] sm:$0xf]  ;;  %v9134_v58 = vld [vmem:[#allocation15 + $0x5ac] sm:$0xf0] }
 0x4c6   :  { %v7464_v51 = vld [vmem:[#allocation15 + $0x70] sm:$0xf0]  ;;  %v7854_v47 = vld [vmem:[#allocation15 + $0x358] sm:$0xf]  ;;  %v9181_v44 = vld [vmem:[#allocation15 + $0x724] sm:$0xf0] }
 0x4c7   :  { %5463 = vmatpush.bf16.msra.mxu2 %v7819_v7  ;;  %9364 = vrcp.f32 %v10443_v2  ;;  %v3625_v45 = vand.u32 2147483648, %v10443_v2  ;;  %v3623_v41 = vand.u32 2147483647, %v10443_v2  ;;  %vm3619_vm2 = vweird.f32 %v10443_v2  ;;  %v7694_v6 = vld [vmem:[#allocation15 + $0x218] sm:$0xf] }
 0x4c8   :  { %5285 = vmatpush.bf16.msrb.mxu0 %v8187_v52  ;;  %v8167_v7 = vor.u32 %v9142_v46, %v8166_v22  ;;  %v9110_v46 = vld [vmem:[#allocation15 + $0x4ec] sm:$0xf0]  ;;  %v8319_v28 = vor.u32 %v9181_v44, %v8318_v17  ;;  %v8190_v17 = vld [vmem:[#allocation15 + $0x608] sm:$0xf] }
 0x4c9   :  { %5400 = vmatpush.bf16.msra.mxu1 %v7495_v9  ;;  %v9026_v9 = vld [vmem:[#allocation15 + $0x254] sm:$0xf]  ;;  %5373 = vmatpush.bf16.msra.mxu3 %v8035_v25  ;;  %v3626_v52 = vor.u32 1.1754944e-38, %v3625_v45  ;;  %vm3624_vm4 = vcmp.eq.f32.partialorder %v3623_v41, 8.507059e+37  ;;  %v8038_v45 = vld [vmem:[#allocation15 + $0x4d0] sm:$0xf] }
 0x4ca   :  { %v7723_v19 = vor.u32 %v9026_v9, %v7720_v11  ;;  %v7662_v9 = vld [vmem:[#allocation15 + $0x1d8] sm:$0xf]  ;;  %v9149_v44 = vld [vmem:[#allocation15 + $0x624] sm:$0xf0] }
 0x4cb   :  { %5464 = vmatpush.bf16.msra.mxu2 %v7787_v13  ;;  %v9063_v13 = vld [vmem:[#allocation15 + $0x374] sm:$0xf0] }
 0x4cc   :  { %v7855_v31 = vor.u32 %v9063_v13, %v7854_v47  ;;  %v9015_v11 = vld [vmem:[#allocation15 + $0x1f4] sm:$0xf0] }
 0x4cd   :  { %5401 = vmatpush.bf16.msra.mxu1 %v7463_v10  ;;  %v9365_v15 = vpop.eup %9364  ;;  %5374 = vmatpush.bf16.msra.mxu3 %v8003_v12  ;;  %v7971_v10 = vor.u32 %v9089_v56, %v7968_v18  ;;  %v7822_v12 = vld [vmem:[#allocation15 + $0x318] sm:$0xf]  ;;  %v3891_v56 = vperm.slane %v10454_v0, 0  ;;  %v7663_v1 = vor.u32 %v9015_v11, %v7662_v9 }
 0x4ce   :  { %v3615_v42 = vmul.f32 %v9365_v15, %v10443_v2  ;;  %vm3620_vm1 = vweird.f32 %v9365_v15  ;;  %v7467_v2 = vor.u32 %v8962_v50, %v7464_v51  ;;  %v8999_v41 = vld [vmem:[#allocation15 + $0x174] sm:$0xf0]  ;;  %v8006_v50 = vld [vmem:[#allocation15 + $0x490] sm:$0xf] }
 0x4cf   :  { %5465 = vmatpush.bf16.msra.mxu2 %v7755_v55  ;;  %vm3621_vm3 = vmor %vm3619_vm2, %vm3620_vm1  ;;  %v7432_v55 = vld [vmem:[#allocation15 + $0x30] sm:$0xf0] }
 0x4d0   :  { %v3616_v59 = vsub.f32 1.0, %v3615_v42  ;;  %v7435_v18 = vor.u32 %v8954_v5, %v7432_v55  ;;  %v8983_v5 = vld [vmem:[#allocation15 + $0xf4] sm:$0xf0] }
 0x4d1   :  { %5402 = vmatpush.bf16.msra.mxu1 %v7431_v8  ;;  %v10448_v14 = vpop.f32.mrf.mxu1  ;;  %v7886_v8 = vld [vmem:[#allocation15 + $0x398] sm:$0xf]  ;;  %5375 = vmatpush.bf16.msra.mxu3 %v7971_v10 }
 0x4d2   :  { %v3617_v36 = vmul.f32 %v9365_v15, %v3616_v59  ;;  %v7887_v21 = vor.u32 %v9071_v43, %v7886_v8  ;;  %v9007_v10 = vld [vmem:[#allocation15 + $0x1b4] sm:$0xf0]  ;;  %v8071_v59 = vor.u32 %v9118_v24, %v8070_v40 }
 0x4d3   :  { %5466 = vmatpush.bf16.msra.mxu2 %v7723_v19  ;;  %v8383_v19 = vor.u32 %v9197_v38, %v8382_v3  ;;  %v7758_v43 = vld [vmem:[#allocation15 + $0x298] sm:$0xf]  ;;  %v9094_v38 = vld [vmem:[#allocation15 + $0x46c] sm:$0xf0] }
 0x4d4   :  { %5403 = vmatmul.bf16.vlgmr.msra.gmra.mxu1 %v10374_v27  ;;  %v3618_v39 = vadd.f32 %v9365_v15, %v3617_v36  ;;  %v7598_v36 = vld [vmem:[#allocation15 + $0x158] sm:$0xf] }
 0x4d5   :  { %5447 = vmatpush.bf16.msrb.mxu1 %v7659_v48  ;;  %v7939_v48 = vor.u32 %v9081_v29, %v7936_v63  ;;  %v9047_v29 = vld [vmem:[#allocation15 + $0x2f4] sm:$0xf0] }
 0x4d6   :  { %v7502_v40 = vld [vmem:[#allocation15 + $0x98] sm:$0xf] }
 0x4d7   :  { %5467 = vmatpush.bf16.msra.mxu2 %v7691_v35  ;;  %5376 = vmatpush.bf16.msra.mxu3 %v7939_v48  ;;  %v7631_v35 = vor.u32 %v9007_v10, %v7630_v30  ;;  %v9039_v48 = vld [vmem:[#allocation15 + $0x2b4] sm:$0xf0]  ;;  %v9138_v30 = vld [vmem:[#allocation15 + $0x5d4] sm:$0xf] }
 0x4d8   :  { %v7759_v51 = vor.u32 %v9039_v48, %v7758_v43  ;;  %v8168_v10 = vld [vmem:[#allocation15 + $0x5f0] sm:$0xf0] }
 0x4d9   :  { %5448 = vmatpush.bf16.msrb.mxu1 %v7627_v33  ;;  %v3622_v33 = vsel %vm3621_vm3, %v9365_v15, %v3618_v39  ;;  %v5198_v34 = vpop.f32.mrf.mxu1  ;;  %v8350_v15 = vld [vmem:[#allocation15 + $0x748] sm:$0xf]  ;;  %v5209_v8 = vpop.f32.mrf.mxu2  ;;  %v8039_v39 = vor.u32 %v9110_v46, %v8038_v45  ;;  %v9201_v45 = vld [vmem:[#allocation15 + $0x7cc] sm:$0xf]  ;;  %v9130_v48 = vld [vmem:[#allocation15 + $0x594] sm:$0xf] }
 0x4da   :  { %v3627_v61 = vsel %vm3624_vm4, %v3626_v52, %v3622_v33  ;;  %5468 = vmatmul.bf16.vlgmr.msra.gmra.mxu2 %v10381_v62  ;;  %5377 = vmatmul.bf16.vlgmr.msra.gmra.mxu3 %v10420_v37  ;;  %v8351_v63 = vor.u32 %v9189_v23, %v8350_v15  ;;  %v9102_v52 = vld [vmem:[#allocation15 + $0x4ac] sm:$0xf0]  ;;  %v9031_v33 = vld [vmem:[#allocation15 + $0x274] sm:$0xf0]  ;;  %v8416_v46 = vld [vmem:[#allocation15 + $0x7e8] sm:$0xf0] }
 0x4db   :  { %5512 = vmatpush.bf16.msrb.mxu2 %v7919_v32  ;;  %v10456_v25 = vpack.c.bf16 %v3627_v61, %v3627_v61  ;;  %5421 = vmatpush.bf16.msrb.mxu3 %v8167_v7  ;;  %v5197_v32 = vadd.f32 %v10448_v14, %v3891_v56  ;;  %v7599_v7 = vor.u32 %v8999_v41, %v7598_v36  ;;  %v9173_v14 = vld [vmem:[#allocation15 + $0x6e4] sm:$0xf0]  ;;  %v9086_v23 = vld [vmem:[#allocation15 + $0x42c] sm:$0xf0]  ;;  %v7470_v36 = vld [vmem:[#allocation15 + $0x58] sm:$0xf] }
 0x4dc   :  { %v8287_v34 = vor.u32 %v9173_v14, %v8286_v49  ;;  %v8007_v47 = vor.u32 %v9102_v52, %v8006_v50  ;;  %v8254_v61 = vld [vmem:[#allocation15 + $0x688] sm:$0xf]  ;;  %v8967_v41 = vld [vmem:[#allocation15 + $0x74] sm:$0xf0]  ;;  %v8191_v49 = vor.u32 %v9149_v44, %v8190_v17  ;;  %v9059_v14 = vld [vmem:[#allocation15 + $0x35c] sm:$0xf] }
 0x4dd   :  { %5449 = vmatpush.bf16.msrb.mxu1 %v7595_v4  ;;  %v8135_v4 = vor.u32 %v9134_v58, %v8134_v57  ;;  %5234 = vmatmul.bf16.vlgmr.msra.gmra.mxu0 %v10456_v25  ;;  %v8991_v57 = vld [vmem:[#allocation15 + $0x134] sm:$0xf0]  ;;  %v7856_v50 = vld [vmem:[#allocation15 + $0x378] sm:$0xf0]  ;;  %v7471_v52 = vor.u32 %v8967_v41, %v7470_v36  ;;  %v8008_v41 = vld [vmem:[#allocation15 + $0x4b0] sm:$0xf0] }
 0x4de   :  { %5330 = vmatpush.bf16.msra.mxu0 %v8415_v26  ;;  %v7726_v58 = vld [vmem:[#allocation15 + $0x258] sm:$0xf]  ;;  %v9165_v26 = vld [vmem:[#allocation15 + $0x6a4] sm:$0xf0] }
 0x4df   :  { %5513 = vmatpush.bf16.msrb.mxu2 %v7887_v21  ;;  %5422 = vmatpush.bf16.msrb.mxu3 %v8135_v4  ;;  %v7566_v21 = vld [vmem:[#allocation15 + $0x118] sm:$0xf]  ;;  %v7727_v3 = vor.u32 %v9031_v33, %v7726_v58  ;;  %v8255_v11 = vor.u32 %v9165_v26, %v8254_v61  ;;  %v8104_v61 = vld [vmem:[#allocation15 + $0x570] sm:$0xf0]  ;;  %v9011_v26 = vld [vmem:[#allocation15 + $0x1dc] sm:$0xf] }
 0x4e0   :  { %v7567_v13 = vor.u32 %v8991_v57, %v7566_v21  ;;  %v7534_v4 = vld [vmem:[#allocation15 + $0xd8] sm:$0xf]  ;;  %v9193_v21 = vld [vmem:[#allocation15 + $0x78c] sm:$0xf] }
 0x4e1   :  { %5450 = vmatpush.bf16.msrb.mxu1 %v7563_v16  ;;  %v9055_v16 = vld [vmem:[#allocation15 + $0x334] sm:$0xf0]  ;;  %v5211_v55 = vpop.f32.mrf.mxu2  ;;  %v8384_v57 = vld [vmem:[#allocation15 + $0x7a8] sm:$0xf0] }
 0x4e2   :  { %v7823_v42 = vor.u32 %v9055_v16, %v7822_v12  ;;  %5331 = vmatpush.bf16.msra.mxu0 %v8383_v19  ;;  %v9075_v12 = vld [vmem:[#allocation15 + $0x3dc] sm:$0xf]  ;;  %v7535_v19 = vor.u32 %v8983_v5, %v7534_v4  ;;  %v7438_v33 = vld [vmem:[#allocation15 + $0x18] sm:$0xf]  ;;  %v8387_v4 = vor.u32 %v9193_v21, %v8384_v57  ;;  %v9090_v21 = vld [vmem:[#allocation15 + $0x454] sm:$0xf] }
 0x4e3   :  { %5514 = vmatpush.bf16.msrb.mxu2 %v7855_v31  ;;  %5423 = vmatpush.bf16.msrb.mxu3 %v8103_v20  ;;  %v9023_v31 = vld [vmem:[#allocation15 + $0x234] sm:$0xf0]  ;;  %v7920_v16 = vld [vmem:[#allocation15 + $0x3f8] sm:$0xf0]  ;;  %v9157_v20 = vld [vmem:[#allocation15 + $0x664] sm:$0xf0] }
 0x4e4   :  { %v7695_v15 = vor.u32 %v9023_v31, %v7694_v6  ;;  %v7923_v24 = vor.u32 %v9075_v12, %v7920_v16  ;;  %v9185_v31 = vld [vmem:[#allocation15 + $0x74c] sm:$0xf]  ;;  %v8072_v16 = vld [vmem:[#allocation15 + $0x530] sm:$0xf0] }
 0x4e5   :  { %5451 = vmatpush.bf16.msrb.mxu1 %v7531_v54  ;;  %v7790_v54 = vld [vmem:[#allocation15 + $0x2d8] sm:$0xf] }
 0x4e6   :  { %v7791_v22 = vor.u32 %v9047_v29, %v7790_v54  ;;  %5332 = vmatpush.bf16.msra.mxu0 %v8351_v63  ;;  %v9067_v29 = vld [vmem:[#allocation15 + $0x39c] sm:$0xf] }
 0x4e7   :  { %5515 = vmatpush.bf16.msrb.mxu2 %v7823_v42  ;;  %5424 = vmatpush.bf16.msrb.mxu3 %v8071_v59  ;;  %v8975_v42 = vld [vmem:[#allocation15 + $0xb4] sm:$0xf0]  ;;  %v7888_v63 = vld [vmem:[#allocation15 + $0x3b8] sm:$0xf0] }
 0x4e8   :  { %v7891_v43 = vor.u32 %v9067_v29, %v7888_v63  ;;  %v7600_v29 = vld [vmem:[#allocation15 + $0x178] sm:$0xf0] }
 0x4e9   :  { %5452 = vmatpush.bf16.msrb.mxu1 %v7499_v60  ;;  %v10464_v60 = vadd.f32 %v5209_v8, %v5197_v32  ;;  %v5261_v8 = vpop.f32.mrf.mxu2  ;;  %v9035_v63 = vld [vmem:[#allocation15 + $0x29c] sm:$0xf] }
 0x4ea   :  { %5333 = vmatpush.bf16.msra.mxu0 %v8319_v28  ;;  %v8136_v28 = vld [vmem:[#allocation15 + $0x5b0] sm:$0xf0] }
 0x4eb   :  { %5516 = vmatpush.bf16.msrb.mxu2 %v7791_v22  ;;  %5425 = vmatpush.bf16.msrb.mxu3 %v8039_v39  ;;  %v8171_v22 = vor.u32 %v9138_v30, %v8168_v10  ;;  %v8139_v58 = vor.u32 %v9130_v48, %v8136_v28  ;;  %v8040_v10 = vld [vmem:[#allocation15 + $0x4f0] sm:$0xf0]  ;;  %v9027_v48 = vld [vmem:[#allocation15 + $0x25c] sm:$0xf] }
 0x4ec   :  { %v7728_v28 = vld [vmem:[#allocation15 + $0x278] sm:$0xf0] }
 0x4ed   :  { %5453 = vmatpush.bf16.msrb.mxu1 %v7467_v2  ;;  %v7974_v2 = vld [vmem:[#allocation15 + $0x450] sm:$0xf]  ;;  %5286 = vmatmul.bf16.vlgmr.msrb.gmra.mxu0 %v10456_v25  ;;  %v7731_v57 = vor.u32 %v9027_v48, %v7728_v28 }
 0x4ee   :  { %5334 = vmatpush.bf16.msra.mxu0 %v8287_v34  ;;  %v7975_v56 = vor.u32 %v9094_v38, %v7974_v2  ;;  %v8959_v34 = vld [vmem:[#allocation15 + $0x34] sm:$0xf0]  ;;  %v7664_v2 = vld [vmem:[#allocation15 + $0x1f8] sm:$0xf0]  ;;  %v8358_v48 = vld [vmem:[#allocation15 + $0x750] sm:$0xf] }
 0x4ef   :  { %5517 = vmatpush.bf16.msrb.mxu2 %v7759_v51  ;;  %5426 = vmatpush.bf16.msrb.mxu3 %v8007_v47  ;;  %v8419_v51 = vor.u32 %v9201_v45, %v8416_v46  ;;  %v9122_v47 = vld [vmem:[#allocation15 + $0x554] sm:$0xf]  ;;  %v7824_v38 = vld [vmem:[#allocation15 + $0x338] sm:$0xf0]  ;;  %v7439_v5 = vor.u32 %v8959_v34, %v7438_v33  ;;  %v7667_v6 = vor.u32 %v9011_v26, %v7664_v2  ;;  %v9169_v45 = vld [vmem:[#allocation15 + $0x6cc] sm:$0xf] }
 0x4f0   :  { %v8107_v55 = vor.u32 %v9122_v47, %v8104_v61  ;;  %v8979_v33 = vld [vmem:[#allocation15 + $0xdc] sm:$0xf]  ;;  %v9190_v28 = vld [vmem:[#allocation15 + $0x76c] sm:$0xf0] }
 0x4f1   :  { %5454 = vmatpush.bf16.msrb.mxu1 %v7435_v18  ;;  %v5248_v9 = vpop.f32.mrf.mxu1  ;;  %v8222_v18 = vld [vmem:[#allocation15 + $0x648] sm:$0xf]  ;;  %v7536_v34 = vld [vmem:[#allocation15 + $0xf8] sm:$0xf0] }
 0x4f2   :  { %5335 = vmatpush.bf16.msra.mxu0 %v8255_v11  ;;  %v8223_v54 = vor.u32 %v9157_v20, %v8222_v18  ;;  %v5249_v32 = vadd.f32 %v5248_v9, %v3892_v53  ;;  %v8352_v53 = vld [vmem:[#allocation15 + $0x768] sm:$0xf0]  ;;  %v9114_v9 = vld [vmem:[#allocation15 + $0x514] sm:$0xf]  ;;  %v5263_v11 = vpop.f32.mrf.mxu2  ;;  %v9043_v18 = vld [vmem:[#allocation15 + $0x2dc] sm:$0xf] }
 0x4f3   :  { %5518 = vmatpush.bf16.msrb.mxu2 %v7727_v3  ;;  %5427 = vmatpush.bf16.msrb.mxu3 %v7975_v56  ;;  %v9051_v3 = vld [vmem:[#allocation15 + $0x31c] sm:$0xf] }
 0x4f4   :  { %5455 = vmatmul.bf16.vlgmr.msrb.gmra.mxu1 %v10374_v27  ;;  %v7827_v12 = vor.u32 %v9051_v3, %v7824_v38  ;;  %v9003_v56 = vld [vmem:[#allocation15 + $0x19c] sm:$0xf]  ;;  %v7539_v38 = vor.u32 %v8979_v33, %v7536_v34  ;;  %v8294_v33 = vld [vmem:[#allocation15 + $0x6d0] sm:$0xf] }
 0x4f5   :  { %5499 = vmatpush.bf16.msra.mxu1 %v7663_v1  ;;  %v7942_v1 = vld [vmem:[#allocation15 + $0x410] sm:$0xf]  ;;  %v7792_v20 = vld [vmem:[#allocation15 + $0x2f8] sm:$0xf0] }
 0x4f6   :  { %v7943_v59 = vor.u32 %v9086_v23, %v7942_v1  ;;  %5336 = vmatpush.bf16.msra.mxu0 %v8223_v54  ;;  %v8355_v1 = vor.u32 %v9185_v31, %v8352_v53  ;;  %v7795_v30 = vor.u32 %v9043_v18, %v7792_v20  ;;  %v8995_v54 = vld [vmem:[#allocation15 + $0x15c] sm:$0xf]  ;;  %v7944_v53 = vld [vmem:[#allocation15 + $0x430] sm:$0xf0]  ;;  %v9174_v34 = vld [vmem:[#allocation15 + $0x6ec] sm:$0xf0] }
 0x4f7   :  { %5519 = vmatpush.bf16.msrb.mxu2 %v7695_v15  ;;  %v8075_v15 = vor.u32 %v9114_v9, %v8072_v16  ;;  %v7603_v44 = vor.u32 %v8995_v54, %v7600_v29  ;;  %v9019_v47 = vld [vmem:[#allocation15 + $0x21c] sm:$0xf]  ;;  %v9143_v16 = vld [vmem:[#allocation15 + $0x5f4] sm:$0xf0] }
 0x4f8   :  { %5428 = vmatpush.bf16.msrb.mxu3 %v7943_v59  ;;  %v7760_v59 = vld [vmem:[#allocation15 + $0x2b8] sm:$0xf0]  ;;  %v9135_v54 = vld [vmem:[#allocation15 + $0x5b4] sm:$0xf0] }
 0x4f9   :  { %5500 = vmatpush.bf16.msra.mxu1 %v7631_v35  ;;  %v7503_v35 = vor.u32 %v8975_v42, %v7502_v40  ;;  %v5250_v39 = vpop.f32.mrf.mxu1  ;;  %v9177_v40 = vld [vmem:[#allocation15 + $0x70c] sm:$0xf]  ;;  %v7763_v36 = vor.u32 %v9035_v63, %v7760_v59  ;;  %v8971_v9 = vld [vmem:[#allocation15 + $0x9c] sm:$0xf] }
 0x4fa   :  { %5520 = vmatmul.bf16.vlgmr.msrb.gmra.mxu2 %v10381_v62  ;;  %5337 = vmatpush.bf16.msra.mxu0 %v8191_v49  ;;  %v8320_v42 = vld [vmem:[#allocation15 + $0x728] sm:$0xf0]  ;;  %v3893_v49 = vperm.slane %v10454_v0, 2  ;;  %v7504_v11 = vld [vmem:[#allocation15 + $0xb8] sm:$0xf0] }
 0x4fb   :  { %5564 = vmatpush.bf16.msra.mxu2 %v7923_v24  ;;  %5429 = vmatmul.bf16.vlgmr.msrb.gmra.mxu3 %v10420_v37  ;;  %v9106_v24 = vld [vmem:[#allocation15 + $0x4d4] sm:$0xf]  ;;  %v7507_v20 = vor.u32 %v8971_v9, %v7504_v11 }
 0x4fc   :  { %5473 = vmatpush.bf16.msra.mxu3 %v8171_v22  ;;  %v8043_v17 = vor.u32 %v9106_v24, %v8040_v10  ;;  %v9098_v22 = vld [vmem:[#allocation15 + $0x494] sm:$0xf]  ;;  %v8963_v24 = vld [vmem:[#allocation15 + $0x5c] sm:$0xf]  ;;  %v8142_v10 = vld [vmem:[#allocation15 + $0x598] sm:$0xf] }
 0x4fd   :  { %5501 = vmatpush.bf16.msra.mxu1 %v7599_v7  ;;  %v10468_v7 = vadd.f32 %v5261_v8, %v5249_v32  ;;  %5338 = vmatmul.bf16.vlgmr.msra.gmra.mxu0 %v10456_v25  ;;  %v8288_v32 = vld [vmem:[#allocation15 + $0x6e8] sm:$0xf0]  ;;  %v5313_v46 = vpop.f32.mrf.mxu2  ;;  %v8987_v8 = vld [vmem:[#allocation15 + $0x11c] sm:$0xf] }
 0x4fe   :  { %5382 = vmatpush.bf16.msrb.mxu0 %v8419_v51  ;;  %v8291_v39 = vor.u32 %v9169_v45, %v8288_v32  ;;  %v9161_v51 = vld [vmem:[#allocation15 + $0x68c] sm:$0xf]  ;;  %v9198_v45 = vld [vmem:[#allocation15 + $0x7ac] sm:$0xf0]  ;;  %v8955_v32 = vld [vmem:[#allocation15 + $0x1c] sm:$0xf] }
 0x4ff   :  { %5565 = vmatpush.bf16.msra.mxu2 %v7891_v43  ;;  %v7568_v43 = vld [vmem:[#allocation15 + $0x138] sm:$0xf0] }
 0x500   :  { %5474 = vmatpush.bf16.msra.mxu3 %v8139_v58  ;;  %v7976_v58 = vld [vmem:[#allocation15 + $0x470] sm:$0xf0] }
 0x501   :  { %5502 = vmatpush.bf16.msra.mxu1 %v7567_v13  ;;  %v7859_v13 = vor.u32 %v9059_v14, %v7856_v50  ;;  %v8011_v14 = vor.u32 %v9098_v22, %v8008_v41  ;;  %v7571_v50 = vor.u32 %v8987_v8, %v7568_v43  ;;  %v7979_v3 = vor.u32 %v9090_v21, %v7976_v58  ;;  %v7440_v22 = vld [vmem:[#allocation15 + $0x38] sm:$0xf0]  ;;  %v9111_v21 = vld [vmem:[#allocation15 + $0x4f4] sm:$0xf0] }
 0x502   :  { %5383 = vmatpush.bf16.msrb.mxu0 %v8387_v4  ;;  %v9153_v4 = vld [vmem:[#allocation15 + $0x64c] sm:$0xf]  ;;  %v7443_v8 = vor.u32 %v8955_v32, %v7440_v22 }
 0x503   :  { %5566 = vmatpush.bf16.msra.mxu2 %v7859_v13  ;;  %v7696_v13 = vld [vmem:[#allocation15 + $0x238] sm:$0xf0] }
 0x504   :  { %5475 = vmatpush.bf16.msra.mxu3 %v8107_v55  ;;  %v9082_v55 = vld [vmem:[#allocation15 + $0x414] sm:$0xf]  ;;  %v7699_v31 = vor.u32 %v9019_v47, %v7696_v13  ;;  %v8014_v13 = vld [vmem:[#allocation15 + $0x498] sm:$0xf] }
 0x505   :  { %5503 = vmatpush.bf16.msra.mxu1 %v7535_v19  ;;  %v7632_v19 = vld [vmem:[#allocation15 + $0x1b8] sm:$0xf0]  ;;  %v7947_v18 = vor.u32 %v9082_v55, %v7944_v53  ;;  %v7982_v55 = vld [vmem:[#allocation15 + $0x458] sm:$0xf] }
 0x506   :  { %v7635_v23 = vor.u32 %v9003_v56, %v7632_v19  ;;  %5384 = vmatpush.bf16.msrb.mxu0 %v8355_v1  ;;  %v9145_v1 = vld [vmem:[#allocation15 + $0x60c] sm:$0xf] }
 0x507   :  { %5567 = vmatpush.bf16.msra.mxu2 %v7827_v12  ;;  %v8174_v12 = vld [vmem:[#allocation15 + $0x5d8] sm:$0xf] }
 0x508   :  { %5476 = vmatpush.bf16.msra.mxu3 %v8075_v15  ;;  %v8192_v15 = vld [vmem:[#allocation15 + $0x628] sm:$0xf0] }
 0x509   :  { %5504 = vmatpush.bf16.msra.mxu1 %v7503_v35  ;;  %v8323_v35 = vor.u32 %v9177_v40, %v8320_v42  ;;  %v8175_v40 = vor.u32 %v9143_v16, %v8174_v12  ;;  %v9206_v42 = vld [vmem:[#allocation15 + $0x7ec] sm:$0xf0]  ;;  %v8195_v63 = vor.u32 %v9145_v1, %v8192_v15  ;;  %v9087_v1 = vld [vmem:[#allocation15 + $0x434] sm:$0xf0] }
 0x50a   :  { %v8230_v16 = vld [vmem:[#allocation15 + $0x650] sm:$0xf] }
 0x50b   :  { %5568 = vmatpush.bf16.msra.mxu2 %v7795_v30  ;;  %5385 = vmatpush.bf16.msrb.mxu0 %v8323_v35  ;;  %v7472_v30 = vld [vmem:[#allocation15 + $0x78] sm:$0xf0]  ;;  %v9213_v15 = vld [vmem:[%s10735_s12 + $0x28] sm:$0xff] }
 0x50c   :  { %5477 = vmatpush.bf16.msra.mxu3 %v8043_v17  ;;  %v7475_v35 = vor.u32 %v8963_v24, %v7472_v30  ;;  %v8390_v17 = vld [vmem:[#allocation15 + $0x790] sm:$0xf] }
 0x50d   :  { %5505 = vmatpush.bf16.msra.mxu1 %v7471_v52  ;;  %v8256_v52 = vld [vmem:[#allocation15 + $0x6a8] sm:$0xf0]  ;;  %v8391_v41 = vor.u32 %v9198_v45, %v8390_v17  ;;  %v8144_v45 = vld [vmem:[#allocation15 + $0x5b8] sm:$0xf0] }
 0x50e   :  { %v8259_v26 = vor.u32 %v9161_v51, %v8256_v52  ;;  %v9182_v51 = vld [vmem:[#allocation15 + $0x72c] sm:$0xf0]  ;;  %v8046_v52 = vld [vmem:[#allocation15 + $0x4d8] sm:$0xf]  ;;  %v9212_v17 = vld [vmem:[%s10735_s12 + $0x20] sm:$0xff] }
 0x50f   :  { %5569 = vmatpush.bf16.msra.mxu2 %v7763_v36  ;;  %5386 = vmatpush.bf16.msrb.mxu0 %v8291_v39  ;;  %v9127_v36 = vld [vmem:[#allocation15 + $0x574] sm:$0xf0]  ;;  %v8047_v58 = vor.u32 %v9111_v21, %v8046_v52 }
 0x510   :  { %5478 = vmatpush.bf16.msra.mxu3 %v8011_v14  ;;  %v9119_v39 = vld [vmem:[#allocation15 + $0x534] sm:$0xf0] }
 0x511   :  { %5506 = vmatpush.bf16.msra.mxu1 %v7439_v5  ;;  %v5300_v61 = vpop.f32.mrf.mxu1  ;;  %v8224_v5 = vld [vmem:[#allocation15 + $0x668] sm:$0xf0]  ;;  %v9210_v52 = vld [vmem:[%s10735_s12 + $0x10] sm:$0xff] }
 0x512   :  { %v5301_v2 = vadd.f32 %v5300_v61, %v3893_v49  ;;  %v8227_v19 = vor.u32 %v9153_v4, %v8224_v5  ;;  %v8359_v49 = vor.u32 %v9190_v28, %v8358_v48  ;;  %v9103_v61 = vld [vmem:[#allocation15 + $0x4b4] sm:$0xf0]  ;;  %v8262_v4 = vld [vmem:[#allocation15 + $0x690] sm:$0xf]  ;;  %v9223_v48 = vld [vmem:[%s10735_s12 + $0x78] sm:$0xff] }
 0x513   :  { %5570 = vmatpush.bf16.msra.mxu2 %v7731_v57  ;;  %5387 = vmatpush.bf16.msrb.mxu0 %v8259_v26  ;;  %v9215_v26 = vld [vmem:[%s10735_s12 + $0x38] sm:$0xff]  ;;  %v9166_v5 = vld [vmem:[#allocation15 + $0x6ac] sm:$0xf0]  ;;  %v9222_v21 = vld [vmem:[%s10735_s12 + $0x70] sm:$0xff] }
 0x514   :  { %5507 = vmatmul.bf16.vlgmr.msra.gmra.mxu1 %v10374_v27  ;;  %v10475_v56 = vadd.f32 %v5313_v46, %v5301_v2  ;;  %5479 = vmatpush.bf16.msra.mxu3 %v7979_v3  ;;  %v8110_v46 = vld [vmem:[#allocation15 + $0x558] sm:$0xf]  ;;  %v8295_v3 = vor.u32 %v9174_v34, %v8294_v33  ;;  %v8263_v9 = vor.u32 %v9166_v5, %v8262_v4  ;;  %v9170_v4 = vld [vmem:[#allocation15 + $0x6d4] sm:$0xf] }
 0x515   :  { %5551 = vmatpush.bf16.msrb.mxu1 %v7667_v6  ;;  %v5315_v6 = vpop.f32.mrf.mxu2  ;;  %v8111_v43 = vor.u32 %v9127_v36, %v8110_v46  ;;  %v9194_v36 = vld [vmem:[#allocation15 + $0x794] sm:$0xf] }
 0x516   :  { %v9095_v6 = vld [vmem:[#allocation15 + $0x474] sm:$0xf0]  ;;  %v8296_v5 = vld [vmem:[#allocation15 + $0x6f0] sm:$0xf0] }
 0x517   :  { %5571 = vmatpush.bf16.msra.mxu2 %v7699_v31  ;;  %5388 = vmatpush.bf16.msrb.mxu0 %v8227_v19  ;;  %v9214_v31 = vld [vmem:[%s10735_s12 + $0x30] sm:$0xff]  ;;  %v7983_v12 = vor.u32 %v9095_v6, %v7982_v55  ;;  %v9158_v19 = vld [vmem:[#allocation15 + $0x66c] sm:$0xf0] }
 0x518   :  { %5480 = vmatpush.bf16.msra.mxu3 %v7947_v18  ;;  %v8231_v30 = vor.u32 %v9158_v19, %v8230_v16  ;;  %v9099_v55 = vld [vmem:[#allocation15 + $0x49c] sm:$0xf]  ;;  %v3895_v16 = vperm.slane %v10454_v0, 4 }
 0x519   :  { %5552 = vmatpush.bf16.msrb.mxu1 %v7635_v23  ;;  %v8422_v23 = vld [vmem:[#allocation15 + $0x7d0] sm:$0xf]  ;;  %v5302_v29 = vpop.f32.mrf.mxu1  ;;  %v8016_v6 = vld [vmem:[#allocation15 + $0x4b8] sm:$0xf0] }
 0x51a   :  { %v8423_v59 = vor.u32 %v9206_v42, %v8422_v23  ;;  %5572 = vmatmul.bf16.vlgmr.msra.gmra.mxu2 %v10381_v62  ;;  %v8078_v62 = vld [vmem:[#allocation15 + $0x518] sm:$0xf]  ;;  %v8176_v42 = vld [vmem:[#allocation15 + $0x5f8] sm:$0xf0]  ;;  %v9150_v29 = vld [vmem:[#allocation15 + $0x62c] sm:$0xf0]  ;;  %v8019_v19 = vor.u32 %v9099_v55, %v8016_v6 }
 0x51b   :  { %5389 = vmatpush.bf16.msrb.mxu0 %v8195_v63  ;;  %5481 = vmatmul.bf16.vlgmr.msra.gmra.mxu3 %v10420_v37  ;;  %v8079_v14 = vor.u32 %v9119_v39, %v8078_v62  ;;  %v10484_v2 = vpop.f32.mrf.mxu3  ;;  %v9123_v62 = vld [vmem:[#allocation15 + $0x55c] sm:$0xf]  ;;  %v9175_v55 = vld [vmem:[#allocation15 + $0x6f4] sm:$0xf0]  ;;  %v9227_v6 = vld [vmem:[%s10735_s12 + $0x98] sm:$0xff] }
 0x51c   :  { %5525 = vmatpush.bf16.msrb.mxu3 %v8175_v40  ;;  %v9139_v40 = vld [vmem:[#allocation15 + $0x5dc] sm:$0xf]  ;;  %6148 = vmatpush.bf16.msrb.mxu2 %v9223_v48  ;;  %v9207_v48 = vld [vmem:[#allocation15 + $0x7f4] sm:$0xf0] }
 0x51d   :  { %5553 = vmatpush.bf16.msrb.mxu1 %v7603_v44  ;;  %v8143_v44 = vor.u32 %v9135_v54, %v8142_v10  ;;  %v5365_v47 = vpop.f32.mrf.mxu2  ;;  %v8198_v54 = vld [vmem:[#allocation15 + $0x610] sm:$0xf]  ;;  %v8179_v63 = vor.u32 %v9139_v40, %v8176_v42  ;;  %v8112_v39 = vld [vmem:[#allocation15 + $0x578] sm:$0xf0] }
 0x51e   :  { %5390 = vmatmul.bf16.vlgmr.msrb.gmra.mxu0 %v10456_v25  ;;  %v8199_v22 = vor.u32 %v9150_v29, %v8198_v54  ;;  %v7984_v40 = vld [vmem:[#allocation15 + $0x478] sm:$0xf0]  ;;  %v9154_v29 = vld [vmem:[#allocation15 + $0x654] sm:$0xf] }
 0x51f   :  { %5434 = vmatpush.bf16.msra.mxu0 %v8423_v59  ;;  %v9202_v59 = vld [vmem:[#allocation15 + $0x7d4] sm:$0xf] }
 0x520   :  { %5526 = vmatpush.bf16.msrb.mxu3 %v8143_v44  ;;  %v9131_v44 = vld [vmem:[#allocation15 + $0x59c] sm:$0xf]  ;;  %6149 = vmatpush.bf16.msrb.mxu2 %v9222_v21  ;;  %v9217_v21 = vld [vmem:[%s10735_s12 + $0x48] sm:$0xff] }
 0x521   :  { %5554 = vmatpush.bf16.msrb.mxu1 %v7571_v50  ;;  %v8326_v50 = vld [vmem:[#allocation15 + $0x710] sm:$0xf] }
 0x522   :  { %v8327_v57 = vor.u32 %v9182_v51, %v8326_v50  ;;  %v8115_v50 = vor.u32 %v9123_v62, %v8112_v39  ;;  %v8360_v51 = vld [vmem:[#allocation15 + $0x770] sm:$0xf0]  ;;  %v9231_v62 = vld [vmem:[%s10735_s12 + $0xb8] sm:$0xff] }
 0x523   :  { %5435 = vmatpush.bf16.msra.mxu0 %v8391_v41  ;;  %v5224_v23 = vpop.f32.mrf.mxu3  ;;  %v8147_v41 = vor.u32 %v9131_v44, %v8144_v45 }
 0x524   :  { %5527 = vmatpush.bf16.msrb.mxu3 %v8111_v43  ;;  %v9211_v43 = vld [vmem:[%s10735_s12 + $0x18] sm:$0xff]  ;;  %v9091_v23 = vld [vmem:[#allocation15 + $0x45c] sm:$0xf] }
 0x525   :  { %5555 = vmatpush.bf16.msrb.mxu1 %v7539_v38  ;;  %v8015_v38 = vor.u32 %v9103_v61, %v8014_v13  ;;  %v5367_v18 = vpop.f32.mrf.mxu2  ;;  %v8328_v13 = vld [vmem:[#allocation15 + $0x730] sm:$0xf0]  ;;  %v7987_v54 = vor.u32 %v9091_v23, %v7984_v40 }
 0x526   :  { %v9162_v18 = vld [vmem:[#allocation15 + $0x694] sm:$0xf] }
 0x527   :  { %5436 = vmatpush.bf16.msra.mxu0 %v8359_v49 }
 0x528   :  { %5528 = vmatpush.bf16.msrb.mxu3 %v8079_v14  ;;  %v9186_v14 = vld [vmem:[#allocation15 + $0x754] sm:$0xf] }
 0x529   :  { %5556 = vmatpush.bf16.msrb.mxu1 %v7507_v20  ;;  %v7950_v20 = vld [vmem:[#allocation15 + $0x418] sm:$0xf]  ;;  %v8363_v33 = vor.u32 %v9186_v14, %v8360_v51 }
 0x52a   :  { %v7951_v10 = vor.u32 %v9087_v1, %v7950_v20  ;;  %v8264_v20 = vld [vmem:[#allocation15 + $0x6b0] sm:$0xf0]  ;;  %v9220_v1 = vld [vmem:[%s10735_s12 + $0x60] sm:$0xff]  ;;  %v9199_v51 = vld [vmem:[#allocation15 + $0x7b4] sm:$0xf0] }
 0x52b   :  { %5437 = vmatpush.bf16.msra.mxu0 %v8327_v57  ;;  %v10504_v28 = vpop.f32.mrf.mxu3  ;;  %v9115_v57 = vld [vmem:[#allocation15 + $0x51c] sm:$0xf] }
 0x52c   :  { %5529 = vmatpush.bf16.msrb.mxu3 %v8047_v58  ;;  %v8080_v58 = vld [vmem:[#allocation15 + $0x538] sm:$0xf0] }
 0x52d   :  { %5557 = vmatpush.bf16.msrb.mxu1 %v7475_v35  ;;  %v8424_v35 = vld [vmem:[#allocation15 + $0x7f0] sm:$0xf0]  ;;  %v8083_v34 = vor.u32 %v9115_v57, %v8080_v58  ;;  %v9216_v58 = vld [vmem:[%s10735_s12 + $0x40] sm:$0xff] }
 0x52e   :  { %v8427_v46 = vor.u32 %v9202_v59, %v8424_v35  ;;  %v9219_v59 = vld [vmem:[%s10735_s12 + $0x58] sm:$0xff]  ;;  %v9083_v35 = vld [vmem:[#allocation15 + $0x41c] sm:$0xf] }
 0x52f   :  { %5438 = vmatpush.bf16.msra.mxu0 %v8295_v3  ;;  %v8048_v3 = vld [vmem:[#allocation15 + $0x4f8] sm:$0xf0] }
 0x530   :  { %5530 = vmatpush.bf16.msrb.mxu3 %v8015_v38 }
 0x531   :  { %5558 = vmatpush.bf16.msrb.mxu1 %v7443_v8  ;;  %v5352_v53 = vpop.f32.mrf.mxu1  ;;  %v8392_v8 = vld [vmem:[#allocation15 + $0x7b0] sm:$0xf0] }
 0x532   :  { %v8395_v49 = vor.u32 %v9194_v36, %v8392_v8  ;;  %v8200_v36 = vld [vmem:[#allocation15 + $0x630] sm:$0xf0] }
 0x533   :  { %5439 = vmatpush.bf16.msra.mxu0 %v8263_v9  ;;  %v5276_v61 = vpop.f32.mrf.mxu3 }
 0x534   :  { %5559 = vmatmul.bf16.vlgmr.msrb.gmra.mxu1 %v10374_v27  ;;  %v3894_v27 = vperm.slane %v10454_v0, 3  ;;  %5531 = vmatpush.bf16.msrb.mxu3 %v7983_v12  ;;  %v9208_v12 = vld [vmem:[%s10735_s12] sm:$0xff]  ;;  %v9183_v61 = vld [vmem:[#allocation15 + $0x734] sm:$0xf0] }
 0x535   :  { %6135 = vmatpush.bf16.msra.mxu1 %v9215_v26  ;;  %v9107_v26 = vld [vmem:[#allocation15 + $0x4dc] sm:$0xf] }
 0x536   :  { %v5353_v11 = vadd.f32 %v5352_v53, %v3894_v27  ;;  %v8051_v38 = vor.u32 %v9107_v26, %v8048_v3  ;;  %v9221_v53 = vld [vmem:[%s10735_s12 + $0x68] sm:$0xff]  ;;  %v9228_v26 = vld [vmem:[%s10735_s12 + $0xa0] sm:$0xff]  ;;  %v5223_v3 = vadd.f32 %v10484_v2, %v10464_v60  ;;  %v9167_v60 = vld [vmem:[#allocation15 + $0x6b4] sm:$0xf0] }
 0x537   :  { %5440 = vmatpush.bf16.msra.mxu0 %v8231_v30  ;;  %6150 = vmatpush.bf16.msrb.mxu2 %v9221_v53  ;;  %v8267_v30 = vor.u32 %v9162_v18, %v8264_v20  ;;  %v9226_v2 = vld [vmem:[%s10735_s12 + $0x90] sm:$0xff] }
 0x538   :  { %v10493_v24 = vadd.f32 %v5365_v47, %v5353_v11  ;;  %5532 = vmatpush.bf16.msrb.mxu3 %v7951_v10  ;;  %v9178_v47 = vld [vmem:[#allocation15 + $0x714] sm:$0xf]  ;;  %v8299_v11 = vor.u32 %v9170_v4, %v8296_v5  ;;  %v8302_v5 = vld [vmem:[#allocation15 + $0x6d8] sm:$0xf] }
 0x539   :  { %6136 = vmatpush.bf16.msra.mxu1 %v9214_v31  ;;  %v5354_v32 = vpop.f32.mrf.mxu1  ;;  %v8331_v27 = vor.u32 %v9178_v47, %v8328_v13  ;;  %v9209_v31 = vld [vmem:[%s10735_s12 + $0x8] sm:$0xff] }
 0x53a   :  { %v9229_v47 = vld [vmem:[%s10735_s12 + $0xa8] sm:$0xff] }
 0x53b   :  { %5441 = vmatpush.bf16.msra.mxu0 %v8199_v22  ;;  %5533 = vmatmul.bf16.vlgmr.msrb.gmra.mxu3 %v10420_v37 }
 0x53c   :  { %5577 = vmatpush.bf16.msra.mxu3 %v8179_v63  ;;  %v8232_v63 = vld [vmem:[#allocation15 + $0x670] sm:$0xf0]  ;;  %6151 = vmatpush.bf16.msrb.mxu2 %v9220_v1 }
 0x53d   :  { %6137 = vmatpush.bf16.msra.mxu1 %v9213_v15  ;;  %v5417_v9 = vpop.f32.mrf.mxu2  ;;  %v10527_v15 = vpop.f32.mrf.mxu3  ;;  %v8235_v32 = vor.u32 %v9154_v29, %v8232_v63  ;;  %v9151_v63 = vld [vmem:[#allocation15 + $0x634] sm:$0xf0] }
 0x53e   :  { %5442 = vmatmul.bf16.vlgmr.msra.gmra.mxu0 %v10456_v25 }
 0x53f   :  { %5486 = vmatpush.bf16.msrb.mxu0 %v8427_v46  ;;  %v9146_v46 = vld [vmem:[#allocation15 + $0x614] sm:$0xf] }
 0x540   :  { %5578 = vmatpush.bf16.msra.mxu3 %v8147_v41  ;;  %6152 = vmatpush.bf16.msrb.mxu2 %v9219_v59  ;;  %v9218_v41 = vld [vmem:[%s10735_s12 + $0x50] sm:$0xff]  ;;  %v9224_v59 = vld [vmem:[%s10735_s12 + $0x80] sm:$0xff] }
 0x541   :  { %6138 = vmatpush.bf16.msra.mxu1 %v9212_v17  ;;  %v7952_v17 = vld [vmem:[#allocation15 + $0x438] sm:$0xf0] }
 0x542   :  { %v7955_v22 = vor.u32 %v9083_v35, %v7952_v17  ;;  %v9203_v17 = vld [vmem:[#allocation15 + $0x7dc] sm:$0xf] }
 0x543   :  { %5487 = vmatpush.bf16.msrb.mxu0 %v8395_v49  ;;  %v8203_v49 = vor.u32 %v9146_v46, %v8200_v36 }
 0x544   :  { %5579 = vmatpush.bf16.msra.mxu3 %v8115_v50  ;;  %v8398_v50 = vld [vmem:[#allocation15 + $0x798] sm:$0xf]  ;;  %6153 = vmatpush.bf16.msrb.mxu2 %v9218_v41 }
 0x545   :  { %6139 = vmatpush.bf16.msra.mxu1 %v9211_v43  ;;  %v5419_v45 = vpop.f32.mrf.mxu2  ;;  %v5328_v8 = vpop.f32.mrf.mxu3  ;;  %v8430_v43 = vld [vmem:[#allocation15 + $0x7d8] sm:$0xf]  ;;  %v8399_v57 = vor.u32 %v9199_v51, %v8398_v50  ;;  %v8368_v50 = vld [vmem:[#allocation15 + $0x778] sm:$0xf0] }
 0x546   :  { %v8431_v14 = vor.u32 %v9207_v48, %v8430_v43  ;;  %v8432_v45 = vld [vmem:[#allocation15 + $0x7f8] sm:$0xf0] }
 0x547   :  { %5488 = vmatpush.bf16.msrb.mxu0 %v8363_v33  ;;  %v8366_v33 = vld [vmem:[#allocation15 + $0x758] sm:$0xf]  ;;  %v8435_v8 = vor.u32 %v9203_v17, %v8432_v45  ;;  %v9195_v43 = vld [vmem:[#allocation15 + $0x79c] sm:$0xf]  ;;  %v9241_v45 = vld [vmem:[%s10735_s12 + $0x108] sm:$0xff] }
 0x548   :  { %5580 = vmatpush.bf16.msra.mxu3 %v8083_v34  ;;  %6154 = vmatpush.bf16.msrb.mxu2 %v9217_v21  ;;  %v9191_v34 = vld [vmem:[#allocation15 + $0x774] sm:$0xf0]  ;;  %v8400_v48 = vld [vmem:[#allocation15 + $0x7b8] sm:$0xf0] }
 0x549   :  { %6140 = vmatpush.bf16.msra.mxu1 %v9210_v52  ;;  %v9230_v52 = vld [vmem:[%s10735_s12 + $0xb0] sm:$0xff]  ;;  %v8367_v13 = vor.u32 %v9191_v34, %v8366_v33  ;;  %v5327_v33 = vadd.f32 %v10527_v15, %v10475_v56 }
 0x54a   :  { %v9179_v51 = vld [vmem:[#allocation15 + $0x71c] sm:$0xf] }
 0x54b   :  { %5489 = vmatpush.bf16.msrb.mxu0 %v8331_v27 }
 0x54c   :  { %5581 = vmatpush.bf16.msra.mxu3 %v8051_v38  ;;  %6155 = vmatpush.bf16.msrb.mxu2 %v9216_v58  ;;  %v8304_v58 = vld [vmem:[#allocation15 + $0x6f8] sm:$0xf0] }
 0x54d   :  { %6141 = vmatpush.bf16.msra.mxu1 %v9209_v31 }
 0x54f   :  { %5490 = vmatpush.bf16.msrb.mxu0 %v8299_v11 }
 0x550   :  { %5582 = vmatpush.bf16.msra.mxu3 %v8019_v19 }
 0x551   :  { %v5404_v42 = vpop.f32.mrf.mxu1  ;;  %6142 = vmatpush.bf16.msra.mxu1 %v9208_v12  ;;  %v3896_v12 = vperm.slane %v10454_v0, 5  ;;  %v9225_v0 = vld [vmem:[%s10735_s12 + $0x88] sm:$0xff] }
 0x552   :  { %v5405_v10 = vadd.f32 %v5404_v42, %v3895_v16  ;;  %v8270_v16 = vld [vmem:[#allocation15 + $0x698] sm:$0xf] }
 0x553   :  { %5491 = vmatpush.bf16.msrb.mxu0 %v8267_v30  ;;  %v8271_v23 = vor.u32 %v9167_v60, %v8270_v16  ;;  %v8238_v42 = vld [vmem:[#allocation15 + $0x658] sm:$0xf] }
 0x554   :  { %v10532_v44 = vadd.f32 %v5417_v9, %v5405_v10  ;;  %5583 = vmatpush.bf16.msra.mxu3 %v7987_v54  ;;  %v8303_v9 = vor.u32 %v9175_v55, %v8302_v5  ;;  %v9159_v30 = vld [vmem:[#allocation15 + $0x674] sm:$0xf0] }
 0x555   :  { %v8239_v29 = vor.u32 %v9159_v30, %v8238_v42  ;;  %v9239_v42 = vld [vmem:[%s10735_s12 + $0xf8] sm:$0xff]  ;;  %v9244_v30 = vld [vmem:[%s10735_s12 + $0x120] sm:$0xff] }
 0x557   :  { %5492 = vmatpush.bf16.msrb.mxu0 %v8235_v32  ;;  %v5275_v32 = vadd.f32 %v10504_v28, %v10468_v7 }
 0x558   :  { %5584 = vmatpush.bf16.msra.mxu3 %v7955_v22 }
 0x559   :  { %v5406_v39 = vpop.f32.mrf.mxu1 }
 0x55a   :  { %v5235_v27 = vpop.f32.mrf.mxu0 }
 0x55b   :  { %5493 = vmatpush.bf16.msrb.mxu0 %v8203_v49  ;;  %5585 = vmatmul.bf16.vlgmr.msra.gmra.mxu3 %v10420_v37  ;;  %v8334_v37 = vld [vmem:[#allocation15 + $0x718] sm:$0xf]  ;;  %v5236_v4 = vadd.f32 %v5235_v27, %v5223_v3  ;;  %v8403_v49 = vor.u32 %v9195_v43, %v8400_v48  ;;  %v9163_v3 = vld [vmem:[#allocation15 + $0x69c] sm:$0xf] }
 0x55c   :  { %6161 = vmatpush.bf16.msrb.mxu3 %v9231_v62  ;;  %v8335_v38 = vor.u32 %v9183_v61, %v8334_v37  ;;  %v9375_v61 = vld [vmem:[#allocation17] sm:$0xff]  ;;  %v8272_v27 = vld [vmem:[#allocation15 + $0x6b8] sm:$0xf0] }
 0x55d   :  { %v5603_v31 = vmax.f32 %v5236_v4, 0.0  ;;  %v5469_v53 = vpop.f32.mrf.mxu2  ;;  %v5378_v19 = vpop.f32.mrf.mxu3  ;;  %v8275_v15 = vor.u32 %v9163_v3, %v8272_v27  ;;  %v3898_v17 = vperm.slane %v9375_v61, 7  ;;  %v9248_v3 = vld [vmem:[%s10735_s12 + $0x140] sm:$0xff] }
 0x55e   :  { %5494 = vmatmul.bf16.vlgmr.msrb.gmra.mxu0 %v10456_v25  ;;  %v10567_v18 = vadd.f32 %v5378_v19, %v10493_v24  ;;  %v8206_v24 = vld [vmem:[#allocation15 + $0x618] sm:$0xf]  ;;  %v8208_v19 = vld [vmem:[#allocation15 + $0x638] sm:$0xf0] }
 0x55f   :  { %5538 = vmatpush.bf16.msra.mxu0 %v8431_v14  ;;  %v5611_v11 = vpack.c.bf16 %v5603_v31, %v5603_v31  ;;  %v8207_v36 = vor.u32 %v9151_v63, %v8206_v24  ;;  %v9187_v14 = vld [vmem:[#allocation15 + $0x75c] sm:$0xf]  ;;  %v9237_v24 = vld [vmem:[%s10735_s12 + $0xe8] sm:$0xff]  ;;  %v9236_v63 = vld [vmem:[%s10735_s12 + $0xe0] sm:$0xff] }
 0x560   :  { %6162 = vmatpush.bf16.msrb.mxu3 %v9230_v52  ;;  %v8371_v28 = vor.u32 %v9187_v14, %v8368_v50  ;;  %v8336_v52 = vld [vmem:[#allocation15 + $0x738] sm:$0xf0]  ;;  %v9233_v14 = vld [vmem:[%s10735_s12 + $0xc8] sm:$0xff] }
 0x561   :  { %6143 = vmatmul.bf16.vlgmr.msra.gmra.mxu1 %v5611_v11  ;;  %v8339_v21 = vor.u32 %v9179_v51, %v8336_v52  ;;  %v9155_v31 = vld [vmem:[#allocation15 + $0x65c] sm:$0xf]  ;;  %v9232_v52 = vld [vmem:[%s10735_s12 + $0xc0] sm:$0xff] }
 0x562   :  { %v5237_v20 = vpop.f32.mrf.mxu0 }
 0x563   :  { %5539 = vmatpush.bf16.msra.mxu0 %v8399_v57  ;;  %v9171_v57 = vld [vmem:[#allocation15 + $0x6dc] sm:$0xf]  ;;  %v9245_v20 = vld [vmem:[%s10735_s12 + $0x128] sm:$0xff] }
 0x564   :  { %6163 = vmatpush.bf16.msrb.mxu3 %v9229_v47  ;;  %v8307_v37 = vor.u32 %v9171_v57, %v8304_v58  ;;  %v9251_v57 = vld [vmem:[%s10735_s12 + $0x158] sm:$0xff]  ;;  %v9250_v58 = vld [vmem:[%s10735_s12 + $0x150] sm:$0xff] }
 0x565   :  { %v5471_v54 = vpop.f32.mrf.mxu2  ;;  %v5380_v35 = vpop.f32.mrf.mxu3 }
 0x566   :  { %v9238_v54 = vld [vmem:[%s10735_s12 + $0xf0] sm:$0xff] }
 0x567   :  { %5540 = vmatpush.bf16.msra.mxu0 %v8367_v13 }
 0x568   :  { %6164 = vmatpush.bf16.msrb.mxu3 %v9228_v26  ;;  %v3897_v26 = vperm.slane %v9375_v61, 6 }
 0x56a   :  { %v5287_v22 = vpop.f32.mrf.mxu0 }
 0x56b   :  { %5541 = vmatpush.bf16.msra.mxu0 %v8335_v38  ;;  %v5288_v41 = vadd.f32 %v5287_v22, %v5275_v32  ;;  %v9247_v38 = vld [vmem:[%s10735_s12 + $0x138] sm:$0xff] }
 0x56c   :  { %6165 = vmatpush.bf16.msrb.mxu3 %v9227_v6  ;;  %6187 = vmatpush.bf16.msrb.mxu1 %v9247_v38  ;;  %v9255_v32 = vld [vmem:[%s10735_s12 + $0x178] sm:$0xff] }
 0x56d   :  { %v5604_v62 = vmax.f32 %v5288_v41, 0.0  ;;  %6200 = vmatpush.bf16.msra.mxu2 %v9255_v32  ;;  %v9234_v41 = vld [vmem:[%s10735_s12 + $0xd0] sm:$0xff] }
 0x56f   :  { %5542 = vmatpush.bf16.msra.mxu0 %v8303_v9  ;;  %v5612_v39 = vpack.c.bf16 %v5604_v62, %v5604_v62  ;;  %v9246_v9 = vld [vmem:[%s10735_s12 + $0x130] sm:$0xff]  ;;  %v9253_v62 = vld [vmem:[%s10735_s12 + $0x168] sm:$0xff] }
 0x570   :  { %6166 = vmatpush.bf16.msrb.mxu3 %v9226_v2  ;;  %6188 = vmatpush.bf16.msrb.mxu1 %v9246_v9  ;;  %v9147_v2 = vld [vmem:[#allocation15 + $0x61c] sm:$0xf]  ;;  %v9257_v9 = vld [vmem:[%s10735_s12 + $0x188] sm:$0xff] }
 0x571   :  { %v5456_v1 = vpop.f32.mrf.mxu1  ;;  %6156 = vmatmul.bf16.vlgmr.msrb.gmra.mxu2 %v5612_v39 }
 0x572   :  { %v5457_v40 = vadd.f32 %v5456_v1, %v3896_v12  ;;  %v5289_v7 = vpop.f32.mrf.mxu0 }
 0x573   :  { %5543 = vmatpush.bf16.msra.mxu0 %v8271_v23 }
 0x574   :  { %v10572_v10 = vadd.f32 %v5469_v53, %v5457_v40  ;;  %6167 = vmatpush.bf16.msrb.mxu3 %v9225_v0  ;;  %v8240_v53 = vld [vmem:[#allocation15 + $0x678] sm:$0xf0]  ;;  %6189 = vmatpush.bf16.msrb.mxu1 %v9245_v20  ;;  %v8211_v40 = vor.u32 %v9147_v2, %v8208_v19  ;;  %v9243_v0 = vld [vmem:[%s10735_s12 + $0x118] sm:$0xff]  ;;  %v9256_v2 = vld [vmem:[%s10735_s12 + $0x180] sm:$0xff] }
 0x575   :  { %v8243_v60 = vor.u32 %v9155_v31, %v8240_v53 }
 0x577   :  { %5544 = vmatpush.bf16.msra.mxu0 %v8239_v29  ;;  %v9242_v29 = vld [vmem:[%s10735_s12 + $0x110] sm:$0xff] }
 0x578   :  { %6168 = vmatpush.bf16.msrb.mxu3 %v9224_v59  ;;  %6190 = vmatpush.bf16.msrb.mxu1 %v9244_v30  ;;  %v9267_v30 = vld [vmem:[%s10735_s12 + $0x1d8] sm:$0xff] }
 0x579   :  { %v5458_v46 = vpop.f32.mrf.mxu1 }
 0x57a   :  { %v5339_v34 = vpop.f32.mrf.mxu0  ;;  %v9240_v46 = vld [vmem:[%s10735_s12 + $0x100] sm:$0xff] }
 0x57b   :  { %5545 = vmatpush.bf16.msra.mxu0 %v8207_v36  ;;  %v5340_v47 = vadd.f32 %v5339_v34, %v5327_v33 }
 0x57c   :  { %6191 = vmatpush.bf16.msrb.mxu1 %v9243_v0  ;;  %v9266_v0 = vld [vmem:[%s10735_s12 + $0x1d0] sm:$0xff] }
 0x57d   :  { %v5521_v13 = vpop.f32.mrf.mxu2  ;;  %v5605_v4 = vmax.f32 %v5340_v47, 0.0 }
 0x57e   :  { %5546 = vmatmul.bf16.vlgmr.msra.gmra.mxu0 %v10456_v25  ;;  %v10585_v5 = vpop.f32.mrf.mxu3 }
 0x57f   :  { %5590 = vmatpush.bf16.msrb.mxu0 %v8435_v8  ;;  %v5613_v55 = vpack.c.bf16 %v5605_v4, %v5605_v4  ;;  %v9254_v8 = vld [vmem:[%s10735_s12 + $0x170] sm:$0xff]  ;;  %v5431_v33 = vadd.f32 %v10585_v5, %v10532_v44  ;;  %v9261_v4 = vld [vmem:[%s10735_s12 + $0x1a8] sm:$0xff] }
 0x580   :  { %6192 = vmatpush.bf16.msrb.mxu1 %v9242_v29  ;;  %6201 = vmatpush.bf16.msra.mxu2 %v9254_v8  ;;  %v9262_v44 = vld [vmem:[%s10735_s12 + $0x1b0] sm:$0xff] }
 0x581   :  { %6169 = vmatmul.bf16.vlgmr.msrb.gmra.mxu3 %v5613_v55  ;;  %v9260_v55 = vld [vmem:[%s10735_s12 + $0x1a0] sm:$0xff] }
 0x582   :  { %v5341_v11 = vpop.f32.mrf.mxu0 }
 0x583   :  { %5591 = vmatpush.bf16.msrb.mxu0 %v8403_v49  ;;  %v9271_v11 = vld [vmem:[%s10735_s12 + $0x1f8] sm:$0xff] }
 0x584   :  { %6193 = vmatpush.bf16.msrb.mxu1 %v9241_v45  ;;  %6202 = vmatpush.bf16.msra.mxu2 %v9253_v62 }
 0x585   :  { %v5523_v16 = vpop.f32.mrf.mxu2 }
 0x586   :  { %v5432_v1 = vpop.f32.mrf.mxu3 }
 0x587   :  { %5592 = vmatpush.bf16.msrb.mxu0 %v8371_v28  ;;  %v9252_v28 = vld [vmem:[%s10735_s12 + $0x160] sm:$0xff]  ;;  %v9269_v1 = vld [vmem:[%s10735_s12 + $0x1e8] sm:$0xff] }
 0x588   :  { %6194 = vmatpush.bf16.msrb.mxu1 %v9240_v46  ;;  %6203 = vmatpush.bf16.msra.mxu2 %v9252_v28 }
 0x58b   :  { %5593 = vmatpush.bf16.msrb.mxu0 %v8339_v21 }
 0x58c   :  { %6204 = vmatpush.bf16.msra.mxu2 %v9251_v57 }
 0x58f   :  { %5594 = vmatpush.bf16.msrb.mxu0 %v8307_v37  ;;  %v9263_v37 = vld [vmem:[%s10735_s12 + $0x1b8] sm:$0xff] }
 0x590   :  { %6205 = vmatpush.bf16.msra.mxu2 %v9250_v58  ;;  %6213 = vmatpush.bf16.msra.mxu3 %v9263_v37 }
 0x591   :  { %v5508_v56 = vpop.f32.mrf.mxu1 }
 0x592   :  { %v5509_v6 = vadd.f32 %v5508_v56, %v3897_v26  ;;  %v9259_v56 = vld [vmem:[%s10735_s12 + $0x198] sm:$0xff] }
 0x593   :  { %5595 = vmatpush.bf16.msrb.mxu0 %v8275_v15  ;;  %v9258_v15 = vld [vmem:[%s10735_s12 + $0x190] sm:$0xff] }
 0x594   :  { %v10590_v12 = vadd.f32 %v5521_v13, %v5509_v6  ;;  %v9249_v13 = vld [vmem:[%s10735_s12 + $0x148] sm:$0xff]  ;;  %6214 = vmatpush.bf16.msra.mxu3 %v9262_v44 }
 0x595   :  { %6206 = vmatpush.bf16.msra.mxu2 %v9249_v13 }
 0x597   :  { %5596 = vmatpush.bf16.msrb.mxu0 %v8243_v60 }
 0x598   :  { %6215 = vmatpush.bf16.msra.mxu3 %v9261_v4 }
 0x599   :  { %v5510_v23 = vpop.f32.mrf.mxu1  ;;  %6207 = vmatpush.bf16.msra.mxu2 %v9248_v3 }
 0x59b   :  { %5597 = vmatpush.bf16.msrb.mxu0 %v8211_v40  ;;  %v5391_v59 = vpop.f32.mrf.mxu0  ;;  %v9268_v40 = vld [vmem:[%s10735_s12 + $0x1e0] sm:$0xff] }
 0x59c   :  { %v5392_v50 = vadd.f32 %v5391_v59, %v10567_v18  ;;  %6216 = vmatpush.bf16.msra.mxu3 %v9260_v55  ;;  %v6239_v55 = vld [vmem:[#allocation20] sm:$0x3] }
 0x59d   :  { %v5573_v35 = vpop.f32.mrf.mxu2 }
 0x59e   :  { %5598 = vmatmul.bf16.vlgmr.msrb.gmra.mxu0 %v10456_v25  ;;  %v9235_v25 = vld [vmem:[%s10735_s12 + $0xd8] sm:$0xff]  ;;  %v5482_v22 = vpop.f32.mrf.mxu3  ;;  %v5606_v21 = vmax.f32 %v5392_v50, 0.0 }
 0x59f   :  { %6174 = vmatpush.bf16.msra.mxu0 %v9239_v42  ;;  %v5483_v6 = vadd.f32 %v5482_v22, %v10572_v10  ;;  %v9270_v10 = vld [vmem:[%s10735_s12 + $0x1f0] sm:$0xff] }
 0x5a0   :  { %v5614_v18 = vpack.c.bf16 %v5606_v21, %v5606_v21  ;;  %6217 = vmatpush.bf16.msra.mxu3 %v9259_v56  ;;  %v6264_v56 = vsel %vm6240_vm5, %v6239_v55, 0.0 }
 0x5a3   :  { %6175 = vmatpush.bf16.msra.mxu0 %v9238_v54  ;;  %v5393_v48 = vpop.f32.mrf.mxu0 }
 0x5a4   :  { %6218 = vmatpush.bf16.msra.mxu3 %v9258_v15 }
 0x5a5   :  { %v5575_v49 = vpop.f32.mrf.mxu2 }
 0x5a6   :  { %v5484_v7 = vpop.f32.mrf.mxu3 }
 0x5a7   :  { %6176 = vmatpush.bf16.msra.mxu0 %v9237_v24 }
 0x5a8   :  { %6219 = vmatpush.bf16.msra.mxu3 %v9257_v9 }
 0x5ab   :  { %6177 = vmatpush.bf16.msra.mxu0 %v9236_v63  ;;  %v9349_v63 = vld [vmem:[#allocation18] ss:$0 sm:$0xff] }
 0x5ac   :  { %6220 = vmatpush.bf16.msra.mxu3 %v9256_v2 }
 0x5af   :  { %6178 = vmatpush.bf16.msra.mxu0 %v9235_v25 }
 0x5b1   :  { %v5560_v36 = vpop.f32.mrf.mxu1 }
 0x5b2   :  { %v5561_v43 = vadd.f32 %v5560_v36, %v3898_v17  ;;  %v9264_v17 = vld [vmem:[%s10735_s12 + $0x1c0] sm:$0xff] }
 0x5b3   :  { %6179 = vmatpush.bf16.msra.mxu0 %v9234_v41 }
 0x5b4   :  { %v10638_v39 = vadd.f32 %v5573_v35, %v5561_v43  ;;  %v9265_v35 = vld [vmem:[%s10735_s12 + $0x1c8] sm:$0xff] }
 0x5b7   :  { %6180 = vmatpush.bf16.msra.mxu0 %v9233_v14 }
 0x5b9   :  { %v5562_v51 = vpop.f32.mrf.mxu1 }
 0x5bb   :  { %6181 = vmatpush.bf16.msra.mxu0 %v9232_v52  ;;  %v5443_v34 = vpop.f32.mrf.mxu0 }
 0x5bc   :  { %v5444_v47 = vadd.f32 %v5443_v34, %v5431_v33 }
 0x5be   :  { %6182 = vmatmul.bf16.vlgmr.msra.gmra.mxu0 %v5614_v18  ;;  %v5607_v61 = vmax.f32 %v5444_v47, 0.0  ;;  %v5534_v26 = vpop.f32.mrf.mxu3 }
 0x5bf   :  { %6226 = vmatpush.bf16.msrb.mxu0 %v9271_v11  ;;  %v5535_v29 = vadd.f32 %v5534_v26, %v10590_v12 }
 0x5c0   :  { %v5615_v27 = vpack.c.bf16 %v5607_v61, %v5607_v61 }
 0x5c2   :  { %6195 = vmatmul.bf16.vlgmr.msrb.gmra.mxu1 %v5615_v27 }
 0x5c3   :  { %v5445_v38 = vpop.f32.mrf.mxu0  ;;  %6227 = vmatpush.bf16.msrb.mxu0 %v9270_v10 }
 0x5c6   :  { %v5536_v5 = vpop.f32.mrf.mxu3 }
 0x5c7   :  { %6228 = vmatpush.bf16.msrb.mxu0 %v9269_v1 }
 0x5cb   :  { %6229 = vmatpush.bf16.msrb.mxu0 %v9268_v40 }
 0x5cf   :  { %6230 = vmatpush.bf16.msrb.mxu0 %v9267_v30 }
 0x5d3   :  { %6231 = vmatpush.bf16.msrb.mxu0 %v9266_v0 }
 0x5d7   :  { %6232 = vmatpush.bf16.msrb.mxu0 %v9265_v35 }
 0x5db   :  { %v5495_v31 = vpop.f32.mrf.mxu0  ;;  %6233 = vmatpush.bf16.msrb.mxu0 %v9264_v17 }
 0x5dc   :  { %v5496_v53 = vadd.f32 %v5495_v31, %v5483_v6 }
 0x5de   :  { %v5608_v16 = vmax.f32 %v5496_v53, 0.0  ;;  %v5586_v60 = vpop.f32.mrf.mxu3  ;;  %v6144_v42 = vpop.f32.mrf.mxu1 }
 0x5df   :  { %v6145_v45 = vadd.f32 %v9349_v63, %v6144_v42  ;;  %v5587_v43 = vadd.f32 %v5586_v60, %v10638_v39 }
 0x5e0   :  { %v5616_v19 = vpack.c.bf16 %v5608_v16, %v5608_v16 }
 0x5e2   :  { %6208 = vmatmul.bf16.vlgmr.msra.gmra.mxu2 %v5616_v19 }
 0x5e3   :  { %v5497_v20 = vpop.f32.mrf.mxu0 }
 0x5e6   :  { %v5588_v23 = vpop.f32.mrf.mxu3  ;;  %v6146_v54 = vpop.f32.mrf.mxu1 }
 0x5f4   :  { %v6157_v22 = vpop.f32.mrf.mxu2 }
 0x5f5   :  { %v6158_v46 = vadd.f32 %v6157_v22, %v6145_v45 }
 0x5fb   :  { %v5547_v24 = vpop.f32.mrf.mxu0 }
 0x5fc   :  { %v5548_v59 = vadd.f32 %v5547_v24, %v5535_v29  ;;  %v6159_v12 = vpop.f32.mrf.mxu2 }
 0x5fe   :  { %v5609_v25 = vmax.f32 %v5548_v59, 0.0 }
 0x600   :  { %v5617_v32 = vpack.c.bf16 %v5609_v25, %v5609_v25 }
 0x602   :  { %6221 = vmatmul.bf16.vlgmr.msra.gmra.mxu3 %v5617_v32 }
 0x603   :  { %v5549_v36 = vpop.f32.mrf.mxu0 }
 0x604   :  { %v6170_v41 = vpop.f32.mrf.mxu3 }
 0x605   :  { %v6171_v8 = vadd.f32 %v6170_v41, %v6158_v46 }
 0x60c   :  { %v6172_v49 = vpop.f32.mrf.mxu3 }
 0x61b   :  { %v5599_v48 = vpop.f32.mrf.mxu0 }
 0x61c   :  { %v5600_v62 = vadd.f32 %v5599_v48, %v5587_v43 }
 0x61e   :  { %v5610_v14 = vmax.f32 %v5600_v62, 0.0 }
 0x620   :  { %v5618_v50 = vpack.c.bf16 %v5610_v14, %v5610_v14 }
 0x622   :  { %6234 = vmatmul.bf16.vlgmr.msrb.gmra.mxu0 %v5618_v50 }
 0x623   :  { %v5601_v7 = vpop.f32.mrf.mxu0 }
 0x63b   :  { %v6183_v28 = vpop.f32.mrf.mxu0 }
 0x63c   :  { %v6184_v51 = vadd.f32 %v6183_v28, %v6171_v8 }
 0x63f   :  { %v6196_v21 = vpop.f32.mrf.mxu1 }
 0x640   :  { %v6197_v57 = vadd.f32 %v6196_v21, %v6184_v51 }
 0x643   :  { %v6185_v52 = vpop.f32.mrf.mxu0 }
 0x647   :  { %v6198_v18 = vpop.f32.mrf.mxu1 }
 0x665   :  { %v6209_v58 = vpop.f32.mrf.mxu2 }
 0x666   :  { %v6210_v13 = vadd.f32 %v6209_v58, %v6197_v57 }
 0x66d   :  { %v6211_v33 = vpop.f32.mrf.mxu2 }
 0x685   :  { %v6222_v34 = vpop.f32.mrf.mxu3 }
 0x686   :  { %v6223_v37 = vadd.f32 %v6222_v34, %v6210_v13 }
 0x68d   :  { %v6224_v47 = vpop.f32.mrf.mxu3 }
 0x69f   :  { %v6235_v39 = vpop.f32.mrf.mxu0 }
 0x6a0   :  { %v6236_v61 = vadd.f32 %v6235_v39, %v6223_v37 }
 0x6a2   :  { %v6241_v26 = vsel %vm6240_vm5, %v6236_v61, -inf }
 0x6a3   :  { %6242 = vmax.xlane.f32.xlu1 %v6241_v26 }
 0x6a7   :  { %v6237_v3 = vpop.f32.mrf.mxu0 }
 0x716   :  { %v6243_v27 = vpop.xlane.xlu1 %6242 }
 0x717   :  { %v6244_v44 = vsub.f32 %v6236_v61, %v6243_v27 }
 0x719   :  { %v6245_v38 = vmul.f32 1.442695, %v6244_v44 }
 0x71b   :  { %9366 = vpow2.f32 %v6245_v38 }
 0x721   :  { %v9367_v4 = vpop.eup %9366 }
 0x722   :  { %v6247_v5 = vsel %vm6240_vm5, %v9367_v4, 0.0 }
 0x723   :  { %6248 = vadd.xlane.f32.xlu2 %v6247_v5 }
 0x72b   :  { %6265 = vadd.xlane.f32.xlu2 %v6264_v56 }
 0x796   :  { %v6249_v15 = vpop.xlane.xlu2 %6248 }
 0x797   :  { %9368 = vrcp.f32 %v6249_v15 }
 0x79d   :  { %v9369_v6 = vpop.eup %9368 }
 0x79e   :  { %v6251_v31 = vmul.f32 %v9369_v6, %v9367_v4  ;;  %v6266_v11 = vpop.xlane.xlu2 %6265 }
 0x79f   :  { %v6267_v16 = vrot.slane %v6266_v11, 4 }
 0x7a0   :  { %v6252_v53 = vmul.f32 %v6251_v31, %v6239_v55 }
 0x7a1   :  { %v6268_v60 = vadd.f32 %v6267_v16, %v6266_v11 }
 0x7a2   :  { %v6253_v9 = vsel %vm6240_vm5, %v6252_v53, 0.0 }
 0x7a3   :  { %6254 = vadd.xlane.f32.xlu0 %v6253_v9  ;;  %v6269_v2 = vrot.slane %v6268_v60, 2 }
 0x7a5   :  { %v6270_v1 = vadd.f32 %v6269_v2, %v6268_v60 }
 0x7a7   :  { %v6271_v42 = vrot.slane %v6270_v1, 1 }
 0x7a9   :  { %v6272_v54 = vadd.f32 %v6271_v42, %v6270_v1 }
 0x816   :  { %v6255_v19 = vpop.xlane.xlu0 %6254 }
 0x817   :  { %v6256_v10 = vrot.slane %v6255_v19, 4 }
 0x819   :  { %v6257_v20 = vadd.f32 %v6256_v10, %v6255_v19 }
 0x81b   :  { %v6258_v23 = vrot.slane %v6257_v20, 2 }
 0x81d   :  { %v6259_v40 = vadd.f32 %v6258_v23, %v6257_v20 }
 0x81f   :  { %v6260_v30 = vrot.slane %v6259_v40, 1 }
 0x821   :  { %v6261_v0 = vadd.f32 %v6260_v30, %v6259_v40 }
 0x823   :  { %9273 = vpush %v6261_v0 }
 0x824   :  { %9275 = vpush %v6272_v54 }
 0x854   :  { %s9274_s12 = spop %9273 }
 0x855   :  { %v6263_v29 = vstv %s9274_s12  ;;  %s9276_s9 = spop %9275 }
 0x856   :  { %9370 = vrcp.f32 %v6263_v29  ;;  %v6274_v24 = vstv %s9276_s9  ;;  %vm6277_vm6 = vcmp.gt.f32.partialorder %v6263_v29, 0.0 }
 0x857   :  { %9372 = vrcp.f32 %v6274_v24 }
 0x85c   :  { %v9371_v63 = vpop.eup %9370 }
 0x85d   :  { %v9373_v59 = vpop.eup %9372  ;;  %v6279_v35 = vmul.f32 %v9371_v63, %v6252_v53 }
 0x85e   :  { %v6276_v25 = vmul.f32 %v9373_v59, %v6239_v55 }
 0x860   :  { %v6282_v17 = vsel %vm6277_vm6, %v6279_v35, %v6276_v25 }
 0x861   :  { %6283 = vst.msk [vmem:[#allocation21] sm:$0x3] %vm6240_vm5, %v6282_v17 }
 0x862   :  { %6294 = dma.vmem_to_hbm [thread:$0]  %s6290_s11, 32, %s6292_s28, [#allocation5]  }
 0x863   :  { %9676 = dma.done.wait [#allocation5], 32  }
 0x864   :  { %9677 = vsyncadd [#allocation5], 4294967264 }
 0x865   :  { %6299 = vsyncpa [#allocation4], 1 }
 0x866   :  { %6300 = vsyncpa [#allocation7], 1 }
 0x867   :  { %6301 = vsyncpa [#allocation10], 1 }
 0x868   :  { %6302 = vsyncpa [#allocation13], 1 }
 0x869   :  { %6303 = vsyncpa [#allocation16], 1 }
 0x86a   :  { %6304 = vsyncpa [#allocation19], 1 }
 0x86b   :  { %6305 = vsyncpa [#allocation5], 1 }

</bundles_post_ra>
